<compile_context>
chip_gen: v5e
topology: v5e:2x2
jax: 0.10.0
libtpu: 0.0.40
codegen_flags: <defaults>
</compile_context>

<pallas_src>
import functools

import jax
import jax.numpy as jnp
import numpy as np
from jax.experimental import pallas as pl
from jax.experimental.pallas import tpu as pltpu

LANE = 128


# -----------------------------------------------------------------------------
# In-kernel helpers
# -----------------------------------------------------------------------------
def _zero_border(ref):
    """Zero the 1-wide spatial border of a (Hp, Wp, C) VMEM scratch.

    NOTE: must run every grid step (each TensorCore has its own scratch under
    dimension_semantics="parallel"); do NOT gate this on program_id.
    """
    hp, wp, c = ref.shape
    dt = ref.dtype
    ref[0:1, :, :] = jnp.zeros((1, wp, c), dt)
    ref[hp - 1:hp, :, :] = jnp.zeros((1, wp, c), dt)
    ref[:, 0:1, :] = jnp.zeros((hp, 1, c), dt)
    ref[:, wp - 1:wp, :] = jnp.zeros((hp, 1, c), dt)


def _conv3x3_tapcat(xpad_ref, w_ref, stride, Ho, Wo):
    """3x3 conv reading an already zero-padded (Hp, Wp, C) bf16 VMEM scratch.

    w_ref: (3, 3*C, Cout) bf16, BN scale pre-folded; (kx, cin) flattened so the
    3 width taps concatenated along channels give one big-K matmul per ky.

    The width-tap concatenation is hoisted out of the ky loop: build one
    (Hp, Wo, 3C) buffer per conv and only row-slice it per ky.
    Returns f32 (Ho*Wo, Cout).
    """
    C = xpad_ref.shape[-1]
    Cout = w_ref.shape[-1]

    if stride == 1:
        taps = [xpad_ref[:, kx:kx + Wo, :] for kx in range(3)]
        cat = jnp.concatenate(taps, axis=-1)                 # (Hp, Wo, 3C)

        def row(ky):
            return cat[ky:ky + Ho]
    else:
        # TODO(synk): stride=2 should go through wrapper-side space-to-depth;
        # this strided-slice path is functional but untuned / untested.
        xpad = xpad_ref[...]
        taps = [xpad[:, kx:kx + stride * (Wo - 1) + 1:stride, :]
                for kx in range(3)]
        cat = jnp.concatenate(taps, axis=-1)

        def row(ky):
            return cat[ky:ky + stride * (Ho - 1) + 1:stride]

    acc = jnp.zeros((Ho * Wo, Cout), jnp.float32)
    for ky in range(3):
        acc = acc + jnp.dot(row(ky).reshape(Ho * Wo, 3 * C), w_ref[ky],
                            preferred_element_type=jnp.float32)
    return acc


# -----------------------------------------------------------------------------
# Fused Bottleneck kernel: one batch element per grid step.
#   conv1(3x3,s)+bn1+relu -> conv2(3x3)+bn2+relu -> conv3(1x1)+bn3+relu
#   -> (+ shortcut [1x1 conv+bn | identity]) -> relu
# -----------------------------------------------------------------------------
def bottleneck_kernel(x_ref, w1_ref, b1_ref, w2_ref, b2_ref, w3_ref, b3_ref,
                      *rest, stride, Ho, Wo, has_proj):
    if has_proj:
        ws_ref, bs_ref, out_ref, xpad_ref, h1pad_ref = rest
    else:
        out_ref, xpad_ref, h1pad_ref = rest

    H, W = x_ref.shape[1], x_ref.shape[2]
    Pp = b1_ref.shape[1]

    # Stage input into a zero-bordered VMEM scratch (halo handled on-chip).
    _zero_border(xpad_ref)
    xpad_ref[1:H + 1, 1:W + 1, :] = x_ref[0]

    # conv1 (3x3, stride) + folded-bn1 bias + relu
    h1 = _conv3x3_tapcat(xpad_ref, w1_ref, stride, Ho, Wo)   # (Ho*Wo, Pp) f32
    h1 = jnp.maximum(h1 + b1_ref[...], 0.0)

    # Stage into zero-bordered scratch so conv2 sees padding=1.
    _zero_border(h1pad_ref)
    h1pad_ref[1:Ho + 1, 1:Wo + 1, :] = (
        h1.reshape(Ho, Wo, Pp).astype(h1pad_ref.dtype))

    # conv2 (3x3, stride 1) + folded-bn2 bias + relu
    h2 = _conv3x3_tapcat(h1pad_ref, w2_ref, 1, Ho, Wo)
    h2 = jnp.maximum(h2 + b2_ref[...], 0.0)

    # conv3 (1x1) + folded-bn3 bias + relu.
    # NOTE: relu happens BEFORE the residual add (module semantics), so conv3
    # and the shortcut projection must stay separate dots.
    h3 = jnp.dot(h2.astype(jnp.bfloat16), w3_ref[...],
                 preferred_element_type=jnp.float32)
    h3 = jnp.maximum(h3 + b3_ref[...], 0.0)                  # (Ho*Wo, Cop)

    # Shortcut read straight from the still-resident x block (not from xpad),
    # so xpad's lifetime stays confined to conv1.
    if stride == 1:
        xs = x_ref[0].reshape(Ho * Wo, x_ref.shape[-1])
    else:
        xs = x_ref[0][::stride, ::stride, :].reshape(Ho * Wo, x_ref.shape[-1])
    if has_proj:
        sc = jnp.dot(xs, ws_ref[...],
                     preferred_element_type=jnp.float32) + bs_ref[...]
    else:
        sc = xs.astype(jnp.float32)

    out = jnp.maximum(h3 + sc, 0.0)
    # bf16 store: halves HBM write-back traffic and the output VMEM buffers.
    out_ref[0] = out.reshape(Ho, Wo, out.shape[-1]).astype(out_ref.dtype)


# -----------------------------------------------------------------------------
# Wrapper: NCHW in / NCHW out, BN folding, channel padding, pallas_call.
# -----------------------------------------------------------------------------
def _fold_bn(gamma, beta, mean, var, eps=1e-5):
    scale = gamma / jnp.sqrt(var + eps)
    shift = beta - mean * scale
    return scale.astype(jnp.float32), shift.astype(jnp.float32)


def _rup(c, m=LANE):
    return ((c + m - 1) // m) * m


def _pad_axis(a, axis, target):
    pad = target - a.shape[axis]
    if pad == 0:
        return a
    widths = [(0, 0)] * a.ndim
    widths[axis] = (0, pad)
    return jnp.pad(a, widths)


def _full_spec(shape):
    nd = len(shape)
    return pl.BlockSpec(shape, lambda n, _nd=nd: (0,) * _nd)


def _vmem_limit_bytes():
    """Generation-aware VMEM limit: 75% of physical, capped at ~100 MiB."""
    cap = 128 * 1024 * 1024
    try:
        info = pltpu.get_tpu_info()
        cap = int(getattr(info, "vmem_capacity_bytes", cap))
    except Exception:
        pass
    return int(min(cap * 3 // 4, 100 * 1024 * 1024))


def bottleneck_forward(x_nchw, params, *, stride=1):
    expansion = 4
    N, Cin, H, W = x_nchw.shape
    planes = params["w1"].shape[0]
    Cout = expansion * planes
    Ho = (H - 1) // stride + 1
    Wo = (W - 1) // stride + 1

    Cin_p, P_p, Cout_p = _rup(Cin), _rup(planes), _rup(Cout)
    has_proj = (stride != 1) or (Cin != Cout)

    # Activations: NCHW -> NHWC (channels on lanes), bf16, channel-pad to 128.
    x = jnp.transpose(x_nchw, (0, 2, 3, 1)).astype(jnp.bfloat16)
    x = _pad_axis(x, 3, Cin_p)

    s1, b1 = _fold_bn(*params["bn1"])
    s2, b2 = _fold_bn(*params["bn2"])
    s3, b3 = _fold_bn(*params["bn3"])

    # conv1: OIHW -> (ky, kx, cin, cout), fold BN scale, pad, flatten (kx, cin).
    w1 = jnp.transpose(params["w1"], (2, 3, 1, 0)) * s1[None, None, None, :]
    w1 = _pad_axis(_pad_axis(w1, 2, Cin_p), 3, P_p).astype(jnp.bfloat16)
    w1 = w1.reshape(3, 3 * Cin_p, P_p)
    b1 = _pad_axis(b1, 0, P_p)[None, :]

    w2 = jnp.transpose(params["w2"], (2, 3, 1, 0)) * s2[None, None, None, :]
    w2 = _pad_axis(_pad_axis(w2, 2, P_p), 3, P_p).astype(jnp.bfloat16)
    w2 = w2.reshape(3, 3 * P_p, P_p)
    b2 = _pad_axis(b2, 0, P_p)[None, :]

    w3 = jnp.transpose(params["w3"][:, :, 0, 0], (1, 0)) * s3[None, :]
    w3 = _pad_axis(_pad_axis(w3, 0, P_p), 1, Cout_p).astype(jnp.bfloat16)
    b3 = _pad_axis(b3, 0, Cout_p)[None, :]

    operands = [x, w1, b1, w2, b2, w3, b3]
    in_specs = [
        pl.BlockSpec((1, H, W, Cin_p), lambda n: (n, 0, 0, 0)),
        _full_spec(w1.shape), _full_spec(b1.shape),
        _full_spec(w2.shape), _full_spec(b2.shape),
        _full_spec(w3.shape), _full_spec(b3.shape),
    ]
    if has_proj:
        ss, bs = _fold_bn(*params["bns"])
        ws = jnp.transpose(params["ws"][:, :, 0, 0], (1, 0)) * ss[None, :]
        ws = _pad_axis(_pad_axis(ws, 0, Cin_p), 1, Cout_p).astype(jnp.bfloat16)
        bs = _pad_axis(bs, 0, Cout_p)[None, :]
        operands += [ws, bs]
        in_specs += [_full_spec(ws.shape), _full_spec(bs.shape)]

    kernel = functools.partial(bottleneck_kernel, stride=stride, Ho=Ho, Wo=Wo,
                               has_proj=has_proj)

    out_p = pl.pallas_call(
        kernel,
        out_shape=jax.ShapeDtypeStruct((N, Ho, Wo, Cout_p), jnp.bfloat16),
        grid_spec=pltpu.PrefetchScalarGridSpec(
            num_scalar_prefetch=0,
            grid=(N,),
            in_specs=in_specs,
            out_specs=pl.BlockSpec((1, Ho, Wo, Cout_p), lambda n: (n, 0, 0, 0)),
            scratch_shapes=[
                pltpu.VMEM((H + 2, W + 2, Cin_p), jnp.bfloat16),   # padded input
                pltpu.VMEM((Ho + 2, Wo + 2, P_p), jnp.bfloat16),   # padded h1
            ],
        ),
        compiler_params=pltpu.CompilerParams(
            dimension_semantics=("parallel",),
            vmem_limit_bytes=_vmem_limit_bytes(),
        ),
    )(*operands)

    out = out_p[..., :Cout]                     # drop padded output channels
    out = jnp.transpose(out, (0, 3, 1, 2))      # back to NCHW
    # Upcast outside the kernel to preserve the module's f32 interface.
    return out.astype(jnp.float32)


# -----------------------------------------------------------------------------
# Pure-JAX reference (mirrors the PyTorch module in eval mode).
# -----------------------------------------------------------------------------
def _conv2d_ref(x, w, stride, padding):
    return jax.lax.conv_general_dilated(
        x, w, (stride, stride), [(padding, padding), (padding, padding)],
        dimension_numbers=("NCHW", "OIHW", "NCHW"))


def _bn_ref(x, gamma, beta, mean, var, eps=1e-5):
    s = gamma / jnp.sqrt(var + eps)
    return x * s[None, :, None, None] + (beta - mean * s)[None, :, None, None]


def bottleneck_ref(x, params, *, stride=1):
    out = jax.nn.relu(_bn_ref(_conv2d_ref(x, params["w1"], stride, 1), *params["bn1"]))
    out = jax.nn.relu(_bn_ref(_conv2d_ref(out, params["w2"], 1, 1), *params["bn2"]))
    out = jax.nn.relu(_bn_ref(_conv2d_ref(out, params["w3"], 1, 0), *params["bn3"]))
    Cin, Cout = x.shape[1], params["w3"].shape[0]
    if stride != 1 or Cin != Cout:
        sc = _bn_ref(_conv2d_ref(x, params["ws"], stride, 0), *params["bns"])
    else:
        sc = x
    return jax.nn.relu(out + sc)


# -----------------------------------------------------------------------------
def _make_params(key, in_planes, planes, expansion=4):
    out_planes = expansion * planes
    ks = jax.random.split(key, 20)

    def bn_params(k, c):
        k1, k2, k3, k4 = jax.random.split(k, 4)
        gamma = jax.random.uniform(k1, (c,), jnp.float32, 0.5, 1.5)
        beta = 0.1 * jax.random.normal(k2, (c,), jnp.float32)
        mean = 0.1 * jax.random.normal(k3, (c,), jnp.float32)
        var = jax.random.uniform(k4, (c,), jnp.float32, 0.5, 1.5)
        return (gamma, beta, mean, var)

    return {
        "w1": 0.1 * jax.random.normal(ks[0], (planes, in_planes, 3, 3), jnp.float32),
        "bn1": bn_params(ks[1], planes),
        "w2": 0.1 * jax.random.normal(ks[2], (planes, planes, 3, 3), jnp.float32),
        "bn2": bn_params(ks[3], planes),
        "w3": 0.1 * jax.random.normal(ks[4], (out_planes, planes, 1, 1), jnp.float32),
        "bn3": bn_params(ks[5], out_planes),
        "ws": 0.1 * jax.random.normal(ks[6], (out_planes, in_planes, 1, 1), jnp.float32),
        "bns": bn_params(ks[7], out_planes),
    }


if __name__ == "__main__":
    key = jax.random.PRNGKey(0)

    # Config 1: projection shortcut (in_planes != expansion*planes), stride=1.
    N, in_planes, planes, H, W = 2, 4, 4, 16, 16
    kx, kp, key = jax.random.split(key, 3)
    x = jax.random.normal(kx, (N, in_planes, H, W), jnp.float32)   # NCHW
    params = _make_params(kp, in_planes, planes)
    out = jax.block_until_ready(bottleneck_forward(x, params, stride=1))
    ref = jax.block_until_ready(bottleneck_ref(x, params, stride=1))
    # bf16 MXU inputs + bf16 output store -> relaxed tolerance vs f32 reference.
    np.testing.assert_allclose(np.asarray(out), np.asarray(ref),
                               rtol=2e-2, atol=2e-2)

    # Config 2: identity shortcut (in_planes == expansion*planes), stride=1.
    kx2, kp2 = jax.random.split(key)
    x2 = jax.random.normal(kx2, (2, 16, 8, 8), jnp.float32)
    params2 = _make_params(kp2, 16, 4)
    out2 = jax.block_until_ready(bottleneck_forward(x2, params2, stride=1))
    ref2 = jax.block_until_ready(bottleneck_ref(x2, params2, stride=1))
    np.testing.assert_allclose(np.asarray(out2), np.asarray(ref2),
                               rtol=2e-2, atol=2e-2)

    print("KERNEL_OK")
</pallas_src>

<mosaic_0001>
module attributes {stable_mosaic.version = 11 : i64} {
  func.func @bottleneck_kernel(%arg0: i32, %arg1: memref<1x16x16x128xbf16, #tpu.memory_space<vmem>>, %arg2: memref<3x384x128xbf16, #tpu.memory_space<vmem>>, %arg3: memref<1x128xf32, #tpu.memory_space<vmem>>, %arg4: memref<3x384x128xbf16, #tpu.memory_space<vmem>>, %arg5: memref<1x128xf32, #tpu.memory_space<vmem>>, %arg6: memref<128x128xbf16, #tpu.memory_space<vmem>>, %arg7: memref<1x128xf32, #tpu.memory_space<vmem>>, %arg8: memref<128x128xbf16, #tpu.memory_space<vmem>>, %arg9: memref<1x128xf32, #tpu.memory_space<vmem>>, %arg10: memref<1x16x16x128xbf16, #tpu.memory_space<vmem>>, %arg11: memref<18x18x128xbf16, #tpu.memory_space<vmem>>, %arg12: memref<18x18x128xbf16, #tpu.memory_space<vmem>>) attributes {dimension_semantics = [#tpu.dimension_semantics<parallel>], iteration_bounds = array<i64: 2>, scalar_prefetch = 0 : i64, scratch_operands = 2 : i64, tpu.core_type = #tpu.core_type<tc>, window_params = [{transform_indices = @transform_0, window_bounds = array<i64: 1, 16, 16, 128>}, {pipeline_mode = #tpu.pipeline_mode<synchronous>, transform_indices = @transform_1, window_bounds = array<i64: 3, 384, 128>}, {pipeline_mode = #tpu.pipeline_mode<synchronous>, transform_indices = @transform_2, window_bounds = array<i64: 1, 128>}, {pipeline_mode = #tpu.pipeline_mode<synchronous>, transform_indices = @transform_3, window_bounds = array<i64: 3, 384, 128>}, {pipeline_mode = #tpu.pipeline_mode<synchronous>, transform_indices = @transform_4, window_bounds = array<i64: 1, 128>}, {pipeline_mode = #tpu.pipeline_mode<synchronous>, transform_indices = @transform_5, window_bounds = array<i64: 128, 128>}, {pipeline_mode = #tpu.pipeline_mode<synchronous>, transform_indices = @transform_6, window_bounds = array<i64: 1, 128>}, {pipeline_mode = #tpu.pipeline_mode<synchronous>, transform_indices = @transform_7, window_bounds = array<i64: 128, 128>}, {pipeline_mode = #tpu.pipeline_mode<synchronous>, transform_indices = @transform_8, window_bounds = array<i64: 1, 128>}, {transform_indices = @transform_9, window_bounds = array<i64: 1, 16, 16, 128>}]} {
    %cst = arith.constant 0.000000e+00 : bf16
    %0 = vector.broadcast %cst : bf16 to vector<1x18x128xbf16>
    %c0 = arith.constant 0 : index
    %c0_0 = arith.constant 0 : index
    %c0_1 = arith.constant 0 : index
    %1 = vector.load %arg11[%c0, %c0_0, %c0_1] : memref<18x18x128xbf16, #tpu.memory_space<vmem>>, vector<1x18x128xbf16>
    tpu.vector_store %arg11[%c0, %c0_0, %c0_1], %0 {strides = array<i32>} : memref<18x18x128xbf16, #tpu.memory_space<vmem>>, vector<1x18x128xbf16>,
    %cst_2 = arith.constant 0.000000e+00 : bf16
    %2 = vector.broadcast %cst_2 : bf16 to vector<1x18x128xbf16>
    %c17 = arith.constant 17 : index
    %c0_3 = arith.constant 0 : index
    %c0_4 = arith.constant 0 : index
    %3 = vector.load %arg11[%c17, %c0_3, %c0_4] : memref<18x18x128xbf16, #tpu.memory_space<vmem>>, vector<1x18x128xbf16>
    tpu.vector_store %arg11[%c17, %c0_3, %c0_4], %2 {strides = array<i32>} : memref<18x18x128xbf16, #tpu.memory_space<vmem>>, vector<1x18x128xbf16>,
    %cst_5 = arith.constant 0.000000e+00 : bf16
    %4 = vector.broadcast %cst_5 : bf16 to vector<18x1x128xbf16>
    %c0_6 = arith.constant 0 : index
    %c0_7 = arith.constant 0 : index
    %c0_8 = arith.constant 0 : index
    %5 = vector.load %arg11[%c0_6, %c0_7, %c0_8] : memref<18x18x128xbf16, #tpu.memory_space<vmem>>, vector<18x1x128xbf16>
    tpu.vector_store %arg11[%c0_6, %c0_7, %c0_8], %4 {strides = array<i32>} : memref<18x18x128xbf16, #tpu.memory_space<vmem>>, vector<18x1x128xbf16>,
    %cst_9 = arith.constant 0.000000e+00 : bf16
    %6 = vector.broadcast %cst_9 : bf16 to vector<18x1x128xbf16>
    %c0_10 = arith.constant 0 : index
    %c17_11 = arith.constant 17 : index
    %c0_12 = arith.constant 0 : index
    %7 = vector.load %arg11[%c0_10, %c17_11, %c0_12] : memref<18x18x128xbf16, #tpu.memory_space<vmem>>, vector<18x1x128xbf16>
    tpu.vector_store %arg11[%c0_10, %c17_11, %c0_12], %6 {strides = array<i32>} : memref<18x18x128xbf16, #tpu.memory_space<vmem>>, vector<18x1x128xbf16>,
    %c0_13 = arith.constant 0 : index
    %c0_14 = arith.constant 0 : index
    %c0_15 = arith.constant 0 : index
    %c0_16 = arith.constant 0 : index
    %8 = vector.load %arg1[%c0_13, %c0_14, %c0_15, %c0_16] : memref<1x16x16x128xbf16, #tpu.memory_space<vmem>>, vector<1x16x16x128xbf16>
    %9 = vector.shape_cast %8 : vector<1x16x16x128xbf16> to vector<16x16x128xbf16>
    %c1 = arith.constant 1 : index
    %c1_17 = arith.constant 1 : index
    %c0_18 = arith.constant 0 : index
    %10 = vector.load %arg11[%c1, %c1_17, %c0_18] : memref<18x18x128xbf16, #tpu.memory_space<vmem>>, vector<16x16x128xbf16>
    tpu.vector_store %arg11[%c1, %c1_17, %c0_18], %9 {strides = array<i32>} : memref<18x18x128xbf16, #tpu.memory_space<vmem>>, vector<16x16x128xbf16>,
    %c0_19 = arith.constant 0 : index
    %c0_20 = arith.constant 0 : index
    %c0_21 = arith.constant 0 : index
    %11 = vector.load %arg11[%c0_19, %c0_20, %c0_21] : memref<18x18x128xbf16, #tpu.memory_space<vmem>>, vector<18x16x128xbf16>
    %c0_22 = arith.constant 0 : index
    %c1_23 = arith.constant 1 : index
    %c0_24 = arith.constant 0 : index
    %12 = vector.load %arg11[%c0_22, %c1_23, %c0_24] : memref<18x18x128xbf16, #tpu.memory_space<vmem>>, vector<18x16x128xbf16>
    %c0_25 = arith.constant 0 : index
    %c2 = arith.constant 2 : index
    %c0_26 = arith.constant 0 : index
    %13 = vector.load %arg11[%c0_25, %c2, %c0_26] : memref<18x18x128xbf16, #tpu.memory_space<vmem>>, vector<18x16x128xbf16>
    %14 = tpu.concatenate %11, %12, %13 in 2 : vector<18x16x128xbf16>, vector<18x16x128xbf16>, vector<18x16x128xbf16> -> vector<18x16x384xbf16>
    %cst_27 = arith.constant 0.000000e+00 : f32
    %15 = vector.broadcast %cst_27 : f32 to vector<256x128xf32>
    %16 = vector.extract_strided_slice %14 {offsets = [0, 0, 0], sizes = [16, 16, 384], strides = [1, 1, 1]} : vector<18x16x384xbf16> to vector<16x16x384xbf16>
    %17 = vector.shape_cast %16 : vector<16x16x384xbf16> to vector<256x384xbf16>
    %c0_28 = arith.constant 0 : index
    %c0_29 = arith.constant 0 : index
    %c0_30 = arith.constant 0 : index
    %18 = vector.load %arg2[%c0_28, %c0_29, %c0_30] : memref<3x384x128xbf16, #tpu.memory_space<vmem>>, vector<1x384x128xbf16>
    %19 = vector.shape_cast %18 : vector<1x384x128xbf16> to vector<384x128xbf16>
    %cst_31 = arith.constant dense<0.000000e+00> : vector<256x128xf32>
    %20 = tpu.matmul %17, %19, %cst_31 {dimension_numbers = #tpu.dot_dimension_numbers<[1], [0], [0], [1], [0, 0, 1, 1], [], []>} : vector<256x384xbf16>, vector<384x128xbf16>, vector<256x128xf32> -> vector<256x128xf32>
    %21 = arith.addf %15, %20 : vector<256x128xf32>
    %22 = vector.extract_strided_slice %14 {offsets = [1, 0, 0], sizes = [16, 16, 384], strides = [1, 1, 1]} : vector<18x16x384xbf16> to vector<16x16x384xbf16>
    %23 = vector.shape_cast %22 : vector<16x16x384xbf16> to vector<256x384xbf16>
    %c1_32 = arith.constant 1 : index
    %c0_33 = arith.constant 0 : index
    %c0_34 = arith.constant 0 : index
    %24 = vector.load %arg2[%c1_32, %c0_33, %c0_34] : memref<3x384x128xbf16, #tpu.memory_space<vmem>>, vector<1x384x128xbf16>
    %25 = vector.shape_cast %24 : vector<1x384x128xbf16> to vector<384x128xbf16>
    %cst_35 = arith.constant dense<0.000000e+00> : vector<256x128xf32>
    %26 = tpu.matmul %23, %25, %cst_35 {dimension_numbers = #tpu.dot_dimension_numbers<[1], [0], [0], [1], [0, 0, 1, 1], [], []>} : vector<256x384xbf16>, vector<384x128xbf16>, vector<256x128xf32> -> vector<256x128xf32>
    %27 = arith.addf %21, %26 : vector<256x128xf32>
    %28 = vector.extract_strided_slice %14 {offsets = [2, 0, 0], sizes = [16, 16, 384], strides = [1, 1, 1]} : vector<18x16x384xbf16> to vector<16x16x384xbf16>
    %29 = vector.shape_cast %28 : vector<16x16x384xbf16> to vector<256x384xbf16>
    %c2_36 = arith.constant 2 : index
    %c0_37 = arith.constant 0 : index
    %c0_38 = arith.constant 0 : index
    %30 = vector.load %arg2[%c2_36, %c0_37, %c0_38] : memref<3x384x128xbf16, #tpu.memory_space<vmem>>, vector<1x384x128xbf16>
    %31 = vector.shape_cast %30 : vector<1x384x128xbf16> to vector<384x128xbf16>
    %cst_39 = arith.constant dense<0.000000e+00> : vector<256x128xf32>
    %32 = tpu.matmul %29, %31, %cst_39 {dimension_numbers = #tpu.dot_dimension_numbers<[1], [0], [0], [1], [0, 0, 1, 1], [], []>} : vector<256x384xbf16>, vector<384x128xbf16>, vector<256x128xf32> -> vector<256x128xf32>
    %33 = arith.addf %27, %32 : vector<256x128xf32>
    %c0_40 = arith.constant 0 : index
    %c0_41 = arith.constant 0 : index
    %34 = vector.load %arg3[%c0_40, %c0_41] : memref<1x128xf32, #tpu.memory_space<vmem>>, vector<1x128xf32>
    %35 = vector.broadcast %34 : vector<1x128xf32> to vector<256x128xf32>
    %36 = arith.addf %33, %35 : vector<256x128xf32>
    %cst_42 = arith.constant 0.000000e+00 : f32
    %37 = vector.broadcast %cst_42 : f32 to vector<256x128xf32>
    %38 = arith.maximumf %36, %37 : vector<256x128xf32>
    %cst_43 = arith.constant 0.000000e+00 : bf16
    %39 = vector.broadcast %cst_43 : bf16 to vector<1x18x128xbf16>
    %c0_44 = arith.constant 0 : index
    %c0_45 = arith.constant 0 : index
    %c0_46 = arith.constant 0 : index
    %40 = vector.load %arg12[%c0_44, %c0_45, %c0_46] : memref<18x18x128xbf16, #tpu.memory_space<vmem>>, vector<1x18x128xbf16>
    tpu.vector_store %arg12[%c0_44, %c0_45, %c0_46], %39 {strides = array<i32>} : memref<18x18x128xbf16, #tpu.memory_space<vmem>>, vector<1x18x128xbf16>,
    %cst_47 = arith.constant 0.000000e+00 : bf16
    %41 = vector.broadcast %cst_47 : bf16 to vector<1x18x128xbf16>
    %c17_48 = arith.constant 17 : index
    %c0_49 = arith.constant 0 : index
    %c0_50 = arith.constant 0 : index
    %42 = vector.load %arg12[%c17_48, %c0_49, %c0_50] : memref<18x18x128xbf16, #tpu.memory_space<vmem>>, vector<1x18x128xbf16>
    tpu.vector_store %arg12[%c17_48, %c0_49, %c0_50], %41 {strides = array<i32>} : memref<18x18x128xbf16, #tpu.memory_space<vmem>>, vector<1x18x128xbf16>,
    %cst_51 = arith.constant 0.000000e+00 : bf16
    %43 = vector.broadcast %cst_51 : bf16 to vector<18x1x128xbf16>
    %c0_52 = arith.constant 0 : index
    %c0_53 = arith.constant 0 : index
    %c0_54 = arith.constant 0 : index
    %44 = vector.load %arg12[%c0_52, %c0_53, %c0_54] : memref<18x18x128xbf16, #tpu.memory_space<vmem>>, vector<18x1x128xbf16>
    tpu.vector_store %arg12[%c0_52, %c0_53, %c0_54], %43 {strides = array<i32>} : memref<18x18x128xbf16, #tpu.memory_space<vmem>>, vector<18x1x128xbf16>,
    %cst_55 = arith.constant 0.000000e+00 : bf16
    %45 = vector.broadcast %cst_55 : bf16 to vector<18x1x128xbf16>
    %c0_56 = arith.constant 0 : index
    %c17_57 = arith.constant 17 : index
    %c0_58 = arith.constant 0 : index
    %46 = vector.load %arg12[%c0_56, %c17_57, %c0_58] : memref<18x18x128xbf16, #tpu.memory_space<vmem>>, vector<18x1x128xbf16>
    tpu.vector_store %arg12[%c0_56, %c17_57, %c0_58], %45 {strides = array<i32>} : memref<18x18x128xbf16, #tpu.memory_space<vmem>>, vector<18x1x128xbf16>,
    %47 = vector.shape_cast %38 : vector<256x128xf32> to vector<16x16x128xf32>
    %48 = arith.truncf %47 : vector<16x16x128xf32> to vector<16x16x128xbf16>
    %c1_59 = arith.constant 1 : index
    %c1_60 = arith.constant 1 : index
    %c0_61 = arith.constant 0 : index
    %49 = vector.load %arg12[%c1_59, %c1_60, %c0_61] : memref<18x18x128xbf16, #tpu.memory_space<vmem>>, vector<16x16x128xbf16>
    tpu.vector_store %arg12[%c1_59, %c1_60, %c0_61], %48 {strides = array<i32>} : memref<18x18x128xbf16, #tpu.memory_space<vmem>>, vector<16x16x128xbf16>,
    %c0_62 = arith.constant 0 : index
    %c0_63 = arith.constant 0 : index
    %c0_64 = arith.constant 0 : index
    %50 = vector.load %arg12[%c0_62, %c0_63, %c0_64] : memref<18x18x128xbf16, #tpu.memory_space<vmem>>, vector<18x16x128xbf16>
    %c0_65 = arith.constant 0 : index
    %c1_66 = arith.constant 1 : index
    %c0_67 = arith.constant 0 : index
    %51 = vector.load %arg12[%c0_65, %c1_66, %c0_67] : memref<18x18x128xbf16, #tpu.memory_space<vmem>>, vector<18x16x128xbf16>
    %c0_68 = arith.constant 0 : index
    %c2_69 = arith.constant 2 : index
    %c0_70 = arith.constant 0 : index
    %52 = vector.load %arg12[%c0_68, %c2_69, %c0_70] : memref<18x18x128xbf16, #tpu.memory_space<vmem>>, vector<18x16x128xbf16>
    %53 = tpu.concatenate %50, %51, %52 in 2 : vector<18x16x128xbf16>, vector<18x16x128xbf16>, vector<18x16x128xbf16> -> vector<18x16x384xbf16>
    %cst_71 = arith.constant 0.000000e+00 : f32
    %54 = vector.broadcast %cst_71 : f32 to vector<256x128xf32>
    %55 = vector.extract_strided_slice %53 {offsets = [0, 0, 0], sizes = [16, 16, 384], strides = [1, 1, 1]} : vector<18x16x384xbf16> to vector<16x16x384xbf16>
    %56 = vector.shape_cast %55 : vector<16x16x384xbf16> to vector<256x384xbf16>
    %c0_72 = arith.constant 0 : index
    %c0_73 = arith.constant 0 : index
    %c0_74 = arith.constant 0 : index
    %57 = vector.load %arg4[%c0_72, %c0_73, %c0_74] : memref<3x384x128xbf16, #tpu.memory_space<vmem>>, vector<1x384x128xbf16>
    %58 = vector.shape_cast %57 : vector<1x384x128xbf16> to vector<384x128xbf16>
    %cst_75 = arith.constant dense<0.000000e+00> : vector<256x128xf32>
    %59 = tpu.matmul %56, %58, %cst_75 {dimension_numbers = #tpu.dot_dimension_numbers<[1], [0], [0], [1], [0, 0, 1, 1], [], []>} : vector<256x384xbf16>, vector<384x128xbf16>, vector<256x128xf32> -> vector<256x128xf32>
    %60 = arith.addf %54, %59 : vector<256x128xf32>
    %61 = vector.extract_strided_slice %53 {offsets = [1, 0, 0], sizes = [16, 16, 384], strides = [1, 1, 1]} : vector<18x16x384xbf16> to vector<16x16x384xbf16>
    %62 = vector.shape_cast %61 : vector<16x16x384xbf16> to vector<256x384xbf16>
    %c1_76 = arith.constant 1 : index
    %c0_77 = arith.constant 0 : index
    %c0_78 = arith.constant 0 : index
    %63 = vector.load %arg4[%c1_76, %c0_77, %c0_78] : memref<3x384x128xbf16, #tpu.memory_space<vmem>>, vector<1x384x128xbf16>
    %64 = vector.shape_cast %63 : vector<1x384x128xbf16> to vector<384x128xbf16>
    %cst_79 = arith.constant dense<0.000000e+00> : vector<256x128xf32>
    %65 = tpu.matmul %62, %64, %cst_79 {dimension_numbers = #tpu.dot_dimension_numbers<[1], [0], [0], [1], [0, 0, 1, 1], [], []>} : vector<256x384xbf16>, vector<384x128xbf16>, vector<256x128xf32> -> vector<256x128xf32>
    %66 = arith.addf %60, %65 : vector<256x128xf32>
    %67 = vector.extract_strided_slice %53 {offsets = [2, 0, 0], sizes = [16, 16, 384], strides = [1, 1, 1]} : vector<18x16x384xbf16> to vector<16x16x384xbf16>
    %68 = vector.shape_cast %67 : vector<16x16x384xbf16> to vector<256x384xbf16>
    %c2_80 = arith.constant 2 : index
    %c0_81 = arith.constant 0 : index
    %c0_82 = arith.constant 0 : index
    %69 = vector.load %arg4[%c2_80, %c0_81, %c0_82] : memref<3x384x128xbf16, #tpu.memory_space<vmem>>, vector<1x384x128xbf16>
    %70 = vector.shape_cast %69 : vector<1x384x128xbf16> to vector<384x128xbf16>
    %cst_83 = arith.constant dense<0.000000e+00> : vector<256x128xf32>
    %71 = tpu.matmul %68, %70, %cst_83 {dimension_numbers = #tpu.dot_dimension_numbers<[1], [0], [0], [1], [0, 0, 1, 1], [], []>} : vector<256x384xbf16>, vector<384x128xbf16>, vector<256x128xf32> -> vector<256x128xf32>
    %72 = arith.addf %66, %71 : vector<256x128xf32>
    %c0_84 = arith.constant 0 : index
    %c0_85 = arith.constant 0 : index
    %73 = vector.load %arg5[%c0_84, %c0_85] : memref<1x128xf32, #tpu.memory_space<vmem>>, vector<1x128xf32>
    %74 = vector.broadcast %73 : vector<1x128xf32> to vector<256x128xf32>
    %75 = arith.addf %72, %74 : vector<256x128xf32>
    %cst_86 = arith.constant 0.000000e+00 : f32
    %76 = vector.broadcast %cst_86 : f32 to vector<256x128xf32>
    %77 = arith.maximumf %75, %76 : vector<256x128xf32>
    %78 = arith.truncf %77 : vector<256x128xf32> to vector<256x128xbf16>
    %c0_87 = arith.constant 0 : index
    %c0_88 = arith.constant 0 : index
    %79 = vector.load %arg6[%c0_87, %c0_88] : memref<128x128xbf16, #tpu.memory_space<vmem>>, vector<128x128xbf16>
    %cst_89 = arith.constant dense<0.000000e+00> : vector<256x128xf32>
    %80 = tpu.matmul %78, %79, %cst_89 {dimension_numbers = #tpu.dot_dimension_numbers<[1], [0], [0], [1], [0, 0, 1, 1], [], []>} : vector<256x128xbf16>, vector<128x128xbf16>, vector<256x128xf32> -> vector<256x128xf32>
    %c0_90 = arith.constant 0 : index
    %c0_91 = arith.constant 0 : index
    %81 = vector.load %arg7[%c0_90, %c0_91] : memref<1x128xf32, #tpu.memory_space<vmem>>, vector<1x128xf32>
    %82 = vector.broadcast %81 : vector<1x128xf32> to vector<256x128xf32>
    %83 = arith.addf %80, %82 : vector<256x128xf32>
    %cst_92 = arith.constant 0.000000e+00 : f32
    %84 = vector.broadcast %cst_92 : f32 to vector<256x128xf32>
    %85 = arith.maximumf %83, %84 : vector<256x128xf32>
    %c0_93 = arith.constant 0 : index
    %c0_94 = arith.constant 0 : index
    %c0_95 = arith.constant 0 : index
    %c0_96 = arith.constant 0 : index
    %86 = vector.load %arg1[%c0_93, %c0_94, %c0_95, %c0_96] : memref<1x16x16x128xbf16, #tpu.memory_space<vmem>>, vector<1x16x16x128xbf16>
    %87 = vector.shape_cast %86 : vector<1x16x16x128xbf16> to vector<16x16x128xbf16>
    %88 = vector.shape_cast %87 : vector<16x16x128xbf16> to vector<256x128xbf16>
    %c0_97 = arith.constant 0 : index
    %c0_98 = arith.constant 0 : index
    %89 = vector.load %arg8[%c0_97, %c0_98] : memref<128x128xbf16, #tpu.memory_space<vmem>>, vector<128x128xbf16>
    %cst_99 = arith.constant dense<0.000000e+00> : vector<256x128xf32>
    %90 = tpu.matmul %88, %89, %cst_99 {dimension_numbers = #tpu.dot_dimension_numbers<[1], [0], [0], [1], [0, 0, 1, 1], [], []>} : vector<256x128xbf16>, vector<128x128xbf16>, vector<256x128xf32> -> vector<256x128xf32>
    %c0_100 = arith.constant 0 : index
    %c0_101 = arith.constant 0 : index
    %91 = vector.load %arg9[%c0_100, %c0_101] : memref<1x128xf32, #tpu.memory_space<vmem>>, vector<1x128xf32>
    %92 = vector.broadcast %91 : vector<1x128xf32> to vector<256x128xf32>
    %93 = arith.addf %90, %92 : vector<256x128xf32>
    %94 = arith.addf %85, %93 : vector<256x128xf32>
    %cst_102 = arith.constant 0.000000e+00 : f32
    %95 = vector.broadcast %cst_102 : f32 to vector<256x128xf32>
    %96 = arith.maximumf %94, %95 : vector<256x128xf32>
    %97 = vector.shape_cast %96 : vector<256x128xf32> to vector<16x16x128xf32>
    %98 = arith.truncf %97 : vector<16x16x128xf32> to vector<16x16x128xbf16>
    %c0_103 = arith.constant 0 : index
    %c0_104 = arith.constant 0 : index
    %c0_105 = arith.constant 0 : index
    %c0_106 = arith.constant 0 : index
    %99 = vector.load %arg10[%c0_103, %c0_104, %c0_105, %c0_106] : memref<1x16x16x128xbf16, #tpu.memory_space<vmem>>, vector<1x16x16x128xbf16>
    %100 = vector.shape_cast %99 : vector<1x16x16x128xbf16> to vector<16x16x128xbf16>
    %101 = vector.shape_cast %98 : vector<16x16x128xbf16> to vector<1x16x16x128xbf16>
    tpu.vector_store %arg10[%c0_103, %c0_104, %c0_105, %c0_106], %101 {strides = array<i32>} : memref<1x16x16x128xbf16, #tpu.memory_space<vmem>>, vector<1x16x16x128xbf16>,
    return
  }
  func.func @transform_0(%arg0: i32) -> (i32, i32, i32, i32) {
    %c0_i32 = arith.constant 0 : i32
    %c0_i32_0 = arith.constant 0 : i32
    %c0_i32_1 = arith.constant 0 : i32
    %c0_i32_2 = arith.constant 0 : i32
    return %arg0, %c0_i32, %c0_i32_0, %c0_i32_1 : i32, i32, i32, i32
  }
  func.func @transform_1(%arg0: i32) -> (i32, i32, i32) {
    %c0_i32 = arith.constant 0 : i32
    %c0_i32_0 = arith.constant 0 : i32
    %c0_i32_1 = arith.constant 0 : i32
    %c0_i32_2 = arith.constant 0 : i32
    return %c0_i32, %c0_i32_0, %c0_i32_1 : i32, i32, i32
  }
  func.func @transform_2(%arg0: i32) -> (i32, i32) {
    %c0_i32 = arith.constant 0 : i32
    %c0_i32_0 = arith.constant 0 : i32
    %c0_i32_1 = arith.constant 0 : i32
    return %c0_i32, %c0_i32_0 : i32, i32
  }
  func.func @transform_3(%arg0: i32) -> (i32, i32, i32) {
    %c0_i32 = arith.constant 0 : i32
    %c0_i32_0 = arith.constant 0 : i32
    %c0_i32_1 = arith.constant 0 : i32
    %c0_i32_2 = arith.constant 0 : i32
    return %c0_i32, %c0_i32_0, %c0_i32_1 : i32, i32, i32
  }
  func.func @transform_4(%arg0: i32) -> (i32, i32) {
    %c0_i32 = arith.constant 0 : i32
    %c0_i32_0 = arith.constant 0 : i32
    %c0_i32_1 = arith.constant 0 : i32
    return %c0_i32, %c0_i32_0 : i32, i32
  }
  func.func @transform_5(%arg0: i32) -> (i32, i32) {
    %c0_i32 = arith.constant 0 : i32
    %c0_i32_0 = arith.constant 0 : i32
    %c0_i32_1 = arith.constant 0 : i32
    return %c0_i32, %c0_i32_0 : i32, i32
  }
  func.func @transform_6(%arg0: i32) -> (i32, i32) {
    %c0_i32 = arith.constant 0 : i32
    %c0_i32_0 = arith.constant 0 : i32
    %c0_i32_1 = arith.constant 0 : i32
    return %c0_i32, %c0_i32_0 : i32, i32
  }
  func.func @transform_7(%arg0: i32) -> (i32, i32) {
    %c0_i32 = arith.constant 0 : i32
    %c0_i32_0 = arith.constant 0 : i32
    %c0_i32_1 = arith.constant 0 : i32
    return %c0_i32, %c0_i32_0 : i32, i32
  }
  func.func @transform_8(%arg0: i32) -> (i32, i32) {
    %c0_i32 = arith.constant 0 : i32
    %c0_i32_0 = arith.constant 0 : i32
    %c0_i32_1 = arith.constant 0 : i32
    return %c0_i32, %c0_i32_0 : i32, i32
  }
  func.func @transform_9(%arg0: i32) -> (i32, i32, i32, i32) {
    %c0_i32 = arith.constant 0 : i32
    %c0_i32_0 = arith.constant 0 : i32
    %c0_i32_1 = arith.constant 0 : i32
    %c0_i32_2 = arith.constant 0 : i32
    return %arg0, %c0_i32, %c0_i32_0, %c0_i32_1 : i32, i32, i32, i32
  }
}

</mosaic_0001>

<bundles_post_ra>
// kernel: tpu_custom_call.1
= control target key start
LH: loop header
LB: loop body
LE: loop exit
PB: predicated region body
PF: predicated region fallthrough
CT: control target
= control target key end

     0   :  { %s10460_s0 = inlined_call_operand.hbm [shape: bf16[2,16,16,128], index: 0, kind: input, shape index: {}]   ;;  %s10461_s1 = inlined_call_operand.hbm [shape: bf16[3,384,128], index: 1, kind: input, shape index: {}]   ;;  %s10462_s2 = inlined_call_operand.vmem [shape: f32[1,128], index: 2, kind: input, shape index: {}]   ;;  %s10463_s3 = inlined_call_operand.hbm [shape: bf16[3,384,128], index: 3, kind: input, shape index: {}]   ;;  %s10464_s4 = inlined_call_operand.vmem [shape: f32[1,128], index: 4, kind: input, shape index: {}]   ;;  %s10465_s5 = inlined_call_operand.hbm [shape: bf16[128,128], index: 5, kind: input, shape index: {}]   ;;  %s10466_s6 = inlined_call_operand.vmem [shape: f32[1,128], index: 6, kind: input, shape index: {}]   ;;  %s10467_s7 = inlined_call_operand.hbm [shape: bf16[128,128], index: 7, kind: input, shape index: {}]   ;;  %s10468_s8 = inlined_call_operand.vmem [shape: f32[1,128], index: 8, kind: input, shape index: {}]   ;;  %s10469_s9 = inlined_call_operand.hbm [shape: bf16[2,16,16,128], index: 9, kind: output, shape index: {}]  }
   0x1   :  { %10539 = sst [smem:[#allocation64_spill]] %s10461_s1 }
   0x2   :  { %10540 = sst [smem:[#allocation65_spill]] %s10463_s3 }
   0x3   :  { %10541 = sst [smem:[#allocation66_spill]] %s10465_s5 }
   0x4   :  { %14 = vsyncpa [#allocation5], 0 }
   0x5   :  { %16 = vsyncpa [#allocation5 + $0x1], 0 }
   0x6   :  { %17 = vsyncpa [#allocation8], 0 }
   0x7   :  { %18 = vsyncpa [#allocation11], 0 }
   0x8   :  { %19 = vsyncpa [#allocation6], 0 }
   0x9   :  { %21 = vsyncpa [#allocation6 + $0x1], 0  ;;  %s8075_s30 = smov 0   ;;  %s8077_s10 = smov 0  }
   0xa   :  { %s8079_s11 = smov 0   ;;  %s8081_s12 = smov 0  }
   0xb LB: > { %s8096_s13 = sadd.s32 4294967295, %s8014_s12   ;;  %s6482_s14 = sadd.s32 4294967294, %s8014_s12   ;;  %s8014_s12 = sphi %s8081_s12, %s10824_s12   ;;  %s8010_s11 = sphi %s8079_s11, %s10823_s11   ;;  %s8006_s10 = sphi %s8077_s10, %s10822_s10   ;;  %s8002_s30 = sphi %s8075_s30, %s10821_s30  }
   0xc   : > { %p47_p0 = scmp.ne.s32.totalorder %s8006_s10, %s8002_s30  ;;  %p48_p1 = scmp.eq.s32.totalorder %s8096_s13, 0 }
   0xd   : > { %p239_p2 = scmp.eq.s32.totalorder %s8096_s13, 1  ;;  %p245_p3 = scmp.eq.s32.totalorder %s6482_s14, 1 }
   0xe   : > { %p8105_p4 = por %p48_p1, %p47_p0  ;;  %p6483_p5 = scmp.ge.s32.totalorder %s8014_s12, 1 }
   0xf   : > { %p8110_p6 = por %p245_p3, %p47_p0  ;;  %p252_p7 = scmp.lt.s32.totalorder %s8014_s12, 3 }
  0x10   : > { %s10544_s1 = sld [smem:[#allocation64_spill]]  ;;  %s8016_s21 = smov [#allocation7]  }
  0x11   : > { %p8118_p8 = pnand %p6483_p5, %p252_p7  ;;  %s265_s22 = sshll.u32 %s8016_s21, 4  ;;  %s266_s22 = int_to_ptr.vmem [resolvable:$true] %s265_s22 }
  0x12   : > { %s10547_s5 = sld [smem:[#allocation66_spill]]  ;;  %s10470_s27 = smov 64  }
  0x13   : > { %p7643_p9 = pneg %p8118_p8  ;;  %s10471_s28 = smov 4  }
  0x14   : > { %s8019_s29 = smov [#allocation10]   ;;  %s10548_s3 = sld [smem:[#allocation65_spill]] }
  0x15   : > { %p8126_p10 = pnand %p7643_p9, %p48_p1  ;;  %s299_s14 = sshll.u32 %s8019_s29, 4  ;;  %s300_s14 = int_to_ptr.vmem [resolvable:$true] %s299_s14 }
  0x16   : > { %s263_s19 = sshll.u32 %s10544_s1, 4  ;;  %s314_s24 = sshll.u32 %s10467_s7, 4  ;;  %s264_s19 = int_to_ptr.hbm [resolvable:$true] %s263_s19  ;;  %s315_s24 = int_to_ptr.hbm [resolvable:$true] %s314_s24 }
  0x17   : > { %7646 = dma.hbm_to_vmem [thread:$0]  (!%p8126_p10), %s264_s19, 9216, %s266_s22, [#allocation8], %s10470_s27, %s10470_s27, %s10471_s28  }
  0x18   : > { %s297_s26 = sshll.u32 %s10547_s5, 4  ;;  %s8020_s25 = smov [#allocation9]   ;;  %s298_s26 = int_to_ptr.hbm [resolvable:$true] %s297_s26 }
  0x19   : > { %7652 = dma.hbm_to_vmem [thread:$0]  (!%p8126_p10), %s298_s26, 1024, %s300_s14, [#allocation11], %s10470_s27, %s10470_s27, %s10471_s28  }
  0x1a   : > { %s280_s21 = sshll.u32 %s10548_s3, 4  ;;  %s282_s29 = sshll.u32 %s8020_s25, 4  ;;  %s281_s21 = int_to_ptr.hbm [resolvable:$true] %s280_s21  ;;  %s283_s29 = int_to_ptr.vmem [resolvable:$true] %s282_s29 }
  0x1b   : > { %7649 = dma.hbm_to_vmem [thread:$0]  (!%p8126_p10), %s281_s21, 9216, %s283_s29, [#allocation8], %s10470_s27, %s10470_s27, %s10471_s28  }
  0x1c   : > { %s8021_s17 = smov [#allocation12]   ;;  %s8161_s14 = sadd.s32 1, %s8014_s12  }
  0x1d   : > { %s316_s26 = sshll.u32 %s8021_s17, 4  ;;  %s34_s18 = sadd.s32 1, %s8010_s11  ;;  %s317_s26 = int_to_ptr.vmem [resolvable:$true] %s316_s26 }
  0x1e   : > { %7655 = dma.hbm_to_vmem [thread:$0]  (!%p8126_p10), %s315_s24, 1024, %s317_s26, [#allocation11], %s10470_s27, %s10470_s27, %s10471_s28  }
  0x1f   : > { %s31_s19 = ssub.s32 %s8014_s12, %s8161_s14  ;;  %p41_p12 = scmp.ne.s32.totalorder %s8010_s11, %s8006_s10 }
  0x20   : > { %p32_p13 = scmp.eq.s32.totalorder %s31_s19, 0  ;;  %p42_p0 = scmp.eq.s32.totalorder %s8014_s12, 0 }
  0x21   : > { %p8171_p3 = por %p239_p2, %p41_p12  ;;  %p7668_p5 = scmp.lt.s32.totalorder %s8014_s12, 2 }
  0x22   : > { %s8177_s22 = scalar_select %p32_p13, %s8010_s11, %s34_s18  }
  0x23   : > { %p43_p7 = por %p42_p0, %p41_p12  ;;  %s333_s23 = sand.u32 1, %s8010_s11  }
  0x24   : > { %s6489_s25 = sshll.u32 %s333_s23, 7  ;;  %s7208_s24 = sshll.u32 %s8014_s12, 7 }
  0x25   : > { %s342_s26 = scalar_lea.hbm %s10460_s0, %s7208_s24  ;;  %s337_s27 = scalar_lea.vmem [#allocation4], %s6489_s25 }
  0x26   : > { %s345_s28 = sshll.u32 %s337_s27, 4  ;;  %s343_s19 = sshll.u32 %s342_s26, 4  ;;  %s346_s28 = int_to_ptr.vmem [resolvable:$true] %s345_s28  ;;  %s344_s19 = int_to_ptr.hbm [resolvable:$true] %s343_s19 }
  0x27   : > { %p8184_p2 = pnand %p7668_p5, %p43_p7  ;;  %s334_s18 = scalar_lea.sflag [#allocation5], %s333_s23 }
  0x28   : > { %s7910_s3 = sshra.s32 %s344_s19, 4  ;;  %s7917_s27 = scalar_lea.hbm %s10460_s0, 256  ;;  %s7911_s3 = int_to_ptr.hbm [resolvable:$true] %s7910_s3 }
  0x29   : > { %s7912_s5 = scalar_lea.hbm %s7911_s3, 128  ;;  %p7914_p10 = pneg %p8184_p2 }
  0x2a   : > { %p7913_p9 = scmp.ne.s32.totalorder %s7911_s3, %s7912_s5  ;;  %p7918_p0 = scmp.lt.s32.totalorder %s7911_s3, %s10460_s0 }
  0x2b   : > { %p7919_p5 = scmp.lt.s32.totalorder %s7917_s27, %s7912_s5 }
  0x2c   : > { %p7915_p12 = pnand %p7914_p10, %p7913_p9 }
  0x2d   : > { %p7920_p7 = por %p7919_p5, %p7918_p0 }
  0x2e   : > { %p7916_p13 = pneg %p7915_p12 }
  0x30   : > { %p7921_p11 = pnand %p7920_p7, %p7916_p13 }
  0x32   : > { %7924 = shalt.err (!%p7921_p11)
}
  0x33   : > { %s10551_s23 = smov 4   ;;  %s10552_s26 = smov 64  }
  0x34   : > { %7659 = dma.hbm_to_vmem [thread:$0]  (!%p8184_p2), %s344_s19, 2048, %s346_s28, %s334_s18, %s10552_s26, %s10552_s26, %s10551_s23  }
  0x35   : > { %357 = sbr.rel (%p8118_p8) target bundleno = 1821 (0x71d), region = 56 }
  0x3a   : > { %s8204_s24 = sand.u32 1, %s8006_s10  }
  0x3b   : > { %s6493_s3 = sshll.u32 %s8204_s24, 7  ;;  %s360_s5 = scalar_lea.sflag [#allocation5], %s8204_s24 }
  0x3c   : > { %s8210_s25 = scalar_lea.vmem [#allocation4], %s6493_s3 }
  0x3d   : > { %7985 = dma.done.wait (%p8105_p4), %s360_s5, 2048  }
  0x3e   : > { %7987 = vsyncadd (%p8105_p4), %s360_s5, 4294965248 }
  0x3f   : > { %7989 = dma.done.wait (%p48_p1), [#allocation8], 18432  }
  0x40   : > { %7991 = vsyncadd (%p48_p1), [#allocation8], 4294948864 }
  0x41   : > { %7993 = dma.done.wait (%p48_p1), [#allocation11], 2048  }
  0x42   : > { %7995 = vsyncadd (%p48_p1), [#allocation11], 4294965248  ;;  %v8022_v0 = vmov 0   ;;  %v7240_v1 = vld [vmem:[#allocation7 + $0xf8] sm:$0xff]  ;;  %v7239_v5 = vld [vmem:[#allocation7 + $0xf0] sm:$0xff]  ;;  %vm427_vm0 = vcmask 1040384  }
  0x43   : > { %420 = vst [vmem:[#allocation2] sm:$0xf] %v8022_v0  ;;  %v7248_v2 = vld [vmem:[#allocation7 + $0x138] sm:$0xff]  ;;  %1846 = vmatpush.bf16.msra.mxu0 %v7240_v1  ;;  %v7247_v6 = vld [vmem:[#allocation7 + $0x130] sm:$0xff]  ;;  %vm428_vm1 = vsmask.f32 256 }
  0x44   : > { %421 = vst [vmem:[#allocation2 + $0x4] sm:$0xf] %v8022_v0  ;;  %v7256_v3 = vld [vmem:[#allocation7 + $0x178] sm:$0xff]  ;;  %1935 = vmatpush.bf16.msra.mxu1 %v7248_v2  ;;  %v7255_v7 = vld [vmem:[#allocation7 + $0x170] sm:$0xff]  ;;  %v7238_v9 = vld [vmem:[#allocation7 + $0xe8] sm:$0xff]  ;;  %v10553_v13 = vmov 0 }
  0x45   : > { %422 = vst [vmem:[#allocation2 + $0x8] sm:$0x1] %v8022_v0  ;;  %v7216_v4 = vld [vmem:[#allocation7 + $0x38] sm:$0xff]  ;;  %2024 = vmatpush.bf16.msra.mxu2 %v7256_v3  ;;  %v7215_v8 = vld [vmem:[#allocation7 + $0x30] sm:$0xff]  ;;  %v7246_v10 = vld [vmem:[#allocation7 + $0x128] sm:$0xff]  ;;  %v10556_v15 = vmov 0 }
  0x46   : > { %424 = vst [vmem:[#allocation2 + $0xcc] sm:$0xf] %v8022_v0  ;;  %2257 = vmatpush.bf16.msra.mxu3 %v7216_v4  ;;  %vm484_vm2 = vsmask.f32 7938  ;;  %v7254_v11 = vld [vmem:[#allocation7 + $0x168] sm:$0xff]  ;;  %vm8226_vm3 = vmand %vm427_vm0, %vm428_vm1  ;;  %v7237_v14 = vld [vmem:[#allocation7 + $0xe0] sm:$0xff] }
  0x47   : > { %425 = vst [vmem:[#allocation2 + $0xd0] sm:$0xf] %v8022_v0  ;;  %1847 = vmatpush.bf16.msra.mxu0 %v7239_v5  ;;  %v7214_v12 = vld [vmem:[#allocation7 + $0x28] sm:$0xff]  ;;  %v10554_v13 = vsel %vm8226_vm3, 4294967295, %v10553_v13  ;;  %vm8232_vm4 = vmand %vm427_vm0, %vm484_vm2  ;;  %vm895_vm5 = vcmask 1043456   ;;  %v7245_v16 = vld [vmem:[#allocation7 + $0x120] sm:$0xff] }
  0x48   : > { %426 = vst [vmem:[#allocation2 + $0xd4] sm:$0x1] %v8022_v0  ;;  %1936 = vmatpush.bf16.msra.mxu1 %v7247_v6  ;;  %v10557_v15 = vsel %vm8232_vm4, 4294967295, %v10556_v15  ;;  %v7253_v17 = vld [vmem:[#allocation7 + $0x160] sm:$0xff]  ;;  %v433_v18 = vld [vmem:[#allocation2 + $0xc] sm:$0x1]  ;;  %vm8259_vm8 = vmand %vm895_vm5, %vm484_vm2 }
  0x49   : > { %3084 = vst [vmem:[#allocation3] sm:$0xf] %v8022_v0  ;;  %2025 = vmatpush.bf16.msra.mxu2 %v7255_v7  ;;  %vm572_vm6 = vsmask.f32 4368  ;;  %v7213_v19 = vld [vmem:[#allocation7 + $0x20] sm:$0xff]  ;;  %v434_v20 = vsel %vm8226_vm3, 0, %v433_v18 }
  0x4a   : > { %3085 = vst [vmem:[#allocation3 + $0x4] sm:$0xf] %v8022_v0  ;;  %2258 = vmatpush.bf16.msra.mxu3 %v7215_v8  ;;  %v540_v21 = vld [vmem:[%s8210_s25] sm:$0xf]  ;;  %v541_v22 = vld [vmem:[%s8210_s25 + $0x4] sm:$0xf]  ;;  %vm8249_vm7 = vmor %vm428_vm1, %vm572_vm6 }
  0x4b   : > { %3086 = vst [vmem:[#allocation3 + $0x8] sm:$0x1] %v8022_v0  ;;  %1848 = vmatpush.bf16.msra.mxu0 %v7238_v9  ;;  %v7236_v23 = vld [vmem:[#allocation7 + $0xd8] sm:$0xff]  ;;  %v575_v25 = vshrl.u32 %v540_v21, 16  ;;  %v578_v26 = vshll.u32 %v540_v21, 16  ;;  %v583_v27 = vshrl.u32 %v541_v22, 16 }
  0x4c   : > { %3088 = vst [vmem:[#allocation3 + $0xcc] sm:$0xf] %v8022_v0  ;;  %1937 = vmatpush.bf16.msra.mxu1 %v7246_v10  ;;  %v7244_v24 = vld [vmem:[#allocation7 + $0x118] sm:$0xff]  ;;  %v586_v28 = vshll.u32 %v541_v22, 16  ;;  %v489_v31 = vld [vmem:[#allocation2 + $0x14] sm:$0x1] }
  0x4d   : > { %3089 = vst [vmem:[#allocation3 + $0xd0] sm:$0xf] %v8022_v0  ;;  %2026 = vmatpush.bf16.msra.mxu2 %v7254_v11  ;;  %v7252_v29 = vld [vmem:[#allocation7 + $0x158] sm:$0xff]  ;;  %v430_v32 = vld [vmem:[#allocation2] sm:$0x1]  ;;  %v577_v34 = vrot.slane %v575_v25, 7 }
  0x4e   : > { %3090 = vst [vmem:[#allocation3 + $0xd4] sm:$0x1] %v8022_v0  ;;  %2259 = vmatpush.bf16.msra.mxu3 %v7214_v12  ;;  %v7212_v30 = vld [vmem:[#allocation7 + $0x18] sm:$0xff]  ;;  %v436_v33 = vld [vmem:[#allocation2 + $0x18] sm:$0x1]  ;;  %v8240_v35 = vrot.slane %v583_v27, 7 }
  0x4f   : > { %10555 = vst [vmem:[#allocation18_spill] sm:$0xff] %v10554_v13  ;;  %1849 = vmatpush.bf16.msra.mxu0 %v7237_v14  ;;  %v490_v36 = vsel %vm8232_vm4, 0, %v489_v31  ;;  %v431_v37 = vsel %vm8226_vm3, 0, %v430_v32  ;;  %v542_v38 = vld [vmem:[%s8210_s25 + $0x8] sm:$0xf]  ;;  %v10559_v39 = vmov 0  ;;  %v580_v45 = vor.u32 %v578_v26, %v577_v34 }
  0x50   : > { %10558 = vst [vmem:[#allocation19_spill] sm:$0xff] %v10557_v15  ;;  %1938 = vmatpush.bf16.msra.mxu1 %v7245_v16  ;;  %v10560_v39 = vsel %vm8249_vm7, 4294967295, %v10559_v39  ;;  %v437_v40 = vsel %vm8226_vm3, 0, %v436_v33  ;;  %v543_v41 = vld [vmem:[%s8210_s25 + $0xc] sm:$0xf]  ;;  %v592_v42 = vshrl.u32 %v542_v38, 16  ;;  %v588_v47 = vor.u32 %v586_v28, %v8240_v35 }
  0x51   : > { %435 = vst [vmem:[#allocation2 + $0xc] sm:$0x1] %v434_v20  ;;  %2027 = vmatpush.bf16.msra.mxu2 %v7253_v17  ;;  %v7235_v43 = vld [vmem:[#allocation7 + $0xd0] sm:$0xff]  ;;  %v581_v46 = vrot.slane %v577_v34, 4  ;;  %v10562_v51 = vmov 0  ;;  %v595_v53 = vshll.u32 %v542_v38, 16 }
  0x52   : > { %2260 = vmatpush.bf16.msra.mxu3 %v7213_v19  ;;  %10561 = vst [vmem:[#allocation20_spill] sm:$0xff] %v10560_v39  ;;  %v7243_v44 = vld [vmem:[#allocation7 + $0x110] sm:$0xff]  ;;  %v10563_v51 = vsel %vm8259_vm8, 4294967295, %v10562_v51  ;;  %v594_v52 = vrot.slane %v592_v42, 7  ;;  %v600_v54 = vshrl.u32 %v543_v41, 16  ;;  %v603_v55 = vshll.u32 %v543_v41, 16 }
  0x53   : > { %491 = vst [vmem:[#allocation2 + $0x14] sm:$0x1] %v490_v36  ;;  %v492_v48 = vld [vmem:[#allocation2 + $0x20] sm:$0x1]  ;;  %1850 = vmatpush.bf16.msra.mxu0 %v7236_v23  ;;  %v589_v56 = vsel %vm8249_vm7, %v581_v46, %v588_v47  ;;  %v590_v57 = vrot.slane %v8240_v35, 4  ;;  %v7234_v0 = vld [vmem:[#allocation7 + $0xc8] sm:$0xff] }
  0x54   : > { %432 = vst [vmem:[#allocation2] sm:$0x1] %v431_v37  ;;  %v7251_v49 = vld [vmem:[#allocation7 + $0x150] sm:$0xff]  ;;  %1939 = vmatpush.bf16.msra.mxu1 %v7244_v24  ;;  %v493_v58 = vsel %vm8232_vm4, 0, %v492_v48  ;;  %v598_v62 = vrot.slane %v594_v52, 4  ;;  %v602_v63 = vrot.slane %v600_v54, 7  ;;  %v597_v7 = vor.u32 %v595_v53, %v594_v52 }
  0x55   : > { %v7211_v50 = vld [vmem:[#allocation7 + $0x10] sm:$0xff]  ;;  %10564 = vst [vmem:[#allocation21_spill] sm:$0xff] %v10563_v51  ;;  %2028 = vmatpush.bf16.msra.mxu2 %v7252_v29  ;;  %v7242_v5 = vld [vmem:[#allocation7 + $0x108] sm:$0xff]  ;;  %v495_v20 = vld [vmem:[#allocation2 + $0x2c] sm:$0x1]  ;;  %vm1532_vm9 = vcmask 1046528  }
  0x56   : > { %438 = vst [vmem:[#allocation2 + $0x18] sm:$0x1] %v437_v40  ;;  %v439_v59 = vld [vmem:[#allocation2 + $0x24] sm:$0x1]  ;;  %v544_v60 = vld [vmem:[%s8210_s25 + $0x10] sm:$0xf]  ;;  %2261 = vmatpush.bf16.msra.mxu3 %v7212_v30  ;;  %v605_v8 = vor.u32 %v603_v55, %v602_v63 }
  0x57   : > { %900 = vst [vmem:[#allocation2 + $0x10] sm:$0xf] %v589_v56  ;;  %v440_v2 = vsel %vm8226_vm3, 0, %v439_v59  ;;  %v545_v3 = vld [vmem:[%s8210_s25 + $0x14] sm:$0xf]  ;;  %v609_v4 = vshrl.u32 %v544_v60, 16  ;;  %1851 = vmatpush.bf16.msra.mxu0 %v7235_v43 }
  0x58   : > { %v897_v61 = vld [vmem:[#allocation2 + $0xc] sm:$0xf]  ;;  %494 = vst [vmem:[#allocation2 + $0x20] sm:$0x1] %v493_v58  ;;  %v7250_v6 = vld [vmem:[#allocation7 + $0x148] sm:$0xff]  ;;  %v612_v9 = vshll.u32 %v544_v60, 16  ;;  %1940 = vmatpush.bf16.msra.mxu1 %v7243_v44  ;;  %v606_v18 = vsel %vm8249_vm7, %v598_v62, %v605_v8 }
  0x59   : > { %v898_v1 = vsel %vm8259_vm8, %v580_v45, %v897_v61  ;;  %v617_v10 = vshrl.u32 %v545_v3, 16  ;;  %441 = vst [vmem:[#allocation2 + $0x24] sm:$0x1] %v440_v2  ;;  %v611_v12 = vrot.slane %v609_v4, 7  ;;  %v620_v14 = vshll.u32 %v545_v3, 16  ;;  %2029 = vmatpush.bf16.msra.mxu2 %v7251_v49  ;;  %v7210_v16 = vld [vmem:[#allocation7 + $0x8] sm:$0xff] }
  0x5a   : > { %899 = vst [vmem:[#allocation2 + $0xc] sm:$0xf] %v898_v1  ;;  %v901_v11 = vld [vmem:[#allocation2 + $0x14] sm:$0x1]  ;;  %2262 = vmatpush.bf16.msra.mxu3 %v7211_v50  ;;  %v607_v23 = vrot.slane %v602_v63, 4  ;;  %v496_v28 = vsel %vm8232_vm4, 0, %v495_v20 }
  0x5b   : > { %v902_v17 = vsel %vm8226_vm3, %v590_v57, %v901_v11  ;;  %v619_v19 = vrot.slane %v617_v10, 7  ;;  %v7233_v21 = vld [vmem:[#allocation7 + $0xc0] sm:$0xff]  ;;  %907 = vst [vmem:[#allocation2 + $0x1c] sm:$0xf] %v606_v18  ;;  %v615_v26 = vrot.slane %v611_v12, 4  ;;  %1852 = vmatpush.bf16.msra.mxu0 %v7234_v0  ;;  %v614_v31 = vor.u32 %v612_v9, %v611_v12  ;;  %v7224_v37 = vld [vmem:[#allocation7 + $0x78] sm:$0xff] }
  0x5c   : > { %v7241_v22 = vld [vmem:[#allocation7 + $0x100] sm:$0xff]  ;;  %903 = vst [vmem:[#allocation2 + $0x14] sm:$0x1] %v902_v17  ;;  %1941 = vmatpush.bf16.msra.mxu1 %v7242_v5  ;;  %v498_v41 = vld [vmem:[#allocation2 + $0x38] sm:$0x1]  ;;  %v7387_v42 = vld [vmem:[#allocation2] sm:$0xff]  }
  0x5d   : > { %v904_v24 = vld [vmem:[#allocation2 + $0x18] sm:$0xf]  ;;  %v622_v27 = vor.u32 %v620_v14, %v619_v19  ;;  %v7249_v29 = vld [vmem:[#allocation7 + $0x140] sm:$0xff]  ;;  %2030 = vmatpush.bf16.msra.mxu2 %v7250_v6  ;;  %497 = vst [vmem:[#allocation2 + $0x2c] sm:$0x1] %v496_v28  ;;  %v624_v44 = vrot.slane %v619_v19, 4 }
  0x5e   : > { %v905_v25 = vsel %vm8259_vm8, %v597_v7, %v904_v24  ;;  %v7209_v30 = vld [vmem:[#allocation7] sm:$0xff]  ;;  %2263 = vmatpush.bf16.msra.mxu3 %v7210_v16  ;;  %v547_v50 = vld [vmem:[%s8210_s25 + $0x1c] sm:$0xf]  ;;  %v499_v52 = vsel %vm8232_vm4, 0, %v498_v41  ;;  %v546_v60 = vld [vmem:[%s8210_s25 + $0x18] sm:$0xf] }
  0x5f   : > { %906 = vst [vmem:[#allocation2 + $0x18] sm:$0xf] %v905_v25  ;;  %v908_v32 = vld [vmem:[#allocation2 + $0x20] sm:$0x1]  ;;  %v623_v33 = vsel %vm8249_vm7, %v615_v26, %v622_v27  ;;  %v7736_v35 = vld [vmem:[#allocation2 + $0xc] sm:$0xf0]  ;;  %1853 = vmatpush.bf16.msra.mxu0 %v7233_v21 }
  0x60   : > { %v909_v38 = vsel %vm8226_vm3, %v607_v23, %v908_v32  ;;  %914 = vst [vmem:[#allocation2 + $0x28] sm:$0xf] %v623_v33  ;;  %v911_v40 = vld [vmem:[#allocation2 + $0x24] sm:$0xf]  ;;  %1942 = vmatpush.bf16.msra.mxu1 %v7241_v22  ;;  %v442_v47 = vld [vmem:[#allocation2 + $0x30] sm:$0x1] }
  0x61   : > { %v8284_v34 = vld [vmem:[#allocation2 + $0xc] sm:$0xff]   ;;  %910 = vst [vmem:[#allocation2 + $0x20] sm:$0x1] %v909_v38  ;;  %v912_v43 = vsel %vm8259_vm8, %v614_v31, %v911_v40  ;;  %2031 = vmatpush.bf16.msra.mxu2 %v7249_v29  ;;  %v443_v49 = vsel %vm8226_vm3, 0, %v442_v47  ;;  %v634_v61 = vshrl.u32 %v547_v50, 16  ;;  %v626_v4 = vshrl.u32 %v546_v60, 16 }
  0x62   : > { %v7737_v36 = vld [vmem:[#allocation2 + $0xc] sm:$0xe]  ;;  %2264 = vmatpush.bf16.msra.mxu3 %v7209_v30  ;;  %913 = vst [vmem:[#allocation2 + $0x24] sm:$0xf] %v912_v43  ;;  %1854 = vmatmul.bf16.vlgmr.msra.gmra.mxu0 %v8284_v34  ;;  %v1257_v53 = vshrl.u32 %v8284_v34, 16  ;;  %v1259_v54 = vshll.u32 %v8284_v34, 16 }
  0x63   : > { %v1046_v45 = vld [vmem:[#allocation2 + $0x14] sm:$0x1]  ;;  %v7738_v46 = vor.u32 %v7737_v36, %v7736_v35  ;;  %2346 = vmatpush.bf16.msrb.mxu0 %v7224_v37  ;;  %444 = vst [vmem:[#allocation2 + $0x30] sm:$0x1] %v443_v49  ;;  %vm1243_vm10 = vsmask.f32 7424 }
  0x64   : > { %v1208_v48 = vunpack.c.l.b16 %v1046_v45  ;;  %v915_v57 = vld [vmem:[#allocation2 + $0x2c] sm:$0x1]  ;;  %v1261_v58 = vrot.slane %v1259_v54, 1  ;;  %500 = vst [vmem:[#allocation2 + $0x38] sm:$0x1] %v499_v52  ;;  %v629_v7 = vshll.u32 %v546_v60, 16 }
  0x65   : > { %v1536_v56 = vrot.slane %v7738_v46, 1  ;;  %2265 = vmatmul.bf16.vlgmr.msra.gmra.mxu3 %v7387_v42  ;;  %v916_v59 = vsel %vm8226_vm3, %v624_v44, %v915_v57  ;;  %v636_v8 = vrot.slane %v634_v61, 7  ;;  %v7549_v10 = vld [vmem:[#allocation2 + $0x18] sm:$0xf0]  ;;  %v628_v14 = vrot.slane %v626_v4, 7  ;;  %v7223_v19 = vld [vmem:[#allocation7 + $0x70] sm:$0xff] }
  0x66   : > { %v1226_v55 = vpack.c.b16 %v1208_v48, %v1208_v48  ;;  %v8301_v0 = vld [vmem:[#allocation2 + $0x18] sm:$0xff]   ;;  %v1262_v2 = vor.u32 %v1261_v58, %v1257_v53  ;;  %917 = vst [vmem:[#allocation2 + $0x2c] sm:$0x1] %v916_v59  ;;  %v637_v16 = vshll.u32 %v547_v50, 16  ;;  %v501_v37 = vld [vmem:[#allocation2 + $0x44] sm:$0x1] }
  0x67   : > { %v1271_v9 = vshll.u32 %v8301_v0, 16  ;;  %v7550_v12 = vld [vmem:[#allocation2 + $0x18] sm:$0xe]  ;;  %v641_v17 = vrot.slane %v636_v8, 4  ;;  %v631_v21 = vor.u32 %v629_v7, %v628_v14  ;;  %v632_v22 = vrot.slane %v628_v14, 4  ;;  %2347 = vmatpush.bf16.msrb.mxu0 %v7223_v19  ;;  %v7227_v15 = vld [vmem:[#allocation7 + $0x90] sm:$0xff] }
  0x68   : > { %v1264_v62 = vshll.u32 %v1226_v55, 16  ;;  %v1537_v63 = vrot.slane %v1226_v55, 1  ;;  %v1047_v1 = vld [vmem:[#allocation2 + $0x20] sm:$0x1]  ;;  %v639_v23 = vor.u32 %v637_v16, %v636_v8  ;;  %v1269_v25 = vshrl.u32 %v8301_v0, 16  ;;  %s10281_s1 = scalar_lea.vmem [#allocation13], %s6493_s3 }
  0x69   : > { %v1209_v3 = vunpack.c.l.b16 %v1047_v1  ;;  %v7551_v26 = vor.u32 %v7550_v12, %v7549_v10  ;;  %v445_v27 = vld [vmem:[#allocation2 + $0x3c] sm:$0x1]  ;;  %v1273_v28 = vrot.slane %v1271_v9, 1  ;;  %v8313_v29 = vld [vmem:[#allocation2 + $0x24] sm:$0xff]   ;;  %v548_v38 = vld [vmem:[%s8210_s25 + $0x20] sm:$0xf] }
  0x6a   : > { %v1266_v5 = vrot.slane %v1264_v62, 1  ;;  %v8304_v6 = vsel %vm1532_vm9, %v1536_v56, %v1537_v63  ;;  %v918_v20 = vld [vmem:[#allocation2 + $0x30] sm:$0xf]  ;;  %v7739_v30 = vld [vmem:[#allocation2 + $0x24] sm:$0xf0]  ;;  %v640_v31 = vsel %vm8249_vm7, %v632_v22, %v639_v23  ;;  %v446_v36 = vsel %vm8226_vm3, 0, %v445_v27 }
  0x6b   : > { %2032 = vmatmul.bf16.vlgmr.msra.gmra.mxu2 %v8304_v6  ;;  %v1227_v18 = vpack.c.b16 %v1209_v3, %v1209_v3  ;;  %v922_v24 = vld [vmem:[#allocation2 + $0x38] sm:$0x1]  ;;  %v919_v32 = vsel %vm8259_vm8, %v631_v21, %v918_v20  ;;  %921 = vst [vmem:[#allocation2 + $0x34] sm:$0xf] %v640_v31  ;;  %v549_v40 = vld [vmem:[%s8210_s25 + $0x24] sm:$0xf]  ;;  %v1274_v46 = vor.u32 %v1273_v28, %v1269_v25 }
  0x6c   : > { %v8309_v11 = vsel %vm1243_vm10, %v1262_v2, %v1266_v5  ;;  %v923_v33 = vsel %vm8226_vm3, %v641_v17, %v922_v24  ;;  %920 = vst [vmem:[#allocation2 + $0x30] sm:$0xf] %v919_v32  ;;  %v643_v41 = vshrl.u32 %v548_v38, 16  ;;  %v651_v42 = vshrl.u32 %v549_v40, 16  ;;  %v7740_v58 = vld [vmem:[#allocation2 + $0x24] sm:$0xe] }
  0x6d   : > { %1943 = vmatmul.bf16.vlgmr.msra.gmra.mxu1 %v8309_v11  ;;  %v1276_v35 = vshll.u32 %v1227_v18, 16  ;;  %924 = vst [vmem:[#allocation2 + $0x38] sm:$0x1] %v923_v33  ;;  %v1539_v43 = vrot.slane %v7551_v26, 1  ;;  %v1540_v44 = vrot.slane %v1227_v18, 1  ;;  %v502_v45 = vsel %vm8232_vm4, 0, %v501_v37 }
  0x6e   : > { %447 = vst [vmem:[#allocation2 + $0x3c] sm:$0x1] %v446_v36  ;;  %v645_v47 = vrot.slane %v643_v41, 7  ;;  %v646_v48 = vshll.u32 %v548_v38, 16  ;;  %v653_v50 = vrot.slane %v651_v42, 7  ;;  %v654_v52 = vshll.u32 %v549_v40, 16 }
  0x6f   : > { %503 = vst [vmem:[#allocation2 + $0x44] sm:$0x1] %v502_v45  ;;  %v1278_v49 = vrot.slane %v1276_v35, 1  ;;  %v1048_v53 = vld [vmem:[#allocation2 + $0x2c] sm:$0x1]  ;;  %v8330_v55 = vsel %vm1532_vm9, %v1539_v43, %v1540_v44  ;;  %v1283_v4 = vshll.u32 %v8313_v29, 16  ;;  %v7741_v5 = vor.u32 %v7740_v58, %v7739_v30 }
  0x70   : > { %v649_v54 = vrot.slane %v645_v47, 4  ;;  %v648_v56 = vor.u32 %v646_v48, %v645_v47  ;;  %v656_v57 = vor.u32 %v654_v52, %v653_v50  ;;  %v658_v59 = vrot.slane %v653_v50, 4  ;;  %v504_v7 = vld [vmem:[#allocation2 + $0x50] sm:$0x1]  ;;  %v448_v14 = vld [vmem:[#allocation2 + $0x48] sm:$0x1] }
  0x71   : > { %v8333_v60 = vsel %vm1243_vm10, %v1274_v46, %v1278_v49  ;;  %v1210_v61 = vunpack.c.l.b16 %v1048_v53  ;;  %v1281_v8 = vshrl.u32 %v8313_v29, 16  ;;  %v1285_v9 = vrot.slane %v1283_v4, 1  ;;  %v551_v19 = vld [vmem:[%s8210_s25 + $0x2c] sm:$0xf]  ;;  %v550_v22 = vld [vmem:[%s8210_s25 + $0x28] sm:$0xf] }
  0x72   : > { %1859 = vmatmul.bf16.gmra.mxu0 %v8301_v0  ;;  %v657_v62 = vsel %vm8249_vm7, %v649_v54, %v656_v57  ;;  %v505_v12 = vsel %vm8232_vm4, 0, %v504_v7  ;;  %v1542_v16 = vrot.slane %v7741_v5, 1  ;;  %v449_v18 = vsel %vm8226_vm3, 0, %v448_v14  ;;  %v7552_v43 = vld [vmem:[#allocation2 + $0x30] sm:$0xf0]  ;;  %v7222_v45 = vld [vmem:[#allocation7 + $0x68] sm:$0xff] }
  0x73   : > { %928 = vst [vmem:[#allocation2 + $0x40] sm:$0xf] %v657_v62  ;;  %v1228_v3 = vpack.c.b16 %v1210_v61, %v1210_v61  ;;  %v1286_v20 = vor.u32 %v1285_v9, %v1281_v8  ;;  %v668_v23 = vshrl.u32 %v551_v19, 16  ;;  %v660_v25 = vshrl.u32 %v550_v22, 16  ;;  %v8359_v32 = vld [vmem:[#allocation2 + $0x30] sm:$0xff]   ;;  %2348 = vmatpush.bf16.msrb.mxu0 %v7222_v45  ;;  %s7385_s3 = sshll.u32 %s8096_s13, 7 }
  0x74   : > { %506 = vst [vmem:[#allocation2 + $0x50] sm:$0x1] %v505_v12  ;;  %v1049_v24 = vld [vmem:[#allocation2 + $0x38] sm:$0x1]  ;;  %v663_v30 = vshll.u32 %v550_v22, 16  ;;  %v671_v35 = vshll.u32 %v551_v19, 16  ;;  %s6367_s20 = scalar_lea.hbm %s10469_s9, %s7385_s3 }
  0x75   : > { %2270 = vmatmul.bf16.gmra.mxu3 %v8284_v34  ;;  %v925_v34 = vld [vmem:[#allocation2 + $0x3c] sm:$0xf]  ;;  %v1288_v10 = vshll.u32 %v1228_v3, 16  ;;  %v1543_v17 = vrot.slane %v1228_v3, 1  ;;  %450 = vst [vmem:[#allocation2 + $0x48] sm:$0x1] %v449_v18  ;;  %v1211_v33 = vunpack.c.l.b16 %v1049_v24 }
  0x76   : > { %v926_v63 = vsel %vm8259_vm8, %v648_v56, %v925_v34  ;;  %v929_v1 = vld [vmem:[#allocation2 + $0x44] sm:$0x1]  ;;  %v670_v27 = vrot.slane %v668_v23, 7  ;;  %v662_v28 = vrot.slane %v660_v25, 7  ;;  %v1295_v42 = vshll.u32 %v8359_v32, 16  ;;  %s6368_s28 = sshll.u32 %s10281_s1, 4  ;;  %s6369_s28 = int_to_ptr.vmem [resolvable:$true] %s6368_s28 }
  0x77   : > { %927 = vst [vmem:[#allocation2 + $0x3c] sm:$0xf] %v926_v63  ;;  %v930_v2 = vsel %vm8226_vm3, %v658_v59, %v929_v1  ;;  %v1290_v21 = vrot.slane %v1288_v10, 1  ;;  %v8354_v26 = vsel %vm1532_vm9, %v1542_v16, %v1543_v17  ;;  %v7553_v44 = vld [vmem:[#allocation2 + $0x30] sm:$0xe]  ;;  %v1229_v48 = vpack.c.b16 %v1211_v33, %v1211_v33  ;;  %s6370_s19 = sshll.u32 %s6367_s20, 4  ;;  %s6371_s19 = int_to_ptr.hbm [resolvable:$true] %s6370_s19 }
  0x78   : > { %931 = vst [vmem:[#allocation2 + $0x44] sm:$0x1] %v930_v2  ;;  %v666_v37 = vrot.slane %v662_v28, 4  ;;  %v675_v38 = vrot.slane %v670_v27, 4  ;;  %v673_v40 = vor.u32 %v671_v35, %v670_v27  ;;  %v451_v50 = vld [vmem:[#allocation2 + $0x54] sm:$0x1]  ;;  %v7554_v52 = vor.u32 %v7553_v44, %v7552_v43 }
  0x79   : > { %v8357_v31 = vsel %vm1243_vm10, %v1286_v20, %v1290_v21  ;;  %v452_v53 = vsel %vm8226_vm3, 0, %v451_v50  ;;  %v1293_v54 = vshrl.u32 %v8359_v32, 16  ;;  %v1297_v56 = vrot.slane %v1295_v42, 1  ;;  %v507_v57 = vld [vmem:[#allocation2 + $0x5c] sm:$0x1]  ;;  %s6356_s13 = scalar_lea.sflag [#allocation6], %s8204_s24 }
  0x7a   : > { %v674_v49 = vsel %vm8249_vm7, %v666_v37, %v673_v40  ;;  %453 = vst [vmem:[#allocation2 + $0x54] sm:$0x1] %v452_v53  ;;  %v1300_v58 = vshll.u32 %v1229_v48, 16  ;;  %v552_v59 = vld [vmem:[%s8210_s25 + $0x30] sm:$0xf]  ;;  %v508_v62 = vsel %vm8232_vm4, 0, %v507_v57 }
  0x7b   : > { %2037 = vmatmul.bf16.gmra.mxu2 %v8330_v55  ;;  %v936_v36 = vld [vmem:[#allocation2 + $0x50] sm:$0x1]  ;;  %935 = vst [vmem:[#allocation2 + $0x4c] sm:$0xf] %v674_v49  ;;  %v553_v61 = vld [vmem:[%s8210_s25 + $0x34] sm:$0xf]  ;;  %v1298_v10 = vor.u32 %v1297_v56, %v1293_v54 }
  0x7c   : > { %v932_v41 = vld [vmem:[#allocation2 + $0x48] sm:$0xf]  ;;  %v937_v47 = vsel %vm8226_vm3, %v675_v38, %v936_v36  ;;  %v7742_v63 = vld [vmem:[#allocation2 + $0x3c] sm:$0xf0]  ;;  %v677_v1 = vshrl.u32 %v552_v59, 16  ;;  %v685_v2 = vshrl.u32 %v553_v61, 16 }
  0x7d   : > { %1948 = vmatmul.bf16.gmra.mxu1 %v8333_v60  ;;  %938 = vst [vmem:[#allocation2 + $0x50] sm:$0x1] %v937_v47  ;;  %v1545_v3 = vrot.slane %v7554_v52, 1  ;;  %v1546_v4 = vrot.slane %v1229_v48, 1  ;;  %v680_v7 = vshll.u32 %v552_v59, 16  ;;  %v688_v9 = vshll.u32 %v553_v61, 16 }
  0x7e   : > { %v8377_v34 = vld [vmem:[#allocation2 + $0x3c] sm:$0xff]   ;;  %509 = vst [vmem:[#allocation2 + $0x5c] sm:$0x1] %v508_v62  ;;  %v679_v5 = vrot.slane %v677_v1, 7  ;;  %v687_v8 = vrot.slane %v685_v2, 7  ;;  %v1302_v12 = vrot.slane %v1300_v58, 1 }
  0x7f   : > { %10565 = vst [vmem:[#allocation22_spill] sm:$0xff] %v8377_v34  ;;  %v1050_v14 = vld [vmem:[#allocation2 + $0x44] sm:$0x1]  ;;  %v8382_v18 = vsel %vm1532_vm9, %v1545_v3, %v1546_v4  ;;  %v7743_v21 = vld [vmem:[#allocation2 + $0x3c] sm:$0xe]  ;;  %v1307_v35 = vshll.u32 %v8377_v34, 16 }
  0x80   : > { %v682_v16 = vor.u32 %v680_v7, %v679_v5  ;;  %v690_v17 = vor.u32 %v688_v9, %v687_v8  ;;  %v683_v19 = vrot.slane %v679_v5, 4  ;;  %v692_v23 = vrot.slane %v687_v8, 4  ;;  %v454_v42 = vld [vmem:[#allocation2 + $0x60] sm:$0x1]  ;;  %v554_v50 = vld [vmem:[%s8210_s25 + $0x38] sm:$0xf] }
  0x81   : > { %v939_v20 = vld [vmem:[#allocation2 + $0x54] sm:$0xf]  ;;  %v8387_v24 = vsel %vm1243_vm10, %v1298_v10, %v1302_v12  ;;  %v1212_v25 = vunpack.c.l.b16 %v1050_v14  ;;  %v7744_v36 = vor.u32 %v7743_v21, %v7742_v63  ;;  %v1305_v37 = vshrl.u32 %v8377_v34, 16  ;;  %s7954_s18 = sshra.s32 %s6371_s19, 4  ;;  %s7960_s23 = scalar_lea.hbm %s10469_s9, 256  ;;  %s7955_s18 = int_to_ptr.hbm [resolvable:$true] %s7954_s18 }
  0x82   : > { %1864 = vmatmul.bf16.gmra.mxu0 %v8313_v29  ;;  %v940_v22 = vsel %vm8259_vm8, %v682_v16, %v939_v20  ;;  %v691_v27 = vsel %vm8249_vm7, %v683_v19, %v690_v17  ;;  %v1309_v38 = vrot.slane %v1307_v35, 1  ;;  %v455_v45 = vsel %vm8226_vm3, 0, %v454_v42  ;;  %v7555_v5 = vld [vmem:[#allocation2 + $0x48] sm:$0xf0]  ;;  %v7221_v12 = vld [vmem:[#allocation7 + $0x60] sm:$0xff]  ;;  %s7956_s27 = scalar_lea.hbm %s7955_s18, 128  ;;  %p7961_p11 = scmp.lt.s32.totalorder %s7955_s18, %s10469_s9 }
  0x83   : > { %941 = vst [vmem:[#allocation2 + $0x54] sm:$0xf] %v940_v22  ;;  %v1230_v33 = vpack.c.b16 %v1212_v25, %v1212_v25  ;;  %v1548_v43 = vrot.slane %v7744_v36, 1  ;;  %v694_v53 = vshrl.u32 %v554_v50, 16  ;;  %v697_v58 = vshll.u32 %v554_v50, 16  ;;  %2349 = vmatpush.bf16.msrb.mxu0 %v7221_v12  ;;  %p7957_p1 = scmp.ne.s32.totalorder %s7955_s18, %s7956_s27  ;;  %p7962_p2 = scmp.lt.s32.totalorder %s7960_s23, %s7956_s27 }
  0x84   : > { %942 = vst [vmem:[#allocation2 + $0x58] sm:$0xf] %v691_v27  ;;  %v1310_v48 = vor.u32 %v1309_v38, %v1305_v37  ;;  %v1051_v52 = vld [vmem:[#allocation2 + $0x50] sm:$0x1]  ;;  %v457_v19 = vld [vmem:[#allocation2 + $0x6c] sm:$0x1] }
  0x85   : > { %2275 = vmatmul.bf16.gmra.mxu3 %v8301_v0  ;;  %v665_v0 = vor.u32 %v663_v30, %v662_v28  ;;  %v943_v28 = vld [vmem:[#allocation2 + $0x5c] sm:$0x1]  ;;  %v1312_v40 = vshll.u32 %v1230_v33, 16  ;;  %v1549_v44 = vrot.slane %v1230_v33, 1  ;;  %456 = vst [vmem:[#allocation2 + $0x60] sm:$0x1] %v455_v45  ;;  %v1213_v63 = vunpack.c.l.b16 %v1051_v52  ;;  %p7958_p4 = pnand %p7957_p1, %p8171_p3  ;;  %p7963_p9 = por %p7962_p2, %p7961_p11 }
  0x86   : > { %v944_v30 = vsel %vm8226_vm3, %v692_v23, %v943_v28  ;;  %v696_v57 = vrot.slane %v694_v53, 7  ;;  %v458_v21 = vsel %vm8226_vm3, 0, %v457_v19  ;;  %v513_v25 = vld [vmem:[#allocation2 + $0x74] sm:$0x1]  ;;  %v556_v28 = vld [vmem:[%s8210_s25 + $0x40] sm:$0xf] }
  0x87   : > { %v933_v46 = vsel %vm8259_vm8, %v665_v0, %v932_v41  ;;  %945 = vst [vmem:[#allocation2 + $0x5c] sm:$0x1] %v944_v30  ;;  %v510_v0 = vld [vmem:[#allocation2 + $0x68] sm:$0x1]  ;;  %v1314_v49 = vrot.slane %v1312_v40, 1  ;;  %v8406_v56 = vsel %vm1532_vm9, %v1548_v43, %v1549_v44  ;;  %v1231_v17 = vpack.c.b16 %v1213_v63, %v1213_v63  ;;  %p7959_p8 = pneg %p7958_p4 }
  0x88   : > { %934 = vst [vmem:[#allocation2 + $0x48] sm:$0xf] %v933_v46  ;;  %v511_v41 = vsel %vm8232_vm4, 0, %v510_v0  ;;  %v555_v46 = vld [vmem:[%s8210_s25 + $0x3c] sm:$0xf]  ;;  %v700_v3 = vrot.slane %v696_v57, 4 }
  0x89   : > { %512 = vst [vmem:[#allocation2 + $0x68] sm:$0x1] %v511_v41  ;;  %v702_v47 = vshrl.u32 %v555_v46, 16  ;;  %v705_v59 = vshll.u32 %v555_v46, 16  ;;  %v8409_v61 = vsel %vm1243_vm10, %v1310_v48, %v1314_v49  ;;  %v1324_v27 = vshll.u32 %v1231_v17, 16  ;;  %p7964_p10 = pnand %p7963_p9, %p7959_p8 }
  0x8a   : > { %459 = vst [vmem:[#allocation2 + $0x6c] sm:$0x1] %v458_v21  ;;  %v557_v30 = vld [vmem:[%s8210_s25 + $0x44] sm:$0xf]  ;;  %v514_v33 = vsel %vm8232_vm4, 0, %v513_v25  ;;  %v711_v0 = vshrl.u32 %v556_v28, 16 }
  0x8b   : > { %2042 = vmatmul.bf16.gmra.mxu2 %v8354_v26  ;;  %v704_v54 = vrot.slane %v702_v47, 7  ;;  %v8429_v35 = vld [vmem:[#allocation2 + $0x54] sm:$0xff]   ;;  %v719_v37 = vshrl.u32 %v557_v30, 16  ;;  %515 = vst [vmem:[#allocation2 + $0x74] sm:$0x1] %v514_v33  ;;  %v1552_v40 = vrot.slane %v1231_v17, 1 }
  0x8c   : > { %v946_v7 = vld [vmem:[#allocation2 + $0x60] sm:$0xf]  ;;  %10566 = vst [vmem:[#allocation23_spill] sm:$0xff] %v8429_v35  ;;  %v7745_v36 = vld [vmem:[#allocation2 + $0x54] sm:$0xf0]  ;;  %v713_v42 = vrot.slane %v711_v0, 7 }
  0x8d   : > { %1953 = vmatmul.bf16.gmra.mxu1 %v8357_v31  ;;  %v709_v1 = vrot.slane %v704_v54, 4  ;;  %v707_v4 = vor.u32 %v705_v59, %v704_v54  ;;  %v714_v43 = vshll.u32 %v556_v28, 16  ;;  %v721_v44 = vrot.slane %v719_v37, 7  ;;  %v7746_v54 = vld [vmem:[#allocation2 + $0x54] sm:$0xe] }
  0x8e   : > { %v1326_v45 = vrot.slane %v1324_v27, 1  ;;  %v722_v46 = vshll.u32 %v557_v30, 16  ;;  %v1052_v47 = vld [vmem:[#allocation2 + $0x5c] sm:$0x1]  ;;  %v717_v50 = vrot.slane %v713_v42, 4 }
  0x8f   : > { %v8411_v62 = vld [vmem:[#allocation2 + $0x48] sm:$0xff]   ;;  %v708_v14 = vsel %vm8249_vm7, %v700_v3, %v707_v4  ;;  %v716_v48 = vor.u32 %v714_v43, %v713_v42  ;;  %v1214_v63 = vunpack.c.l.b16 %v1052_v47  ;;  %v1331_v4 = vshll.u32 %v8429_v35, 16  ;;  %v558_v25 = vld [vmem:[%s8210_s25 + $0x48] sm:$0xf] }
  0x90   : > { %v950_v2 = vld [vmem:[#allocation2 + $0x68] sm:$0x1]  ;;  %v1319_v9 = vshll.u32 %v8411_v62, 16  ;;  %v7556_v10 = vld [vmem:[#allocation2 + $0x48] sm:$0xe]  ;;  %v1317_v22 = vshrl.u32 %v8411_v62, 16  ;;  %v724_v52 = vor.u32 %v722_v46, %v721_v44 }
  0x91   : > { %v951_v8 = vsel %vm8226_vm3, %v709_v1, %v950_v2  ;;  %949 = vst [vmem:[#allocation2 + $0x64] sm:$0xf] %v708_v14  ;;  %v7557_v20 = vor.u32 %v7556_v10, %v7555_v5  ;;  %v953_v53 = vld [vmem:[#allocation2 + $0x6c] sm:$0xf]  ;;  %v1232_v3 = vpack.c.b16 %v1214_v63, %v1214_v63  ;;  %v7747_v5 = vor.u32 %v7746_v54, %v7745_v36  ;;  %v460_v14 = vld [vmem:[#allocation2 + $0x78] sm:$0x1] }
  0x92   : > { %1869 = vmatmul.bf16.gmra.mxu0 %v8359_v32  ;;  %952 = vst [vmem:[#allocation2 + $0x68] sm:$0x1] %v951_v8  ;;  %v1321_v23 = vrot.slane %v1319_v9, 1  ;;  %v725_v1 = vsel %vm8249_vm7, %v717_v50, %v724_v52  ;;  %v957_v2 = vld [vmem:[#allocation2 + $0x74] sm:$0x1]  ;;  %v1329_v8 = vshrl.u32 %v8429_v35, 16 }
  0x93   : > { %v1551_v38 = vrot.slane %v7557_v20, 1  ;;  %956 = vst [vmem:[#allocation2 + $0x70] sm:$0xf] %v725_v1  ;;  %v1333_v9 = vrot.slane %v1331_v4, 1  ;;  %v1336_v10 = vshll.u32 %v1232_v3, 16  ;;  %v1555_v17 = vrot.slane %v1232_v3, 1 }
  0x94   : > { %v1322_v41 = vor.u32 %v1321_v23, %v1317_v22  ;;  %v461_v19 = vsel %vm8226_vm3, 0, %v460_v14  ;;  %v559_v20 = vld [vmem:[%s8210_s25 + $0x4c] sm:$0xf]  ;;  %v728_v28 = vshrl.u32 %v558_v25, 16  ;;  %v731_v0 = vshll.u32 %v558_v25, 16 }
  0x95   : > { %2280 = vmatmul.bf16.gmra.mxu3 %v8313_v29  ;;  %v8434_v49 = vsel %vm1532_vm9, %v1551_v38, %v1552_v40  ;;  %462 = vst [vmem:[#allocation2 + $0x78] sm:$0x1] %v461_v19  ;;  %v736_v21 = vshrl.u32 %v559_v20, 16  ;;  %v1334_v22 = vor.u32 %v1333_v9, %v1329_v8  ;;  %v1338_v23 = vrot.slane %v1336_v10, 1  ;;  %v463_v63 = vld [vmem:[#allocation2 + $0x84] sm:$0x1] }
  0x96   : > { %v8439_v59 = vsel %vm1243_vm10, %v1322_v41, %v1326_v45  ;;  %v730_v36 = vrot.slane %v728_v28, 7  ;;  %v739_v37 = vshll.u32 %v559_v20, 16  ;;  %v519_v4 = vld [vmem:[#allocation2 + $0x8c] sm:$0x1]  ;;  %v561_v8 = vld [vmem:[%s8210_s25 + $0x54] sm:$0xf] }
  0x97   : > { %v738_v30 = vrot.slane %v736_v21, 7  ;;  %v8461_v38 = vsel %vm1243_vm10, %v1334_v22, %v1338_v23  ;;  %v520_v9 = vsel %vm8232_vm4, 0, %v519_v4 }
  0x98   : > { %v7558_v46 = vld [vmem:[#allocation2 + $0x60] sm:$0xf0]  ;;  %521 = vst [vmem:[#allocation2 + $0x8c] sm:$0x1] %v520_v9 }
  0x99   : > { %v1053_v27 = vld [vmem:[#allocation2 + $0x68] sm:$0x1]  ;;  %v743_v42 = vrot.slane %v738_v30, 4  ;;  %v741_v45 = vor.u32 %v739_v37, %v738_v30 }
  0x9a   : > { %v1215_v41 = vunpack.c.l.b16 %v1053_v27  ;;  %v756_v27 = vshll.u32 %v561_v8, 16 }
  0x9b   : > { %2047 = vmatmul.bf16.gmra.mxu2 %v8382_v18 }
  0x9c   : > { %v960_v47 = vld [vmem:[#allocation2 + $0x78] sm:$0xf] }
  0x9d   : > { %1958 = vmatmul.bf16.gmra.mxu1 %v8387_v24 }
  0xa2   : > { %1874 = vmatmul.bf16.gmra.mxu0 %v8377_v34 }
  0xa5   : > { %2285 = vmatmul.bf16.gmra.mxu3 %v8359_v32  ;;  %v699_v32 = vor.u32 %v697_v58, %v696_v57  ;;  %v954_v57 = vsel %vm8259_vm8, %v716_v48, %v953_v53  ;;  %v726_v58 = vrot.slane %v721_v44, 4  ;;  %v734_v44 = vrot.slane %v730_v36, 4  ;;  %v7220_v53 = vld [vmem:[#allocation7 + $0x58] sm:$0xff] }
  0xa6   : > { %955 = vst [vmem:[#allocation2 + $0x6c] sm:$0xf] %v954_v57  ;;  %2350 = vmatpush.bf16.msrb.mxu0 %v7220_v53 }
  0xa7   : > { %v947_v16 = vsel %vm8259_vm8, %v699_v32, %v946_v7  ;;  %v958_v32 = vsel %vm8226_vm3, %v726_v58, %v957_v2  ;;  %v516_v7 = vld [vmem:[#allocation2 + $0x80] sm:$0x1]  ;;  %v742_v54 = vsel %vm8249_vm7, %v734_v44, %v741_v45  ;;  %v1233_v58 = vpack.c.b16 %v1215_v41, %v1215_v41 }
  0xa8   : > { %948 = vst [vmem:[#allocation2 + $0x60] sm:$0xf] %v947_v16  ;;  %v517_v12 = vsel %vm8232_vm4, 0, %v516_v7  ;;  %v1554_v16 = vrot.slane %v7747_v5, 1  ;;  %v464_v2 = vsel %vm8226_vm3, 0, %v463_v63 }
  0xa9   : > { %959 = vst [vmem:[#allocation2 + $0x74] sm:$0x1] %v958_v32  ;;  %v1348_v5 = vshll.u32 %v1233_v58, 16  ;;  %v560_v7 = vld [vmem:[%s8210_s25 + $0x50] sm:$0xf]  ;;  %v1558_v19 = vrot.slane %v1233_v58, 1 }
  0xaa   : > { %518 = vst [vmem:[#allocation2 + $0x80] sm:$0x1] %v517_v12  ;;  %v8458_v33 = vsel %vm1532_vm9, %v1554_v16, %v1555_v17  ;;  %v7748_v12 = vld [vmem:[#allocation2 + $0x6c] sm:$0xf0]  ;;  %v745_v14 = vshrl.u32 %v560_v7, 16  ;;  %v753_v16 = vshrl.u32 %v561_v8, 16 }
  0xab   : > { %2052 = vmatmul.bf16.gmra.mxu2 %v8406_v56  ;;  %963 = vst [vmem:[#allocation2 + $0x7c] sm:$0xf] %v742_v54  ;;  %v748_v22 = vshll.u32 %v560_v7, 16  ;;  %v1350_v25 = vrot.slane %v1348_v5, 1  ;;  %v522_v54 = vld [vmem:[#allocation2 + $0x98] sm:$0x1] }
  0xac   : > { %465 = vst [vmem:[#allocation2 + $0x84] sm:$0x1] %v464_v2  ;;  %v747_v21 = vrot.slane %v745_v14, 7  ;;  %v755_v23 = vrot.slane %v753_v16, 7  ;;  %v523_v2 = vsel %vm8232_vm4, 0, %v522_v54  ;;  %v7219_v54 = vld [vmem:[#allocation7 + $0x50] sm:$0xff] }
  0xad   : > { %1963 = vmatmul.bf16.gmra.mxu1 %v8409_v61  ;;  %v8481_v10 = vld [vmem:[#allocation2 + $0x6c] sm:$0xff]   ;;  %524 = vst [vmem:[#allocation2 + $0x98] sm:$0x1] %v523_v2  ;;  %v562_v16 = vld [vmem:[%s8210_s25 + $0x58] sm:$0xf]  ;;  %2351 = vmatpush.bf16.msrb.mxu0 %v7219_v54 }
  0xae   : > { %10567 = vst [vmem:[#allocation24_spill] sm:$0xff] %v8481_v10  ;;  %v750_v30 = vor.u32 %v748_v22, %v747_v21  ;;  %v758_v37 = vor.u32 %v756_v27, %v755_v23  ;;  %v1353_v58 = vshrl.u32 %v8481_v10, 16  ;;  %v563_v7 = vld [vmem:[%s8210_s25 + $0x5c] sm:$0xf]  ;;  %v765_v27 = vshll.u32 %v562_v16, 16 }
  0xaf   : > { %v8463_v40 = vld [vmem:[#allocation2 + $0x60] sm:$0xff]   ;;  %v770_v8 = vshrl.u32 %v563_v7, 16  ;;  %v7232_v2 = vld [vmem:[#allocation7 + $0xb8] sm:$0xff] }
  0xb0   : > { %v1343_v50 = vshll.u32 %v8463_v40, 16  ;;  %v7559_v52 = vld [vmem:[#allocation2 + $0x60] sm:$0xe]  ;;  %v1341_v32 = vshrl.u32 %v8463_v40, 16  ;;  %v1054_v28 = vld [vmem:[#allocation2 + $0x74] sm:$0x1]  ;;  %2435 = vmatpush.bf16.msrb.mxu1 %v7232_v2 }
  0xb1   : > { %v964_v43 = vld [vmem:[#allocation2 + $0x80] sm:$0x1]  ;;  %v7560_v1 = vor.u32 %v7559_v52, %v7558_v46  ;;  %v1216_v45 = vunpack.c.l.b16 %v1054_v28  ;;  %v1355_v52 = vshll.u32 %v8481_v10, 16  ;;  %v773_v28 = vshll.u32 %v563_v7, 16 }
  0xb2   : > { %1879 = vmatmul.bf16.gmra.mxu0 %v8411_v62  ;;  %v965_v48 = vsel %vm8226_vm3, %v743_v42, %v964_v43  ;;  %v1345_v3 = vrot.slane %v1343_v50, 1  ;;  %v7749_v42 = vld [vmem:[#allocation2 + $0x6c] sm:$0xe] }
  0xb3   : > { %966 = vst [vmem:[#allocation2 + $0x80] sm:$0x1] %v965_v48  ;;  %v1557_v17 = vrot.slane %v7560_v1, 1  ;;  %v967_v41 = vld [vmem:[#allocation2 + $0x84] sm:$0xf]  ;;  %v1234_v50 = vpack.c.b16 %v1216_v45, %v1216_v45  ;;  %v7750_v53 = vor.u32 %v7749_v42, %v7748_v12  ;;  %v1357_v63 = vrot.slane %v1355_v52, 1 }
  0xb4   : > { %v1346_v20 = vor.u32 %v1345_v3, %v1341_v32  ;;  %v968_v43 = vsel %vm8259_vm8, %v750_v30, %v967_v41  ;;  %v466_v32 = vld [vmem:[#allocation2 + $0x90] sm:$0x1]  ;;  %v978_v41 = vld [vmem:[#allocation2 + $0x98] sm:$0x1] }
  0xb5   : > { %2290 = vmatmul.bf16.gmra.mxu3 %v8377_v34  ;;  %969 = vst [vmem:[#allocation2 + $0x84] sm:$0xf] %v968_v43  ;;  %v1360_v1 = vshll.u32 %v1234_v50, 16  ;;  %v1560_v3 = vrot.slane %v7750_v53, 1  ;;  %v1561_v4 = vrot.slane %v1234_v50, 1  ;;  %v467_v5 = vsel %vm8226_vm3, 0, %v466_v32 }
  0xb6   : > { %v8491_v44 = vsel %vm1243_vm10, %v1346_v20, %v1350_v25  ;;  %468 = vst [vmem:[#allocation2 + $0x90] sm:$0x1] %v467_v5  ;;  %v1358_v9 = vor.u32 %v1357_v63, %v1353_v58  ;;  %v469_v32 = vld [vmem:[#allocation2 + $0x9c] sm:$0x1] }
  0xb7   : > { %v1362_v12 = vrot.slane %v1360_v1, 1  ;;  %v8510_v20 = vsel %vm1532_vm9, %v1560_v3, %v1561_v4  ;;  %v470_v7 = vsel %vm8226_vm3, 0, %v469_v32 }
  0xb8   : > { %471 = vst [vmem:[#allocation2 + $0x9c] sm:$0x1] %v470_v7 }
  0xba   : > { %v1055_v14 = vld [vmem:[#allocation2 + $0x80] sm:$0x1] }
  0xbb   : > { %2057 = vmatmul.bf16.gmra.mxu2 %v8434_v49 }
  0xbd   : > { %1968 = vmatmul.bf16.gmra.mxu1 %v8439_v59 }
  0xc2   : > { %1884 = vmatmul.bf16.gmra.mxu0 %v8429_v35 }
  0xc5   : > { %2295 = vmatmul.bf16.gmra.mxu3 %v8411_v62  ;;  %v733_v62 = vor.u32 %v731_v0, %v730_v36  ;;  %v751_v36 = vrot.slane %v747_v21, 4  ;;  %v8486_v0 = vsel %vm1532_vm9, %v1557_v17, %v1558_v19  ;;  %v762_v17 = vshrl.u32 %v562_v16, 16 }
  0xc6   : > { %v772_v19 = vrot.slane %v770_v8, 7 }
  0xc7   : > { %v961_v57 = vsel %vm8259_vm8, %v733_v62, %v960_v47  ;;  %v760_v62 = vrot.slane %v755_v23, 4  ;;  %v759_v46 = vsel %vm8249_vm7, %v751_v36, %v758_v37  ;;  %v971_v47 = vld [vmem:[#allocation2 + $0x8c] sm:$0x1]  ;;  %v1217_v23 = vunpack.c.l.b16 %v1055_v14  ;;  %v525_v14 = vld [vmem:[#allocation2 + $0xa4] sm:$0x1] }
  0xc8   : > { %962 = vst [vmem:[#allocation2 + $0x78] sm:$0xf] %v961_v57  ;;  %v764_v25 = vrot.slane %v762_v17, 7  ;;  %v8515_v36 = vsel %vm1243_vm10, %v1358_v9, %v1362_v12 }
  0xc9   : > { %970 = vst [vmem:[#allocation2 + $0x88] sm:$0xf] %v759_v46  ;;  %v972_v48 = vsel %vm8226_vm3, %v760_v62, %v971_v47  ;;  %v7561_v46 = vld [vmem:[#allocation2 + $0x78] sm:$0xf0]  ;;  %v775_v47 = vor.u32 %v773_v28, %v772_v19  ;;  %v1235_v52 = vpack.c.b16 %v1217_v23, %v1217_v23  ;;  %v565_v23 = vld [vmem:[%s8210_s25 + $0x64] sm:$0xf] }
  0xca   : > { %973 = vst [vmem:[#allocation2 + $0x8c] sm:$0x1] %v972_v48  ;;  %v767_v43 = vor.u32 %v765_v27, %v764_v25  ;;  %v768_v62 = vrot.slane %v764_v25, 4  ;;  %v974_v48 = vld [vmem:[#allocation2 + $0x90] sm:$0xf]  ;;  %v526_v25 = vsel %vm8232_vm4, 0, %v525_v14 }
  0xcb   : > { %2062 = vmatmul.bf16.gmra.mxu2 %v8458_v33  ;;  %v1372_v12 = vshll.u32 %v1235_v52, 16  ;;  %527 = vst [vmem:[#allocation2 + $0xa4] sm:$0x1] %v526_v25 }
  0xcc   : > { %v776_v63 = vsel %vm8249_vm7, %v768_v62, %v775_v47 }
  0xcd   : > { %1973 = vmatmul.bf16.gmra.mxu1 %v8461_v38  ;;  %977 = vst [vmem:[#allocation2 + $0x94] sm:$0xf] %v776_v63  ;;  %v1374_v62 = vrot.slane %v1372_v12, 1 }
  0xcf   : > { %v8512_v22 = vld [vmem:[#allocation2 + $0x78] sm:$0xff]  }
  0xd0   : > { %v1367_v45 = vshll.u32 %v8512_v22, 16  ;;  %v7562_v53 = vld [vmem:[#allocation2 + $0x78] sm:$0xe]  ;;  %v1365_v3 = vshrl.u32 %v8512_v22, 16  ;;  %v8535_v28 = vld [vmem:[#allocation2 + $0x84] sm:$0xff]  }
  0xd1   : > { %v7563_v5 = vor.u32 %v7562_v53, %v7561_v46  ;;  %10568 = vst [vmem:[#allocation25_spill] sm:$0xff] %v8535_v28  ;;  %v1056_v53 = vld [vmem:[#allocation2 + $0x8c] sm:$0x1] }
  0xd2   : > { %1889 = vmatmul.bf16.gmra.mxu0 %v8463_v40  ;;  %v1369_v4 = vrot.slane %v1367_v45, 1  ;;  %v1218_v12 = vunpack.c.l.b16 %v1056_v53  ;;  %v472_v53 = vld [vmem:[#allocation2 + $0xa8] sm:$0x1] }
  0xd5   : > { %2300 = vmatmul.bf16.gmra.mxu3 %v8429_v35 }
  0xdb   : > { %2067 = vmatmul.bf16.gmra.mxu2 %v8486_v0 }
  0xdd   : > { %1978 = vmatmul.bf16.gmra.mxu1 %v8491_v44 }
  0xdf   : > { %v1855_v57 = vpop.f32.mrf.mxu0 }
  0xe2   : > { %1894 = vmatmul.bf16.gmra.mxu0 %v8481_v10 }
  0xe5   : > { %2305 = vmatmul.bf16.gmra.mxu3 %v8463_v40  ;;  %v777_v40 = vrot.slane %v772_v19, 4  ;;  %v564_v19 = vld [vmem:[%s8210_s25 + $0x60] sm:$0xf] }
  0xe6   : > { %v782_v46 = vshll.u32 %v564_v19, 16 }
  0xe7   : > { %v1857_v37 = vpop.f32.mrf.mxu0  ;;  %v979_v50 = vsel %vm8226_vm3, %v777_v40, %v978_v41  ;;  %v779_v40 = vshrl.u32 %v564_v19, 16  ;;  %v787_v41 = vshrl.u32 %v565_v23, 16 }
  0xe8   : > { %v2266_v21 = vpop.f32.mrf.mxu3  ;;  %980 = vst [vmem:[#allocation2 + $0x98] sm:$0x1] %v979_v50  ;;  %v790_v50 = vshll.u32 %v565_v23, 16 }
  0xe9   : > { %v781_v45 = vrot.slane %v779_v40, 7  ;;  %v789_v47 = vrot.slane %v787_v41, 7  ;;  %v1379_v40 = vshll.u32 %v8535_v28, 16 }
  0xea   : > { %v1944_v30 = vpop.f32.mrf.mxu1 }
  0xeb   : > { %v1945_v42 = vadd.f32 %v1944_v30, %v1855_v57  ;;  %2072 = vmatmul.bf16.gmra.mxu2 %v8510_v20  ;;  %v975_v57 = vsel %vm8259_vm8, %v767_v43, %v974_v48  ;;  %v7751_v30 = vld [vmem:[#allocation2 + $0x84] sm:$0xf0]  ;;  %v1564_v43 = vrot.slane %v1235_v52, 1  ;;  %v784_v54 = vor.u32 %v782_v46, %v781_v45 }
  0xec   : > { %976 = vst [vmem:[#allocation2 + $0x90] sm:$0xf] %v975_v57  ;;  %v792_v63 = vor.u32 %v790_v50, %v789_v47  ;;  %v1377_v46 = vshrl.u32 %v8535_v28, 16 }
  0xed   : > { %1983 = vmatmul.bf16.gmra.mxu1 %v8515_v36 }
  0xee   : > { %v2033_v58 = vpop.f32.mrf.mxu2 }
  0xef   : > { %v2034_v1 = vadd.f32 %v2033_v58, %v1945_v42  ;;  %v1860_v17 = vpop.f32.mrf.mxu0  ;;  %v1563_v42 = vrot.slane %v7563_v5, 1  ;;  %v785_v58 = vrot.slane %v781_v45, 4 }
  0xf0   : > { %v2268_v9 = vpop.f32.mrf.mxu3 }
  0xf1   : > { %v8529_v8 = vadd.f32 %v2266_v21, %v2034_v1  ;;  %v1370_v21 = vor.u32 %v1369_v4, %v1365_v3  ;;  %v8540_v57 = vsel %vm1532_vm9, %v1563_v42, %v1564_v43  ;;  %v981_v1 = vld [vmem:[#allocation2 + $0x9c] sm:$0xf]  ;;  %v7752_v3 = vld [vmem:[#allocation2 + $0x84] sm:$0xe]  ;;  %v793_v14 = vsel %vm8249_vm7, %v785_v58, %v792_v63  ;;  %v528_v43 = vld [vmem:[#allocation2 + $0xb0] sm:$0x1] }
  0xf2   : > { %v1946_v16 = vpop.f32.mrf.mxu1  ;;  %1899 = vmatmul.bf16.gmra.mxu0 %v8512_v22  ;;  %v982_v4 = vsel %vm8259_vm8, %v784_v54, %v981_v1  ;;  %984 = vst [vmem:[#allocation2 + $0xa0] sm:$0xf] %v793_v14  ;;  %v529_v50 = vsel %vm8232_vm4, 0, %v528_v43  ;;  %v473_v58 = vsel %vm8226_vm3, 0, %v472_v53  ;;  %v567_v63 = vld [vmem:[%s8210_s25 + $0x6c] sm:$0xf] }
  0xf3   : > { %v1947_v27 = vadd.f32 %v1946_v16, %v1857_v37  ;;  %v8545_v2 = vsel %vm1243_vm10, %v1370_v21, %v1374_v62  ;;  %983 = vst [vmem:[#allocation2 + $0x9c] sm:$0xf] %v982_v4  ;;  %v794_v16 = vrot.slane %v789_v47, 4  ;;  %v7753_v21 = vor.u32 %v7752_v3, %v7751_v30  ;;  %v8575_v43 = vld [vmem:[#allocation2 + $0x90] sm:$0xff]  }
  0xf4   : > { %v1381_v47 = vrot.slane %v1379_v40, 1  ;;  %530 = vst [vmem:[#allocation2 + $0xb0] sm:$0x1] %v529_v50  ;;  %v804_v1 = vshrl.u32 %v567_v63, 16 }
  0xf5   : > { %2310 = vmatmul.bf16.gmra.mxu3 %v8481_v10  ;;  %v1566_v54 = vrot.slane %v7753_v21, 1  ;;  %474 = vst [vmem:[#allocation2 + $0xa8] sm:$0x1] %v473_v58  ;;  %v7564_v58 = vld [vmem:[#allocation2 + $0x90] sm:$0xf0] }
  0xf6   : > { %v2035_v48 = vpop.f32.mrf.mxu2  ;;  %v1382_v3 = vor.u32 %v1381_v47, %v1377_v46 }
  0xf7   : > { %v2036_v37 = vadd.f32 %v2035_v48, %v1947_v27  ;;  %v1862_v7 = vpop.f32.mrf.mxu0  ;;  %v1236_v27 = vpack.c.b16 %v1218_v12, %v1218_v12  ;;  %v566_v12 = vld [vmem:[%s8210_s25 + $0x68] sm:$0xf] }
  0xf8   : > { %v2271_v32 = vpop.f32.mrf.mxu3  ;;  %v796_v14 = vshrl.u32 %v566_v12, 16 }
  0xf9   : > { %v8542_v52 = vadd.f32 %v2268_v9, %v2036_v37  ;;  %v985_v9 = vld [vmem:[#allocation2 + $0xa4] sm:$0x1]  ;;  %v1384_v48 = vshll.u32 %v1236_v27, 16  ;;  %v1567_v30 = vrot.slane %v1236_v27, 1 }
  0xfa   : > { %v1949_v5 = vpop.f32.mrf.mxu1  ;;  %v986_v23 = vsel %vm8226_vm3, %v794_v16, %v985_v9  ;;  %v798_v27 = vrot.slane %v796_v14, 7  ;;  %v1389_v14 = vshrl.u32 %v8575_v43, 16 }
  0xfb   : > { %v1950_v19 = vadd.f32 %v1949_v5, %v1860_v17  ;;  %2077 = vmatmul.bf16.gmra.mxu2 %v8540_v57  ;;  %987 = vst [vmem:[#allocation2 + $0xa4] sm:$0x1] %v986_v23  ;;  %v1386_v4 = vrot.slane %v1384_v48, 1  ;;  %v1057_v5 = vld [vmem:[#allocation2 + $0x98] sm:$0x1]  ;;  %v8568_v16 = vsel %vm1532_vm9, %v1566_v54, %v1567_v30  ;;  %v1391_v30 = vshll.u32 %v8575_v43, 16 }
  0xfc   : > { %v802_v47 = vrot.slane %v798_v27, 4  ;;  %v992_v48 = vld [vmem:[#allocation2 + $0xb0] sm:$0x1]  ;;  %v988_v53 = vld [vmem:[#allocation2 + $0xa8] sm:$0xf] }
  0xfd   : > { %1988 = vmatmul.bf16.gmra.mxu1 %v8545_v2 }
  0xfe   : > { %v2038_v25 = vpop.f32.mrf.mxu2 }
  0xff   : > { %v2039_v41 = vadd.f32 %v2038_v25, %v1950_v19  ;;  %v1865_v45 = vpop.f32.mrf.mxu0  ;;  %v806_v19 = vrot.slane %v804_v1, 7  ;;  %v1219_v25 = vunpack.c.l.b16 %v1057_v5  ;;  %v7565_v1 = vld [vmem:[#allocation2 + $0x90] sm:$0xe] }
 0x100   : > { %v2273_v17 = vpop.f32.mrf.mxu3 }
 0x101   : > { %v8556_v42 = vadd.f32 %v2271_v32, %v2039_v41  ;;  %v8573_v41 = vsel %vm1243_vm10, %v1382_v3, %v1386_v4  ;;  %v1237_v54 = vpack.c.b16 %v1219_v25, %v1219_v25 }
 0x102   : > { %v1951_v62 = vpop.f32.mrf.mxu1  ;;  %1904 = vmatmul.bf16.gmra.mxu0 %v8535_v28 }
 0x103   : > { %v1952_v37 = vadd.f32 %v1951_v62, %v1862_v7  ;;  %v807_v62 = vshll.u32 %v567_v63, 16 }
 0x105   : > { %2315 = vmatmul.bf16.gmra.mxu3 %v8512_v22  ;;  %v799_v22 = vshll.u32 %v566_v12, 16  ;;  %v7231_v12 = vld [vmem:[#allocation7 + $0xb0] sm:$0xff] }
 0x106   : > { %v2040_v32 = vpop.f32.mrf.mxu2  ;;  %2436 = vmatpush.bf16.msrb.mxu1 %v7231_v12 }
 0x107   : > { %v2041_v7 = vadd.f32 %v2040_v32, %v1952_v37  ;;  %v1867_v21 = vpop.f32.mrf.mxu0  ;;  %v801_v50 = vor.u32 %v799_v22, %v798_v27  ;;  %v811_v37 = vrot.slane %v806_v19, 4  ;;  %v7218_v32 = vld [vmem:[#allocation7 + $0x48] sm:$0xff]  ;;  %v1393_v22 = vrot.slane %v1391_v30, 1 }
 0x108   : > { %v2276_v23 = vpop.f32.mrf.mxu3  ;;  %2352 = vmatpush.bf16.msrb.mxu0 %v7218_v32  ;;  %v1570_v30 = vrot.slane %v1237_v54, 1 }
 0x109   : > { %v8570_v9 = vadd.f32 %v2273_v17, %v2041_v7  ;;  %v809_v17 = vor.u32 %v807_v62, %v806_v19  ;;  %v989_v63 = vsel %vm8259_vm8, %v801_v50, %v988_v53  ;;  %v993_v4 = vsel %vm8226_vm3, %v811_v37, %v992_v48  ;;  %v475_v7 = vld [vmem:[#allocation2 + $0xb4] sm:$0x1]  ;;  %v568_v50 = vld [vmem:[%s8210_s25 + $0x70] sm:$0xf] }
 0x10a   : > { %v1954_v40 = vpop.f32.mrf.mxu1  ;;  %990 = vst [vmem:[#allocation2 + $0xa8] sm:$0xf] %v989_v63  ;;  %v7566_v19 = vor.u32 %v7565_v1, %v7564_v58  ;;  %v476_v25 = vsel %vm8226_vm3, 0, %v475_v7  ;;  %v1396_v62 = vshll.u32 %v1237_v54, 16  ;;  %v8593_v53 = vld [vmem:[#allocation2 + $0x9c] sm:$0xff]   ;;  %v813_v1 = vshrl.u32 %v568_v50, 16 }
 0x10b   : > { %v1955_v46 = vadd.f32 %v1954_v40, %v1865_v45  ;;  %2082 = vmatmul.bf16.gmra.mxu2 %v8568_v16  ;;  %v810_v45 = vsel %vm8249_vm7, %v802_v47, %v809_v17  ;;  %994 = vst [vmem:[#allocation2 + $0xb0] sm:$0x1] %v993_v4  ;;  %v569_v17 = vld [vmem:[%s8210_s25 + $0x74] sm:$0xf]  ;;  %v7754_v58 = vld [vmem:[#allocation2 + $0x9c] sm:$0xf0]  ;;  %v1394_v7 = vor.u32 %v1393_v22, %v1389_v14 }
 0x10c   : > { %991 = vst [vmem:[#allocation2 + $0xac] sm:$0xf] %v810_v45  ;;  %v821_v32 = vshrl.u32 %v569_v17, 16  ;;  %v815_v45 = vrot.slane %v813_v1, 7  ;;  %v816_v63 = vshll.u32 %v568_v50, 16 }
 0x10d   : > { %1993 = vmatmul.bf16.gmra.mxu1 %v8573_v41  ;;  %477 = vst [vmem:[#allocation2 + $0xb4] sm:$0x1] %v476_v25  ;;  %v7755_v1 = vld [vmem:[#allocation2 + $0x9c] sm:$0xe] }
 0x10e   : > { %v2043_v3 = vpop.f32.mrf.mxu2  ;;  %10569 = vst [vmem:[#allocation26_spill] sm:$0xff] %v8593_v53  ;;  %v823_v4 = vrot.slane %v821_v32, 7  ;;  %v818_v10 = vor.u32 %v816_v63, %v815_v45  ;;  %v819_v35 = vrot.slane %v815_v45, 4  ;;  %v1403_v45 = vshll.u32 %v8593_v53, 16 }
 0x10f   : > { %v2044_v5 = vadd.f32 %v2043_v3, %v1955_v46  ;;  %v531_v46 = vld [vmem:[#allocation2 + $0xbc] sm:$0x1]  ;;  %v1870_v48 = vpop.f32.mrf.mxu0  ;;  %v1569_v3 = vrot.slane %v7566_v19, 1 }
 0x110   : > { %v2278_v40 = vpop.f32.mrf.mxu3  ;;  %v828_v14 = vrot.slane %v823_v4, 4 }
 0x111   : > { %v8589_v27 = vadd.f32 %v2276_v23, %v2044_v5  ;;  %v532_v23 = vsel %vm8232_vm4, 0, %v531_v46  ;;  %v824_v5 = vshll.u32 %v569_v17, 16  ;;  %v8600_v19 = vsel %vm1532_vm9, %v1569_v3, %v1570_v30 }
 0x112   : > { %v1956_v47 = vpop.f32.mrf.mxu1  ;;  %533 = vst [vmem:[#allocation2 + $0xbc] sm:$0x1] %v532_v23  ;;  %1909 = vmatmul.bf16.gmra.mxu0 %v8575_v43 }
 0x113   : > { %v1957_v37 = vadd.f32 %v1956_v47, %v1867_v21  ;;  %v1398_v21 = vrot.slane %v1396_v62, 1  ;;  %v1058_v47 = vld [vmem:[#allocation2 + $0xa4] sm:$0x1]  ;;  %v826_v34 = vor.u32 %v824_v5, %v823_v4  ;;  %10570 = vst [vmem:[#allocation27_spill] sm:$0xff] %v8600_v19  ;;  %v7756_v4 = vor.u32 %v7755_v1, %v7754_v58  ;;  %v534_v5 = vld [vmem:[#allocation2 + $0xc8] sm:$0x1] }
 0x114   : > { %v995_v17 = vld [vmem:[#allocation2 + $0xb4] sm:$0xf]  ;;  %v1220_v32 = vunpack.c.l.b16 %v1058_v47  ;;  %v571_v1 = vld [vmem:[%s8210_s25 + $0x7c] sm:$0xf] }
 0x115   : > { %2320 = vmatmul.bf16.gmra.mxu3 %v8535_v28  ;;  %v827_v50 = vsel %vm8249_vm7, %v819_v35, %v826_v34  ;;  %v8607_v62 = vsel %vm1243_vm10, %v1394_v7, %v1398_v21  ;;  %v996_v23 = vsel %vm8259_vm8, %v818_v10, %v995_v17  ;;  %v1401_v21 = vshrl.u32 %v8593_v53, 16  ;;  %v7217_v28 = vld [vmem:[#allocation7 + $0x40] sm:$0xff] }
 0x116   : > { %v2045_v12 = vpop.f32.mrf.mxu2  ;;  %998 = vst [vmem:[#allocation2 + $0xb8] sm:$0xf] %v827_v50  ;;  %v1238_v30 = vpack.c.b16 %v1220_v32, %v1220_v32  ;;  %v535_v50 = vsel %vm8232_vm4, 0, %v534_v5  ;;  %v838_v32 = vshrl.u32 %v571_v1, 16  ;;  %2353 = vmatpush.bf16.msrb.mxu0 %v7217_v28 }
 0x117   : > { %v2046_v25 = vadd.f32 %v2045_v12, %v1957_v37  ;;  %v1872_v37 = vpop.f32.mrf.mxu0  ;;  %997 = vst [vmem:[#allocation2 + $0xb4] sm:$0xf] %v996_v23 }
 0x118   : > { %v2281_v46 = vpop.f32.mrf.mxu3  ;;  %v1408_v47 = vshll.u32 %v1238_v30, 16  ;;  %536 = vst [vmem:[#allocation2 + $0xc8] sm:$0x1] %v535_v50  ;;  %v1573_v58 = vrot.slane %v1238_v30, 1  ;;  %v840_v30 = vrot.slane %v838_v32, 7 }
 0x119   : > { %v8602_v54 = vadd.f32 %v2278_v40, %v2046_v25  ;;  %v999_v40 = vld [vmem:[#allocation2 + $0xbc] sm:$0x1]  ;;  %v1405_v25 = vrot.slane %v1403_v45, 1 }
 0x11a   : > { %v1959_v22 = vpop.f32.mrf.mxu1  ;;  %v1000_v34 = vsel %vm8226_vm3, %v828_v14, %v999_v40  ;;  %v478_v14 = vld [vmem:[#allocation2 + $0xc0] sm:$0x1]  ;;  %v1410_v40 = vrot.slane %v1408_v47, 1 }
 0x11b   : > { %v1960_v3 = vadd.f32 %v1959_v22, %v1870_v48  ;;  %2087 = vmatmul.bf16.gmra.mxu2 %v8600_v19  ;;  %1001 = vst [vmem:[#allocation2 + $0xbc] sm:$0x1] %v1000_v34  ;;  %v1572_v22 = vrot.slane %v7756_v4, 1  ;;  %v570_v34 = vld [vmem:[%s8210_s25 + $0x78] sm:$0xf] }
 0x11c   : > { %v830_v45 = vshrl.u32 %v570_v34, 16  ;;  %v833_v47 = vshll.u32 %v570_v34, 16 }
 0x11d   : > { %1998 = vmatmul.bf16.gmra.mxu1 %v8607_v62  ;;  %v7757_v28 = vld [vmem:[#allocation2 + $0xb4] sm:$0xf0] }
 0x11e   : > { %v2048_v35 = vpop.f32.mrf.mxu2 }
 0x11f   : > { %v2049_v63 = vadd.f32 %v2048_v35, %v1960_v3  ;;  %v1875_v7 = vpop.f32.mrf.mxu0  ;;  %v1406_v3 = vor.u32 %v1405_v25, %v1401_v21  ;;  %v8635_v25 = vld [vmem:[#allocation2 + $0xa8] sm:$0xff]  }
 0x120   : > { %v2283_v48 = vpop.f32.mrf.mxu3 }
 0x121   : > { %v8616_v10 = vadd.f32 %v2281_v46, %v2049_v63  ;;  %v479_v46 = vsel %vm8226_vm3, 0, %v478_v14  ;;  %v8628_v63 = vsel %vm1532_vm9, %v1572_v22, %v1573_v58  ;;  %v8633_v14 = vsel %vm1243_vm10, %v1406_v3, %v1410_v40  ;;  %v1006_v58 = vld [vmem:[#allocation2 + $0xc8] sm:$0x1]  ;;  %v7567_v40 = vld [vmem:[#allocation2 + $0xa8] sm:$0xf0] }
 0x122   : > { %v1961_v12 = vpop.f32.mrf.mxu1  ;;  %1914 = vmatmul.bf16.gmra.mxu0 %v8593_v53  ;;  %480 = vst [vmem:[#allocation2 + $0xc0] sm:$0x1] %v479_v46  ;;  %v1415_v3 = vshll.u32 %v8635_v25, 16 }
 0x123   : > { %v1962_v17 = vadd.f32 %v1961_v12, %v1872_v37  ;;  %v1059_v37 = vld [vmem:[#allocation2 + $0xb0] sm:$0x1]  ;;  %10571 = vst [vmem:[#allocation28_spill] sm:$0xff] %v8628_v63  ;;  %v832_v12 = vrot.slane %v830_v45, 7  ;;  %v7568_v45 = vld [vmem:[#allocation2 + $0xa8] sm:$0xe] }
 0x124   : > { %10572 = vst [vmem:[#allocation29_spill] sm:$0xff] %v8633_v14 }
 0x125   : > { %2325 = vmatmul.bf16.gmra.mxu3 %v8575_v43  ;;  %v1221_v43 = vunpack.c.l.b16 %v1059_v37  ;;  %v836_v22 = vrot.slane %v832_v12, 4  ;;  %v835_v32 = vor.u32 %v833_v47, %v832_v12  ;;  %v7230_v12 = vld [vmem:[#allocation7 + $0xa8] sm:$0xff] }
 0x126   : > { %v2050_v23 = vpop.f32.mrf.mxu2  ;;  %2437 = vmatpush.bf16.msrb.mxu1 %v7230_v12  ;;  %v7229_v12 = vld [vmem:[#allocation7 + $0xa0] sm:$0xff] }
 0x127   : > { %v2051_v35 = vadd.f32 %v2050_v23, %v1962_v17  ;;  %v1877_v21 = vpop.f32.mrf.mxu0  ;;  %v841_v17 = vshll.u32 %v571_v1, 16  ;;  %v845_v23 = vrot.slane %v840_v30, 4  ;;  %v1239_v37 = vpack.c.b16 %v1221_v43, %v1221_v43 }
 0x128   : > { %v2286_v5 = vpop.f32.mrf.mxu3 }
 0x129   : > { %v8630_v4 = vadd.f32 %v2283_v48, %v2051_v35  ;;  %v843_v48 = vor.u32 %v841_v17, %v840_v30  ;;  %v1002_v35 = vld [vmem:[#allocation2 + $0xc0] sm:$0xf]  ;;  %v1007_v34 = vsel %vm8226_vm3, %v845_v23, %v1006_v58  ;;  %v1576_v58 = vrot.slane %v1239_v37, 1 }
 0x12a   : > { %v1964_v50 = vpop.f32.mrf.mxu1  ;;  %v1003_v1 = vsel %vm8259_vm8, %v835_v32, %v1002_v35  ;;  %1008 = vst [vmem:[#allocation2 + $0xc8] sm:$0x1] %v1007_v34  ;;  %v1417_v32 = vrot.slane %v1415_v3, 1  ;;  %v1420_v35 = vshll.u32 %v1239_v37, 16  ;;  %2438 = vmatpush.bf16.msrb.mxu1 %v7229_v12 }
 0x12b   : > { %v1965_v46 = vadd.f32 %v1964_v50, %v1875_v7  ;;  %2092 = vmatmul.bf16.gmra.mxu2 %v8628_v63  ;;  %v844_v7 = vsel %vm8249_vm7, %v836_v22, %v843_v48  ;;  %1004 = vst [vmem:[#allocation2 + $0xc0] sm:$0xf] %v1003_v1  ;;  %v7569_v50 = vor.u32 %v7568_v45, %v7567_v40  ;;  %v1413_v48 = vshrl.u32 %v8635_v25, 16  ;;  %v1060_v45 = vld [vmem:[#allocation2 + $0xbc] sm:$0x1] }
 0x12c   : > { %1005 = vst [vmem:[#allocation2 + $0xc4] sm:$0xf] %v844_v7  ;;  %v1422_v40 = vrot.slane %v1420_v35, 1  ;;  %v1222_v37 = vunpack.c.l.b16 %v1060_v45 }
 0x12d   : > { %2003 = vmatmul.bf16.gmra.mxu1 %v8633_v14  ;;  %v1418_v23 = vor.u32 %v1417_v32, %v1413_v48 }
 0x12e   : > { %v2053_v19 = vpop.f32.mrf.mxu2  ;;  %v1240_v35 = vpack.c.b16 %v1222_v37, %v1222_v37  ;;  %v7264_v37 = vld [vmem:[#allocation7 + $0x1b8] sm:$0xff] }
 0x12f   : > { %v2054_v30 = vadd.f32 %v2053_v19, %v1965_v46  ;;  %v1880_v22 = vpop.f32.mrf.mxu0  ;;  %v8653_v19 = vld [vmem:[#allocation2 + $0xb4] sm:$0xff]   ;;  %v1575_v46 = vrot.slane %v7569_v50, 1  ;;  %v8663_v34 = vsel %vm1243_vm10, %v1418_v23, %v1422_v40  ;;  %v486_v50 = vld [vmem:[#allocation2 + $0x8] sm:$0x1]  ;;  %2717 = vmatpush.bf16.msrb.mxu2 %v7264_v37 }
 0x130   : > { %v8648_v17 = vpop.f32.mrf.mxu3  ;;  %10573 = vst [vmem:[#allocation30_spill] sm:$0xff] %v8653_v19  ;;  %v487_v48 = vsel %vm8232_vm4, 0, %v486_v50  ;;  %v1425_v50 = vshrl.u32 %v8653_v19, 16 }
 0x131   : > { %v8646_v47 = vadd.f32 %v2286_v5, %v2054_v30  ;;  %v8660_v7 = vsel %vm1532_vm9, %v1575_v46, %v1576_v58  ;;  %10575 = vst [vmem:[#allocation32_spill] sm:$0xff] %v8663_v34  ;;  %v1427_v46 = vshll.u32 %v8653_v19, 16  ;;  %v7228_v58 = vld [vmem:[#allocation7 + $0x98] sm:$0xff] }
 0x132   : > { %v1966_v43 = vpop.f32.mrf.mxu1  ;;  %1919 = vmatmul.bf16.gmra.mxu0 %v8635_v25  ;;  %10574 = vst [vmem:[#allocation31_spill] sm:$0xff] %v8660_v7  ;;  %2439 = vmatpush.bf16.msrb.mxu1 %v7228_v58 }
 0x133   : > { %v8651_v39 = vadd.f32 %v1966_v43, %v1877_v21  ;;  %v7758_v21 = vld [vmem:[#allocation2 + $0xb4] sm:$0xe]  ;;  %488 = vst [vmem:[#allocation2 + $0x8] sm:$0x1] %v487_v48  ;;  %v1429_v12 = vrot.slane %v1427_v46, 1  ;;  %v1432_v48 = vshll.u32 %v1240_v35, 16 }
 0x134   : > { %v7759_v40 = vor.u32 %v7758_v21, %v7757_v28 }
 0x135   : > { %2330 = vmatmul.bf16.gmra.mxu3 %v8593_v53  ;;  %v7272_v53 = vld [vmem:[#allocation7 + $0x1f8] sm:$0xff]  ;;  %v1434_v21 = vrot.slane %v1432_v48, 1 }
 0x136   : > { %v8656_v5 = vpop.f32.mrf.mxu2  ;;  %2440 = vmatpush.bf16.msrb.mxu1 %v7227_v15  ;;  %2806 = vmatpush.bf16.msrb.mxu3 %v7272_v53  ;;  %v7570_v53 = vld [vmem:[#allocation2 + $0xc0] sm:$0xf0] }
 0x137   : > { %v1882_v30 = vpop.f32.mrf.mxu0 }
 0x138   : > { %v2291_v3 = vpop.f32.mrf.mxu3 }
 0x13a   : > { %v1969_v1 = vpop.f32.mrf.mxu1 }
 0x13b   : > { %v1970_v43 = vadd.f32 %v1969_v1, %v1880_v22  ;;  %2097 = vmatmul.bf16.gmra.mxu2 %v8660_v7  ;;  %v1578_v7 = vrot.slane %v7759_v40, 1  ;;  %v7225_v40 = vld [vmem:[#allocation7 + $0x80] sm:$0xff] }
 0x13d   : > { %2008 = vmatmul.bf16.gmra.mxu1 %v8663_v34  ;;  %v1579_v34 = vrot.slane %v1240_v35, 1 }
 0x13e   : > { %v2058_v32 = vpop.f32.mrf.mxu2 }
 0x13f   : > { %v2059_v23 = vadd.f32 %v2058_v32, %v1970_v43  ;;  %v1885_v51 = vpop.f32.mrf.mxu0  ;;  %v7226_v43 = vld [vmem:[#allocation7 + $0x88] sm:$0xff]  ;;  %v1061_v32 = vld [vmem:[#allocation2 + $0xc8] sm:$0x1] }
 0x140   : > { %v8672_v22 = vpop.f32.mrf.mxu3  ;;  %2441 = vmatpush.bf16.msrb.mxu1 %v7226_v43 }
 0x141   : > { %v8670_v45 = vadd.f32 %v2291_v3, %v2059_v23  ;;  %10576 = vst [vmem:[#allocation33_spill] sm:$0xff] %v8672_v22  ;;  %v1430_v3 = vor.u32 %v1429_v12, %v1425_v50  ;;  %v1223_v23 = vunpack.c.l.b16 %v1061_v32  ;;  %v8688_v50 = vld [vmem:[#allocation2 + $0xc0] sm:$0xff]  }
 0x142   : > { %v1971_v1 = vpop.f32.mrf.mxu1  ;;  %1924 = vmatmul.bf16.gmra.mxu0 %v8653_v19  ;;  %10579 = vst [vmem:[#allocation36_spill] sm:$0xff] %v8688_v50  ;;  %v1439_v12 = vshll.u32 %v8688_v50, 16 }
 0x143   : > { %v8675_v13 = vadd.f32 %v1971_v1, %v1882_v30  ;;  %v8682_v30 = vsel %vm1532_vm9, %v1578_v7, %v1579_v34  ;;  %v8685_v15 = vsel %vm1243_vm10, %v1430_v3, %v1434_v21  ;;  %v7571_v7 = vld [vmem:[#allocation2 + $0xc0] sm:$0xe]  ;;  %v1241_v48 = vpack.c.b16 %v1223_v23, %v1223_v23  ;;  %v1045_v3 = vld [vmem:[#allocation2 + $0x8] sm:$0x1] }
 0x144   : > { %10577 = vst [vmem:[#allocation34_spill] sm:$0xff] %v8682_v30  ;;  %2442 = vmatpush.bf16.msrb.mxu1 %v7225_v40  ;;  %v7572_v21 = vor.u32 %v7571_v7, %v7570_v53  ;;  %v1437_v40 = vshrl.u32 %v8688_v50, 16  ;;  %v1207_v63 = vunpack.c.l.b16 %v1045_v3  ;;  %v7719_v23 = vld [vmem:[#allocation2] sm:$0xff]  }
 0x145   : > { %2335 = vmatmul.bf16.gmra.mxu3 %v8635_v25  ;;  %10578 = vst [vmem:[#allocation35_spill] sm:$0xff] %v8685_v15  ;;  %v7280_v25 = vld [vmem:[#allocation7 + $0x238] sm:$0xff]  ;;  %v1582_v14 = vrot.slane %v1241_v48, 1  ;;  %v1245_v3 = vshrl.u32 %v7719_v23, 16 }
 0x146   : > { %v8678_v28 = vpop.f32.mrf.mxu2  ;;  %2895 = vmatpush.bf16.msra.mxu0 %v7280_v25  ;;  %v1581_v25 = vrot.slane %v7572_v21, 1 }
 0x147   : > { %v1887_v35 = vpop.f32.mrf.mxu0 }
 0x148   : > { %v2296_v46 = vpop.f32.mrf.mxu3 }
 0x14a   : > { %v1974_v58 = vpop.f32.mrf.mxu1 }
 0x14b   : > { %v1975_v1 = vadd.f32 %v1974_v58, %v1885_v51  ;;  %2102 = vmatmul.bf16.gmra.mxu2 %v8682_v30  ;;  %v1441_v30 = vrot.slane %v1439_v12, 1 }
 0x14d   : > { %2013 = vmatmul.bf16.gmra.mxu1 %v8685_v15  ;;  %v1444_v15 = vshll.u32 %v1241_v48, 16 }
 0x14e   : > { %v2063_v34 = vpop.f32.mrf.mxu2 }
 0x14f   : > { %v2064_v37 = vadd.f32 %v2063_v34, %v1975_v1  ;;  %v1890_v58 = vpop.f32.mrf.mxu0  ;;  %v1247_v1 = vshll.u32 %v7719_v23, 16  ;;  %v1446_v7 = vrot.slane %v1444_v15, 1  ;;  %v1225_v34 = vpack.c.b16 %v1207_v63, %v1207_v63 }
 0x150   : > { %v8694_v51 = vpop.f32.mrf.mxu3 }
 0x151   : > { %v8692_v43 = vadd.f32 %v2296_v46, %v2064_v37  ;;  %10580 = vst [vmem:[#allocation37_spill] sm:$0xff] %v8694_v51  ;;  %v1442_v46 = vor.u32 %v1441_v30, %v1437_v40  ;;  %v8704_v37 = vsel %vm1532_vm9, %v1581_v25, %v1582_v14  ;;  %v7546_v14 = vld [vmem:[#allocation2] sm:$0xf0]  ;;  %v7547_v25 = vld [vmem:[#allocation2] sm:$0xe] }
 0x152   : > { %v1976_v32 = vpop.f32.mrf.mxu1  ;;  %1929 = vmatmul.bf16.gmra.mxu0 %v8688_v50  ;;  %10582 = vst [vmem:[#allocation39_spill] sm:$0xff] %v8704_v37  ;;  %v1252_v50 = vshll.u32 %v1225_v34, 16 }
 0x153   : > { %v8697_v22 = vadd.f32 %v1976_v32, %v1887_v35  ;;  %v1249_v35 = vrot.slane %v1247_v1, 1  ;;  %v8707_v48 = vsel %vm1243_vm10, %v1442_v46, %v1446_v7 }
 0x154   : > { %10583 = vst [vmem:[#allocation40_spill] sm:$0xff] %v8707_v48  ;;  %v1254_v63 = vrot.slane %v1252_v50, 1 }
 0x155   : > { %2340 = vmatmul.bf16.gmra.mxu3 %v8653_v19  ;;  %v1250_v30 = vor.u32 %v1249_v35, %v1245_v3 }
 0x156   : > { %v8700_v53 = vpop.f32.mrf.mxu2 }
 0x157   : > { %10581 = vst [vmem:[#allocation38_spill] sm:$0xff] %v8700_v53  ;;  %v1892_v21 = vpop.f32.mrf.mxu0  ;;  %v1255_v7 = vsel %vm1243_vm10, %v1250_v30, %v1254_v63  ;;  %v7548_v53 = vor.u32 %v7547_v25, %v7546_v14 }
 0x158   : > { %v2301_v12 = vpop.f32.mrf.mxu3 }
 0x159   : > { %v1533_v50 = vrot.slane %v7548_v53, 1 }
 0x15a   : > { %v1979_v32 = vpop.f32.mrf.mxu1 }
 0x15b   : > { %v1980_v51 = vadd.f32 %v1979_v32, %v1890_v58  ;;  %2107 = vmatmul.bf16.gmra.mxu2 %v8704_v37  ;;  %v7263_v32 = vld [vmem:[#allocation7 + $0x1b0] sm:$0xff] }
 0x15c   : > { %v7271_v37 = vld [vmem:[#allocation7 + $0x1f0] sm:$0xff]  ;;  %2718 = vmatpush.bf16.msrb.mxu2 %v7263_v32 }
 0x15d   : > { %2018 = vmatmul.bf16.gmra.mxu1 %v8707_v48  ;;  %2807 = vmatpush.bf16.msrb.mxu3 %v7271_v37 }
 0x15e   : > { %v2068_v15 = vpop.f32.mrf.mxu2 }
 0x15f   : > { %v2069_v40 = vadd.f32 %v2068_v15, %v1980_v51  ;;  %v1895_v46 = vpop.f32.mrf.mxu0  ;;  %v1534_v51 = vrot.slane %v1225_v34, 1 }
 0x160   : > { %v8713_v23 = vpop.f32.mrf.mxu3 }
 0x161   : > { %v8711_v19 = vadd.f32 %v2301_v12, %v2069_v40  ;;  %10584 = vst [vmem:[#allocation41_spill] sm:$0xff] %v8713_v23  ;;  %v1535_v15 = vsel %vm1532_vm9, %v1533_v50, %v1534_v51  ;;  %v7279_v23 = vld [vmem:[#allocation7 + $0x230] sm:$0xff] }
 0x162   : > { %v1981_v1 = vpop.f32.mrf.mxu1  ;;  %2354 = vmatmul.bf16.vlgmr.msrb.gmra.mxu0 %v1255_v7 }
 0x163   : > { %v8716_v58 = vadd.f32 %v1981_v1, %v1892_v21  ;;  %2896 = vmatpush.bf16.msra.mxu0 %v7279_v23 }
 0x166   : > { %v8718_v3 = vpop.f32.mrf.mxu2 }
 0x167   : > { %v1897_v40 = vpop.f32.mrf.mxu0 }
 0x168   : > { %v2306_v12 = vpop.f32.mrf.mxu3 }
 0x16a   : > { %v1984_v35 = vpop.f32.mrf.mxu1 }
 0x16b   : > { %v1985_v48 = vadd.f32 %v1984_v35, %v1895_v46 }
 0x16d   : > { %2443 = vmatmul.bf16.vlgmr.msrb.gmra.mxu1 %v1535_v15 }
 0x16e   : > { %v2073_v21 = vpop.f32.mrf.mxu2 }
 0x16f   : > { %v2074_v30 = vadd.f32 %v2073_v21, %v1985_v48  ;;  %v1900_v1 = vpop.f32.mrf.mxu0 }
 0x170   : > { %v8723_v14 = vpop.f32.mrf.mxu3 }
 0x171   : > { %v8721_v63 = vadd.f32 %v2306_v12, %v2074_v30 }
 0x172   : > { %v1986_v25 = vpop.f32.mrf.mxu1  ;;  %2359 = vmatmul.bf16.gmra.mxu0 %v8309_v11  ;;  %v7270_v11 = vld [vmem:[#allocation7 + $0x1e8] sm:$0xff] }
 0x173   : > { %v8725_v53 = vadd.f32 %v1986_v25, %v1897_v40  ;;  %v7262_v40 = vld [vmem:[#allocation7 + $0x1a8] sm:$0xff]  ;;  %2808 = vmatpush.bf16.msrb.mxu3 %v7270_v11 }
 0x174   : > { %2719 = vmatpush.bf16.msrb.mxu2 %v7262_v40 }
 0x176   : > { %v8728_v34 = vpop.f32.mrf.mxu2 }
 0x177   : > { %v1902_v46 = vpop.f32.mrf.mxu0 }
 0x178   : > { %v2311_v37 = vpop.f32.mrf.mxu3 }
 0x17a   : > { %v1989_v7 = vpop.f32.mrf.mxu1 }
 0x17b   : > { %v1990_v32 = vadd.f32 %v1989_v7, %v1900_v1 }
 0x17d   : > { %2448 = vmatmul.bf16.gmra.mxu1 %v8304_v6 }
 0x17e   : > { %v2078_v23 = vpop.f32.mrf.mxu2 }
 0x17f   : > { %v2079_v48 = vadd.f32 %v2078_v23, %v1990_v32  ;;  %v1905_v35 = vpop.f32.mrf.mxu0 }
 0x180   : > { %v8733_v51 = vpop.f32.mrf.mxu3 }
 0x181   : > { %v8731_v50 = vadd.f32 %v2311_v37, %v2079_v48  ;;  %10585 = vst [vmem:[#allocation42_spill] sm:$0xff] %v8733_v51  ;;  %v7278_v37 = vld [vmem:[#allocation7 + $0x228] sm:$0xff] }
 0x182   : > { %v1991_v12 = vpop.f32.mrf.mxu1  ;;  %2364 = vmatmul.bf16.gmra.mxu0 %v8333_v60 }
 0x183   : > { %v8735_v15 = vadd.f32 %v1991_v12, %v1902_v46  ;;  %2897 = vmatpush.bf16.msra.mxu0 %v7278_v37 }
 0x186   : > { %v8738_v21 = vpop.f32.mrf.mxu2 }
 0x187   : > { %10586 = vst [vmem:[#allocation43_spill] sm:$0xff] %v8738_v21  ;;  %v1907_v25 = vpop.f32.mrf.mxu0 }
 0x188   : > { %v2316_v30 = vpop.f32.mrf.mxu3 }
 0x18a   : > { %v1994_v6 = vpop.f32.mrf.mxu1 }
 0x18b   : > { %v1995_v1 = vadd.f32 %v1994_v6, %v1905_v35 }
 0x18d   : > { %2453 = vmatmul.bf16.gmra.mxu1 %v8330_v55 }
 0x18e   : > { %v2083_v7 = vpop.f32.mrf.mxu2 }
 0x18f   : > { %v2084_v32 = vadd.f32 %v2083_v7, %v1995_v1  ;;  %v1910_v12 = vpop.f32.mrf.mxu0 }
 0x190   : > { %v8743_v23 = vpop.f32.mrf.mxu3 }
 0x191   : > { %v8741_v46 = vadd.f32 %v2316_v30, %v2084_v32  ;;  %10588 = vst [vmem:[#allocation45_spill] sm:$0xff] %v8743_v23 }
 0x192   : > { %v1996_v48 = vpop.f32.mrf.mxu1  ;;  %2369 = vmatmul.bf16.gmra.mxu0 %v8357_v31 }
 0x193   : > { %10587 = vst [vmem:[#allocation44_spill] sm:$0xff] %v8741_v46  ;;  %v8745_v40 = vadd.f32 %v1996_v48, %v1907_v25  ;;  %v7261_v48 = vld [vmem:[#allocation7 + $0x1a0] sm:$0xff] }
 0x194   : > { %2720 = vmatpush.bf16.msrb.mxu2 %v7261_v48 }
 0x195   : > { %10589 = vst [vmem:[#allocation46_spill] sm:$0xff] %v8745_v40  ;;  %v7269_v40 = vld [vmem:[#allocation7 + $0x1e0] sm:$0xff] }
 0x196   : > { %v8748_v11 = vpop.f32.mrf.mxu2  ;;  %2809 = vmatpush.bf16.msrb.mxu3 %v7269_v40 }
 0x197   : > { %10590 = vst [vmem:[#allocation47_spill] sm:$0xff] %v8748_v11  ;;  %v1912_v6 = vpop.f32.mrf.mxu0 }
 0x198   : > { %v2321_v51 = vpop.f32.mrf.mxu3 }
 0x19a   : > { %v1999_v35 = vpop.f32.mrf.mxu1 }
 0x19b   : > { %v2000_v21 = vadd.f32 %v1999_v35, %v1910_v12 }
 0x19d   : > { %2458 = vmatmul.bf16.gmra.mxu1 %v8354_v26 }
 0x19e   : > { %v2088_v37 = vpop.f32.mrf.mxu2 }
 0x19f   : > { %v2089_v1 = vadd.f32 %v2088_v37, %v2000_v21  ;;  %v1915_v23 = vpop.f32.mrf.mxu0 }
 0x1a0   : > { %v8753_v7 = vpop.f32.mrf.mxu3 }
 0x1a1   : > { %v8751_v30 = vadd.f32 %v2321_v51, %v2089_v1  ;;  %10592 = vst [vmem:[#allocation49_spill] sm:$0xff] %v8753_v7  ;;  %v7277_v51 = vld [vmem:[#allocation7 + $0x220] sm:$0xff] }
 0x1a2   : > { %v2001_v32 = vpop.f32.mrf.mxu1  ;;  %2374 = vmatmul.bf16.gmra.mxu0 %v8387_v24 }
 0x1a3   : > { %10591 = vst [vmem:[#allocation48_spill] sm:$0xff] %v8751_v30  ;;  %v8755_v25 = vadd.f32 %v2001_v32, %v1912_v6  ;;  %2898 = vmatpush.bf16.msra.mxu0 %v7277_v51 }
 0x1a5   : > { %10593 = vst [vmem:[#allocation50_spill] sm:$0xff] %v8755_v25 }
 0x1a6   : > { %v8758_v11 = vpop.f32.mrf.mxu2 }
 0x1a7   : > { %10594 = vst [vmem:[#allocation51_spill] sm:$0xff] %v8758_v11  ;;  %v1917_v46 = vpop.f32.mrf.mxu0 }
 0x1a8   : > { %v2326_v12 = vpop.f32.mrf.mxu3 }
 0x1aa   : > { %v2004_v35 = vpop.f32.mrf.mxu1 }
 0x1ab   : > { %v2005_v21 = vadd.f32 %v2004_v35, %v1915_v23 }
 0x1ad   : > { %2463 = vmatmul.bf16.gmra.mxu1 %v8382_v18 }
 0x1ae   : > { %v2093_v37 = vpop.f32.mrf.mxu2 }
 0x1af   : > { %v2094_v1 = vadd.f32 %v2093_v37, %v2005_v21  ;;  %v1920_v25 = vpop.f32.mrf.mxu0 }
 0x1b0   : > { %v8763_v32 = vpop.f32.mrf.mxu3 }
 0x1b1   : > { %v8761_v6 = vadd.f32 %v2326_v12, %v2094_v1  ;;  %10596 = vst [vmem:[#allocation53_spill] sm:$0xff] %v8763_v32 }
 0x1b2   : > { %v2006_v7 = vpop.f32.mrf.mxu1  ;;  %2379 = vmatmul.bf16.gmra.mxu0 %v8409_v61 }
 0x1b3   : > { %10595 = vst [vmem:[#allocation52_spill] sm:$0xff] %v8761_v6  ;;  %v8765_v48 = vadd.f32 %v2006_v7, %v1917_v46  ;;  %v7260_v7 = vld [vmem:[#allocation7 + $0x198] sm:$0xff] }
 0x1b4   : > { %2721 = vmatpush.bf16.msrb.mxu2 %v7260_v7 }
 0x1b5   : > { %10597 = vst [vmem:[#allocation54_spill] sm:$0xff] %v8765_v48  ;;  %v7268_v48 = vld [vmem:[#allocation7 + $0x1d8] sm:$0xff] }
 0x1b6   : > { %v8768_v40 = vpop.f32.mrf.mxu2  ;;  %2810 = vmatpush.bf16.msrb.mxu3 %v7268_v48 }
 0x1b7   : > { %10598 = vst [vmem:[#allocation55_spill] sm:$0xff] %v8768_v40  ;;  %v1922_v35 = vpop.f32.mrf.mxu0 }
 0x1b8   : > { %v2331_v11 = vpop.f32.mrf.mxu3 }
 0x1ba   : > { %v2009_v23 = vpop.f32.mrf.mxu1 }
 0x1bb   : > { %v2010_v30 = vadd.f32 %v2009_v23, %v1920_v25 }
 0x1bd   : > { %2468 = vmatmul.bf16.gmra.mxu1 %v8406_v56 }
 0x1be   : > { %v2098_v51 = vpop.f32.mrf.mxu2 }
 0x1bf   : > { %v2099_v21 = vadd.f32 %v2098_v51, %v2010_v30  ;;  %v1925_v32 = vpop.f32.mrf.mxu0 }
 0x1c0   : > { %v8773_v37 = vpop.f32.mrf.mxu3 }
 0x1c1   : > { %v8771_v12 = vadd.f32 %v2331_v11, %v2099_v21  ;;  %10600 = vst [vmem:[#allocation57_spill] sm:$0xff] %v8773_v37  ;;  %v7276_v11 = vld [vmem:[#allocation7 + $0x218] sm:$0xff] }
 0x1c2   : > { %v2011_v1 = vpop.f32.mrf.mxu1  ;;  %2384 = vmatmul.bf16.gmra.mxu0 %v8439_v59 }
 0x1c3   : > { %10599 = vst [vmem:[#allocation56_spill] sm:$0xff] %v8771_v12  ;;  %v8775_v46 = vadd.f32 %v2011_v1, %v1922_v35  ;;  %2899 = vmatpush.bf16.msra.mxu0 %v7276_v11 }
 0x1c5   : > { %10601 = vst [vmem:[#allocation58_spill] sm:$0xff] %v8775_v46 }
 0x1c6   : > { %v8778_v40 = vpop.f32.mrf.mxu2 }
 0x1c7   : > { %10602 = vst [vmem:[#allocation59_spill] sm:$0xff] %v8778_v40  ;;  %v1927_v6 = vpop.f32.mrf.mxu0 }
 0x1c8   : > { %v2336_v25 = vpop.f32.mrf.mxu3 }
 0x1ca   : > { %v2014_v23 = vpop.f32.mrf.mxu1 }
 0x1cb   : > { %v2015_v30 = vadd.f32 %v2014_v23, %v1925_v32 }
 0x1cd   : > { %2473 = vmatmul.bf16.gmra.mxu1 %v8434_v49 }
 0x1ce   : > { %v2103_v51 = vpop.f32.mrf.mxu2 }
 0x1cf   : > { %v2104_v21 = vadd.f32 %v2103_v51, %v2015_v30  ;;  %v1930_v37 = vpop.f32.mrf.mxu0 }
 0x1d0   : > { %v8785_v7 = vpop.f32.mrf.mxu3 }
 0x1d1   : > { %v8781_v35 = vadd.f32 %v2336_v25, %v2104_v21  ;;  %10605 = vst [vmem:[#allocation62_spill] sm:$0xff] %v8785_v7  ;;  %v7259_v7 = vld [vmem:[#allocation7 + $0x190] sm:$0xff] }
 0x1d2   : > { %v2016_v1 = vpop.f32.mrf.mxu1  ;;  %2389 = vmatmul.bf16.gmra.mxu0 %v8461_v38  ;;  %2722 = vmatpush.bf16.msrb.mxu2 %v7259_v7 }
 0x1d3   : > { %10603 = vst [vmem:[#allocation60_spill] sm:$0xff] %v8781_v35  ;;  %v8783_v46 = vadd.f32 %v2016_v1, %v1927_v6 }
 0x1d5   : > { %10604 = vst [vmem:[#allocation61_spill] sm:$0xff] %v8783_v46  ;;  %v7267_v46 = vld [vmem:[#allocation7 + $0x1d0] sm:$0xff] }
 0x1d6   : > { %v8788_v48 = vpop.f32.mrf.mxu2  ;;  %2811 = vmatpush.bf16.msrb.mxu3 %v7267_v46 }
 0x1d7   : > { %10606 = vst [vmem:[#allocation63_spill] sm:$0xff] %v8788_v48  ;;  %v1932_v32 = vpop.f32.mrf.mxu0  ;;  %v7266_v48 = vld [vmem:[#allocation7 + $0x1c8] sm:$0xff] }
 0x1d8   : > { %v2341_v12 = vpop.f32.mrf.mxu3 }
 0x1da   : > { %v2019_v40 = vpop.f32.mrf.mxu1  ;;  %2812 = vmatpush.bf16.msrb.mxu3 %v7266_v48 }
 0x1db   : > { %v2020_v23 = vadd.f32 %v2019_v40, %v1930_v37 }
 0x1dd   : > { %2478 = vmatmul.bf16.gmra.mxu1 %v8458_v33 }
 0x1de   : > { %v2108_v11 = vpop.f32.mrf.mxu2 }
 0x1df   : > { %v2109_v30 = vadd.f32 %v2108_v11, %v2020_v23  ;;  %v2355_v21 = vpop.f32.mrf.mxu0  ;;  %v7275_v23 = vld [vmem:[#allocation7 + $0x210] sm:$0xff]  ;;  %v7312_v11 = vld [vmem:[#allocation9 + $0xf8] sm:$0xff] }
 0x1e0   : > { %v2356_v1 = vadd.f32 %v2355_v21, %v8529_v8  ;;  %2900 = vmatpush.bf16.msra.mxu0 %v7275_v23  ;;  %v7265_v8 = vld [vmem:[#allocation7 + $0x1c0] sm:$0xff]  ;;  %4499 = vmatpush.bf16.msra.mxu1 %v7312_v11 }
 0x1e1   : > { %v8791_v25 = vadd.f32 %v2341_v12, %v2109_v30  ;;  %2813 = vmatpush.bf16.msrb.mxu3 %v7265_v8  ;;  %v7257_v30 = vld [vmem:[#allocation7 + $0x180] sm:$0xff] }
 0x1e2   : > { %v2021_v51 = vpop.f32.mrf.mxu1  ;;  %2394 = vmatmul.bf16.gmra.mxu0 %v8491_v44 }
 0x1e3   : > { %v8793_v6 = vadd.f32 %v2021_v51, %v1932_v32  ;;  %v7258_v32 = vld [vmem:[#allocation7 + $0x188] sm:$0xff] }
 0x1e4   : > { %2723 = vmatpush.bf16.msrb.mxu2 %v7258_v32  ;;  %2814 = vmatmul.bf16.vlgmr.msrb.gmra.mxu3 %v8333_v60 }
 0x1e7   : > { %v2357_v37 = vpop.f32.mrf.mxu0 }
 0x1e8   : > { %v2358_v12 = vadd.f32 %v2357_v37, %v8542_v52  ;;  %2724 = vmatpush.bf16.msrb.mxu2 %v7257_v30  ;;  %v7720_v52 = vld [vmem:[#allocation2 + $0x18] sm:$0xff]  }
 0x1ea   : > { %v2444_v40 = vpop.f32.mrf.mxu1 }
 0x1eb   : > { %v8797_v35 = vadd.f32 %v2444_v40, %v2356_v1  ;;  %2725 = vmatmul.bf16.vlgmr.msrb.gmra.mxu2 %v7720_v52 }
 0x1ed   : > { %2483 = vmatmul.bf16.gmra.mxu1 %v8486_v0 }
 0x1ef   : > { %v2360_v46 = vpop.f32.mrf.mxu0 }
 0x1f0   : > { %v2361_v21 = vadd.f32 %v2360_v46, %v8556_v42  ;;  %v7311_v46 = vld [vmem:[#allocation9 + $0xf0] sm:$0xff] }
 0x1f1   : > { %4500 = vmatpush.bf16.msra.mxu1 %v7311_v46  ;;  %v7273_v46 = vld [vmem:[#allocation7 + $0x200] sm:$0xff] }
 0x1f2   : > { %v2446_v7 = vpop.f32.mrf.mxu1  ;;  %2399 = vmatmul.bf16.gmra.mxu0 %v8515_v36 }
 0x1f3   : > { %v8801_v51 = vadd.f32 %v2446_v7, %v2358_v12  ;;  %v7274_v7 = vld [vmem:[#allocation7 + $0x208] sm:$0xff] }
 0x1f4   : > { %2819 = vmatmul.bf16.gmra.mxu3 %v8357_v31  ;;  %2901 = vmatpush.bf16.msra.mxu0 %v7274_v7 }
 0x1f7   : > { %v2362_v1 = vpop.f32.mrf.mxu0 }
 0x1f8   : > { %v2363_v37 = vadd.f32 %v2362_v1, %v8570_v9  ;;  %2902 = vmatpush.bf16.msra.mxu0 %v7273_v46 }
 0x1fa   : > { %v2449_v48 = vpop.f32.mrf.mxu1 }
 0x1fb   : > { %v8806_v40 = vadd.f32 %v2449_v48, %v2361_v21  ;;  %2730 = vmatmul.bf16.gmra.mxu2 %v8313_v29  ;;  %v7721_v29 = vld [vmem:[#allocation2 + $0x30] sm:$0xff]  }
 0x1fd   : > { %2488 = vmatmul.bf16.gmra.mxu1 %v8510_v20 }
 0x1ff   : > { %v2365_v12 = vpop.f32.mrf.mxu0 }
 0x200   : > { %v2366_v42 = vadd.f32 %v2365_v12, %v8589_v27 }
 0x202   : > { %v2451_v23 = vpop.f32.mrf.mxu1  ;;  %2404 = vmatmul.bf16.gmra.mxu0 %v8545_v2 }
 0x203   : > { %v8810_v32 = vadd.f32 %v2451_v23, %v2363_v37 }
 0x204   : > { %2824 = vmatmul.bf16.gmra.mxu3 %v8387_v24  ;;  %v2056_v24 = vadd.f32 %v8656_v5, %v8651_v39 }
 0x207   : > { %v2367_v8 = vpop.f32.mrf.mxu0 }
 0x208   : > { %v2368_v9 = vadd.f32 %v2367_v8, %v8602_v54 }
 0x20a   : > { %v2454_v60 = vpop.f32.mrf.mxu1 }
 0x20b   : > { %v8816_v11 = vadd.f32 %v2454_v60, %v2366_v42  ;;  %2735 = vmatmul.bf16.gmra.mxu2 %v7721_v29  ;;  %v10607_v42 = vld [vmem:[#allocation22_spill] sm:$0xff]  ;;  %v2289_v60 = vadd.f32 %v8648_v17, %v2056_v24  ;;  %v2061_v17 = vadd.f32 %v8678_v28, %v8675_v13  ;;  %v10610_v29 = vld [vmem:[#allocation33_spill] sm:$0xff] }
 0x20c   : > { %v10612_v13 = vld [vmem:[#allocation38_spill] sm:$0xff] }
 0x20d   : > { %2493 = vmatmul.bf16.gmra.mxu1 %v8540_v57  ;;  %v2066_v28 = vadd.f32 %v10612_v13, %v8697_v22 }
 0x20f   : > { %v2370_v27 = vpop.f32.mrf.mxu0 }
 0x210   : > { %v2371_v31 = vadd.f32 %v2370_v27, %v8616_v10  ;;  %v10609_v27 = vld [vmem:[#allocation29_spill] sm:$0xff] }
 0x212   : > { %v2456_v30 = vpop.f32.mrf.mxu1  ;;  %2409 = vmatmul.bf16.gmra.mxu0 %v8573_v41 }
 0x213   : > { %v8820_v21 = vadd.f32 %v2456_v30, %v2368_v9  ;;  %v10608_v30 = vld [vmem:[#allocation27_spill] sm:$0xff] }
 0x214   : > { %2829 = vmatmul.bf16.gmra.mxu3 %v8409_v61  ;;  %v7310_v61 = vld [vmem:[#allocation9 + $0xe8] sm:$0xff] }
 0x215   : > { %4501 = vmatpush.bf16.msra.mxu1 %v7310_v61 }
 0x217   : > { %v2372_v54 = vpop.f32.mrf.mxu0 }
 0x218   : > { %v2373_v1 = vadd.f32 %v2372_v54, %v8630_v4 }
 0x21a   : > { %v2459_v52 = vpop.f32.mrf.mxu1 }
 0x21b   : > { %v8825_v48 = vadd.f32 %v2459_v52, %v2371_v31  ;;  %2740 = vmatmul.bf16.gmra.mxu2 %v10607_v42  ;;  %v7722_v31 = vld [vmem:[#allocation2 + $0x48] sm:$0xff]   ;;  %v2294_v52 = vadd.f32 %v10610_v29, %v2061_v17  ;;  %v10613_v42 = vld [vmem:[#allocation32_spill] sm:$0xff]  ;;  %v7309_v17 = vld [vmem:[#allocation9 + $0xe0] sm:$0xff]  ;;  %v2071_v29 = vadd.f32 %v8718_v3, %v8716_v58  ;;  %v2076_v58 = vadd.f32 %v8728_v34, %v8725_v53  ;;  %v8900_v53 = vpop.f32.mrf.mxu2 }
 0x21c   : > { %4502 = vmatpush.bf16.msra.mxu1 %v7309_v17  ;;  %v10626_v3 = vld [vmem:[#allocation24_spill] sm:$0xff] }
 0x21d   : > { %2498 = vmatmul.bf16.gmra.mxu1 %v8568_v16 }
 0x21f   : > { %v2375_v23 = vpop.f32.mrf.mxu0 }
 0x220   : > { %v2376_v10 = vadd.f32 %v2375_v23, %v8646_v47 }
 0x222   : > { %v2461_v37 = vpop.f32.mrf.mxu1  ;;  %2414 = vmatmul.bf16.gmra.mxu0 %v8607_v62 }
 0x223   : > { %v8829_v12 = vadd.f32 %v2461_v37, %v2373_v1 }
 0x224   : > { %2834 = vmatmul.bf16.gmra.mxu3 %v8439_v59 }
 0x227   : > { %v2377_v8 = vpop.f32.mrf.mxu0 }
 0x228   : > { %v8840_v7 = vadd.f32 %v2377_v8, %v2289_v60  ;;  %v10614_v60 = vld [vmem:[#allocation23_spill] sm:$0xff] }
 0x22a   : > { %v2464_v4 = vpop.f32.mrf.mxu1 }
 0x22b   : > { %v8838_v9 = vadd.f32 %v2464_v4, %v2376_v10  ;;  %2745 = vmatmul.bf16.gmra.mxu2 %v7722_v31  ;;  %v10611_v10 = vld [vmem:[#allocation28_spill] sm:$0xff]  ;;  %v10615_v4 = vld [vmem:[#allocation37_spill] sm:$0xff]  ;;  %v10618_v31 = vld [vmem:[#allocation31_spill] sm:$0xff] }
 0x22c   : > { %v2299_v8 = vadd.f32 %v10615_v4, %v2066_v28  ;;  %v10624_v4 = vld [vmem:[#allocation34_spill] sm:$0xff] }
 0x22d   : > { %2503 = vmatmul.bf16.gmra.mxu1 %v10608_v30 }
 0x22f   : > { %v2380_v39 = vpop.f32.mrf.mxu0 }
 0x230   : > { %v2381_v5 = vadd.f32 %v2380_v39, %v8670_v45 }
 0x232   : > { %v8843_v47 = vpop.f32.mrf.mxu1  ;;  %2419 = vmatmul.bf16.gmra.mxu0 %v10609_v27 }
 0x234   : > { %2839 = vmatmul.bf16.gmra.mxu3 %v8461_v38 }
 0x237   : > { %v2382_v1 = vpop.f32.mrf.mxu0 }
 0x238   : > { %v8853_v23 = vadd.f32 %v2382_v1, %v2294_v52  ;;  %v10620_v52 = vld [vmem:[#allocation35_spill] sm:$0xff]  ;;  %v10621_v1 = vld [vmem:[#allocation41_spill] sm:$0xff] }
 0x23a   : > { %v2469_v54 = vpop.f32.mrf.mxu1 }
 0x23b   : > { %v8851_v37 = vadd.f32 %v2469_v54, %v2381_v5  ;;  %2750 = vmatmul.bf16.gmra.mxu2 %v10614_v60  ;;  %v7723_v54 = vld [vmem:[#allocation2 + $0x60] sm:$0xff]  }
 0x23d   : > { %2508 = vmatmul.bf16.gmra.mxu1 %v10611_v10 }
 0x23f   : > { %v2385_v59 = vpop.f32.mrf.mxu0 }
 0x240   : > { %v2386_v24 = vadd.f32 %v2385_v59, %v8692_v43  ;;  %v2304_v59 = vadd.f32 %v10621_v1, %v2071_v29  ;;  %v7308_v29 = vld [vmem:[#allocation9 + $0xd8] sm:$0xff] }
 0x241   : > { %4503 = vmatpush.bf16.msra.mxu1 %v7308_v29 }
 0x242   : > { %v8856_v45 = vpop.f32.mrf.mxu1  ;;  %2424 = vmatmul.bf16.gmra.mxu0 %v10613_v42 }
 0x244   : > { %2844 = vmatmul.bf16.gmra.mxu3 %v8491_v44 }
 0x247   : > { %v2387_v61 = vpop.f32.mrf.mxu0 }
 0x248   : > { %v8867_v5 = vadd.f32 %v2387_v61, %v2299_v8 }
 0x24a   : > { %v2474_v46 = vpop.f32.mrf.mxu1  ;;  %10617 = vst [vmem:[#allocation27_spill] sm:$0xff] %v8867_v5  ;;  %v3097_v5 = vld [vmem:[#allocation3 + $0x18] sm:$0x1] }
 0x24b   : > { %v8865_v39 = vadd.f32 %v2474_v46, %v2386_v24  ;;  %2755 = vmatmul.bf16.gmra.mxu2 %v7723_v54  ;;  %v2309_v46 = vadd.f32 %v8723_v14, %v2076_v58  ;;  %v10630_v14 = vld [vmem:[#allocation43_spill] sm:$0xff] }
 0x24c   : > { %v2081_v34 = vadd.f32 %v10630_v14, %v8735_v15  ;;  %v10637_v14 = vld [vmem:[#allocation47_spill] sm:$0xff] }
 0x24d   : > { %10616 = vst [vmem:[#allocation22_spill] sm:$0xff] %v8865_v39  ;;  %2513 = vmatmul.bf16.gmra.mxu1 %v10618_v31 }
 0x24f   : > { %v2390_v43 = vpop.f32.mrf.mxu0 }
 0x250   : > { %v2391_v22 = vadd.f32 %v2390_v43, %v8711_v19 }
 0x252   : > { %v8870_v38 = vpop.f32.mrf.mxu1  ;;  %2429 = vmatmul.bf16.gmra.mxu0 %v10620_v52 }
 0x253   : > { %10619 = vst [vmem:[#allocation29_spill] sm:$0xff] %v8870_v38 }
 0x254   : > { %2849 = vmatmul.bf16.gmra.mxu3 %v8515_v36 }
 0x257   : > { %v2392_v13 = vpop.f32.mrf.mxu0 }
 0x258   : > { %v8880_v60 = vadd.f32 %v2392_v13, %v2304_v59  ;;  %v7724_v59 = vld [vmem:[#allocation2 + $0x78] sm:$0xff]  }
 0x25a   : > { %v2479_v24 = vpop.f32.mrf.mxu1  ;;  %10623 = vst [vmem:[#allocation28_spill] sm:$0xff] %v8880_v60 }
 0x25b   : > { %v8878_v28 = vadd.f32 %v2479_v24, %v2391_v22  ;;  %2760 = vmatmul.bf16.gmra.mxu2 %v10626_v3  ;;  %v10631_v24 = vld [vmem:[#allocation42_spill] sm:$0xff] }
 0x25c   : > { %v2314_v13 = vadd.f32 %v10631_v24, %v2081_v34  ;;  %v10638_v24 = vld [vmem:[#allocation25_spill] sm:$0xff] }
 0x25d   : > { %10622 = vst [vmem:[#allocation33_spill] sm:$0xff] %v8878_v28  ;;  %2518 = vmatmul.bf16.gmra.mxu1 %v10624_v4 }
 0x25f   : > { %v2395_v44 = vpop.f32.mrf.mxu0 }
 0x260   : > { %v2396_v8 = vadd.f32 %v2395_v44, %v8721_v63  ;;  %v8896_v63 = vpop.f32.mrf.mxu3 }
 0x262   : > { %v8883_v19 = vpop.f32.mrf.mxu1  ;;  %2903 = vmatmul.bf16.vlgmr.msra.gmra.mxu0 %v8330_v55 }
 0x263   : > { %10625 = vst [vmem:[#allocation38_spill] sm:$0xff] %v8883_v19  ;;  %v7326_v19 = vld [vmem:[#allocation9 + $0x168] sm:$0xff] }
 0x264   : > { %2854 = vmatmul.bf16.gmra.mxu3 %v8545_v2  ;;  %v7320_v2 = vld [vmem:[#allocation9 + $0x138] sm:$0xff] }
 0x265   : > { %4588 = vmatpush.bf16.msra.mxu2 %v7320_v2 }
 0x267   : > { %v2397_v17 = vpop.f32.mrf.mxu0 }
 0x268   : > { %v8894_v22 = vadd.f32 %v2397_v17, %v2309_v46  ;;  %v8907_v1 = vpop.f32.mrf.mxu3  ;;  %v7328_v46 = vld [vmem:[#allocation9 + $0x178] sm:$0xff]  ;;  %v10635_v17 = vld [vmem:[#allocation44_spill] sm:$0xff] }
 0x269   : > { %4677 = vmatpush.bf16.msra.mxu3 %v7328_v46 }
 0x26a   : > { %v2484_v61 = vpop.f32.mrf.mxu1  ;;  %10628 = vst [vmem:[#allocation23_spill] sm:$0xff] %v8894_v22 }
 0x26b   : > { %v8892_v43 = vadd.f32 %v2484_v61, %v2396_v8  ;;  %2765 = vmatmul.bf16.gmra.mxu2 %v7724_v59 }
 0x26d   : > { %10627 = vst [vmem:[#allocation32_spill] sm:$0xff] %v8892_v43 }
 0x26f   : > { %v2400_v54 = vpop.f32.mrf.mxu0 }
 0x270   : > { %v2401_v55 = vadd.f32 %v2400_v54, %v8731_v50  ;;  %v8914_v50 = vpop.f32.mrf.mxu2  ;;  %v8916_v15 = vpop.f32.mrf.mxu3 }
 0x272   : > { %v8898_v36 = vpop.f32.mrf.mxu1  ;;  %2908 = vmatmul.bf16.gmra.mxu0 %v8354_v26 }
 0x273   : > { %10629 = vst [vmem:[#allocation37_spill] sm:$0xff] %v8898_v36 }
 0x274   : > { %2859 = vmatmul.bf16.gmra.mxu3 %v8573_v41  ;;  %v7307_v41 = vld [vmem:[#allocation9 + $0xd0] sm:$0xff] }
 0x275   : > { %4504 = vmatpush.bf16.msra.mxu1 %v7307_v41 }
 0x277   : > { %v2402_v8 = vpop.f32.mrf.mxu0 }
 0x278   : > { %v8912_v3 = vadd.f32 %v2402_v8, %v2314_v13  ;;  %v8921_v54 = vpop.f32.mrf.mxu2  ;;  %v8927_v59 = vpop.f32.mrf.mxu3  ;;  %v10639_v13 = vld [vmem:[#allocation45_spill] sm:$0xff] }
 0x27a   : > { %v2489_v44 = vpop.f32.mrf.mxu1  ;;  %10633 = vst [vmem:[#allocation35_spill] sm:$0xff] %v8912_v3 }
 0x27b   : > { %v8910_v58 = vadd.f32 %v2489_v44, %v2401_v55  ;;  %v10636_v55 = vld [vmem:[#allocation46_spill] sm:$0xff]  ;;  %2770 = vmatmul.bf16.gmra.mxu2 %v10638_v24 }
 0x27c   : > { %v2086_v34 = vadd.f32 %v10637_v14, %v10636_v55  ;;  %v10643_v14 = vld [vmem:[#allocation48_spill] sm:$0xff] }
 0x27d   : > { %10632 = vst [vmem:[#allocation31_spill] sm:$0xff] %v8910_v58  ;;  %v7327_v58 = vld [vmem:[#allocation9 + $0x170] sm:$0xff] }
 0x27e   : > { %v2319_v44 = vadd.f32 %v10639_v13, %v2086_v34  ;;  %v10644_v34 = vld [vmem:[#allocation50_spill] sm:$0xff]  ;;  %4678 = vmatpush.bf16.msra.mxu3 %v7327_v58  ;;  %v10654_v58 = vld [vmem:[#allocation53_spill] sm:$0xff] }
 0x27f   : > { %v2405_v61 = vpop.f32.mrf.mxu0 }
 0x280   : > { %v2406_v29 = vadd.f32 %v2405_v61, %v10635_v17  ;;  %v8935_v17 = vpop.f32.mrf.mxu2 }
 0x282   : > { %v8918_v26 = vpop.f32.mrf.mxu1  ;;  %2913 = vmatmul.bf16.gmra.mxu0 %v8382_v18  ;;  %4679 = vmatpush.bf16.msra.mxu3 %v7326_v19  ;;  %v10669_v19 = vld [vmem:[#allocation62_spill] sm:$0xff] }
 0x283   : > { %10634 = vst [vmem:[#allocation41_spill] sm:$0xff] %v8918_v26  ;;  %v8937_v26 = vpop.f32.mrf.mxu3 }
 0x284   : > { %2864 = vmatmul.bf16.gmra.mxu3 %v8607_v62  ;;  %v7319_v62 = vld [vmem:[#allocation9 + $0x130] sm:$0xff] }
 0x285   : > { %4589 = vmatpush.bf16.msra.mxu2 %v7319_v62 }
 0x287   : > { %v2407_v2 = vpop.f32.mrf.mxu0 }
 0x288   : > { %v8933_v61 = vadd.f32 %v2407_v2, %v2319_v44  ;;  %v8942_v24 = vpop.f32.mrf.mxu2  ;;  %v10646_v2 = vld [vmem:[#allocation49_spill] sm:$0xff] }
 0x28a   : > { %v2494_v8 = vpop.f32.mrf.mxu1  ;;  %10641 = vst [vmem:[#allocation24_spill] sm:$0xff] %v8933_v61 }
 0x28b   : > { %v8931_v46 = vadd.f32 %v2494_v8, %v2406_v29  ;;  %v10645_v29 = vld [vmem:[#allocation51_spill] sm:$0xff]  ;;  %v8948_v44 = vpop.f32.mrf.mxu3  ;;  %v7725_v8 = vld [vmem:[#allocation2 + $0x90] sm:$0xff]  }
 0x28c   : > { %v2091_v13 = vadd.f32 %v10645_v29, %v10644_v34  ;;  %2775 = vmatmul.bf16.gmra.mxu2 %v7725_v8  ;;  %v10650_v8 = vld [vmem:[#allocation52_spill] sm:$0xff] }
 0x28d   : > { %10640 = vst [vmem:[#allocation34_spill] sm:$0xff] %v8931_v46 }
 0x28e   : > { %v2324_v41 = vadd.f32 %v10646_v2, %v2091_v13 }
 0x28f   : > { %v2410_v18 = vpop.f32.mrf.mxu0 }
 0x290   : > { %v2411_v3 = vadd.f32 %v2410_v18, %v10643_v14  ;;  %v8955_v14 = vpop.f32.mrf.mxu2 }
 0x292   : > { %v8939_v55 = vpop.f32.mrf.mxu1  ;;  %2918 = vmatmul.bf16.gmra.mxu0 %v8406_v56 }
 0x293   : > { %10642 = vst [vmem:[#allocation43_spill] sm:$0xff] %v8939_v55  ;;  %v8957_v34 = vpop.f32.mrf.mxu3 }
 0x294   : > { %2869 = vmatmul.bf16.gmra.mxu3 %v10609_v27  ;;  %v7306_v27 = vld [vmem:[#allocation9 + $0xc8] sm:$0xff] }
 0x295   : > { %4505 = vmatpush.bf16.msra.mxu1 %v7306_v27 }
 0x297   : > { %v2412_v55 = vpop.f32.mrf.mxu0 }
 0x298   : > { %v8953_v18 = vadd.f32 %v2412_v55, %v2324_v41  ;;  %v8962_v13 = vpop.f32.mrf.mxu2  ;;  %v10653_v41 = vld [vmem:[#allocation26_spill] sm:$0xff] }
 0x29a   : > { %v2499_v61 = vpop.f32.mrf.mxu1  ;;  %10648 = vst [vmem:[#allocation44_spill] sm:$0xff] %v8953_v18 }
 0x29b   : > { %v8951_v46 = vadd.f32 %v2499_v61, %v2411_v3  ;;  %v10651_v3 = vld [vmem:[#allocation54_spill] sm:$0xff]  ;;  %v10652_v61 = vld [vmem:[#allocation55_spill] sm:$0xff]  ;;  %v8968_v2 = vpop.f32.mrf.mxu3 }
 0x29c   : > { %v2096_v55 = vadd.f32 %v10652_v61, %v10651_v3  ;;  %2780 = vmatmul.bf16.gmra.mxu2 %v10653_v41  ;;  %v10658_v61 = vld [vmem:[#allocation56_spill] sm:$0xff] }
 0x29d   : > { %10647 = vst [vmem:[#allocation42_spill] sm:$0xff] %v8951_v46 }
 0x29e   : > { %v2329_v62 = vadd.f32 %v10654_v58, %v2096_v55  ;;  %v10659_v55 = vld [vmem:[#allocation58_spill] sm:$0xff]  ;;  %v7726_v58 = vld [vmem:[#allocation2 + $0xa8] sm:$0xff]  }
 0x29f   : > { %v2415_v29 = vpop.f32.mrf.mxu0 }
 0x2a0   : > { %v2416_v36 = vadd.f32 %v2415_v29, %v10650_v8  ;;  %v8976_v8 = vpop.f32.mrf.mxu2 }
 0x2a2   : > { %v8959_v56 = vpop.f32.mrf.mxu1  ;;  %2923 = vmatmul.bf16.gmra.mxu0 %v8434_v49 }
 0x2a3   : > { %10649 = vst [vmem:[#allocation46_spill] sm:$0xff] %v8959_v56  ;;  %v8978_v22 = vpop.f32.mrf.mxu3 }
 0x2a4   : > { %2874 = vmatmul.bf16.gmra.mxu3 %v10613_v42  ;;  %v7318_v42 = vld [vmem:[#allocation9 + $0x128] sm:$0xff] }
 0x2a5   : > { %4590 = vmatpush.bf16.msra.mxu2 %v7318_v42 }
 0x2a7   : > { %v2417_v56 = vpop.f32.mrf.mxu0 }
 0x2a8   : > { %v8974_v29 = vadd.f32 %v2417_v56, %v2329_v62  ;;  %v8983_v41 = vpop.f32.mrf.mxu2  ;;  %v10661_v62 = vld [vmem:[#allocation57_spill] sm:$0xff] }
 0x2aa   : > { %v2504_v18 = vpop.f32.mrf.mxu1  ;;  %10656 = vst [vmem:[#allocation25_spill] sm:$0xff] %v8974_v29 }
 0x2ab   : > { %v8972_v46 = vadd.f32 %v2504_v18, %v2416_v36  ;;  %v10660_v36 = vld [vmem:[#allocation59_spill] sm:$0xff]  ;;  %v8989_v56 = vpop.f32.mrf.mxu3 }
 0x2ac   : > { %v2101_v18 = vadd.f32 %v10660_v36, %v10659_v55  ;;  %2785 = vmatmul.bf16.gmra.mxu2 %v7726_v58  ;;  %v10665_v58 = vld [vmem:[#allocation60_spill] sm:$0xff] }
 0x2ad   : > { %10655 = vst [vmem:[#allocation47_spill] sm:$0xff] %v8972_v46 }
 0x2ae   : > { %v2334_v27 = vadd.f32 %v10661_v62, %v2101_v18 }
 0x2af   : > { %v2420_v49 = vpop.f32.mrf.mxu0 }
 0x2b0   : > { %v2421_v43 = vadd.f32 %v2420_v49, %v10658_v61  ;;  %v8996_v61 = vpop.f32.mrf.mxu2 }
 0x2b2   : > { %v8980_v3 = vpop.f32.mrf.mxu1  ;;  %2928 = vmatmul.bf16.gmra.mxu0 %v8458_v33 }
 0x2b3   : > { %10657 = vst [vmem:[#allocation45_spill] sm:$0xff] %v8980_v3  ;;  %v8998_v55 = vpop.f32.mrf.mxu3 }
 0x2b4   : > { %2879 = vmatmul.bf16.gmra.mxu3 %v10620_v52 }
 0x2b7   : > { %v2422_v3 = vpop.f32.mrf.mxu0 }
 0x2b8   : > { %v8994_v49 = vadd.f32 %v2422_v3, %v2334_v27  ;;  %v9003_v18 = vpop.f32.mrf.mxu2  ;;  %v10668_v27 = vld [vmem:[#allocation30_spill] sm:$0xff] }
 0x2ba   : > { %v2509_v29 = vpop.f32.mrf.mxu1  ;;  %10663 = vst [vmem:[#allocation50_spill] sm:$0xff] %v8994_v49  ;;  %v3094_v49 = vld [vmem:[#allocation3 + $0xc] sm:$0x1] }
 0x2bb   : > { %v8992_v46 = vadd.f32 %v2509_v29, %v2421_v43  ;;  %v10666_v43 = vld [vmem:[#allocation61_spill] sm:$0xff]  ;;  %v10667_v29 = vld [vmem:[#allocation63_spill] sm:$0xff]  ;;  %v9009_v62 = vpop.f32.mrf.mxu3 }
 0x2bc   : > { %v2106_v3 = vadd.f32 %v10667_v29, %v10666_v43  ;;  %2790 = vmatmul.bf16.gmra.mxu2 %v10668_v27  ;;  %v481_v43 = vld [vmem:[#allocation2 + $0xcc] sm:$0x1] }
 0x2bd   : > { %10662 = vst [vmem:[#allocation48_spill] sm:$0xff] %v8992_v46  ;;  %v482_v29 = vsel %vm8226_vm3, 0, %v481_v43  ;;  %v2111_v43 = vadd.f32 %v8900_v53, %v8793_v6 }
 0x2be   : > { %v2339_v42 = vadd.f32 %v10669_v19, %v2106_v3  ;;  %483 = vst [vmem:[#allocation2 + $0xcc] sm:$0x1] %v482_v29  ;;  %v537_v3 = vld [vmem:[#allocation2 + $0xd4] sm:$0x1] }
 0x2bf   : > { %v2425_v36 = vpop.f32.mrf.mxu0  ;;  %v538_v19 = vsel %vm8232_vm4, 0, %v537_v3 }
 0x2c0   : > { %v2426_v60 = vadd.f32 %v2425_v36, %v10665_v58  ;;  %v3095_v36 = vsel %vm8226_vm3, 0, %v3094_v49  ;;  %v9019_v39 = vpop.f32.mrf.mxu2  ;;  %539 = vst [vmem:[#allocation2 + $0xd4] sm:$0x1] %v538_v19  ;;  %v10677_v19 = vld [vmem:[#allocation36_spill] sm:$0xff] }
 0x2c1   : > { %3096 = vst [vmem:[#allocation3 + $0xc] sm:$0x1] %v3095_v36  ;;  %v3148_v36 = vld [vmem:[#allocation3 + $0x14] sm:$0x1] }
 0x2c2   : > { %v9000_v33 = vpop.f32.mrf.mxu1  ;;  %2933 = vmatmul.bf16.gmra.mxu0 %v8486_v0  ;;  %v3149_v29 = vsel %vm8232_vm4, 0, %v3148_v36 }
 0x2c3   : > { %10664 = vst [vmem:[#allocation51_spill] sm:$0xff] %v9000_v33  ;;  %v9021_v0 = vpop.f32.mrf.mxu3 }
 0x2c4   : > { %3150 = vst [vmem:[#allocation3 + $0x14] sm:$0x1] %v3149_v29 }
 0x2c7   : > { %v2427_v46 = vpop.f32.mrf.mxu0 }
 0x2c8   : > { %v9017_v52 = vadd.f32 %v2427_v46, %v2339_v42  ;;  %v9030_v49 = vpop.f32.mrf.mxu2  ;;  %v7305_v42 = vld [vmem:[#allocation9 + $0xc0] sm:$0xff] }
 0x2c9   : > { %4506 = vmatpush.bf16.msra.mxu1 %v7305_v42 }
 0x2ca   : > { %v2514_v33 = vpop.f32.mrf.mxu1  ;;  %10672 = vst [vmem:[#allocation52_spill] sm:$0xff] %v9017_v52 }
 0x2cb   : > { %v9015_v58 = vadd.f32 %v2514_v33, %v2426_v60  ;;  %v10675_v33 = vld [vmem:[#allocation40_spill] sm:$0xff]  ;;  %v9038_v3 = vpop.f32.mrf.mxu3 }
 0x2cc   : > { %2884 = vmatmul.bf16.gmra.mxu3 %v10675_v33  ;;  %10676 = vst [vmem:[#allocation55_spill] sm:$0xff] %v9038_v3  ;;  %2795 = vmatmul.bf16.gmra.mxu2 %v10677_v19  ;;  %v2344_v33 = vadd.f32 %v8896_v63, %v2111_v43  ;;  %v3098_v19 = vsel %vm8226_vm3, 0, %v3097_v5  ;;  %v7325_v63 = vld [vmem:[#allocation9 + $0x160] sm:$0xff] }
 0x2cd   : > { %10671 = vst [vmem:[#allocation49_spill] sm:$0xff] %v9015_v58  ;;  %4680 = vmatpush.bf16.msra.mxu3 %v7325_v63  ;;  %v7316_v63 = vld [vmem:[#allocation9 + $0x118] sm:$0xff] }
 0x2ce   : > { %3099 = vst [vmem:[#allocation3 + $0x18] sm:$0x1] %v3098_v19 }
 0x2cf   : > { %v2430_v60 = vpop.f32.mrf.mxu0 }
 0x2d0   : > { %v2431_v46 = vadd.f32 %v2430_v60, %v8791_v25  ;;  %v1043_v25 = vld [vmem:[#allocation2 + $0xcc] sm:$0xff]   ;;  %v9048_v36 = vpop.f32.mrf.mxu2 }
 0x2d1   : > { %v9041_v60 = vld [vmem:[#allocation2 + $0xcc] sm:$0xf0]  ;;  %v1451_v29 = vshll.u32 %v1043_v25, 16  ;;  %v1449_v43 = vshrl.u32 %v1043_v25, 16 }
 0x2d2   : > { %v9027_v38 = vpop.f32.mrf.mxu1  ;;  %2938 = vmatmul.bf16.gmra.mxu0 %v8510_v20  ;;  %10678 = vst [vmem:[#allocation26_spill] sm:$0xff] %v9041_v60 }
 0x2d3   : > { %10674 = vst [vmem:[#allocation54_spill] sm:$0xff] %v9027_v38  ;;  %v1062_v38 = vld [vmem:[#allocation2 + $0xd4] sm:$0x1]  ;;  %v9054_v60 = vpop.f32.mrf.mxu3  ;;  %v1453_v3 = vrot.slane %v1451_v29, 1 }
 0x2d4   : > { %v1224_v6 = vunpack.c.l.b16 %v1062_v38  ;;  %10681 = vst [vmem:[#allocation58_spill] sm:$0xff] %v9054_v60  ;;  %v9063_v60 = vld [vmem:[%s10462_s2] ss:$0 sm:$0xff] }
 0x2d6   : > { %v9050_v42 = vpack.c.b16 %v1224_v6, %v1224_v6  ;;  %v7317_v6 = vld [vmem:[#allocation9 + $0x120] sm:$0xff] }
 0x2d7   : > { %v2432_v58 = vpop.f32.mrf.mxu0  ;;  %4591 = vmatpush.bf16.msra.mxu2 %v7317_v6 }
 0x2d8   : > { %v9046_v20 = vadd.f32 %v2432_v58, %v2344_v33  ;;  %v1456_v38 = vshll.u32 %v9050_v42, 16  ;;  %v2816_v58 = vadd.f32 %v8907_v1, %v8914_v50  ;;  %v9065_v29 = vpop.f32.mrf.mxu2  ;;  %v3151_v1 = vld [vmem:[#allocation3 + $0x20] sm:$0x1] }
 0x2da   : > { %v2519_v52 = vpop.f32.mrf.mxu1  ;;  %10680 = vst [vmem:[#allocation56_spill] sm:$0xff] %v9046_v20 }
 0x2db   : > { %v9044_v53 = vadd.f32 %v2519_v52, %v2431_v46  ;;  %v1454_v52 = vor.u32 %v1453_v3, %v1449_v43  ;;  %v1458_v46 = vrot.slane %v1456_v38, 1  ;;  %v3152_v3 = vsel %vm8232_vm4, 0, %v3151_v1  ;;  %v9071_v19 = vpop.f32.mrf.mxu3  ;;  %v7323_v43 = vld [vmem:[#allocation9 + $0x150] sm:$0xff]  ;;  %4592 = vmatpush.bf16.msra.mxu2 %v7316_v63  ;;  %v3100_v1 = vld [vmem:[#allocation3 + $0x24] sm:$0x1] }
 0x2dc   : > { %3153 = vst [vmem:[#allocation3 + $0x20] sm:$0x1] %v3152_v3  ;;  %2800 = vmatmul.bf16.gmra.mxu2 %v1043_v25  ;;  %v3101_v25 = vsel %vm8226_vm3, 0, %v3100_v1  ;;  %v2821_v3 = vadd.f32 %v8927_v59, %v8935_v17  ;;  %v7288_v59 = vld [vmem:[#allocation9 + $0x38] sm:$0xff] }
 0x2dd   : > { %10679 = vst [vmem:[#allocation53_spill] sm:$0xff] %v9044_v53  ;;  %v1459_v20 = vsel %vm1243_vm10, %v1454_v52, %v1458_v46  ;;  %v7324_v53 = vld [vmem:[#allocation9 + $0x158] sm:$0xff]  ;;  %4910 = vmatpush.bf16.msrb.mxu0 %v7288_v59 }
 0x2de   : > { %2889 = vmatmul.bf16.gmra.mxu3 %v1459_v20  ;;  %10682 = vst [vmem:[#allocation59_spill] sm:$0xff] %v9071_v19  ;;  %v7296_v17 = vld [vmem:[#allocation9 + $0x78] sm:$0xff] }
 0x2df   : > { %v2904_v33 = vpop.f32.mrf.mxu0  ;;  %4681 = vmatpush.bf16.msra.mxu3 %v7324_v53  ;;  %v2818_v53 = vadd.f32 %v8916_v15, %v8921_v54  ;;  %v7314_v15 = vld [vmem:[#allocation9 + $0x108] sm:$0xff]  ;;  %v7321_v54 = vld [vmem:[#allocation9 + $0x140] sm:$0xff]  ;;  %3102 = vst [vmem:[#allocation3 + $0x24] sm:$0x1] %v3101_v25  ;;  %4999 = vmatpush.bf16.msrb.mxu1 %v7296_v17 }
 0x2e0   : > { %v2905_v5 = vadd.f32 %v2904_v33, %v2816_v58  ;;  %v7315_v58 = vld [vmem:[#allocation9 + $0x110] sm:$0xff]  ;;  %v9076_v33 = vpop.f32.mrf.mxu2 }
 0x2e1   : > { %4593 = vmatpush.bf16.msra.mxu2 %v7315_v58  ;;  %v7313_v58 = vld [vmem:[#allocation9 + $0x100] sm:$0xff] }
 0x2e2   : > { %v2984_v50 = vadd.f32 %v2905_v5, %v8797_v35  ;;  %2943 = vmatmul.bf16.gmra.mxu0 %v8540_v57  ;;  %v7322_v57 = vld [vmem:[#allocation9 + $0x148] sm:$0xff] }
 0x2e3   : > { %4682 = vmatpush.bf16.msra.mxu3 %v7323_v43 }
 0x2e4   : > { %v3020_v38 = vadd.f32 %v9063_v60, %v2984_v50  ;;  %v9081_v50 = vpop.f32.mrf.mxu3 }
 0x2e5   : > { %10683 = vst [vmem:[#allocation57_spill] sm:$0xff] %v9081_v50  ;;  %4594 = vmatpush.bf16.msra.mxu2 %v7314_v15 }
 0x2e6   : > { %v3052_v20 = vmax.f32 %v3020_v38, 0.0 }
 0x2e7   : > { %v2906_v35 = vpop.f32.mrf.mxu0  ;;  %4683 = vmatpush.bf16.msra.mxu3 %v7322_v57 }
 0x2e8   : > { %v3199_v52 = vpack.c.bf16 %v3052_v20, %v3052_v20  ;;  %v2907_v46 = vadd.f32 %v2906_v35, %v2818_v53  ;;  %v3552_v53 = vld [vmem:[#allocation3 + $0xc] sm:$0xf]  ;;  %v9088_v19 = vpop.f32.mrf.mxu2 }
 0x2e9   : > { %4595 = vmatpush.bf16.msra.mxu2 %v7313_v58 }
 0x2ea   : > { %v3232_v6 = vshrl.u32 %v3199_v52, 16  ;;  %v2985_v5 = vadd.f32 %v2907_v46, %v8801_v51  ;;  %v3235_v43 = vshll.u32 %v3199_v52, 16  ;;  %v3154_v52 = vld [vmem:[#allocation3 + $0x2c] sm:$0x1] }
 0x2eb   : > { %4684 = vmatpush.bf16.msra.mxu3 %v7321_v54  ;;  %v3155_v25 = vsel %vm8232_vm4, 0, %v3154_v52 }
 0x2ec   : > { %v3234_v63 = vrot.slane %v3232_v6, 7  ;;  %v3021_v38 = vadd.f32 %v9063_v60, %v2985_v5  ;;  %3156 = vst [vmem:[#allocation3 + $0x2c] sm:$0x1] %v3155_v25  ;;  %v9094_v15 = vpop.f32.mrf.mxu3 }
 0x2ee   : > { %v3237_v51 = vor.u32 %v3235_v43, %v3234_v63  ;;  %v3053_v20 = vmax.f32 %v3021_v38, 0.0  ;;  %v2823_v38 = vadd.f32 %v8937_v26, %v8942_v24  ;;  %v2826_v24 = vadd.f32 %v8948_v44, %v8955_v14 }
 0x2ef   : > { %v2909_v35 = vpop.f32.mrf.mxu0 }
 0x2f0   : > { %v3553_v46 = vsel %vm8259_vm8, %v3237_v51, %v3552_v53  ;;  %v3200_v1 = vpack.c.bf16 %v3053_v20, %v3053_v20  ;;  %v2910_v50 = vadd.f32 %v2909_v35, %v2821_v3  ;;  %v3556_v53 = vld [vmem:[#allocation3 + $0x14] sm:$0x1]  ;;  %v3238_v51 = vrot.slane %v3234_v63, 4  ;;  %v3103_v63 = vld [vmem:[#allocation3 + $0x30] sm:$0x1] }
 0x2f1   : > { %3554 = vst [vmem:[#allocation3 + $0xc] sm:$0xf] %v3553_v46 }
 0x2f2   : > { %v3240_v6 = vshrl.u32 %v3200_v1, 16  ;;  %v2986_v5 = vadd.f32 %v2910_v50, %v8806_v40  ;;  %2948 = vmatmul.bf16.gmra.mxu0 %v8568_v16  ;;  %v3243_v3 = vshll.u32 %v3200_v1, 16  ;;  %v9103_v1 = vpop.f32.mrf.mxu2 }
 0x2f4   : > { %v3242_v54 = vrot.slane %v3240_v6, 7  ;;  %v3022_v43 = vadd.f32 %v9063_v60, %v2986_v5  ;;  %v9108_v6 = vpop.f32.mrf.mxu3 }
 0x2f6   : > { %v3245_v40 = vor.u32 %v3243_v3, %v3242_v54  ;;  %v3247_v50 = vrot.slane %v3242_v54, 4  ;;  %v3054_v16 = vmax.f32 %v3022_v43, 0.0  ;;  %v3104_v3 = vsel %vm8226_vm3, 0, %v3103_v63  ;;  %v3559_v43 = vld [vmem:[#allocation3 + $0x18] sm:$0xf] }
 0x2f7   : > { %v2911_v20 = vpop.f32.mrf.mxu0  ;;  %3105 = vst [vmem:[#allocation3 + $0x30] sm:$0x1] %v3104_v3 }
 0x2f8   : > { %v3246_v58 = vsel %vm8249_vm7, %v3238_v51, %v3245_v40  ;;  %v3557_v46 = vsel %vm8226_vm3, %v3247_v50, %v3556_v53  ;;  %v3201_v59 = vpack.c.bf16 %v3054_v16, %v3054_v16  ;;  %v2912_v17 = vadd.f32 %v2911_v20, %v2823_v38  ;;  %v7761_v51 = vld [vmem:[#allocation3 + $0xc] sm:$0xe] }
 0x2f9   : > { %3555 = vst [vmem:[#allocation3 + $0x10] sm:$0xf] %v3246_v58 }
 0x2fa   : > { %3558 = vst [vmem:[#allocation3 + $0x14] sm:$0x1] %v3557_v46  ;;  %v3249_v52 = vshrl.u32 %v3201_v59, 16  ;;  %v2987_v26 = vadd.f32 %v2912_v17, %v8810_v32  ;;  %v3252_v25 = vshll.u32 %v3201_v59, 16  ;;  %v9117_v20 = vpop.f32.mrf.mxu2  ;;  %v3157_v46 = vld [vmem:[#allocation3 + $0x38] sm:$0x1] }
 0x2fb   : > { %v3158_v63 = vsel %vm8232_vm4, 0, %v3157_v46 }
 0x2fc   : > { %v3251_v5 = vrot.slane %v3249_v52, 7  ;;  %v3023_v54 = vadd.f32 %v9063_v60, %v2987_v26  ;;  %3159 = vst [vmem:[#allocation3 + $0x38] sm:$0x1] %v3158_v63 }
 0x2fe   : > { %v3254_v38 = vor.u32 %v3252_v25, %v3251_v5  ;;  %v3055_v53 = vmax.f32 %v3023_v54, 0.0  ;;  %v9123_v25 = vpop.f32.mrf.mxu3 }
 0x2ff   : > { %v2914_v40 = vpop.f32.mrf.mxu0 }
 0x300   : > { %v3560_v32 = vsel %vm8259_vm8, %v3254_v38, %v3559_v43  ;;  %v3202_v44 = vpack.c.bf16 %v3055_v53, %v3055_v53  ;;  %v2915_v14 = vadd.f32 %v2914_v40, %v2826_v24  ;;  %v9115_v50 = vld [vmem:[#allocation3 + $0xc] sm:$0xff]   ;;  %v2828_v38 = vadd.f32 %v8957_v34, %v8962_v13 }
 0x301   : > { %v7760_v16 = vld [vmem:[#allocation3 + $0xc] sm:$0xf0]  ;;  %3561 = vst [vmem:[#allocation3 + $0x18] sm:$0xf] %v3560_v32  ;;  %v3701_v58 = vld [vmem:[#allocation3 + $0x14] sm:$0x1]  ;;  %4507 = vmatmul.bf16.vlgmr.msra.gmra.mxu1 %v9115_v50 }
 0x302   : > { %v3257_v59 = vshrl.u32 %v3202_v44, 16  ;;  %v2988_v17 = vadd.f32 %v2915_v14, %v8816_v11  ;;  %2953 = vmatmul.bf16.gmra.mxu0 %v10608_v30  ;;  %v3863_v52 = vunpack.c.l.b16 %v3701_v58  ;;  %v7762_v26 = vor.u32 %v7761_v51, %v7760_v16  ;;  %v3563_v11 = vld [vmem:[#allocation3 + $0x20] sm:$0x1] }
 0x303   : > { %v3260_v54 = vshll.u32 %v3202_v44, 16  ;;  %v3255_v53 = vrot.slane %v3251_v5, 4  ;;  %v3913_v51 = vshll.u32 %v9115_v50, 16  ;;  %v3911_v44 = vshrl.u32 %v9115_v50, 16 }
 0x304   : > { %v3259_v24 = vrot.slane %v3257_v59, 7  ;;  %v3024_v3 = vadd.f32 %v9063_v60, %v2988_v17  ;;  %v3881_v43 = vpack.c.b16 %v3863_v52, %v3863_v52  ;;  %v4189_v30 = vrot.slane %v7762_v26, 1  ;;  %v9135_v52 = vpop.f32.mrf.mxu2 }
 0x305   : > { %v3915_v46 = vrot.slane %v3913_v51, 1 }
 0x306   : > { %v3262_v40 = vor.u32 %v3260_v54, %v3259_v24  ;;  %v3264_v32 = vrot.slane %v3259_v24, 4  ;;  %v3056_v14 = vmax.f32 %v3024_v3, 0.0  ;;  %v4190_v16 = vrot.slane %v3881_v43, 1 }
 0x307   : > { %v2916_v58 = vpop.f32.mrf.mxu0  ;;  %v3918_v59 = vshll.u32 %v3881_v43, 16  ;;  %v3916_v63 = vor.u32 %v3915_v46, %v3911_v44  ;;  %v3106_v43 = vld [vmem:[#allocation3 + $0x3c] sm:$0x1] }
 0x308   : > { %v3263_v17 = vsel %vm8249_vm7, %v3255_v53, %v3262_v40  ;;  %v3564_v34 = vsel %vm8226_vm3, %v3264_v32, %v3563_v11  ;;  %v3203_v13 = vpack.c.bf16 %v3056_v14, %v3056_v14  ;;  %v2917_v5 = vadd.f32 %v2916_v58, %v2828_v38  ;;  %v9147_v11 = vpop.f32.mrf.mxu3 }
 0x309   : > { %3562 = vst [vmem:[#allocation3 + $0x1c] sm:$0xf] %v3263_v17  ;;  %v9138_v26 = vsel %vm1532_vm9, %v4189_v30, %v4190_v16  ;;  %v3920_v24 = vrot.slane %v3918_v59, 1  ;;  %v3107_v38 = vsel %vm8226_vm3, 0, %v3106_v43  ;;  %v2831_v30 = vadd.f32 %v8968_v2, %v8976_v8  ;;  %v7585_v2 = vld [vmem:[#allocation3 + $0x18] sm:$0xe] }
 0x30a   : > { %3565 = vst [vmem:[#allocation3 + $0x20] sm:$0x1] %v3564_v34  ;;  %v3266_v54 = vshrl.u32 %v3203_v13, 16  ;;  %v2989_v3 = vadd.f32 %v2917_v5, %v8820_v21  ;;  %4685 = vmatmul.bf16.vlgmr.msra.gmra.mxu3 %v9138_v26  ;;  %v3269_v40 = vshll.u32 %v3203_v13, 16  ;;  %v3566_v21 = vld [vmem:[#allocation3 + $0x24] sm:$0xf] }
 0x30b   : > { %v9143_v53 = vsel %vm1243_vm10, %v3916_v63, %v3920_v24  ;;  %3108 = vst [vmem:[#allocation3 + $0x3c] sm:$0x1] %v3107_v38  ;;  %v7295_v43 = vld [vmem:[#allocation9 + $0x70] sm:$0xff]  ;;  %v3160_v38 = vld [vmem:[#allocation3 + $0x44] sm:$0x1] }
 0x30c   : > { %v3268_v51 = vrot.slane %v3266_v54, 7  ;;  %v3025_v32 = vadd.f32 %v9063_v60, %v2989_v3  ;;  %4596 = vmatmul.bf16.vlgmr.msra.gmra.mxu2 %v9143_v53  ;;  %v9157_v8 = vpop.f32.mrf.mxu2  ;;  %v7287_v3 = vld [vmem:[#allocation9 + $0x30] sm:$0xff]  ;;  %5000 = vmatpush.bf16.msrb.mxu1 %v7295_v43 }
 0x30d   : > { %4911 = vmatpush.bf16.msrb.mxu0 %v7287_v3 }
 0x30e   : > { %v3271_v14 = vor.u32 %v3269_v40, %v3268_v51  ;;  %v3057_v16 = vmax.f32 %v3025_v32, 0.0  ;;  %v3161_v40 = vsel %vm8232_vm4, 0, %v3160_v38 }
 0x30f   : > { %v2919_v58 = vpop.f32.mrf.mxu0  ;;  %3162 = vst [vmem:[#allocation3 + $0x44] sm:$0x1] %v3161_v40 }
 0x310   : > { %v3567_v44 = vsel %vm8259_vm8, %v3271_v14, %v3566_v21  ;;  %v3204_v46 = vpack.c.bf16 %v3057_v16, %v3057_v16  ;;  %v2920_v59 = vadd.f32 %v2919_v58, %v2831_v30  ;;  %v9155_v17 = vld [vmem:[#allocation3 + $0x18] sm:$0xff]   ;;  %v3570_v58 = vld [vmem:[#allocation3 + $0x2c] sm:$0x1] }
 0x311   : > { %v7584_v34 = vld [vmem:[#allocation3 + $0x18] sm:$0xf0]  ;;  %3568 = vst [vmem:[#allocation3 + $0x24] sm:$0xf] %v3567_v44  ;;  %v3702_v13 = vld [vmem:[#allocation3 + $0x20] sm:$0x1]  ;;  %4512 = vmatmul.bf16.gmra.mxu1 %v9155_v17 }
 0x312   : > { %v3925_v5 = vshll.u32 %v9155_v17, 16  ;;  %v3274_v63 = vshrl.u32 %v3204_v46, 16  ;;  %v2990_v24 = vadd.f32 %v2920_v59, %v8825_v48  ;;  %2958 = vmatmul.bf16.gmra.mxu0 %v10611_v10  ;;  %v3864_v54 = vunpack.c.l.b16 %v3702_v13  ;;  %v9168_v59 = vpop.f32.mrf.mxu3 }
 0x313   : > { %v7586_v30 = vor.u32 %v7585_v2, %v7584_v34  ;;  %v3277_v21 = vshll.u32 %v3204_v46, 16  ;;  %v2833_v48 = vadd.f32 %v8978_v22, %v8983_v41  ;;  %v3272_v10 = vrot.slane %v3268_v51, 4 }
 0x314   : > { %v3276_v32 = vrot.slane %v3274_v63, 7  ;;  %v3026_v14 = vadd.f32 %v9063_v60, %v2990_v24  ;;  %v3882_v16 = vpack.c.b16 %v3864_v54, %v3864_v54  ;;  %v3927_v44 = vrot.slane %v3925_v5, 1  ;;  %v9175_v5 = vpop.f32.mrf.mxu2 }
 0x315   : > { %v4192_v24 = vrot.slane %v7586_v30, 1  ;;  %v3923_v54 = vshrl.u32 %v9155_v17, 16 }
 0x316   : > { %v3279_v34 = vor.u32 %v3277_v21, %v3276_v32  ;;  %v3281_v2 = vrot.slane %v3276_v32, 4  ;;  %v3058_v13 = vmax.f32 %v3026_v14, 0.0  ;;  %v4193_v46 = vrot.slane %v3882_v16, 1  ;;  %v3109_v14 = vld [vmem:[#allocation3 + $0x48] sm:$0x1] }
 0x317   : > { %v2921_v63 = vpop.f32.mrf.mxu0  ;;  %v3930_v3 = vshll.u32 %v3882_v16, 16  ;;  %v3928_v40 = vor.u32 %v3927_v44, %v3923_v54 }
 0x318   : > { %v3280_v43 = vsel %vm8249_vm7, %v3272_v10, %v3279_v34  ;;  %v3571_v22 = vsel %vm8226_vm3, %v3281_v2, %v3570_v58  ;;  %v3205_v41 = vpack.c.bf16 %v3058_v13, %v3058_v13  ;;  %v2922_v51 = vadd.f32 %v2921_v63, %v2833_v48 }
 0x319   : > { %3569 = vst [vmem:[#allocation3 + $0x28] sm:$0xf] %v3280_v43  ;;  %v9178_v38 = vsel %vm1532_vm9, %v4192_v24, %v4193_v46  ;;  %v3932_v32 = vrot.slane %v3930_v3, 1  ;;  %v3110_v48 = vsel %vm8226_vm3, 0, %v3109_v14  ;;  %v2836_v10 = vadd.f32 %v8989_v56, %v8996_v61  ;;  %v7764_v46 = vld [vmem:[#allocation3 + $0x24] sm:$0xe] }
 0x31a   : > { %10686 = vst [vmem:[#allocation60_spill] sm:$0xff] %v9178_v38  ;;  %v3283_v30 = vshrl.u32 %v3205_v41, 16  ;;  %v2991_v21 = vadd.f32 %v2922_v51, %v8829_v12  ;;  %4690 = vmatmul.bf16.gmra.mxu3 %v9178_v38  ;;  %v3286_v34 = vshll.u32 %v3205_v41, 16  ;;  %v3573_v12 = vld [vmem:[#allocation3 + $0x30] sm:$0xf]  ;;  %v9191_v24 = vpop.f32.mrf.mxu3 }
 0x31b   : > { %3572 = vst [vmem:[#allocation3 + $0x2c] sm:$0x1] %v3571_v22  ;;  %v9183_v16 = vsel %vm1243_vm10, %v3928_v40, %v3932_v32  ;;  %v3163_v51 = vld [vmem:[#allocation3 + $0x50] sm:$0x1] }
 0x31c   : > { %v3285_v58 = vrot.slane %v3283_v30, 7  ;;  %v3027_v44 = vadd.f32 %v9063_v60, %v2991_v21  ;;  %4601 = vmatmul.bf16.gmra.mxu2 %v9183_v16  ;;  %3111 = vst [vmem:[#allocation3 + $0x48] sm:$0x1] %v3110_v48  ;;  %v9197_v41 = vpop.f32.mrf.mxu2  ;;  %v3164_v14 = vsel %vm8232_vm4, 0, %v3163_v51 }
 0x31d   : > { %3165 = vst [vmem:[#allocation3 + $0x50] sm:$0x1] %v3164_v14 }
 0x31e   : > { %v3288_v2 = vor.u32 %v3286_v34, %v3285_v58  ;;  %v3059_v13 = vmax.f32 %v3027_v44, 0.0 }
 0x31f   : > { %v2924_v63 = vpop.f32.mrf.mxu0 }
 0x320   : > { %v3574_v54 = vsel %vm8259_vm8, %v3288_v2, %v3573_v12  ;;  %v3206_v3 = vpack.c.bf16 %v3059_v13, %v3059_v13  ;;  %v2925_v43 = vadd.f32 %v2924_v63, %v2836_v10  ;;  %v9195_v56 = vld [vmem:[#allocation3 + $0x24] sm:$0xff]   ;;  %v2838_v12 = vadd.f32 %v8998_v55, %v9003_v18  ;;  %v3577_v13 = vld [vmem:[#allocation3 + $0x38] sm:$0x1] }
 0x321   : > { %v7763_v61 = vld [vmem:[#allocation3 + $0x24] sm:$0xf0]  ;;  %3575 = vst [vmem:[#allocation3 + $0x30] sm:$0xf] %v3574_v54  ;;  %v3289_v2 = vrot.slane %v3285_v58, 4  ;;  %4517 = vmatmul.bf16.gmra.mxu1 %v9195_v56 }
 0x322   : > { %v3703_v22 = vld [vmem:[#allocation3 + $0x2c] sm:$0x1]  ;;  %v3291_v40 = vshrl.u32 %v3206_v3, 16  ;;  %v2992_v32 = vadd.f32 %v2925_v43, %v8838_v9  ;;  %2963 = vmatmul.bf16.gmra.mxu0 %v10618_v31  ;;  %v7765_v21 = vor.u32 %v7764_v46, %v7763_v61  ;;  %v3294_v10 = vshll.u32 %v3206_v3, 16 }
 0x323   : > { %v3865_v30 = vunpack.c.l.b16 %v3703_v22  ;;  %v3937_v31 = vshll.u32 %v9195_v56, 16  ;;  %v2467_v3 = vadd.f32 %v8843_v47, %v8840_v7  ;;  %v3935_v22 = vshrl.u32 %v9195_v56, 16  ;;  %v9218_v7 = vpop.f32.mrf.mxu3 }
 0x324   : > { %v3293_v48 = vrot.slane %v3291_v40, 7  ;;  %v3028_v34 = vadd.f32 %v9063_v60, %v2992_v32  ;;  %v4195_v9 = vrot.slane %v7765_v21, 1 }
 0x325   : > { %v3883_v44 = vpack.c.b16 %v3865_v30, %v3865_v30  ;;  %v3939_v51 = vrot.slane %v3937_v31, 1 }
 0x326   : > { %v3296_v46 = vor.u32 %v3294_v10, %v3293_v48  ;;  %v3298_v63 = vrot.slane %v3293_v48, 4  ;;  %v3060_v54 = vmax.f32 %v3028_v34, 0.0  ;;  %v3112_v10 = vld [vmem:[#allocation3 + $0x54] sm:$0x1] }
 0x327   : > { %v4196_v43 = vrot.slane %v3883_v44, 1  ;;  %v2926_v61 = vpop.f32.mrf.mxu0  ;;  %v3942_v40 = vshll.u32 %v3883_v44, 16  ;;  %v3940_v21 = vor.u32 %v3939_v51, %v3935_v22  ;;  %v9224_v44 = vpop.f32.mrf.mxu2 }
 0x328   : > { %v3297_v55 = vsel %vm8249_vm7, %v3289_v2, %v3296_v46  ;;  %v3578_v18 = vsel %vm8226_vm3, %v3298_v63, %v3577_v13  ;;  %v3207_v58 = vpack.c.bf16 %v3060_v54, %v3060_v54  ;;  %v2927_v32 = vadd.f32 %v2926_v61, %v2838_v12  ;;  %v3580_v46 = vld [vmem:[#allocation3 + $0x3c] sm:$0xf] }
 0x329   : > { %3576 = vst [vmem:[#allocation3 + $0x34] sm:$0xf] %v3297_v55  ;;  %v9216_v30 = vsel %vm1532_vm9, %v4195_v9, %v4196_v43  ;;  %v3944_v14 = vrot.slane %v3942_v40, 1  ;;  %v3113_v12 = vsel %vm8226_vm3, 0, %v3112_v10  ;;  %v2841_v2 = vadd.f32 %v9009_v62, %v9019_v39  ;;  %v7588_v39 = vld [vmem:[#allocation3 + $0x30] sm:$0xe] }
 0x32a   : > { %10687 = vst [vmem:[#allocation61_spill] sm:$0xff] %v9216_v30  ;;  %v3300_v47 = vshrl.u32 %v3207_v58, 16  ;;  %v2993_v48 = vadd.f32 %v2927_v32, %v2467_v3  ;;  %4695 = vmatmul.bf16.gmra.mxu3 %v9216_v30  ;;  %v3303_v9 = vshll.u32 %v3207_v58, 16 }
 0x32b   : > { %3579 = vst [vmem:[#allocation3 + $0x38] sm:$0x1] %v3578_v18  ;;  %v9222_v34 = vsel %vm1243_vm10, %v3940_v21, %v3944_v14  ;;  %v7286_v21 = vld [vmem:[#allocation9 + $0x28] sm:$0xff]  ;;  %v9239_v10 = vpop.f32.mrf.mxu3 }
 0x32c   : > { %v3302_v13 = vrot.slane %v3300_v47, 7  ;;  %v3029_v31 = vadd.f32 %v9063_v60, %v2993_v48  ;;  %4606 = vmatmul.bf16.gmra.mxu2 %v9222_v34  ;;  %3114 = vst [vmem:[#allocation3 + $0x54] sm:$0x1] %v3113_v12  ;;  %v7294_v14 = vld [vmem:[#allocation9 + $0x68] sm:$0xff]  ;;  %v3166_v47 = vld [vmem:[#allocation3 + $0x5c] sm:$0x1]  ;;  %4912 = vmatpush.bf16.msrb.mxu0 %v7286_v21 }
 0x32d   : > { %v3167_v12 = vsel %vm8232_vm4, 0, %v3166_v47  ;;  %5001 = vmatpush.bf16.msrb.mxu1 %v7294_v14 }
 0x32e   : > { %v3305_v63 = vor.u32 %v3303_v9, %v3302_v13  ;;  %v3061_v54 = vmax.f32 %v3029_v31, 0.0  ;;  %3168 = vst [vmem:[#allocation3 + $0x5c] sm:$0x1] %v3167_v12 }
 0x32f   : > { %v2929_v43 = vpop.f32.mrf.mxu0 }
 0x330   : > { %v3581_v3 = vsel %vm8259_vm8, %v3305_v63, %v3580_v46  ;;  %v3208_v61 = vpack.c.bf16 %v3061_v54, %v3061_v54  ;;  %v2930_v22 = vadd.f32 %v2929_v43, %v2841_v2  ;;  %v9234_v51 = vld [vmem:[#allocation3 + $0x30] sm:$0xff]   ;;  %v3584_v63 = vld [vmem:[#allocation3 + $0x44] sm:$0x1]  ;;  %v9247_v43 = vpop.f32.mrf.mxu2 }
 0x331   : > { %v7587_v40 = vld [vmem:[#allocation3 + $0x30] sm:$0xf0]  ;;  %3582 = vst [vmem:[#allocation3 + $0x3c] sm:$0xf] %v3581_v3  ;;  %v3949_v55 = vshll.u32 %v9234_v51, 16  ;;  %4522 = vmatmul.bf16.gmra.mxu1 %v9234_v51  ;;  %v7285_v3 = vld [vmem:[#allocation9 + $0x20] sm:$0xff] }
 0x332   : > { %v3704_v62 = vld [vmem:[#allocation3 + $0x38] sm:$0x1]  ;;  %v3308_v18 = vshrl.u32 %v3208_v61, 16  ;;  %v2994_v58 = vadd.f32 %v2930_v22, %v8851_v37  ;;  %2968 = vmatmul.bf16.gmra.mxu0 %v10624_v4  ;;  %v7589_v48 = vor.u32 %v7588_v39, %v7587_v40  ;;  %v3311_v9 = vshll.u32 %v3208_v61, 16 }
 0x333   : > { %v3866_v32 = vunpack.c.l.b16 %v3704_v62  ;;  %v2843_v37 = vadd.f32 %v9021_v0, %v9030_v49  ;;  %v3306_v4 = vrot.slane %v3302_v13, 4  ;;  %v3951_v54 = vrot.slane %v3949_v55, 1  ;;  %4913 = vmatpush.bf16.msrb.mxu0 %v7285_v3  ;;  %v3587_v3 = vld [vmem:[#allocation3 + $0x48] sm:$0xf] }
 0x334   : > { %v3310_v2 = vrot.slane %v3308_v18, 7  ;;  %v3030_v31 = vadd.f32 %v9063_v60, %v2994_v58  ;;  %v2472_v62 = vadd.f32 %v8856_v45, %v8853_v23  ;;  %v4198_v58 = vrot.slane %v7589_v48, 1  ;;  %v7284_v45 = vld [vmem:[#allocation9 + $0x18] sm:$0xff] }
 0x335   : > { %v3884_v46 = vpack.c.b16 %v3866_v32, %v3866_v32  ;;  %v3947_v32 = vshrl.u32 %v9234_v51, 16 }
 0x336   : > { %v3313_v22 = vor.u32 %v3311_v9, %v3310_v2  ;;  %v3315_v40 = vrot.slane %v3310_v2, 4  ;;  %v3062_v61 = vmax.f32 %v3030_v31, 0.0  ;;  %v3115_v2 = vld [vmem:[#allocation3 + $0x60] sm:$0x1] }
 0x337   : > { %v4199_v39 = vrot.slane %v3884_v46, 1  ;;  %v2931_v18 = vpop.f32.mrf.mxu0  ;;  %v3954_v0 = vshll.u32 %v3884_v46, 16  ;;  %v3952_v47 = vor.u32 %v3951_v54, %v3947_v32  ;;  %v3116_v31 = vsel %vm8226_vm3, 0, %v3115_v2  ;;  %v10690_v46 = vld [vmem:[#allocation55_spill] sm:$0xff]  ;;  %4914 = vmatpush.bf16.msrb.mxu0 %v7284_v45  ;;  %v7770_v32 = vld [vmem:[#allocation2 + $0xcc] sm:$0xe] }
 0x338   : > { %v3314_v49 = vsel %vm8249_vm7, %v3306_v4, %v3313_v22  ;;  %v3585_v13 = vsel %vm8226_vm3, %v3315_v40, %v3584_v63  ;;  %v3209_v55 = vpack.c.bf16 %v3062_v61, %v3062_v61  ;;  %v2932_v21 = vadd.f32 %v2931_v18, %v2843_v37  ;;  %3117 = vst [vmem:[#allocation3 + $0x60] sm:$0x1] %v3116_v31  ;;  %v9269_v22 = vpop.f32.mrf.mxu3  ;;  %v7283_v40 = vld [vmem:[#allocation9 + $0x10] sm:$0xff]  ;;  %v10693_v31 = vld [vmem:[#allocation22_spill] sm:$0xff] }
 0x339   : > { %3583 = vst [vmem:[#allocation3 + $0x40] sm:$0xf] %v3314_v49  ;;  %v9257_v14 = vsel %vm1532_vm9, %v4198_v58, %v4199_v39  ;;  %v3956_v23 = vrot.slane %v3954_v0, 1  ;;  %v2846_v37 = vadd.f32 %v10690_v46, %v9048_v36  ;;  %v9271_v58 = vpop.f32.mrf.mxu2 }
 0x33a   : > { %10688 = vst [vmem:[#allocation63_spill] sm:$0xff] %v9257_v14  ;;  %v3317_v48 = vshrl.u32 %v3209_v55, 16  ;;  %v2995_v12 = vadd.f32 %v2932_v21, %v2472_v62  ;;  %4700 = vmatmul.bf16.gmra.mxu3 %v9257_v14  ;;  %v3320_v63 = vshll.u32 %v3209_v55, 16  ;;  %v7767_v62 = vld [vmem:[#allocation3 + $0x3c] sm:$0xe] }
 0x33b   : > { %3586 = vst [vmem:[#allocation3 + $0x44] sm:$0x1] %v3585_v13  ;;  %v9261_v9 = vsel %vm1243_vm10, %v3952_v47, %v3956_v23  ;;  %4915 = vmatpush.bf16.msrb.mxu0 %v7283_v40  ;;  %v3091_v21 = vld [vmem:[#allocation3] sm:$0x1]  ;;  %v10692_v23 = vld [vmem:[#allocation29_spill] sm:$0xff] }
 0x33c   : > { %10689 = vst [vmem:[#allocation30_spill] sm:$0xff] %v9261_v9  ;;  %v3319_v4 = vrot.slane %v3317_v48, 7  ;;  %v3031_v54 = vadd.f32 %v9063_v60, %v2995_v12  ;;  %4611 = vmatmul.bf16.gmra.mxu2 %v9261_v9  ;;  %v10691_v47 = vld [vmem:[#allocation27_spill] sm:$0xff]  ;;  %v3169_v12 = vld [vmem:[#allocation3 + $0x68] sm:$0x1]  ;;  %v3092_v40 = vsel %vm8226_vm3, 0, %v3091_v21 }
 0x33d   : > { %v2477_v45 = vadd.f32 %v10692_v23, %v10691_v47  ;;  %v3591_v47 = vld [vmem:[#allocation3 + $0x50] sm:$0x1]  ;;  %3093 = vst [vmem:[#allocation3] sm:$0x1] %v3092_v40 }
 0x33e   : > { %v3322_v61 = vor.u32 %v3320_v63, %v3319_v4  ;;  %v3063_v39 = vmax.f32 %v3031_v54, 0.0  ;;  %v10694_v63 = vld [vmem:[#allocation39_spill] sm:$0xff] }
 0x33f   : > { %v2934_v18 = vpop.f32.mrf.mxu0 }
 0x340   : > { %v3588_v36 = vsel %vm8259_vm8, %v3322_v61, %v3587_v3  ;;  %v3210_v0 = vpack.c.bf16 %v3063_v39, %v3063_v39  ;;  %v2935_v49 = vadd.f32 %v2934_v18, %v2846_v37  ;;  %v9275_v13 = vld [vmem:[#allocation3 + $0x3c] sm:$0xff]   ;;  %v3170_v37 = vsel %vm8232_vm4, 0, %v3169_v12 }
 0x341   : > { %v7766_v55 = vld [vmem:[#allocation3 + $0x3c] sm:$0xf0]  ;;  %3589 = vst [vmem:[#allocation3 + $0x48] sm:$0xf] %v3588_v36  ;;  %4527 = vmatmul.bf16.gmra.mxu1 %v9275_v13  ;;  %v7281_v12 = vld [vmem:[#allocation9] sm:$0xff] }
 0x342   : > { %v3705_v48 = vld [vmem:[#allocation3 + $0x44] sm:$0x1]  ;;  %v3325_v2 = vshrl.u32 %v3210_v0, 16  ;;  %v2996_v46 = vadd.f32 %v2935_v49, %v10693_v31  ;;  %2973 = vmatmul.bf16.gmra.mxu0 %v10694_v63  ;;  %v7768_v61 = vor.u32 %v7767_v62, %v7766_v55  ;;  %v3328_v18 = vshll.u32 %v3210_v0, 16  ;;  %3171 = vst [vmem:[#allocation3 + $0x68] sm:$0x1] %v3170_v37 }
 0x343   : > { %v3867_v54 = vunpack.c.l.b16 %v3705_v48  ;;  %v7282_v3 = vld [vmem:[#allocation9 + $0x8] sm:$0xff]  ;;  %v10695_v49 = vld [vmem:[#allocation58_spill] sm:$0xff]  ;;  %v3323_v48 = vrot.slane %v3319_v4, 4  ;;  %v3961_v55 = vshll.u32 %v9275_v13, 16 }
 0x344   : > { %v3327_v39 = vrot.slane %v3325_v2, 7  ;;  %v3032_v36 = vadd.f32 %v9063_v60, %v2996_v46  ;;  %4916 = vmatpush.bf16.msrb.mxu0 %v7282_v3  ;;  %v2848_v31 = vadd.f32 %v10695_v49, %v9065_v29  ;;  %v4201_v62 = vrot.slane %v7768_v61, 1  ;;  %v10696_v37 = vld [vmem:[#allocation26_spill] sm:$0xff]  ;;  %v9292_v29 = vpop.f32.mrf.mxu3 }
 0x345   : > { %v3885_v23 = vpack.c.b16 %v3867_v54, %v3867_v54  ;;  %v3959_v46 = vshrl.u32 %v9275_v13, 16  ;;  %v3963_v54 = vrot.slane %v3961_v55, 1  ;;  %v7771_v9 = vor.u32 %v7770_v32, %v10696_v37 }
 0x346   : > { %v3330_v21 = vor.u32 %v3328_v18, %v3327_v39  ;;  %v3332_v2 = vrot.slane %v3327_v39, 4  ;;  %v3064_v0 = vmax.f32 %v3032_v36, 0.0 }
 0x347   : > { %v4202_v63 = vrot.slane %v3885_v23, 1  ;;  %v2936_v14 = vpop.f32.mrf.mxu0  ;;  %v3966_v3 = vshll.u32 %v3885_v23, 16  ;;  %v3964_v36 = vor.u32 %v3963_v54, %v3959_v46  ;;  %v9301_v23 = vpop.f32.mrf.mxu2 }
 0x348   : > { %v3331_v4 = vsel %vm8249_vm7, %v3323_v48, %v3330_v21  ;;  %v3592_v61 = vsel %vm8226_vm3, %v3332_v2, %v3591_v47  ;;  %v3211_v40 = vpack.c.bf16 %v3064_v0, %v3064_v0  ;;  %v2937_v18 = vadd.f32 %v2936_v14, %v2848_v31  ;;  %4917 = vmatpush.bf16.msrb.mxu0 %v7281_v12  ;;  %v3118_v48 = vld [vmem:[#allocation3 + $0x6c] sm:$0x1] }
 0x349   : > { %3590 = vst [vmem:[#allocation3 + $0x4c] sm:$0xf] %v3331_v4  ;;  %v9299_v39 = vsel %vm1532_vm9, %v4201_v62, %v4202_v63  ;;  %v3968_v49 = vrot.slane %v3966_v3, 1  ;;  %v1584_v47 = vrot.slane %v7771_v9, 1  ;;  %v1585_v14 = vrot.slane %v9050_v42, 1  ;;  %v10699_v62 = vld [vmem:[#allocation59_spill] sm:$0xff] }
 0x34a   : > { %10697 = vst [vmem:[#allocation62_spill] sm:$0xff] %v9299_v39  ;;  %v3334_v32 = vshrl.u32 %v3211_v40, 16  ;;  %v2997_v55 = vadd.f32 %v2937_v18, %v2477_v45  ;;  %4705 = vmatmul.bf16.gmra.mxu3 %v9299_v39  ;;  %v3119_v31 = vsel %vm8226_vm3, 0, %v3118_v48  ;;  %v2851_v12 = vadd.f32 %v10699_v62, %v9076_v33  ;;  %v3594_v45 = vld [vmem:[#allocation3 + $0x54] sm:$0xf] }
 0x34b   : > { %3593 = vst [vmem:[#allocation3 + $0x50] sm:$0x1] %v3592_v61  ;;  %v9305_v21 = vsel %vm1243_vm10, %v3964_v36, %v3968_v49  ;;  %v3337_v0 = vshll.u32 %v3211_v40, 16  ;;  %v1586_v9 = vsel %vm1532_vm9, %v1584_v47, %v1585_v14  ;;  %v7591_v48 = vld [vmem:[#allocation3 + $0x48] sm:$0xe]  ;;  %v7293_v14 = vld [vmem:[#allocation9 + $0x60] sm:$0xff] }
 0x34c   : > { %10698 = vst [vmem:[#allocation40_spill] sm:$0xff] %v9305_v21  ;;  %v3336_v2 = vrot.slane %v3334_v32, 7  ;;  %v3033_v63 = vadd.f32 %v9063_v60, %v2997_v55  ;;  %4616 = vmatmul.bf16.gmra.mxu2 %v9305_v21  ;;  %v9319_v18 = vpop.f32.mrf.mxu3  ;;  %v10700_v32 = vld [vmem:[#allocation33_spill] sm:$0xff]  ;;  %5002 = vmatpush.bf16.msrb.mxu1 %v7293_v14 }
 0x34d   : > { %3120 = vst [vmem:[#allocation3 + $0x6c] sm:$0x1] %v3119_v31  ;;  %v3172_v31 = vld [vmem:[#allocation3 + $0x74] sm:$0x1] }
 0x34e   : > { %v3339_v46 = vor.u32 %v3337_v0, %v3336_v2  ;;  %v3065_v54 = vmax.f32 %v3033_v63, 0.0 }
 0x34f   : > { %v2939_v3 = vpop.f32.mrf.mxu0 }
 0x350   : > { %v3595_v42 = vsel %vm8259_vm8, %v3339_v46, %v3594_v45  ;;  %v3212_v37 = vpack.c.bf16 %v3065_v54, %v3065_v54  ;;  %v2940_v4 = vadd.f32 %v2939_v3, %v2851_v12  ;;  %v9317_v61 = vld [vmem:[#allocation3 + $0x48] sm:$0xff]   ;;  %v9323_v12 = vpop.f32.mrf.mxu2  ;;  %v3173_v54 = vsel %vm8232_vm4, 0, %v3172_v31  ;;  %v10701_v3 = vld [vmem:[#allocation57_spill] sm:$0xff] }
 0x351   : > { %v7590_v33 = vld [vmem:[#allocation3 + $0x48] sm:$0xf0]  ;;  %3596 = vst [vmem:[#allocation3 + $0x54] sm:$0xf] %v3595_v42  ;;  %v3973_v36 = vshll.u32 %v9317_v61, 16  ;;  %v2853_v42 = vadd.f32 %v10701_v3, %v9088_v19  ;;  %4532 = vmatmul.bf16.gmra.mxu1 %v9317_v61  ;;  %v3971_v31 = vshrl.u32 %v9317_v61, 16 }
 0x352   : > { %v3706_v40 = vld [vmem:[#allocation3 + $0x50] sm:$0x1]  ;;  %v3342_v49 = vshrl.u32 %v3212_v37, 16  ;;  %v2998_v55 = vadd.f32 %v2940_v4, %v10700_v32  ;;  %2978 = vmatmul.bf16.gmra.mxu0 %v1586_v9  ;;  %v3345_v62 = vshll.u32 %v3212_v37, 16  ;;  %v7592_v0 = vor.u32 %v7591_v48, %v7590_v33  ;;  %v3598_v4 = vld [vmem:[#allocation3 + $0x5c] sm:$0x1] }
 0x353   : > { %v3868_v47 = vunpack.c.l.b16 %v3706_v40  ;;  %v3340_v9 = vrot.slane %v3336_v2, 4  ;;  %v3975_v40 = vrot.slane %v3973_v36, 1  ;;  %3174 = vst [vmem:[#allocation3 + $0x74] sm:$0x1] %v3173_v54  ;;  %v10702_v48 = vld [vmem:[#allocation28_spill] sm:$0xff] }
 0x354   : > { %v3344_v63 = vrot.slane %v3342_v49, 7  ;;  %v3034_v45 = vadd.f32 %v9063_v60, %v2998_v55  ;;  %v10703_v55 = vld [vmem:[#allocation38_spill] sm:$0xff]  ;;  %v4204_v39 = vrot.slane %v7592_v0, 1 }
 0x355   : > { %v3886_v46 = vpack.c.b16 %v3868_v47, %v3868_v47  ;;  %v2482_v47 = vadd.f32 %v10703_v55, %v10702_v48 }
 0x356   : > { %v3347_v37 = vor.u32 %v3345_v62, %v3344_v63  ;;  %v3349_v33 = vrot.slane %v3344_v63, 4  ;;  %v3066_v32 = vmax.f32 %v3034_v45, 0.0  ;;  %v3976_v63 = vor.u32 %v3975_v40, %v3971_v31 }
 0x357   : > { %v4205_v49 = vrot.slane %v3886_v46, 1  ;;  %v2941_v14 = vpop.f32.mrf.mxu0  ;;  %v3978_v21 = vshll.u32 %v3886_v46, 16  ;;  %v3121_v46 = vld [vmem:[#allocation3 + $0x78] sm:$0x1] }
 0x358   : > { %v3348_v19 = vsel %vm8249_vm7, %v3340_v9, %v3347_v37  ;;  %v3599_v2 = vsel %vm8226_vm3, %v3349_v33, %v3598_v4  ;;  %v3213_v36 = vpack.c.bf16 %v3066_v32, %v3066_v32  ;;  %v2942_v54 = vadd.f32 %v2941_v14, %v2853_v42  ;;  %v9345_v9 = vpop.f32.mrf.mxu3  ;;  %v3601_v37 = vld [vmem:[#allocation3 + $0x60] sm:$0xf]  ;;  %v9353_v33 = vpop.f32.mrf.mxu2  ;;  %v7773_v55 = vld [vmem:[#allocation3 + $0x54] sm:$0xe] }
 0x359   : > { %3597 = vst [vmem:[#allocation3 + $0x58] sm:$0xf] %v3348_v19  ;;  %v9339_v62 = vsel %vm1532_vm9, %v4204_v39, %v4205_v49  ;;  %v3980_v45 = vrot.slane %v3978_v21, 1  ;;  %v3122_v42 = vsel %vm8226_vm3, 0, %v3121_v46  ;;  %v2856_v39 = vadd.f32 %v9094_v15, %v9103_v1  ;;  %v7423_v14 = vld [vmem:[#allocation3] sm:$0xff]  }
 0x35a   : > { %10704 = vst [vmem:[#allocation36_spill] sm:$0xff] %v9339_v62  ;;  %v3351_v3 = vshrl.u32 %v3213_v36, 16  ;;  %v2999_v0 = vadd.f32 %v2942_v54, %v2482_v47  ;;  %4710 = vmatmul.bf16.gmra.mxu3 %v9339_v62  ;;  %v3354_v40 = vshll.u32 %v3213_v36, 16  ;;  %v3175_v36 = vld [vmem:[#allocation3 + $0x80] sm:$0x1] }
 0x35b   : > { %3600 = vst [vmem:[#allocation3 + $0x5c] sm:$0x1] %v3599_v2  ;;  %v9343_v48 = vsel %vm1243_vm10, %v3976_v63, %v3980_v45  ;;  %v10706_v63 = vld [vmem:[#allocation32_spill] sm:$0xff]  ;;  %v3176_v46 = vsel %vm8232_vm4, 0, %v3175_v36  ;;  %v10707_v36 = vld [vmem:[#allocation23_spill] sm:$0xff] }
 0x35c   : > { %10705 = vst [vmem:[#allocation21_spill] sm:$0xff] %v9343_v48  ;;  %v3353_v4 = vrot.slane %v3351_v3, 7  ;;  %v3035_v21 = vadd.f32 %v9063_v60, %v2999_v0  ;;  %4621 = vmatmul.bf16.gmra.mxu2 %v9343_v48 }
 0x35d   : > { %3123 = vst [vmem:[#allocation3 + $0x78] sm:$0x1] %v3122_v42 }
 0x35e   : > { %v3356_v32 = vor.u32 %v3354_v40, %v3353_v4  ;;  %v3067_v49 = vmax.f32 %v3035_v21, 0.0  ;;  %3177 = vst [vmem:[#allocation3 + $0x80] sm:$0x1] %v3176_v46 }
 0x35f   : > { %v2944_v47 = vpop.f32.mrf.mxu0 }
 0x360   : > { %v3602_v31 = vsel %vm8259_vm8, %v3356_v32, %v3601_v37  ;;  %v3214_v19 = vpack.c.bf16 %v3067_v49, %v3067_v49  ;;  %v2945_v15 = vadd.f32 %v2944_v47, %v2856_v39  ;;  %v9357_v1 = vld [vmem:[#allocation3 + $0x54] sm:$0xff]   ;;  %v9365_v39 = vld [vmem:[%s10462_s2] ss:$0 sm:$0xff]  ;;  %v2858_v32 = vadd.f32 %v9108_v6, %v9117_v20 }
 0x361   : > { %v7772_v2 = vld [vmem:[#allocation3 + $0x54] sm:$0xf0]  ;;  %3603 = vst [vmem:[#allocation3 + $0x60] sm:$0xf] %v3602_v31  ;;  %v3357_v49 = vrot.slane %v3353_v4, 4  ;;  %4537 = vmatmul.bf16.gmra.mxu1 %v9357_v1  ;;  %v3985_v31 = vshll.u32 %v9357_v1, 16  ;;  %v9377_v4 = vpop.f32.mrf.mxu2 }
 0x362   : > { %v3707_v60 = vld [vmem:[#allocation3 + $0x5c] sm:$0x1]  ;;  %v3359_v54 = vshrl.u32 %v3214_v19, 16  ;;  %v3000_v45 = vadd.f32 %v2945_v15, %v10706_v63  ;;  %4918 = vmatmul.bf16.vlgmr.msrb.gmra.mxu0 %v7423_v14  ;;  %v7774_v0 = vor.u32 %v7773_v55, %v7772_v2  ;;  %v3362_v40 = vshll.u32 %v3214_v19, 16  ;;  %v3605_v47 = vld [vmem:[#allocation3 + $0x68] sm:$0x1]  ;;  %v9371_v14 = vpop.f32.mrf.mxu3 }
 0x363   : > { %v3869_v3 = vunpack.c.l.b16 %v3707_v60  ;;  %v3987_v6 = vrot.slane %v3985_v31, 1 }
 0x364   : > { %v3361_v42 = vrot.slane %v3359_v54, 7  ;;  %v3036_v21 = vadd.f32 %v9365_v39, %v3000_v45  ;;  %v4207_v55 = vrot.slane %v7774_v0, 1  ;;  %v10708_v54 = vld [vmem:[#allocation37_spill] sm:$0xff] }
 0x365   : > { %v3887_v37 = vpack.c.b16 %v3869_v3, %v3869_v3  ;;  %v2487_v63 = vadd.f32 %v10708_v54, %v10707_v36  ;;  %v3983_v3 = vshrl.u32 %v9357_v1, 16 }
 0x366   : > { %v3364_v19 = vor.u32 %v3362_v40, %v3361_v42  ;;  %v3366_v15 = vrot.slane %v3361_v42, 4  ;;  %v3068_v2 = vmax.f32 %v3036_v21, 0.0 }
 0x367   : > { %v4208_v60 = vrot.slane %v3887_v37, 1  ;;  %v2946_v45 = vpop.f32.mrf.mxu0  ;;  %v3990_v20 = vshll.u32 %v3887_v37, 16  ;;  %v3988_v36 = vor.u32 %v3987_v6, %v3983_v3  ;;  %v3124_v37 = vld [vmem:[#allocation3 + $0x84] sm:$0x1] }
 0x368   : > { %v3365_v0 = vsel %vm8249_vm7, %v3357_v49, %v3364_v19  ;;  %v3606_v46 = vsel %vm8226_vm3, %v3366_v15, %v3605_v47  ;;  %v3215_v40 = vpack.c.bf16 %v3068_v2, %v3068_v2  ;;  %v2947_v42 = vadd.f32 %v2946_v45, %v2858_v32  ;;  %v3608_v15 = vld [vmem:[#allocation3 + $0x6c] sm:$0xf] }
 0x369   : > { %3604 = vst [vmem:[#allocation3 + $0x64] sm:$0xf] %v3365_v0  ;;  %v9384_v21 = vsel %vm1532_vm9, %v4207_v55, %v4208_v60  ;;  %v3992_v54 = vrot.slane %v3990_v20, 1  ;;  %v3125_v49 = vsel %vm8226_vm3, 0, %v3124_v37  ;;  %v2861_v32 = vadd.f32 %v9123_v25, %v9135_v52  ;;  %v9400_v52 = vpop.f32.mrf.mxu2  ;;  %v7292_v37 = vld [vmem:[#allocation9 + $0x58] sm:$0xff] }
 0x36a   : > { %10709 = vst [vmem:[#allocation20_spill] sm:$0xff] %v9384_v21  ;;  %v3368_v62 = vshrl.u32 %v3215_v40, 16  ;;  %v3001_v31 = vadd.f32 %v2947_v42, %v2487_v63  ;;  %4715 = vmatmul.bf16.gmra.mxu3 %v9384_v21  ;;  %v3371_v55 = vshll.u32 %v3215_v40, 16  ;;  %v9396_v45 = vpop.f32.mrf.mxu3  ;;  %v10711_v42 = vld [vmem:[#allocation31_spill] sm:$0xff]  ;;  %5003 = vmatpush.bf16.msrb.mxu1 %v7292_v37 }
 0x36b   : > { %3607 = vst [vmem:[#allocation3 + $0x68] sm:$0x1] %v3606_v46  ;;  %v9388_v48 = vsel %vm1243_vm10, %v3988_v36, %v3992_v54  ;;  %v7594_v54 = vld [vmem:[#allocation3 + $0x60] sm:$0xe] }
 0x36c   : > { %10710 = vst [vmem:[#allocation55_spill] sm:$0xff] %v9388_v48  ;;  %v3370_v47 = vrot.slane %v3368_v62, 7  ;;  %v3037_v19 = vadd.f32 %v9365_v39, %v3001_v31  ;;  %4626 = vmatmul.bf16.gmra.mxu2 %v9388_v48  ;;  %v10712_v21 = vld [vmem:[#allocation35_spill] sm:$0xff] }
 0x36d   : > { %3126 = vst [vmem:[#allocation3 + $0x84] sm:$0x1] %v3125_v49  ;;  %v3178_v49 = vld [vmem:[#allocation3 + $0x8c] sm:$0x1] }
 0x36e   : > { %v3373_v2 = vor.u32 %v3371_v55, %v3370_v47  ;;  %v3069_v60 = vmax.f32 %v3037_v19, 0.0 }
 0x36f   : > { %v2949_v63 = vpop.f32.mrf.mxu0 }
 0x370   : > { %v3609_v3 = vsel %vm8259_vm8, %v3373_v2, %v3608_v15  ;;  %v3216_v6 = vpack.c.bf16 %v3069_v60, %v3069_v60  ;;  %v2950_v20 = vadd.f32 %v2949_v63, %v2861_v32  ;;  %v7576_v0 = vld [vmem:[#allocation3 + $0x60] sm:$0xff]   ;;  %v3179_v32 = vsel %vm8232_vm4, 0, %v3178_v49  ;;  %v10713_v49 = vld [vmem:[#allocation41_spill] sm:$0xff] }
 0x371   : > { %v7593_v25 = vld [vmem:[#allocation3 + $0x60] sm:$0xf0]  ;;  %3610 = vst [vmem:[#allocation3 + $0x6c] sm:$0xf] %v3609_v3  ;;  %v3997_v46 = vshll.u32 %v7576_v0, 16  ;;  %v2863_v63 = vadd.f32 %v9147_v11, %v9157_v8  ;;  %v3374_v3 = vrot.slane %v3370_v47, 4  ;;  %4542 = vmatmul.bf16.gmra.mxu1 %v7576_v0 }
 0x372   : > { %v3708_v62 = vld [vmem:[#allocation3 + $0x68] sm:$0x1]  ;;  %v3376_v40 = vshrl.u32 %v3216_v6, 16  ;;  %v3002_v36 = vadd.f32 %v2950_v20, %v10711_v42  ;;  %4923 = vmatmul.bf16.gmra.mxu0 %v9115_v50  ;;  %v7595_v55 = vor.u32 %v7594_v54, %v7593_v25  ;;  %v3379_v15 = vshll.u32 %v3216_v6, 16  ;;  %3180 = vst [vmem:[#allocation3 + $0x8c] sm:$0x1] %v3179_v32  ;;  %v9418_v32 = vpop.f32.mrf.mxu3 }
 0x373   : > { %v3870_v31 = vunpack.c.l.b16 %v3708_v62  ;;  %v3612_v50 = vld [vmem:[#allocation3 + $0x74] sm:$0x1]  ;;  %v3999_v20 = vrot.slane %v3997_v46, 1 }
 0x374   : > { %v3378_v19 = vrot.slane %v3376_v40, 7  ;;  %v3038_v2 = vadd.f32 %v9365_v39, %v3002_v36  ;;  %v2492_v40 = vadd.f32 %v10713_v49, %v10712_v21  ;;  %v4210_v48 = vrot.slane %v7595_v55, 1 }
 0x375   : > { %v3888_v60 = vpack.c.b16 %v3870_v31, %v3870_v31  ;;  %v3995_v36 = vshrl.u32 %v7576_v0, 16 }
 0x376   : > { %v3381_v62 = vor.u32 %v3379_v15, %v3378_v19  ;;  %v3383_v42 = vrot.slane %v3378_v19, 4  ;;  %v3070_v25 = vmax.f32 %v3038_v2, 0.0  ;;  %v9420_v15 = vpop.f32.mrf.mxu1  ;;  %v3127_v2 = vld [vmem:[#allocation3 + $0x90] sm:$0x1] }
 0x377   : > { %v4211_v54 = vrot.slane %v3888_v60, 1  ;;  %v2951_v6 = vpop.f32.mrf.mxu0  ;;  %v4002_v31 = vshll.u32 %v3888_v60, 16  ;;  %v4000_v19 = vor.u32 %v3999_v20, %v3995_v36 }
 0x378   : > { %v3382_v37 = vsel %vm8249_vm7, %v3374_v3, %v3381_v62  ;;  %v3613_v11 = vsel %vm8226_vm3, %v3383_v42, %v3612_v50  ;;  %v3217_v8 = vpack.c.bf16 %v3070_v25, %v3070_v25  ;;  %v2952_v47 = vadd.f32 %v2951_v6, %v2863_v63  ;;  %v9426_v63 = vpop.f32.mrf.mxu2  ;;  %v3615_v42 = vld [vmem:[#allocation3 + $0x78] sm:$0xf]  ;;  %v7776_v49 = vld [vmem:[#allocation3 + $0x6c] sm:$0xe] }
 0x379   : > { %3611 = vst [vmem:[#allocation3 + $0x70] sm:$0xf] %v3382_v37  ;;  %v9416_v46 = vsel %vm1532_vm9, %v4210_v48, %v4211_v54  ;;  %v4004_v21 = vrot.slane %v4002_v31, 1  ;;  %v3128_v48 = vsel %vm8226_vm3, 0, %v3127_v2  ;;  %v2866_v3 = vadd.f32 %v9168_v59, %v9175_v5 }
 0x37a   : > { %10714 = vst [vmem:[#allocation27_spill] sm:$0xff] %v9416_v46  ;;  %v3385_v0 = vshrl.u32 %v3217_v8, 16  ;;  %v3003_v55 = vadd.f32 %v2952_v47, %v2492_v40  ;;  %4720 = vmatmul.bf16.gmra.mxu3 %v9416_v46  ;;  %v3388_v20 = vshll.u32 %v3217_v8, 16  ;;  %v10716_v47 = vld [vmem:[#allocation34_spill] sm:$0xff]  ;;  %v9440_v2 = vpop.f32.mrf.mxu3 }
 0x37b   : > { %3614 = vst [vmem:[#allocation3 + $0x74] sm:$0x1] %v3613_v11  ;;  %v9424_v60 = vsel %vm1243_vm10, %v4000_v19, %v4004_v21  ;;  %v7304_v11 = vld [vmem:[#allocation9 + $0xb8] sm:$0xff] }
 0x37c   : > { %10715 = vst [vmem:[#allocation29_spill] sm:$0xff] %v9424_v60  ;;  %v3387_v50 = vrot.slane %v3385_v0, 7  ;;  %v3039_v62 = vadd.f32 %v9365_v39, %v3003_v55  ;;  %4631 = vmatmul.bf16.gmra.mxu2 %v9424_v60  ;;  %v3181_v55 = vld [vmem:[#allocation3 + $0x98] sm:$0x1] }
 0x37d   : > { %3129 = vst [vmem:[#allocation3 + $0x90] sm:$0x1] %v3128_v48  ;;  %5088 = vmatpush.bf16.msrb.mxu2 %v7304_v11 }
 0x37e   : > { %v3390_v25 = vor.u32 %v3388_v20, %v3387_v50  ;;  %v3071_v54 = vmax.f32 %v3039_v62, 0.0  ;;  %v4508_v21 = vpop.f32.mrf.mxu1 }
 0x37f   : > { %v2954_v40 = vpop.f32.mrf.mxu0 }
 0x380   : > { %v3616_v6 = vsel %vm8259_vm8, %v3390_v25, %v3615_v42  ;;  %v3218_v36 = vpack.c.bf16 %v3071_v54, %v3071_v54  ;;  %v2955_v31 = vadd.f32 %v2954_v40, %v2866_v3  ;;  %v9436_v37 = vld [vmem:[#allocation3 + $0x6c] sm:$0xff]   ;;  %v3182_v3 = vsel %vm8232_vm4, 0, %v3181_v55 }
 0x381   : > { %v7775_v59 = vld [vmem:[#allocation3 + $0x6c] sm:$0xf0]  ;;  %3617 = vst [vmem:[#allocation3 + $0x78] sm:$0xf] %v3616_v6  ;;  %v2868_v54 = vadd.f32 %v9191_v24, %v9197_v41  ;;  %v3391_v40 = vrot.slane %v3387_v50, 4  ;;  %4547 = vmatmul.bf16.gmra.mxu1 %v9436_v37  ;;  %v9448_v6 = vpop.f32.mrf.mxu2  ;;  %v4007_v55 = vshrl.u32 %v9436_v37, 16 }
 0x382   : > { %v3709_v5 = vld [vmem:[#allocation3 + $0x74] sm:$0x1]  ;;  %v3393_v8 = vshrl.u32 %v3218_v36, 16  ;;  %v3004_v19 = vadd.f32 %v2955_v31, %v10716_v47  ;;  %4928 = vmatmul.bf16.gmra.mxu0 %v9155_v17  ;;  %v7777_v48 = vor.u32 %v7776_v49, %v7775_v59  ;;  %v3396_v62 = vshll.u32 %v3218_v36, 16  ;;  %3183 = vst [vmem:[#allocation3 + $0x98] sm:$0x1] %v3182_v3 }
 0x383   : > { %v3871_v0 = vunpack.c.l.b16 %v3709_v5  ;;  %v3619_v17 = vld [vmem:[#allocation3 + $0x80] sm:$0x1]  ;;  %v4009_v31 = vshll.u32 %v9436_v37, 16 }
 0x384   : > { %v3395_v20 = vrot.slane %v3393_v8, 7  ;;  %v3040_v42 = vadd.f32 %v9365_v39, %v3004_v19  ;;  %v4213_v49 = vrot.slane %v7777_v48, 1  ;;  %v10717_v8 = vld [vmem:[#allocation24_spill] sm:$0xff]  ;;  %v10718_v47 = vld [vmem:[#allocation43_spill] sm:$0xff] }
 0x385   : > { %v3889_v25 = vpack.c.b16 %v3871_v0, %v3871_v0  ;;  %v2497_v19 = vadd.f32 %v10718_v47, %v10717_v8  ;;  %v4011_v24 = vrot.slane %v4009_v31, 1  ;;  %v7336_v31 = vld [vmem:[#allocation9 + $0x1b8] sm:$0xff] }
 0x386   : > { %v3398_v59 = vor.u32 %v3396_v62, %v3395_v20  ;;  %v3400_v5 = vrot.slane %v3395_v20, 4  ;;  %v3072_v11 = vmax.f32 %v3040_v42, 0.0  ;;  %5370 = vmatpush.bf16.msrb.mxu3 %v7336_v31 }
 0x387   : > { %v4214_v36 = vrot.slane %v3889_v25, 1  ;;  %v2956_v0 = vpop.f32.mrf.mxu0  ;;  %v4014_v41 = vshll.u32 %v3889_v25, 16  ;;  %v4012_v62 = vor.u32 %v4011_v24, %v4007_v55  ;;  %v9462_v25 = vpop.f32.mrf.mxu1 }
 0x388   : > { %v3399_v50 = vsel %vm8249_vm7, %v3391_v40, %v3398_v59  ;;  %v3620_v48 = vsel %vm8226_vm3, %v3400_v5, %v3619_v17  ;;  %v3219_v3 = vpack.c.bf16 %v3072_v11, %v3072_v11  ;;  %v2957_v46 = vadd.f32 %v2956_v0, %v2868_v54  ;;  %v3130_v54 = vld [vmem:[#allocation3 + $0x9c] sm:$0x1]  ;;  %v3622_v11 = vld [vmem:[#allocation3 + $0x84] sm:$0xf] }
 0x389   : > { %3618 = vst [vmem:[#allocation3 + $0x7c] sm:$0xf] %v3399_v50  ;;  %v9459_v20 = vsel %vm1532_vm9, %v4213_v49, %v4214_v36  ;;  %v4016_v42 = vrot.slane %v4014_v41, 1  ;;  %v2871_v40 = vadd.f32 %v9218_v7, %v9224_v44 }
 0x38a   : > { %10719 = vst [vmem:[#allocation22_spill] sm:$0xff] %v9459_v20  ;;  %v3402_v8 = vshrl.u32 %v3219_v3, 16  ;;  %v3005_v47 = vadd.f32 %v2957_v46, %v2497_v19  ;;  %4725 = vmatmul.bf16.gmra.mxu3 %v9459_v20  ;;  %v3405_v49 = vshll.u32 %v3219_v3, 16  ;;  %v3131_v46 = vsel %vm8226_vm3, 0, %v3130_v54 }
 0x38b   : > { %3621 = vst [vmem:[#allocation3 + $0x80] sm:$0x1] %v3620_v48  ;;  %v9467_v17 = vsel %vm1243_vm10, %v4012_v62, %v4016_v42 }
 0x38c   : > { %10720 = vst [vmem:[#allocation39_spill] sm:$0xff] %v9467_v17  ;;  %v3404_v59 = vrot.slane %v3402_v8, 7  ;;  %v3041_v5 = vadd.f32 %v9365_v39, %v3005_v47  ;;  %4636 = vmatmul.bf16.gmra.mxu2 %v9467_v17  ;;  %v10721_v47 = vld [vmem:[#allocation42_spill] sm:$0xff] }
 0x38d   : > { %v4686_v36 = vpop.f32.mrf.mxu3  ;;  %3132 = vst [vmem:[#allocation3 + $0x9c] sm:$0x1] %v3131_v46  ;;  %v7291_v46 = vld [vmem:[#allocation9 + $0x50] sm:$0xff] }
 0x38e   : > { %v3407_v19 = vor.u32 %v3405_v49, %v3404_v59  ;;  %v3073_v0 = vmax.f32 %v3041_v5, 0.0  ;;  %v7597_v49 = vld [vmem:[#allocation3 + $0x78] sm:$0xe]  ;;  %5004 = vmatpush.bf16.msrb.mxu1 %v7291_v46 }
 0x38f   : > { %v2959_v7 = vpop.f32.mrf.mxu0  ;;  %v4597_v44 = vpop.f32.mrf.mxu2 }
 0x390   : > { %v3623_v55 = vsel %vm8259_vm8, %v3407_v19, %v3622_v11  ;;  %v3220_v24 = vpack.c.bf16 %v3073_v0, %v3073_v0  ;;  %v2960_v41 = vadd.f32 %v2959_v7, %v2871_v40  ;;  %v4598_v50 = vadd.f32 %v4597_v44, %v4508_v21  ;;  %v9475_v48 = vld [vmem:[#allocation3 + $0x78] sm:$0xff]   ;;  %v9479_v54 = vpop.f32.mrf.mxu1  ;;  %v3184_v11 = vld [vmem:[#allocation3 + $0xa4] sm:$0x1] }
 0x391   : > { %v7596_v3 = vld [vmem:[#allocation3 + $0x78] sm:$0xf0]  ;;  %3624 = vst [vmem:[#allocation3 + $0x84] sm:$0xf] %v3623_v55  ;;  %v4021_v42 = vshll.u32 %v9475_v48, 16  ;;  %v3185_v21 = vsel %vm8232_vm4, 0, %v3184_v11  ;;  %4552 = vmatmul.bf16.gmra.mxu1 %v9475_v48 }
 0x392   : > { %v3710_v62 = vld [vmem:[#allocation3 + $0x80] sm:$0x1]  ;;  %v3410_v8 = vshrl.u32 %v3220_v24, 16  ;;  %v3006_v31 = vadd.f32 %v2960_v41, %v10721_v47  ;;  %4933 = vmatmul.bf16.gmra.mxu0 %v9195_v56  ;;  %v7598_v40 = vor.u32 %v7597_v49, %v7596_v3  ;;  %v9484_v19 = vadd.f32 %v4686_v36, %v4598_v50  ;;  %3186 = vst [vmem:[#allocation3 + $0xa4] sm:$0x1] %v3185_v21 }
 0x393   : > { %v3872_v5 = vunpack.c.l.b16 %v3710_v62  ;;  %v3413_v7 = vshll.u32 %v3220_v24, 16  ;;  %v2873_v41 = vadd.f32 %v9239_v10, %v9247_v43  ;;  %v3408_v47 = vrot.slane %v3404_v59, 4  ;;  %v3626_v62 = vld [vmem:[#allocation3 + $0x8c] sm:$0x1]  ;;  %v10723_v24 = vld [vmem:[#allocation46_spill] sm:$0xff] }
 0x394   : > { %v3412_v0 = vrot.slane %v3410_v8, 7  ;;  %v3042_v44 = vadd.f32 %v9365_v39, %v3006_v31  ;;  %v4023_v3 = vrot.slane %v4021_v42, 1  ;;  %v10722_v8 = vld [vmem:[#allocation44_spill] sm:$0xff]  ;;  %v4216_v46 = vrot.slane %v7598_v40, 1 }
 0x395   : > { %v3890_v55 = vpack.c.b16 %v3872_v5, %v3872_v5  ;;  %v4688_v20 = vpop.f32.mrf.mxu3  ;;  %v2502_v17 = vadd.f32 %v10723_v24, %v10722_v8  ;;  %v4019_v21 = vshrl.u32 %v9475_v48, 16 }
 0x396   : > { %v3415_v49 = vor.u32 %v3413_v7, %v3412_v0  ;;  %v3417_v11 = vrot.slane %v3412_v0, 4  ;;  %v3074_v36 = vmax.f32 %v3042_v44, 0.0 }
 0x397   : > { %v4217_v50 = vrot.slane %v3890_v55, 1  ;;  %v2961_v31 = vpop.f32.mrf.mxu0  ;;  %v4599_v5 = vpop.f32.mrf.mxu2  ;;  %v4026_v60 = vshll.u32 %v3890_v55, 16  ;;  %v4024_v44 = vor.u32 %v4023_v3, %v4019_v21  ;;  %v2876_v3 = vadd.f32 %v9269_v22, %v9271_v58 }
 0x398   : > { %v3416_v10 = vsel %vm8249_vm7, %v3408_v47, %v3415_v49  ;;  %v3627_v43 = vsel %vm8226_vm3, %v3417_v11, %v3626_v62  ;;  %v3221_v59 = vpack.c.bf16 %v3074_v36, %v3074_v36  ;;  %v2962_v42 = vadd.f32 %v2961_v31, %v2873_v41  ;;  %v9502_v55 = vpop.f32.mrf.mxu1  ;;  %v3133_v47 = vld [vmem:[#allocation3 + $0xa8] sm:$0x1]  ;;  %v3629_v11 = vld [vmem:[#allocation3 + $0x90] sm:$0xf] }
 0x399   : > { %3625 = vst [vmem:[#allocation3 + $0x88] sm:$0xf] %v3416_v10  ;;  %v4600_v0 = vadd.f32 %v4599_v5, %v9462_v25  ;;  %v9499_v7 = vsel %vm1532_vm9, %v4216_v46, %v4217_v50  ;;  %v4028_v8 = vrot.slane %v4026_v60, 1  ;;  %v3134_v41 = vsel %vm8226_vm3, 0, %v3133_v47  ;;  %v7779_v5 = vld [vmem:[#allocation3 + $0x84] sm:$0xe] }
 0x39a   : > { %3628 = vst [vmem:[#allocation3 + $0x8c] sm:$0x1] %v3627_v43  ;;  %v3419_v40 = vshrl.u32 %v3221_v59, 16  ;;  %v3007_v24 = vadd.f32 %v2962_v42, %v2502_v17  ;;  %4730 = vmatmul.bf16.gmra.mxu3 %v9499_v7  ;;  %v3422_v49 = vshll.u32 %v3221_v59, 16 }
 0x39b   : > { %v9505_v62 = vsel %vm1243_vm10, %v4024_v44, %v4028_v8  ;;  %v9509_v25 = vadd.f32 %v4688_v20, %v4600_v0  ;;  %3135 = vst [vmem:[#allocation3 + $0xa8] sm:$0x1] %v3134_v41  ;;  %v7303_v0 = vld [vmem:[#allocation9 + $0xb0] sm:$0xff]  ;;  %v10724_v8 = vld [vmem:[#allocation47_spill] sm:$0xff]  ;;  %v3187_v41 = vld [vmem:[#allocation3 + $0xb0] sm:$0x1] }
 0x39c   : > { %v3421_v60 = vrot.slane %v3419_v40, 7  ;;  %v3043_v17 = vadd.f32 %v9365_v39, %v3007_v24  ;;  %4641 = vmatmul.bf16.gmra.mxu2 %v9505_v62 }
 0x39d   : > { %v4691_v36 = vpop.f32.mrf.mxu3  ;;  %5089 = vmatpush.bf16.msrb.mxu2 %v7303_v0  ;;  %v10726_v0 = vld [vmem:[#allocation45_spill] sm:$0xff] }
 0x39e   : > { %v3424_v50 = vor.u32 %v3422_v49, %v3421_v60  ;;  %v3075_v31 = vmax.f32 %v3043_v17, 0.0 }
 0x39f   : > { %v2964_v46 = vpop.f32.mrf.mxu0  ;;  %v4602_v21 = vpop.f32.mrf.mxu2 }
 0x3a0   : > { %v3630_v20 = vsel %vm8259_vm8, %v3424_v50, %v3629_v11  ;;  %v3222_v10 = vpack.c.bf16 %v3075_v31, %v3075_v31  ;;  %v2965_v43 = vadd.f32 %v2964_v46, %v2876_v3  ;;  %v4603_v22 = vadd.f32 %v4602_v21, %v9479_v54  ;;  %v9518_v58 = vld [vmem:[#allocation3 + $0x84] sm:$0xff]   ;;  %v9521_v24 = vpop.f32.mrf.mxu1 }
 0x3a1   : > { %v7778_v59 = vld [vmem:[#allocation3 + $0x84] sm:$0xf0]  ;;  %3631 = vst [vmem:[#allocation3 + $0x90] sm:$0xf] %v3630_v20  ;;  %v3711_v42 = vld [vmem:[#allocation3 + $0x8c] sm:$0x1]  ;;  %v2878_v46 = vadd.f32 %v9292_v29, %v9301_v23  ;;  %4557 = vmatmul.bf16.gmra.mxu1 %v9518_v58 }
 0x3a2   : > { %v3427_v44 = vshrl.u32 %v3222_v10, 16  ;;  %v3008_v40 = vadd.f32 %v2965_v43, %v10724_v8  ;;  %4938 = vmatmul.bf16.gmra.mxu0 %v9234_v51  ;;  %v3873_v47 = vunpack.c.l.b16 %v3711_v42  ;;  %v7780_v49 = vor.u32 %v7779_v5, %v7778_v59  ;;  %v3633_v51 = vld [vmem:[#allocation3 + $0x98] sm:$0x1] }
 0x3a3   : > { %v3188_v54 = vsel %vm8232_vm4, 0, %v3187_v41  ;;  %v9526_v3 = vadd.f32 %v4691_v36, %v4603_v22  ;;  %v3430_v11 = vshll.u32 %v3222_v10, 16  ;;  %v3425_v21 = vrot.slane %v3421_v60, 4  ;;  %v10725_v10 = vld [vmem:[#allocation25_spill] sm:$0xff] }
 0x3a4   : > { %v3429_v17 = vrot.slane %v3427_v44, 7  ;;  %v3044_v50 = vadd.f32 %v9365_v39, %v3008_v40  ;;  %v3891_v31 = vpack.c.b16 %v3873_v47, %v3873_v47  ;;  %3189 = vst [vmem:[#allocation3 + $0xb0] sm:$0x1] %v3188_v54  ;;  %v4219_v5 = vrot.slane %v7780_v49, 1 }
 0x3a5   : > { %v4693_v20 = vpop.f32.mrf.mxu3  ;;  %v4033_v43 = vshll.u32 %v9518_v58, 16  ;;  %v2507_v44 = vadd.f32 %v10726_v0, %v10725_v10  ;;  %v4031_v47 = vshrl.u32 %v9518_v58, 16 }
 0x3a6   : > { %v3432_v59 = vor.u32 %v3430_v11, %v3429_v17  ;;  %v3434_v36 = vrot.slane %v3429_v17, 4  ;;  %v3076_v22 = vmax.f32 %v3044_v50, 0.0  ;;  %v4220_v42 = vrot.slane %v3891_v31, 1 }
 0x3a7   : > { %v2966_v8 = vpop.f32.mrf.mxu0  ;;  %v4604_v40 = vpop.f32.mrf.mxu2  ;;  %v4035_v29 = vrot.slane %v4033_v43, 1  ;;  %v4038_v23 = vshll.u32 %v3891_v31, 16 }
 0x3a8   : > { %v3433_v60 = vsel %vm8249_vm7, %v3425_v21, %v3432_v59  ;;  %v3634_v41 = vsel %vm8226_vm3, %v3434_v36, %v3633_v51  ;;  %v3223_v49 = vpack.c.bf16 %v3076_v22, %v3076_v22  ;;  %v2967_v54 = vadd.f32 %v2966_v8, %v2878_v46  ;;  %v9545_v31 = vpop.f32.mrf.mxu1  ;;  %v7335_v21 = vld [vmem:[#allocation9 + $0x1b0] sm:$0xff] }
 0x3a9   : > { %3632 = vst [vmem:[#allocation3 + $0x94] sm:$0xf] %v3433_v60  ;;  %v4605_v17 = vadd.f32 %v4604_v40, %v9502_v55  ;;  %v9542_v11 = vsel %vm1532_vm9, %v4219_v5, %v4220_v42  ;;  %v4036_v50 = vor.u32 %v4035_v29, %v4031_v47  ;;  %v4040_v10 = vrot.slane %v4038_v23, 1  ;;  %v3136_v55 = vld [vmem:[#allocation3 + $0xb4] sm:$0x1]  ;;  %5371 = vmatpush.bf16.msrb.mxu3 %v7335_v21 }
 0x3aa   : > { %10727 = vst [vmem:[#allocation58_spill] sm:$0xff] %v9542_v11  ;;  %v3436_v0 = vshrl.u32 %v3223_v49, 16  ;;  %v3009_v43 = vadd.f32 %v2967_v54, %v2507_v44  ;;  %4735 = vmatmul.bf16.gmra.mxu3 %v9542_v11  ;;  %v2881_v51 = vadd.f32 %v9319_v18, %v9323_v12  ;;  %v3439_v36 = vshll.u32 %v3223_v49, 16  ;;  %v3636_v44 = vld [vmem:[#allocation3 + $0x9c] sm:$0xf] }
 0x3ab   : > { %3635 = vst [vmem:[#allocation3 + $0x98] sm:$0x1] %v3634_v41  ;;  %v9550_v46 = vsel %vm1243_vm10, %v4036_v50, %v4040_v10  ;;  %v9552_v59 = vadd.f32 %v4693_v20, %v4605_v17  ;;  %v3137_v42 = vsel %vm8226_vm3, 0, %v3136_v55  ;;  %v10728_v10 = vld [vmem:[#allocation48_spill] sm:$0xff]  ;;  %v7600_v21 = vld [vmem:[#allocation3 + $0x90] sm:$0xe] }
 0x3ac   : > { %v3438_v5 = vrot.slane %v3436_v0, 7  ;;  %v3045_v22 = vadd.f32 %v9365_v39, %v3009_v43  ;;  %4646 = vmatmul.bf16.gmra.mxu2 %v9550_v46  ;;  %3138 = vst [vmem:[#allocation3 + $0xb4] sm:$0x1] %v3137_v42 }
 0x3ad   : > { %v4696_v8 = vpop.f32.mrf.mxu3 }
 0x3ae   : > { %v3441_v18 = vor.u32 %v3439_v36, %v3438_v5  ;;  %v3077_v12 = vmax.f32 %v3045_v22, 0.0  ;;  %v7290_v36 = vld [vmem:[#allocation9 + $0x48] sm:$0xff] }
 0x3af   : > { %v2969_v40 = vpop.f32.mrf.mxu0  ;;  %v4607_v47 = vpop.f32.mrf.mxu2  ;;  %5005 = vmatpush.bf16.msrb.mxu1 %v7290_v36 }
 0x3b0   : > { %v3637_v20 = vsel %vm8259_vm8, %v3441_v18, %v3636_v44  ;;  %v3224_v29 = vpack.c.bf16 %v3077_v12, %v3077_v12  ;;  %v2970_v23 = vadd.f32 %v2969_v40, %v2881_v51  ;;  %v4608_v60 = vadd.f32 %v4607_v47, %v9521_v24  ;;  %v9561_v41 = vld [vmem:[#allocation3 + $0x90] sm:$0xff]   ;;  %v9565_v43 = vpop.f32.mrf.mxu1  ;;  %v3190_v51 = vld [vmem:[#allocation3 + $0xbc] sm:$0x1] }
 0x3b1   : > { %v7599_v49 = vld [vmem:[#allocation3 + $0x90] sm:$0xf0]  ;;  %3638 = vst [vmem:[#allocation3 + $0x9c] sm:$0xf] %v3637_v20  ;;  %v4045_v17 = vshll.u32 %v9561_v41, 16  ;;  %v3191_v24 = vsel %vm8232_vm4, 0, %v3190_v51  ;;  %v2883_v47 = vadd.f32 %v9345_v9, %v9353_v33  ;;  %4562 = vmatmul.bf16.gmra.mxu1 %v9561_v41 }
 0x3b2   : > { %v3712_v54 = vld [vmem:[#allocation3 + $0x98] sm:$0x1]  ;;  %v3444_v50 = vshrl.u32 %v3224_v29, 16  ;;  %v3010_v0 = vadd.f32 %v2970_v23, %v10728_v10  ;;  %4943 = vmatmul.bf16.gmra.mxu0 %v9275_v13  ;;  %v7601_v22 = vor.u32 %v7600_v21, %v7599_v49  ;;  %v9570_v42 = vadd.f32 %v4696_v8, %v4608_v60  ;;  %3192 = vst [vmem:[#allocation3 + $0xbc] sm:$0x1] %v3191_v24 }
 0x3b3   : > { %v3874_v55 = vunpack.c.l.b16 %v3712_v54  ;;  %v3447_v18 = vshll.u32 %v3224_v29, 16  ;;  %v3442_v20 = vrot.slane %v3438_v5, 4  ;;  %v3640_v23 = vld [vmem:[#allocation3 + $0xa4] sm:$0x1]  ;;  %v4047_v49 = vrot.slane %v4045_v17, 1 }
 0x3b4   : > { %v3446_v44 = vrot.slane %v3444_v50, 7  ;;  %v3046_v12 = vadd.f32 %v9365_v39, %v3010_v0  ;;  %v10729_v50 = vld [vmem:[#allocation50_spill] sm:$0xff]  ;;  %v10730_v29 = vld [vmem:[#allocation51_spill] sm:$0xff]  ;;  %v4222_v36 = vrot.slane %v7601_v22, 1  ;;  %v4043_v24 = vshrl.u32 %v9561_v41, 16 }
 0x3b5   : > { %v3892_v40 = vpack.c.b16 %v3874_v55, %v3874_v55  ;;  %v4698_v54 = vpop.f32.mrf.mxu3  ;;  %v2512_v51 = vadd.f32 %v10730_v29, %v10729_v50 }
 0x3b6   : > { %v3449_v10 = vor.u32 %v3447_v18, %v3446_v44  ;;  %v3451_v21 = vrot.slane %v3446_v44, 4  ;;  %v3078_v8 = vmax.f32 %v3046_v12, 0.0  ;;  %v4048_v12 = vor.u32 %v4047_v49, %v4043_v24 }
 0x3b7   : > { %v4223_v60 = vrot.slane %v3892_v40, 1  ;;  %v2971_v0 = vpop.f32.mrf.mxu0  ;;  %v4609_v55 = vpop.f32.mrf.mxu2  ;;  %v4050_v11 = vshll.u32 %v3892_v40, 16  ;;  %v2886_v49 = vadd.f32 %v9371_v14, %v9377_v4 }
 0x3b8   : > { %v3450_v9 = vsel %vm8249_vm7, %v3442_v20, %v3449_v10  ;;  %v3641_v33 = vsel %vm8226_vm3, %v3451_v21, %v3640_v23  ;;  %v3225_v5 = vpack.c.bf16 %v3078_v8, %v3078_v8  ;;  %v2972_v17 = vadd.f32 %v2971_v0, %v2883_v47  ;;  %v9588_v40 = vpop.f32.mrf.mxu1  ;;  %v3139_v20 = vld [vmem:[#allocation3 + $0xc0] sm:$0x1]  ;;  %v3643_v8 = vld [vmem:[#allocation3 + $0xa8] sm:$0xf] }
 0x3b9   : > { %3639 = vst [vmem:[#allocation3 + $0xa0] sm:$0xf] %v3450_v9  ;;  %v4610_v44 = vadd.f32 %v4609_v55, %v9545_v31  ;;  %v9585_v18 = vsel %vm1532_vm9, %v4222_v36, %v4223_v60  ;;  %v4052_v50 = vrot.slane %v4050_v11, 1  ;;  %v3140_v47 = vsel %vm8226_vm3, 0, %v3139_v20  ;;  %v7782_v55 = vld [vmem:[#allocation3 + $0x9c] sm:$0xe] }
 0x3ba   : > { %3642 = vst [vmem:[#allocation3 + $0xa4] sm:$0x1] %v3641_v33  ;;  %v3453_v22 = vshrl.u32 %v3225_v5, 16  ;;  %v3011_v29 = vadd.f32 %v2972_v17, %v2512_v51  ;;  %4740 = vmatmul.bf16.gmra.mxu3 %v9585_v18  ;;  %v3456_v10 = vshll.u32 %v3225_v5, 16 }
 0x3bb   : > { %v9591_v23 = vsel %vm1243_vm10, %v4048_v12, %v4052_v50  ;;  %v9595_v31 = vadd.f32 %v4698_v54, %v4610_v44  ;;  %3141 = vst [vmem:[#allocation3 + $0xc0] sm:$0x1] %v3140_v47  ;;  %v7302_v44 = vld [vmem:[#allocation9 + $0xa8] sm:$0xff]  ;;  %v10731_v50 = vld [vmem:[#allocation49_spill] sm:$0xff]  ;;  %v3193_v47 = vld [vmem:[#allocation3 + $0xc8] sm:$0x1] }
 0x3bc   : > { %v3455_v11 = vrot.slane %v3453_v22, 7  ;;  %v3047_v21 = vadd.f32 %v9365_v39, %v3011_v29  ;;  %4651 = vmatmul.bf16.gmra.mxu2 %v9591_v23 }
 0x3bd   : > { %v4701_v60 = vpop.f32.mrf.mxu3  ;;  %5090 = vmatpush.bf16.msrb.mxu2 %v7302_v44  ;;  %v10733_v44 = vld [vmem:[#allocation54_spill] sm:$0xff] }
 0x3be   : > { %v3458_v51 = vor.u32 %v3456_v10, %v3455_v11  ;;  %v3079_v0 = vmax.f32 %v3047_v21, 0.0 }
 0x3bf   : > { %v2974_v36 = vpop.f32.mrf.mxu0  ;;  %v4612_v24 = vpop.f32.mrf.mxu2 }
 0x3c0   : > { %v3644_v54 = vsel %vm8259_vm8, %v3458_v51, %v3643_v8  ;;  %v3226_v9 = vpack.c.bf16 %v3079_v0, %v3079_v0  ;;  %v2975_v33 = vadd.f32 %v2974_v36, %v2886_v49  ;;  %v4613_v14 = vadd.f32 %v4612_v24, %v9565_v43  ;;  %v9604_v4 = vld [vmem:[#allocation3 + $0x9c] sm:$0xff]   ;;  %v9607_v29 = vpop.f32.mrf.mxu1 }
 0x3c1   : > { %v7781_v5 = vld [vmem:[#allocation3 + $0x9c] sm:$0xf0]  ;;  %3645 = vst [vmem:[#allocation3 + $0xa8] sm:$0xf] %v3644_v54  ;;  %v3713_v17 = vld [vmem:[#allocation3 + $0xa4] sm:$0x1]  ;;  %v2888_v36 = vadd.f32 %v9396_v45, %v9400_v52  ;;  %4567 = vmatmul.bf16.gmra.mxu1 %v9604_v4 }
 0x3c2   : > { %v3461_v12 = vshrl.u32 %v3226_v9, 16  ;;  %v3012_v22 = vadd.f32 %v2975_v33, %v10731_v50  ;;  %4948 = vmatmul.bf16.gmra.mxu0 %v9317_v61  ;;  %v3875_v20 = vunpack.c.l.b16 %v3713_v17  ;;  %v7783_v10 = vor.u32 %v7782_v55, %v7781_v5  ;;  %v3647_v61 = vld [vmem:[#allocation3 + $0xb0] sm:$0x1] }
 0x3c3   : > { %v3194_v43 = vsel %vm8232_vm4, 0, %v3193_v47  ;;  %v9612_v49 = vadd.f32 %v4701_v60, %v4613_v14  ;;  %v3464_v8 = vshll.u32 %v3226_v9, 16  ;;  %v3459_v24 = vrot.slane %v3455_v11, 4  ;;  %v10732_v9 = vld [vmem:[#allocation52_spill] sm:$0xff] }
 0x3c4   : > { %v3463_v21 = vrot.slane %v3461_v12, 7  ;;  %v3048_v51 = vadd.f32 %v9365_v39, %v3012_v22  ;;  %v3893_v0 = vpack.c.b16 %v3875_v20, %v3875_v20  ;;  %3195 = vst [vmem:[#allocation3 + $0xc8] sm:$0x1] %v3194_v43  ;;  %v4225_v55 = vrot.slane %v7783_v10, 1 }
 0x3c5   : > { %v4703_v54 = vpop.f32.mrf.mxu3  ;;  %v4057_v33 = vshll.u32 %v9604_v4, 16  ;;  %v2517_v12 = vadd.f32 %v10733_v44, %v10732_v9  ;;  %v4055_v20 = vshrl.u32 %v9604_v4, 16 }
 0x3c6   : > { %v3466_v5 = vor.u32 %v3464_v8, %v3463_v21  ;;  %v3468_v60 = vrot.slane %v3463_v21, 4  ;;  %v3080_v14 = vmax.f32 %v3048_v51, 0.0  ;;  %v4226_v17 = vrot.slane %v3893_v0, 1 }
 0x3c7   : > { %v2976_v50 = vpop.f32.mrf.mxu0  ;;  %v4614_v22 = vpop.f32.mrf.mxu2  ;;  %v4059_v45 = vrot.slane %v4057_v33, 1  ;;  %v4062_v52 = vshll.u32 %v3893_v0, 16 }
 0x3c8   : > { %v3467_v11 = vsel %vm8249_vm7, %v3459_v24, %v3466_v5  ;;  %v3648_v47 = vsel %vm8226_vm3, %v3468_v60, %v3647_v61  ;;  %v3227_v10 = vpack.c.bf16 %v3080_v14, %v3080_v14  ;;  %v2977_v43 = vadd.f32 %v2976_v50, %v2888_v36  ;;  %v9631_v0 = vpop.f32.mrf.mxu1  ;;  %v7334_v24 = vld [vmem:[#allocation9 + $0x1a8] sm:$0xff]  ;;  %v7289_v5 = vld [vmem:[#allocation9 + $0x40] sm:$0xff] }
 0x3c9   : > { %3646 = vst [vmem:[#allocation3 + $0xac] sm:$0xf] %v3467_v11  ;;  %v4615_v21 = vadd.f32 %v4614_v22, %v9588_v40  ;;  %v9628_v8 = vsel %vm1532_vm9, %v4225_v55, %v4226_v17  ;;  %v4060_v51 = vor.u32 %v4059_v45, %v4055_v20  ;;  %v4064_v9 = vrot.slane %v4062_v52, 1  ;;  %5372 = vmatpush.bf16.msrb.mxu3 %v7334_v24  ;;  %v3650_v17 = vld [vmem:[#allocation3 + $0xb4] sm:$0xf] }
 0x3ca   : > { %3649 = vst [vmem:[#allocation3 + $0xb0] sm:$0x1] %v3648_v47  ;;  %v3470_v44 = vshrl.u32 %v3227_v10, 16  ;;  %v3013_v33 = vadd.f32 %v2977_v43, %v2517_v12  ;;  %4745 = vmatmul.bf16.gmra.mxu3 %v9628_v8  ;;  %v2891_v40 = vadd.f32 %v9418_v32, %v9426_v63  ;;  %v3473_v60 = vshll.u32 %v3227_v10, 16  ;;  %5006 = vmatpush.bf16.msrb.mxu1 %v7289_v5 }
 0x3cb   : > { %v9634_v61 = vsel %vm1243_vm10, %v4060_v51, %v4064_v9  ;;  %v9636_v36 = vadd.f32 %v4703_v54, %v4615_v21  ;;  %v10734_v51 = vld [vmem:[#allocation53_spill] sm:$0xff] }
 0x3cc   : > { %v3472_v55 = vrot.slane %v3470_v44, 7  ;;  %v3049_v14 = vadd.f32 %v9365_v39, %v3013_v33  ;;  %4656 = vmatmul.bf16.gmra.mxu2 %v9634_v61  ;;  %v7603_v33 = vld [vmem:[#allocation3 + $0xa8] sm:$0xe] }
 0x3cd   : > { %v4706_v12 = vpop.f32.mrf.mxu3 }
 0x3ce   : > { %v3475_v50 = vor.u32 %v3473_v60, %v3472_v55  ;;  %v3081_v22 = vmax.f32 %v3049_v14, 0.0 }
 0x3cf   : > { %v2979_v20 = vpop.f32.mrf.mxu0  ;;  %v4617_v45 = vpop.f32.mrf.mxu2 }
 0x3d0   : > { %v3651_v54 = vsel %vm8259_vm8, %v3475_v50, %v3650_v17  ;;  %v3228_v52 = vpack.c.bf16 %v3081_v22, %v3081_v22  ;;  %v2980_v11 = vadd.f32 %v2979_v20, %v2891_v40  ;;  %v4618_v32 = vadd.f32 %v4617_v45, %v9607_v29  ;;  %v9645_v63 = vld [vmem:[#allocation3 + $0xa8] sm:$0xff]   ;;  %v9649_v44 = vpop.f32.mrf.mxu1  ;;  %v3654_v20 = vld [vmem:[#allocation3 + $0xbc] sm:$0x1] }
 0x3d1   : > { %v7602_v47 = vld [vmem:[#allocation3 + $0xa8] sm:$0xf0]  ;;  %3652 = vst [vmem:[#allocation3 + $0xb4] sm:$0xf] %v3651_v54  ;;  %v3714_v10 = vld [vmem:[#allocation3 + $0xb0] sm:$0x1]  ;;  %v2893_v50 = vadd.f32 %v9440_v2, %v9448_v6  ;;  %4572 = vmatmul.bf16.gmra.mxu1 %v9645_v63 }
 0x3d2   : > { %v4069_v43 = vshll.u32 %v9645_v63, 16  ;;  %v3478_v21 = vshrl.u32 %v3228_v52, 16  ;;  %v3014_v9 = vadd.f32 %v2980_v11, %v10734_v51  ;;  %4953 = vmatmul.bf16.gmra.mxu0 %v9357_v1  ;;  %v3876_v24 = vunpack.c.l.b16 %v3714_v10  ;;  %v7301_v11 = vld [vmem:[#allocation9 + $0xa0] sm:$0xff] }
 0x3d3   : > { %v7604_v5 = vor.u32 %v7603_v33, %v7602_v47  ;;  %v9652_v40 = vadd.f32 %v4706_v12, %v4618_v32  ;;  %v3481_v60 = vshll.u32 %v3228_v52, 16  ;;  %v3476_v22 = vrot.slane %v3472_v55, 4  ;;  %v7333_v51 = vld [vmem:[#allocation9 + $0x1a0] sm:$0xff]  ;;  %5091 = vmatpush.bf16.msrb.mxu2 %v7301_v11 }
 0x3d4   : > { %v3480_v29 = vrot.slane %v3478_v21, 7  ;;  %v3050_v14 = vadd.f32 %v9365_v39, %v3014_v9  ;;  %v3894_v17 = vpack.c.b16 %v3876_v24, %v3876_v24  ;;  %v4071_v54 = vrot.slane %v4069_v43, 1  ;;  %v10735_v21 = vld [vmem:[#allocation56_spill] sm:$0xff]  ;;  %5373 = vmatpush.bf16.msrb.mxu3 %v7333_v51 }
 0x3d5   : > { %v4708_v45 = vpop.f32.mrf.mxu3  ;;  %v2522_v52 = vadd.f32 %v9420_v15, %v10735_v21  ;;  %v4228_v33 = vrot.slane %v7604_v5, 1  ;;  %v4067_v2 = vshrl.u32 %v9645_v63, 16  ;;  %v3657_v21 = vld [vmem:[#allocation3 + $0xc0] sm:$0xf] }
 0x3d6   : > { %v3483_v10 = vor.u32 %v3481_v60, %v3480_v29  ;;  %v3485_v47 = vrot.slane %v3480_v29, 4  ;;  %v3082_v12 = vmax.f32 %v3050_v14, 0.0  ;;  %v4229_v32 = vrot.slane %v3894_v17, 1 }
 0x3d7   : > { %v2981_v39 = vpop.f32.mrf.mxu0  ;;  %v4619_v9 = vpop.f32.mrf.mxu2  ;;  %v4074_v6 = vshll.u32 %v3894_v17, 16  ;;  %v4072_v5 = vor.u32 %v4071_v54, %v4067_v2  ;;  %v7728_v54 = vld [vmem:[%s10462_s2] ss:$0 sm:$0xff] }
 0x3d8   : > { %v3484_v55 = vsel %vm8249_vm7, %v3476_v22, %v3483_v10  ;;  %v3655_v43 = vsel %vm8226_vm3, %v3485_v47, %v3654_v20  ;;  %v3229_v24 = vpack.c.bf16 %v3082_v12, %v3082_v12  ;;  %v2982_v29 = vadd.f32 %v2981_v39, %v2893_v50  ;;  %v9670_v51 = vpop.f32.mrf.mxu1  ;;  %v7332_v22 = vld [vmem:[#allocation9 + $0x198] sm:$0xff]  ;;  %v3145_v50 = vld [vmem:[#allocation3 + $0x8] sm:$0x1] }
 0x3d9   : > { %3653 = vst [vmem:[#allocation3 + $0xb8] sm:$0xf] %v3484_v55  ;;  %v4620_v60 = vadd.f32 %v4619_v9, %v9631_v0  ;;  %v9667_v15 = vsel %vm1532_vm9, %v4228_v33, %v4229_v32  ;;  %v4076_v14 = vrot.slane %v4074_v6, 1  ;;  %5374 = vmatpush.bf16.msrb.mxu3 %v7332_v22  ;;  %v3146_v32 = vsel %vm8232_vm4, 0, %v3145_v50  ;;  %v7300_v39 = vld [vmem:[#allocation9 + $0x98] sm:$0xff]  ;;  %v7331_v9 = vld [vmem:[#allocation9 + $0x190] sm:$0xff] }
 0x3da   : > { %3656 = vst [vmem:[#allocation3 + $0xbc] sm:$0x1] %v3655_v43  ;;  %v3487_v17 = vshrl.u32 %v3229_v24, 16  ;;  %v3015_v11 = vadd.f32 %v2982_v29, %v2522_v52  ;;  %4750 = vmatmul.bf16.gmra.mxu3 %v9667_v15  ;;  %v3490_v47 = vshll.u32 %v3229_v24, 16  ;;  %v7785_v2 = vld [vmem:[#allocation3 + $0xb4] sm:$0xe]  ;;  %5092 = vmatpush.bf16.msrb.mxu2 %v7300_v39 }
 0x3db   : > { %v9673_v20 = vsel %vm1243_vm10, %v4072_v5, %v4076_v14  ;;  %v9675_v10 = vadd.f32 %v4708_v45, %v4620_v60  ;;  %3147 = vst [vmem:[#allocation3 + $0x8] sm:$0x1] %v3146_v32 }
 0x3dc   : > { %v9677_v0 = vrot.slane %v3487_v17, 7  ;;  %v3051_v12 = vadd.f32 %v7728_v54, %v3015_v11  ;;  %4661 = vmatmul.bf16.gmra.mxu2 %v9673_v20  ;;  %v7299_v17 = vld [vmem:[#allocation9 + $0x90] sm:$0xff]  ;;  %v7330_v11 = vld [vmem:[#allocation9 + $0x188] sm:$0xff] }
 0x3dd   : > { %v4711_v52 = vpop.f32.mrf.mxu3  ;;  %5375 = vmatpush.bf16.msrb.mxu3 %v7331_v9  ;;  %v9694_v54 = vld [vmem:[#allocation3 + $0x60] sm:$0xff]  }
 0x3de   : > { %v3492_v45 = vor.u32 %v3490_v47, %v9677_v0  ;;  %v3083_v33 = vmax.f32 %v3051_v12, 0.0  ;;  %5093 = vmatpush.bf16.msrb.mxu2 %v7299_v17  ;;  %v3493_v9 = vrot.slane %v9677_v0, 4  ;;  %v7352_v17 = vld [vmem:[#allocation9 + $0x238] sm:$0xff] }
 0x3df   : > { %v4622_v6 = vpop.f32.mrf.mxu2  ;;  %v4919_v55 = vpop.f32.mrf.mxu0  ;;  %5548 = vmatpush.bf16.msra.mxu1 %v7352_v17 }
 0x3e0   : > { %v3658_v43 = vsel %vm8259_vm8, %v3492_v45, %v3657_v21  ;;  %v3230_v24 = vpack.c.bf16 %v3083_v33, %v3083_v33  ;;  %v4623_v29 = vadd.f32 %v4622_v6, %v9649_v44  ;;  %v9690_v60 = vadd.f32 %v4919_v55, %v9484_v19  ;;  %v9692_v5 = vld [vmem:[#allocation3 + $0xb4] sm:$0xff]   ;;  %v4538_v47 = vpop.f32.mrf.mxu1  ;;  %v3661_v21 = vld [vmem:[#allocation3 + $0xc8] sm:$0x1] }
 0x3e1   : > { %v7784_v14 = vld [vmem:[#allocation3 + $0xb4] sm:$0xf0]  ;;  %3659 = vst [vmem:[#allocation3 + $0xc0] sm:$0xf] %v3658_v43  ;;  %v3715_v22 = vld [vmem:[#allocation3 + $0xbc] sm:$0x1]  ;;  %5376 = vmatpush.bf16.msrb.mxu3 %v7330_v11  ;;  %4577 = vmatmul.bf16.gmra.mxu1 %v9692_v5 }
 0x3e2   : > { %v3495_v50 = vshrl.u32 %v3230_v24, 16  ;;  %4958 = vmatmul.bf16.gmra.mxu0 %v9694_v54  ;;  %v3877_v57 = vunpack.c.l.b16 %v3715_v22  ;;  %v9697_v12 = vadd.f32 %v4711_v52, %v4623_v29  ;;  %v7786_v44 = vor.u32 %v7785_v2, %v7784_v14  ;;  %v7344_v55 = vld [vmem:[#allocation9 + $0x1f8] sm:$0xff]  ;;  %v7298_v43 = vld [vmem:[#allocation9 + $0x88] sm:$0xff]  ;;  %v7329_v22 = vld [vmem:[#allocation9 + $0x180] sm:$0xff] }
 0x3e3   : > { %v3498_v32 = vshll.u32 %v3230_v24, 16  ;;  %v4081_v6 = vshll.u32 %v9692_v5, 16  ;;  %v4079_v11 = vshrl.u32 %v9692_v5, 16  ;;  %5459 = vmatpush.bf16.msra.mxu0 %v7344_v55  ;;  %5094 = vmatpush.bf16.msrb.mxu2 %v7298_v43  ;;  %v3700_v43 = vld [vmem:[#allocation3 + $0x8] sm:$0x1] }
 0x3e4   : > { %v3497_v19 = vrot.slane %v3495_v50, 7  ;;  %v3895_v39 = vpack.c.b16 %v3877_v57, %v3877_v57  ;;  %v4231_v33 = vrot.slane %v7786_v44, 1 }
 0x3e5   : > { %v4713_v45 = vpop.f32.mrf.mxu3  ;;  %v4083_v57 = vrot.slane %v4081_v6, 1  ;;  %5377 = vmatpush.bf16.msrb.mxu3 %v7329_v22 }
 0x3e6   : > { %v3500_v52 = vor.u32 %v3498_v32, %v3497_v19  ;;  %v3502_v29 = vrot.slane %v3497_v19, 4  ;;  %v4232_v2 = vrot.slane %v3895_v39, 1  ;;  %v4086_v14 = vshll.u32 %v3895_v39, 16 }
 0x3e7   : > { %v4624_v24 = vpop.f32.mrf.mxu2  ;;  %v4921_v50 = vpop.f32.mrf.mxu0  ;;  %v4084_v39 = vor.u32 %v4083_v57, %v4079_v11  ;;  %v3862_v11 = vunpack.c.l.b16 %v3700_v43 }
 0x3e8   : > { %v3501_v0 = vsel %vm8249_vm7, %v3493_v9, %v3500_v52  ;;  %v3662_v44 = vsel %vm8226_vm3, %v3502_v29, %v3661_v21  ;;  %v4625_v27 = vadd.f32 %v4624_v24, %v9670_v51  ;;  %v9709_v19 = vadd.f32 %v4921_v50, %v9509_v25  ;;  %v4540_v35 = vpop.f32.mrf.mxu1  ;;  %v7297_v9 = vld [vmem:[#allocation9 + $0x80] sm:$0xff] }
 0x3e9   : > { %3660 = vst [vmem:[#allocation3 + $0xc4] sm:$0xf] %v3501_v0  ;;  %v9712_v32 = vsel %vm1532_vm9, %v4231_v33, %v4232_v2  ;;  %v4088_v6 = vrot.slane %v4086_v14, 1  ;;  %5095 = vmatpush.bf16.msrb.mxu2 %v7297_v9  ;;  %v7606_v14 = vld [vmem:[#allocation3 + $0xc0] sm:$0xe] }
 0x3ea   : > { %10736 = vst [vmem:[#allocation26_spill] sm:$0xff] %v9712_v32  ;;  %4755 = vmatmul.bf16.gmra.mxu3 %v9712_v32  ;;  %v9715_v55 = vadd.f32 %v4713_v45, %v4625_v27 }
 0x3eb   : > { %3663 = vst [vmem:[#allocation3 + $0xc8] sm:$0x1] %v3662_v44  ;;  %v9718_v51 = vsel %vm1243_vm10, %v4084_v39, %v4088_v6 }
 0x3ec   : > { %10737 = vst [vmem:[#allocation59_spill] sm:$0xff] %v9718_v51  ;;  %4666 = vmatmul.bf16.gmra.mxu2 %v9718_v51 }
 0x3ed   : > { %v4716_v25 = vpop.f32.mrf.mxu3 }
 0x3ef   : > { %v4627_v21 = vpop.f32.mrf.mxu2  ;;  %v4924_v33 = vpop.f32.mrf.mxu0 }
 0x3f0   : > { %v4628_v22 = vadd.f32 %v4627_v21, %v4538_v47  ;;  %v9722_v52 = vadd.f32 %v4924_v33, %v9526_v3  ;;  %v9724_v29 = vld [vmem:[#allocation3 + $0xc0] sm:$0xff]   ;;  %v4543_v17 = vpop.f32.mrf.mxu1  ;;  %v3880_v33 = vpack.c.b16 %v3862_v11, %v3862_v11 }
 0x3f1   : > { %v7605_v2 = vld [vmem:[#allocation3 + $0xc0] sm:$0xf0]  ;;  %v4093_v27 = vshll.u32 %v9724_v29, 16  ;;  %4582 = vmatmul.bf16.gmra.mxu1 %v9724_v29  ;;  %v4091_v28 = vshrl.u32 %v9724_v29, 16 }
 0x3f2   : > { %v3716_v45 = vld [vmem:[#allocation3 + $0xc8] sm:$0x1]  ;;  %4963 = vmatmul.bf16.gmra.mxu0 %v9436_v37  ;;  %v7607_v50 = vor.u32 %v7606_v14, %v7605_v2  ;;  %v9728_v57 = vadd.f32 %v4716_v25, %v4628_v22  ;;  %v7730_v47 = vld [vmem:[#allocation3] sm:$0xff]  }
 0x3f3   : > { %v3878_v24 = vunpack.c.l.b16 %v3716_v45  ;;  %v3901_v44 = vshll.u32 %v7730_v47, 16  ;;  %v4095_v39 = vrot.slane %v4093_v27, 1  ;;  %v3899_v27 = vshrl.u32 %v7730_v47, 16 }
 0x3f4   : > { %v4234_v6 = vrot.slane %v7607_v50, 1  ;;  %v3906_v50 = vshll.u32 %v3880_v33, 16 }
 0x3f5   : > { %v3896_v0 = vpack.c.b16 %v3878_v24, %v3878_v24  ;;  %v4718_v3 = vpop.f32.mrf.mxu3  ;;  %v4096_v2 = vor.u32 %v4095_v39, %v4091_v28  ;;  %v3903_v14 = vrot.slane %v3901_v44, 1 }
 0x3f7   : > { %v4235_v9 = vrot.slane %v3896_v0, 1  ;;  %v4098_v21 = vshll.u32 %v3896_v0, 16  ;;  %v4629_v32 = vpop.f32.mrf.mxu2  ;;  %v4926_v51 = vpop.f32.mrf.mxu0 }
 0x3f8   : > { %v4630_v45 = vadd.f32 %v4629_v32, %v4540_v35  ;;  %v9733_v43 = vadd.f32 %v4926_v51, %v9552_v59  ;;  %v4545_v24 = vpop.f32.mrf.mxu1  ;;  %v3904_v32 = vor.u32 %v3903_v14, %v3899_v27  ;;  %v3908_v35 = vrot.slane %v3906_v50, 1  ;;  %v7581_v51 = vld [vmem:[#allocation3] sm:$0xf0]  ;;  %v7343_v14 = vld [vmem:[#allocation9 + $0x1f0] sm:$0xff] }
 0x3f9   : > { %v9736_v25 = vsel %vm1532_vm9, %v4234_v6, %v4235_v9  ;;  %v4100_v22 = vrot.slane %v4098_v21, 1  ;;  %v7582_v6 = vld [vmem:[#allocation3] sm:$0xe]  ;;  %v4187_v27 = vrot.slane %v3880_v33, 1  ;;  %v7351_v50 = vld [vmem:[#allocation9 + $0x230] sm:$0xff]  ;;  %5460 = vmatpush.bf16.msra.mxu0 %v7343_v14 }
 0x3fa   : > { %10738 = vst [vmem:[#allocation33_spill] sm:$0xff] %v9736_v25  ;;  %4760 = vmatmul.bf16.gmra.mxu3 %v9736_v25  ;;  %v9739_v11 = vadd.f32 %v4718_v3, %v4630_v45  ;;  %v7583_v39 = vor.u32 %v7582_v6, %v7581_v51  ;;  %v3909_v3 = vsel %vm1243_vm10, %v3904_v32, %v3908_v35  ;;  %v7731_v51 = vld [vmem:[#allocation3 + $0x18] sm:$0xff]  }
 0x3fb   : > { %v9742_v0 = vsel %vm1243_vm10, %v4096_v2, %v4100_v22  ;;  %5549 = vmatpush.bf16.msra.mxu1 %v7351_v50 }
 0x3fc   : > { %10739 = vst [vmem:[#allocation57_spill] sm:$0xff] %v9742_v0  ;;  %4671 = vmatmul.bf16.gmra.mxu2 %v9742_v0  ;;  %v4186_v2 = vrot.slane %v7583_v39, 1 }
 0x3fd   : > { %v4721_v59 = vpop.f32.mrf.mxu3 }
 0x3ff   : > { %v4632_v9 = vpop.f32.mrf.mxu2  ;;  %v4929_v28 = vpop.f32.mrf.mxu0 }
 0x400   : > { %v4633_v47 = vadd.f32 %v4632_v9, %v4543_v17  ;;  %v9746_v44 = vadd.f32 %v4929_v28, %v9570_v42  ;;  %v4548_v21 = vpop.f32.mrf.mxu1 }
 0x401   : > { %5007 = vmatmul.bf16.vlgmr.msrb.gmra.mxu1 %v3909_v3 }
 0x402   : > { %4968 = vmatmul.bf16.gmra.mxu0 %v9475_v48  ;;  %v9750_v45 = vadd.f32 %v4721_v59, %v4633_v47  ;;  %v4188_v48 = vsel %vm1532_vm9, %v4186_v2, %v4187_v27 }
 0x405   : > { %v4723_v22 = vpop.f32.mrf.mxu3 }
 0x407   : > { %v4634_v25 = vpop.f32.mrf.mxu2  ;;  %v4931_v0 = vpop.f32.mrf.mxu0 }
 0x408   : > { %v4635_v42 = vadd.f32 %v4634_v25, %v4545_v24  ;;  %v9753_v17 = vadd.f32 %v4931_v0, %v9595_v31  ;;  %v4550_v59 = vpop.f32.mrf.mxu1 }
 0x40a   : > { %5378 = vmatmul.bf16.vlgmr.msrb.gmra.mxu3 %v7731_v51  ;;  %v9756_v32 = vadd.f32 %v4723_v22, %v4635_v42 }
 0x40c   : > { %5096 = vmatmul.bf16.vlgmr.msrb.gmra.mxu2 %v4188_v48  ;;  %v7350_v48 = vld [vmem:[#allocation9 + $0x228] sm:$0xff] }
 0x40d   : > { %v4726_v35 = vpop.f32.mrf.mxu3  ;;  %5550 = vmatpush.bf16.msra.mxu1 %v7350_v48 }
 0x40f   : > { %v4637_v33 = vpop.f32.mrf.mxu2  ;;  %v4934_v6 = vpop.f32.mrf.mxu0 }
 0x410   : > { %v4638_v9 = vadd.f32 %v4637_v33, %v4548_v21  ;;  %v9759_v28 = vadd.f32 %v4934_v6, %v9612_v49  ;;  %v4553_v47 = vpop.f32.mrf.mxu1 }
 0x411   : > { %5012 = vmatmul.bf16.gmra.mxu1 %v9143_v53 }
 0x412   : > { %4973 = vmatmul.bf16.gmra.mxu0 %v9518_v58  ;;  %v9762_v31 = vadd.f32 %v4726_v35, %v4638_v9 }
 0x415   : > { %v4728_v25 = vpop.f32.mrf.mxu3 }
 0x417   : > { %v4639_v24 = vpop.f32.mrf.mxu2  ;;  %v4936_v0 = vpop.f32.mrf.mxu0 }
 0x418   : > { %v4640_v39 = vadd.f32 %v4639_v24, %v4550_v59  ;;  %v9766_v3 = vadd.f32 %v4936_v0, %v9636_v36  ;;  %v4555_v21 = vpop.f32.mrf.mxu1  ;;  %v7341_v0 = vld [vmem:[#allocation9 + $0x1e0] sm:$0xff] }
 0x41a   : > { %5383 = vmatmul.bf16.gmra.mxu3 %v9195_v56  ;;  %v9769_v22 = vadd.f32 %v4728_v25, %v4640_v39  ;;  %v7342_v56 = vld [vmem:[#allocation9 + $0x1e8] sm:$0xff] }
 0x41b   : > { %5461 = vmatpush.bf16.msra.mxu0 %v7342_v56 }
 0x41c   : > { %5101 = vmatmul.bf16.gmra.mxu2 %v9138_v26 }
 0x41d   : > { %v4731_v49 = vpop.f32.mrf.mxu3 }
 0x41f   : > { %v4642_v2 = vpop.f32.mrf.mxu2  ;;  %v4939_v27 = vpop.f32.mrf.mxu0  ;;  %5462 = vmatpush.bf16.msra.mxu0 %v7341_v0 }
 0x420   : > { %v4643_v14 = vadd.f32 %v4642_v2, %v4553_v47  ;;  %v9773_v50 = vadd.f32 %v4939_v27, %v9652_v40  ;;  %v4558_v53 = vpop.f32.mrf.mxu1  ;;  %v7732_v40 = vld [vmem:[#allocation3 + $0x30] sm:$0xff]  }
 0x421   : > { %5017 = vmatmul.bf16.gmra.mxu1 %v9183_v16 }
 0x422   : > { %4978 = vmatmul.bf16.gmra.mxu0 %v9561_v41  ;;  %v9776_v42 = vadd.f32 %v4731_v49, %v4643_v14  ;;  %v7340_v49 = vld [vmem:[#allocation9 + $0x1d8] sm:$0xff] }
 0x423   : > { %5463 = vmatpush.bf16.msra.mxu0 %v7340_v49 }
 0x425   : > { %v4733_v36 = vpop.f32.mrf.mxu3 }
 0x427   : > { %v4644_v51 = vpop.f32.mrf.mxu2  ;;  %v4941_v59 = vpop.f32.mrf.mxu0 }
 0x428   : > { %v4645_v26 = vadd.f32 %v4644_v51, %v4555_v21  ;;  %v9780_v35 = vadd.f32 %v4941_v59, %v9675_v10  ;;  %v4560_v33 = vpop.f32.mrf.mxu1  ;;  %v7338_v51 = vld [vmem:[#allocation9 + $0x1c8] sm:$0xff] }
 0x42a   : > { %5388 = vmatmul.bf16.gmra.mxu3 %v7732_v40  ;;  %v9782_v6 = vadd.f32 %v4733_v36, %v4645_v26 }
 0x42c   : > { %5106 = vmatmul.bf16.gmra.mxu2 %v9178_v38 }
 0x42d   : > { %v4736_v41 = vpop.f32.mrf.mxu3 }
 0x42f   : > { %v4647_v9 = vpop.f32.mrf.mxu2  ;;  %v4944_v47 = vpop.f32.mrf.mxu0 }
 0x430   : > { %v4648_v25 = vadd.f32 %v4647_v9, %v4558_v53  ;;  %v9786_v24 = vadd.f32 %v4944_v47, %v9697_v12  ;;  %v4563_v39 = vpop.f32.mrf.mxu1  ;;  %v7339_v12 = vld [vmem:[#allocation9 + $0x1d0] sm:$0xff]  ;;  %v10740_v47 = vld [vmem:[#allocation30_spill] sm:$0xff] }
 0x431   : > { %5022 = vmatmul.bf16.gmra.mxu1 %v9222_v34  ;;  %5464 = vmatpush.bf16.msra.mxu0 %v7339_v12 }
 0x432   : > { %4983 = vmatmul.bf16.gmra.mxu0 %v9604_v4  ;;  %v9789_v10 = vadd.f32 %v4736_v41, %v4648_v25  ;;  %v7349_v25 = vld [vmem:[#allocation9 + $0x220] sm:$0xff] }
 0x433   : > { %5551 = vmatpush.bf16.msra.mxu1 %v7349_v25 }
 0x435   : > { %v4738_v21 = vpop.f32.mrf.mxu3  ;;  %5465 = vmatpush.bf16.msra.mxu0 %v7338_v51 }
 0x437   : > { %v4649_v2 = vpop.f32.mrf.mxu2  ;;  %v4946_v27 = vpop.f32.mrf.mxu0 }
 0x438   : > { %v4650_v14 = vadd.f32 %v4649_v2, %v4560_v33  ;;  %v9793_v53 = vadd.f32 %v4946_v27, %v9715_v55  ;;  %v4565_v36 = vpop.f32.mrf.mxu1  ;;  %v7337_v55 = vld [vmem:[#allocation9 + $0x1c0] sm:$0xff] }
 0x439   : > { %5466 = vmatpush.bf16.msra.mxu0 %v7337_v55  ;;  %v10742_v55 = vld [vmem:[#allocation40_spill] sm:$0xff] }
 0x43a   : > { %5393 = vmatmul.bf16.gmra.mxu3 %v9275_v13  ;;  %v9796_v56 = vadd.f32 %v4738_v21, %v4650_v14  ;;  %v10741_v14 = vld [vmem:[#allocation63_spill] sm:$0xff] }
 0x43c   : > { %5111 = vmatmul.bf16.gmra.mxu2 %v9216_v30 }
 0x43d   : > { %v4741_v48 = vpop.f32.mrf.mxu3 }
 0x43f   : > { %v4652_v59 = vpop.f32.mrf.mxu2  ;;  %v4949_v26 = vpop.f32.mrf.mxu0 }
 0x440   : > { %v4653_v40 = vadd.f32 %v4652_v59, %v4563_v39  ;;  %v9800_v33 = vadd.f32 %v4949_v26, %v9728_v57  ;;  %v4568_v41 = vpop.f32.mrf.mxu1  ;;  %v7733_v57 = vld [vmem:[#allocation3 + $0x48] sm:$0xff]  }
 0x441   : > { %5027 = vmatmul.bf16.gmra.mxu1 %v10740_v47 }
 0x442   : > { %4988 = vmatmul.bf16.gmra.mxu0 %v9645_v63  ;;  %v9803_v13 = vadd.f32 %v4741_v48, %v4653_v40 }
 0x445   : > { %v4743_v9 = vpop.f32.mrf.mxu3 }
 0x447   : > { %v4654_v0 = vpop.f32.mrf.mxu2  ;;  %v4951_v21 = vpop.f32.mrf.mxu0 }
 0x448   : > { %v4655_v49 = vadd.f32 %v4654_v0, %v4565_v36  ;;  %v9807_v39 = vadd.f32 %v4951_v21, %v9739_v11  ;;  %v4570_v2 = vpop.f32.mrf.mxu1 }
 0x44a   : > { %5398 = vmatmul.bf16.gmra.mxu3 %v7733_v57  ;;  %v9809_v27 = vadd.f32 %v4743_v9, %v4655_v49 }
 0x44c   : > { %5116 = vmatmul.bf16.gmra.mxu2 %v10741_v14 }
 0x44d   : > { %v4746_v12 = vpop.f32.mrf.mxu3 }
 0x44f   : > { %v4657_v48 = vpop.f32.mrf.mxu2  ;;  %v4954_v51 = vpop.f32.mrf.mxu0 }
 0x450   : > { %v4658_v59 = vadd.f32 %v4657_v48, %v4568_v41  ;;  %v9813_v26 = vadd.f32 %v4954_v51, %v9750_v45  ;;  %v4573_v40 = vpop.f32.mrf.mxu1  ;;  %v10743_v45 = vld [vmem:[#allocation62_spill] sm:$0xff] }
 0x451   : > { %5032 = vmatmul.bf16.gmra.mxu1 %v10742_v55 }
 0x452   : > { %4993 = vmatmul.bf16.gmra.mxu0 %v9692_v5  ;;  %v9816_v36 = vadd.f32 %v4746_v12, %v4658_v59 }
 0x455   : > { %v4748_v11 = vpop.f32.mrf.mxu3 }
 0x457   : > { %v4659_v25 = vpop.f32.mrf.mxu2  ;;  %v4956_v9 = vpop.f32.mrf.mxu0 }
 0x458   : > { %v4660_v0 = vadd.f32 %v4659_v25, %v4570_v2  ;;  %v9820_v21 = vadd.f32 %v4956_v9, %v9756_v32  ;;  %v4575_v41 = vpop.f32.mrf.mxu1  ;;  %v10744_v25 = vld [vmem:[#allocation21_spill] sm:$0xff] }
 0x45a   : > { %5403 = vmatmul.bf16.gmra.mxu3 %v9357_v1  ;;  %v9823_v49 = vadd.f32 %v4748_v11, %v4660_v0  ;;  %v7348_v1 = vld [vmem:[#allocation9 + $0x218] sm:$0xff] }
 0x45b   : > { %5552 = vmatpush.bf16.msra.mxu1 %v7348_v1  ;;  %v10747_v1 = vld [vmem:[#allocation55_spill] sm:$0xff] }
 0x45c   : > { %5121 = vmatmul.bf16.gmra.mxu2 %v10743_v45 }
 0x45d   : > { %v4751_v57 = vpop.f32.mrf.mxu3 }
 0x45f   : > { %v4662_v48 = vpop.f32.mrf.mxu2  ;;  %v4959_v12 = vpop.f32.mrf.mxu0 }
 0x460   : > { %v4663_v51 = vadd.f32 %v4662_v48, %v4573_v40  ;;  %v9827_v59 = vadd.f32 %v4959_v12, %v9762_v31  ;;  %v4578_v14 = vpop.f32.mrf.mxu1  ;;  %v10745_v48 = vld [vmem:[#allocation36_spill] sm:$0xff] }
 0x461   : > { %5037 = vmatmul.bf16.gmra.mxu1 %v10744_v25 }
 0x462   : > { %5467 = vmatmul.bf16.vlgmr.msra.gmra.mxu0 %v9183_v16  ;;  %v9830_v2 = vadd.f32 %v4751_v57, %v4663_v51 }
 0x465   : > { %v4753_v32 = vpop.f32.mrf.mxu3 }
 0x467   : > { %v4664_v11 = vpop.f32.mrf.mxu2  ;;  %v4961_v9 = vpop.f32.mrf.mxu0 }
 0x468   : > { %v4665_v0 = vadd.f32 %v4664_v11, %v4575_v41  ;;  %v9834_v45 = vadd.f32 %v4961_v9, %v9769_v22  ;;  %v4580_v31 = vpop.f32.mrf.mxu1 }
 0x46a   : > { %5408 = vmatmul.bf16.gmra.mxu3 %v9694_v54  ;;  %v9837_v40 = vadd.f32 %v4753_v32, %v4665_v0  ;;  %v7360_v54 = vld [vmem:[#allocation10 + $0x38] sm:$0xff] }
 0x46b   : > { %5821 = vmatpush.bf16.msra.mxu2 %v7360_v54  ;;  %v10749_v54 = vld [vmem:[#allocation29_spill] sm:$0xff] }
 0x46c   : > { %5126 = vmatmul.bf16.gmra.mxu2 %v10745_v48 }
 0x46d   : > { %v4756_v16 = vpop.f32.mrf.mxu3 }
 0x46f   : > { %v4667_v57 = vpop.f32.mrf.mxu2  ;;  %v4964_v12 = vpop.f32.mrf.mxu0 }
 0x470   : > { %v4668_v51 = vadd.f32 %v4667_v57, %v4578_v14  ;;  %v9841_v30 = vadd.f32 %v4964_v12, %v9776_v42  ;;  %v4583_v38 = vpop.f32.mrf.mxu1  ;;  %v7384_v14 = vld [vmem:[#allocation12 + $0x38] sm:$0xff] }
 0x471   : > { %5042 = vmatmul.bf16.gmra.mxu1 %v10747_v1  ;;  %6138 = vmatpush.bf16.msra.mxu3 %v7384_v14 }
 0x472   : > { %10746 = vst [vmem:[#allocation28_spill] sm:$0xff] %v9841_v30  ;;  %5472 = vmatmul.bf16.gmra.mxu0 %v9222_v34  ;;  %v9844_v41 = vadd.f32 %v4756_v16, %v4668_v51  ;;  %v10748_v34 = vld [vmem:[#allocation20_spill] sm:$0xff] }
 0x475   : > { %v4758_v22 = vpop.f32.mrf.mxu3 }
 0x477   : > { %v4669_v32 = vpop.f32.mrf.mxu2  ;;  %v4966_v11 = vpop.f32.mrf.mxu0 }
 0x478   : > { %v4670_v9 = vadd.f32 %v4669_v32, %v4580_v31  ;;  %v9848_v0 = vadd.f32 %v4966_v11, %v9782_v6  ;;  %v4585_v42 = vpop.f32.mrf.mxu1 }
 0x47a   : > { %5413 = vmatmul.bf16.gmra.mxu3 %v9436_v37  ;;  %v9851_v57 = vadd.f32 %v4758_v22, %v4670_v9  ;;  %v7347_v22 = vld [vmem:[#allocation9 + $0x210] sm:$0xff] }
 0x47b   : > { %5553 = vmatpush.bf16.msra.mxu1 %v7347_v22 }
 0x47c   : > { %5131 = vmatmul.bf16.gmra.mxu2 %v10748_v34 }
 0x47d   : > { %v4761_v16 = vpop.f32.mrf.mxu3 }
 0x47f   : > { %v4672_v12 = vpop.f32.mrf.mxu2  ;;  %v4969_v51 = vpop.f32.mrf.mxu0 }
 0x480   : > { %v4673_v48 = vadd.f32 %v4672_v12, %v4583_v38  ;;  %v9855_v30 = vadd.f32 %v4969_v51, %v9789_v10  ;;  %v5008_v31 = vpop.f32.mrf.mxu1  ;;  %v7734_v10 = vld [vmem:[#allocation3 + $0x78] sm:$0xff]  }
 0x481   : > { %v5009_v37 = vadd.f32 %v5008_v31, %v9690_v60  ;;  %5047 = vmatmul.bf16.gmra.mxu1 %v10749_v54 }
 0x482   : > { %5477 = vmatmul.bf16.gmra.mxu0 %v10740_v47  ;;  %v9858_v6 = vadd.f32 %v4761_v16, %v4673_v48  ;;  %v10750_v48 = vld [vmem:[#allocation27_spill] sm:$0xff] }
 0x485   : > { %v4763_v38 = vpop.f32.mrf.mxu3 }
 0x487   : > { %v4674_v32 = vpop.f32.mrf.mxu2  ;;  %v4971_v11 = vpop.f32.mrf.mxu0 }
 0x488   : > { %v4675_v9 = vadd.f32 %v4674_v32, %v4585_v42  ;;  %v9863_v14 = vadd.f32 %v4971_v11, %v9796_v56  ;;  %v5010_v12 = vpop.f32.mrf.mxu1  ;;  %v10751_v32 = vld [vmem:[#allocation39_spill] sm:$0xff]  ;;  %v7359_v11 = vld [vmem:[#allocation10 + $0x30] sm:$0xff] }
 0x489   : > { %v5011_v47 = vadd.f32 %v5010_v12, %v9709_v19  ;;  %5822 = vmatpush.bf16.msra.mxu2 %v7359_v11 }
 0x48a   : > { %5418 = vmatmul.bf16.gmra.mxu3 %v7734_v10  ;;  %v9865_v51 = vadd.f32 %v4763_v38, %v4675_v9 }
 0x48c   : > { %5136 = vmatmul.bf16.gmra.mxu2 %v10750_v48 }
 0x48f   : > { %v4974_v60 = vpop.f32.mrf.mxu0  ;;  %v5097_v16 = vpop.f32.mrf.mxu2 }
 0x490   : > { %v9870_v31 = vadd.f32 %v4974_v60, %v9803_v13  ;;  %v9872_v22 = vadd.f32 %v5097_v16, %v5009_v37  ;;  %v5013_v42 = vpop.f32.mrf.mxu1  ;;  %v7383_v13 = vld [vmem:[#allocation12 + $0x30] sm:$0xff] }
 0x491   : > { %v5014_v56 = vadd.f32 %v5013_v42, %v9722_v52  ;;  %5052 = vmatmul.bf16.gmra.mxu1 %v10751_v32  ;;  %6139 = vmatpush.bf16.msra.mxu3 %v7383_v13 }
 0x492   : > { %5482 = vmatmul.bf16.gmra.mxu0 %v10742_v55  ;;  %v10752_v55 = vld [vmem:[#allocation22_spill] sm:$0xff] }
 0x497   : > { %v4976_v9 = vpop.f32.mrf.mxu0  ;;  %v5099_v38 = vpop.f32.mrf.mxu2 }
 0x498   : > { %v9878_v19 = vadd.f32 %v4976_v9, %v9809_v27  ;;  %v9880_v10 = vadd.f32 %v5099_v38, %v5011_v47  ;;  %v5015_v37 = vpop.f32.mrf.mxu1 }
 0x499   : > { %v5016_v12 = vadd.f32 %v5015_v37, %v9733_v43 }
 0x49a   : > { %5423 = vmatmul.bf16.gmra.mxu3 %v9518_v58  ;;  %v7346_v58 = vld [vmem:[#allocation9 + $0x208] sm:$0xff] }
 0x49b   : > { %5554 = vmatpush.bf16.msra.mxu1 %v7346_v58 }
 0x49c   : > { %5141 = vmatmul.bf16.gmra.mxu2 %v10752_v55 }
 0x49f   : > { %v4979_v52 = vpop.f32.mrf.mxu0  ;;  %v5102_v60 = vpop.f32.mrf.mxu2 }
 0x4a0   : > { %v9886_v16 = vadd.f32 %v4979_v52, %v9816_v36  ;;  %v9888_v42 = vadd.f32 %v5102_v60, %v5014_v56  ;;  %v5018_v27 = vpop.f32.mrf.mxu1  ;;  %v7735_v36 = vld [vmem:[#allocation3 + $0x90] sm:$0xff]  }
 0x4a1   : > { %v5019_v47 = vadd.f32 %v5018_v27, %v9746_v44  ;;  %5057 = vmatmul.bf16.gmra.mxu1 %v9505_v62 }
 0x4a2   : > { %5487 = vmatmul.bf16.gmra.mxu0 %v10744_v25 }
 0x4a7   : > { %v4981_v11 = vpop.f32.mrf.mxu0  ;;  %v5104_v43 = vpop.f32.mrf.mxu2 }
 0x4a8   : > { %v9894_v9 = vadd.f32 %v4981_v11, %v9823_v49  ;;  %v9896_v38 = vadd.f32 %v5104_v43, %v5016_v12  ;;  %v5020_v56 = vpop.f32.mrf.mxu1  ;;  %v7358_v12 = vld [vmem:[#allocation10 + $0x28] sm:$0xff] }
 0x4a9   : > { %v5021_v13 = vadd.f32 %v5020_v56, %v9753_v17  ;;  %5823 = vmatpush.bf16.msra.mxu2 %v7358_v12  ;;  %v9908_v17 = vpop.f32.mrf.mxu3 }
 0x4aa   : > { %5428 = vmatmul.bf16.gmra.mxu3 %v7735_v36 }
 0x4ac   : > { %5146 = vmatmul.bf16.gmra.mxu2 %v9499_v7 }
 0x4af   : > { %v4984_v25 = vpop.f32.mrf.mxu0  ;;  %v5107_v44 = vpop.f32.mrf.mxu2 }
 0x4b0   : > { %v9901_v37 = vadd.f32 %v4984_v25, %v9830_v2  ;;  %v9903_v52 = vadd.f32 %v5107_v44, %v5019_v47  ;;  %v5023_v60 = vpop.f32.mrf.mxu1  ;;  %v7382_v47 = vld [vmem:[#allocation12 + $0x28] sm:$0xff] }
 0x4b1   : > { %v5024_v49 = vadd.f32 %v5023_v60, %v9759_v28  ;;  %5062 = vmatmul.bf16.gmra.mxu1 %v9550_v46  ;;  %6140 = vmatpush.bf16.msra.mxu3 %v7382_v47  ;;  %v10753_v28 = vld [vmem:[#allocation58_spill] sm:$0xff] }
 0x4b2   : > { %5492 = vmatmul.bf16.gmra.mxu0 %v10747_v1 }
 0x4b7   : > { %v4986_v27 = vpop.f32.mrf.mxu0  ;;  %v5109_v58 = vpop.f32.mrf.mxu2 }
 0x4b8   : > { %v9911_v11 = vadd.f32 %v4986_v27, %v9837_v40  ;;  %v9913_v2 = vadd.f32 %v5109_v58, %v5021_v13  ;;  %v5025_v43 = vpop.f32.mrf.mxu1  ;;  %v9923_v40 = vpop.f32.mrf.mxu3 }
 0x4b9   : > { %v5026_v1 = vadd.f32 %v5025_v43, %v9766_v3  ;;  %v7345_v3 = vld [vmem:[#allocation9 + $0x200] sm:$0xff] }
 0x4ba   : > { %5433 = vmatmul.bf16.gmra.mxu3 %v9604_v4  ;;  %5555 = vmatpush.bf16.msra.mxu1 %v7345_v3 }
 0x4bc   : > { %5151 = vmatmul.bf16.gmra.mxu2 %v10753_v28 }
 0x4bf   : > { %v4989_v36 = vpop.f32.mrf.mxu0  ;;  %v5112_v56 = vpop.f32.mrf.mxu2 }
 0x4c0   : > { %v9919_v25 = vadd.f32 %v4989_v36, %v9844_v41  ;;  %v9921_v44 = vadd.f32 %v5112_v56, %v5024_v49  ;;  %v5028_v13 = vpop.f32.mrf.mxu1 }
 0x4c1   : > { %v5029_v4 = vadd.f32 %v5028_v13, %v9773_v50  ;;  %5067 = vmatmul.bf16.gmra.mxu1 %v9591_v23 }
 0x4c2   : > { %5497 = vmatmul.bf16.gmra.mxu0 %v10749_v54  ;;  %v9937_v54 = vpop.f32.mrf.mxu3 }
 0x4c7   : > { %v4991_v60 = vpop.f32.mrf.mxu0  ;;  %v5114_v12 = vpop.f32.mrf.mxu2 }
 0x4c8   : > { %v9929_v27 = vadd.f32 %v4991_v60, %v9851_v57  ;;  %v9931_v41 = vadd.f32 %v5114_v12, %v5026_v1  ;;  %v5030_v49 = vpop.f32.mrf.mxu1 }
 0x4c9   : > { %v9935_v58 = vadd.f32 %v5030_v49, %v9780_v35  ;;  %v7357_v35 = vld [vmem:[#allocation10 + $0x20] sm:$0xff] }
 0x4ca   : > { %5438 = vmatmul.bf16.gmra.mxu3 %v9645_v63  ;;  %v9948_v1 = vpop.f32.mrf.mxu3  ;;  %5824 = vmatpush.bf16.msra.mxu2 %v7357_v35  ;;  %v10756_v35 = vld [vmem:[#allocation59_spill] sm:$0xff] }
 0x4cc   : > { %5156 = vmatmul.bf16.gmra.mxu2 %v9585_v18 }
 0x4cf   : > { %v4994_v50 = vpop.f32.mrf.mxu0  ;;  %v5117_v47 = vpop.f32.mrf.mxu2 }
 0x4d0   : > { %v9941_v43 = vadd.f32 %v4994_v50, %v9858_v6  ;;  %v9943_v36 = vadd.f32 %v5117_v47, %v5029_v4  ;;  %v5033_v57 = vpop.f32.mrf.mxu1  ;;  %v7381_v6 = vld [vmem:[#allocation12 + $0x20] sm:$0xff] }
 0x4d1   : > { %v5034_v63 = vadd.f32 %v5033_v57, %v9786_v24  ;;  %5072 = vmatmul.bf16.gmra.mxu1 %v9634_v61  ;;  %6141 = vmatpush.bf16.msra.mxu3 %v7381_v6 }
 0x4d2   : > { %5502 = vmatmul.bf16.gmra.mxu0 %v10751_v32  ;;  %v9960_v60 = vpop.f32.mrf.mxu3 }
 0x4d7   : > { %v4996_v56 = vpop.f32.mrf.mxu0  ;;  %v9950_v13 = vpop.f32.mrf.mxu2 }
 0x4d8   : > { %v9953_v3 = vadd.f32 %v4996_v56, %v9865_v51  ;;  %v5035_v4 = vpop.f32.mrf.mxu1  ;;  %v7356_v56 = vld [vmem:[#allocation10 + $0x18] sm:$0xff] }
 0x4d9   : > { %v9957_v32 = vadd.f32 %v5035_v4, %v9793_v53  ;;  %5825 = vmatpush.bf16.msra.mxu2 %v7356_v56 }
 0x4da   : > { %5443 = vmatmul.bf16.gmra.mxu3 %v9692_v5  ;;  %v9969_v50 = vpop.f32.mrf.mxu3 }
 0x4dc   : > { %5161 = vmatmul.bf16.gmra.mxu2 %v9628_v8 }
 0x4df   : > { %v5122_v24 = vpop.f32.mrf.mxu2 }
 0x4e0   : > { %v9962_v12 = vadd.f32 %v5122_v24, %v5034_v63  ;;  %v5038_v49 = vpop.f32.mrf.mxu1 }
 0x4e1   : > { %v5039_v51 = vadd.f32 %v5038_v49, %v9800_v33  ;;  %5077 = vmatmul.bf16.gmra.mxu1 %v9673_v20  ;;  %v10759_v49 = vld [vmem:[#allocation26_spill] sm:$0xff] }
 0x4e2   : > { %5507 = vmatmul.bf16.gmra.mxu0 %v9505_v62 }
 0x4e7   : > { %v9967_v5 = vpop.f32.mrf.mxu2 }
 0x4e8   : > { %v5040_v53 = vpop.f32.mrf.mxu1 }
 0x4e9   : > { %v9973_v47 = vadd.f32 %v5040_v53, %v9807_v39  ;;  %v9983_v39 = vpop.f32.mrf.mxu3 }
 0x4ea   : > { %5448 = vmatmul.bf16.gmra.mxu3 %v9724_v29  ;;  %v7380_v29 = vld [vmem:[#allocation12 + $0x18] sm:$0xff] }
 0x4eb   : > { %10754 = vst [vmem:[#allocation38_spill] sm:$0xff] %v9973_v47  ;;  %6142 = vmatpush.bf16.msra.mxu3 %v7380_v29 }
 0x4ec   : > { %5166 = vmatmul.bf16.gmra.mxu2 %v9667_v15 }
 0x4ef   : > { %v5127_v57 = vpop.f32.mrf.mxu2 }
 0x4f0   : > { %v9976_v63 = vadd.f32 %v5127_v57, %v5039_v51  ;;  %v5043_v62 = vpop.f32.mrf.mxu1 }
 0x4f1   : > { %v5044_v33 = vadd.f32 %v5043_v62, %v9813_v26  ;;  %5082 = vmatmul.bf16.gmra.mxu1 %v10756_v35  ;;  %v9993_v57 = vpop.f32.mrf.mxu3  ;;  %v10761_v62 = vld [vmem:[#allocation60_spill] sm:$0xff] }
 0x4f2   : > { %10755 = vst [vmem:[#allocation32_spill] sm:$0xff] %v9976_v63  ;;  %5512 = vmatmul.bf16.gmra.mxu0 %v9550_v46 }
 0x4f7   : > { %v9981_v6 = vpop.f32.mrf.mxu2 }
 0x4f8   : > { %10757 = vst [vmem:[#allocation23_spill] sm:$0xff] %v9981_v6  ;;  %v5045_v4 = vpop.f32.mrf.mxu1 }
 0x4f9   : > { %v9986_v24 = vadd.f32 %v5045_v4, %v9820_v21  ;;  %v10001_v4 = vpop.f32.mrf.mxu3 }
 0x4fb   : > { %10758 = vst [vmem:[#allocation37_spill] sm:$0xff] %v9986_v24 }
 0x4fc   : > { %5171 = vmatmul.bf16.gmra.mxu2 %v10759_v49 }
 0x4ff   : > { %v5132_v51 = vpop.f32.mrf.mxu2 }
 0x500   : > { %v9989_v46 = vadd.f32 %v5132_v51, %v5044_v33  ;;  %v5048_v26 = vpop.f32.mrf.mxu1  ;;  %v10003_v33 = vpop.f32.mrf.mxu0 }
 0x501   : > { %v5049_v53 = vadd.f32 %v5048_v26, %v9827_v59  ;;  %5556 = vmatmul.bf16.vlgmr.msra.gmra.mxu1 %v10761_v62  ;;  %v10765_v59 = vld [vmem:[#allocation28_spill] sm:$0xff] }
 0x502   : > { %10760 = vst [vmem:[#allocation31_spill] sm:$0xff] %v9989_v46  ;;  %5517 = vmatmul.bf16.gmra.mxu0 %v9591_v23  ;;  %v10766_v46 = vld [vmem:[#allocation61_spill] sm:$0xff]  ;;  %v7355_v62 = vld [vmem:[#allocation10 + $0x10] sm:$0xff] }
 0x503   : > { %5826 = vmatpush.bf16.msra.mxu2 %v7355_v62 }
 0x507   : > { %v9996_v56 = vpop.f32.mrf.mxu2 }
 0x508   : > { %10762 = vst [vmem:[#allocation35_spill] sm:$0xff] %v9996_v56  ;;  %v5050_v29 = vpop.f32.mrf.mxu1 }
 0x509   : > { %v9999_v21 = vadd.f32 %v5050_v29, %v9834_v45  ;;  %v7379_v45 = vld [vmem:[#allocation12 + $0x10] sm:$0xff]  ;;  %v10012_v29 = vpop.f32.mrf.mxu3 }
 0x50a   : > { %6143 = vmatpush.bf16.msra.mxu3 %v7379_v45 }
 0x50b   : > { %10763 = vst [vmem:[#allocation41_spill] sm:$0xff] %v9999_v21  ;;  %v10014_v21 = vpop.f32.mrf.mxu0 }
 0x50f   : > { %v5137_v24 = vpop.f32.mrf.mxu2 }
 0x510   : > { %v10005_v51 = vadd.f32 %v5137_v24, %v5049_v53  ;;  %v5053_v23 = vpop.f32.mrf.mxu1 }
 0x511   : > { %v5054_v26 = vadd.f32 %v5053_v23, %v10765_v59  ;;  %5561 = vmatmul.bf16.gmra.mxu1 %v10766_v46  ;;  %v10022_v46 = vpop.f32.mrf.mxu3 }
 0x512   : > { %10764 = vst [vmem:[#allocation34_spill] sm:$0xff] %v10005_v51  ;;  %5522 = vmatmul.bf16.gmra.mxu0 %v9634_v61 }
 0x513   : > { %v10025_v62 = vpop.f32.mrf.mxu0 }
 0x517   : > { %v10010_v56 = vpop.f32.mrf.mxu2 }
 0x518   : > { %10767 = vst [vmem:[#allocation24_spill] sm:$0xff] %v10010_v56  ;;  %v5055_v6 = vpop.f32.mrf.mxu1  ;;  %v10770_v56 = vld [vmem:[#allocation63_spill] sm:$0xff] }
 0x519   : > { %v10017_v24 = vadd.f32 %v5055_v6, %v9848_v0  ;;  %v10033_v6 = vpop.f32.mrf.mxu3 }
 0x51b   : > { %10768 = vst [vmem:[#allocation43_spill] sm:$0xff] %v10017_v24 }
 0x51f   : > { %v5142_v53 = vpop.f32.mrf.mxu2 }
 0x520   : > { %v10019_v61 = vadd.f32 %v5142_v53, %v5054_v26  ;;  %v5058_v23 = vpop.f32.mrf.mxu1  ;;  %v10035_v26 = vpop.f32.mrf.mxu0 }
 0x521   : > { %v5059_v59 = vadd.f32 %v5058_v23, %v9855_v30  ;;  %5566 = vmatmul.bf16.gmra.mxu1 %v10770_v56  ;;  %v10774_v23 = vld [vmem:[#allocation62_spill] sm:$0xff]  ;;  %v7354_v56 = vld [vmem:[#allocation10 + $0x8] sm:$0xff] }
 0x522   : > { %10769 = vst [vmem:[#allocation42_spill] sm:$0xff] %v10019_v61  ;;  %5527 = vmatmul.bf16.gmra.mxu0 %v9673_v20  ;;  %5827 = vmatpush.bf16.msra.mxu2 %v7354_v56 }
 0x527   : > { %v10028_v51 = vpop.f32.mrf.mxu2 }
 0x528   : > { %10771 = vst [vmem:[#allocation44_spill] sm:$0xff] %v10028_v51  ;;  %v5060_v45 = vpop.f32.mrf.mxu1  ;;  %v10042_v51 = vpop.f32.mrf.mxu3 }
 0x529   : > { %v10031_v0 = vadd.f32 %v5060_v45, %v9863_v14  ;;  %v10046_v14 = vpop.f32.mrf.mxu0  ;;  %v7378_v45 = vld [vmem:[#allocation12 + $0x8] sm:$0xff] }
 0x52a   : > { %6144 = vmatpush.bf16.msra.mxu3 %v7378_v45 }
 0x52b   : > { %10772 = vst [vmem:[#allocation46_spill] sm:$0xff] %v10031_v0 }
 0x52f   : > { %v5147_v53 = vpop.f32.mrf.mxu2 }
 0x530   : > { %v10037_v20 = vadd.f32 %v5147_v53, %v5059_v59  ;;  %v5063_v24 = vpop.f32.mrf.mxu1 }
 0x531   : > { %v5064_v30 = vadd.f32 %v5063_v24, %v9870_v31  ;;  %5571 = vmatmul.bf16.gmra.mxu1 %v10774_v23  ;;  %v10053_v31 = vpop.f32.mrf.mxu3  ;;  %v10055_v24 = vpop.f32.mrf.mxu0 }
 0x532   : > { %10773 = vst [vmem:[#allocation47_spill] sm:$0xff] %v10037_v20  ;;  %5532 = vmatmul.bf16.gmra.mxu0 %v10756_v35  ;;  %v10778_v20 = vld [vmem:[#allocation57_spill] sm:$0xff] }
 0x537   : > { %v10044_v61 = vpop.f32.mrf.mxu2 }
 0x538   : > { %10775 = vst [vmem:[#allocation25_spill] sm:$0xff] %v10044_v61  ;;  %v5065_v0 = vpop.f32.mrf.mxu1  ;;  %v10779_v61 = vld [vmem:[#allocation36_spill] sm:$0xff] }
 0x539   : > { %v10049_v59 = vadd.f32 %v5065_v0, %v9878_v19  ;;  %v10062_v63 = vpop.f32.mrf.mxu3 }
 0x53b   : > { %10776 = vst [vmem:[#allocation45_spill] sm:$0xff] %v10049_v59 }
 0x53f   : > { %v5152_v53 = vpop.f32.mrf.mxu2 }
 0x540   : > { %v10051_v35 = vadd.f32 %v5152_v53, %v5064_v30  ;;  %v5068_v23 = vpop.f32.mrf.mxu1 }
 0x541   : > { %v5069_v56 = vadd.f32 %v5068_v23, %v9886_v16  ;;  %5576 = vmatmul.bf16.gmra.mxu1 %v10779_v61  ;;  %v7353_v16 = vld [vmem:[#allocation10] sm:$0xff]  ;;  %v3142_v23 = vld [vmem:[#allocation3 + $0xcc] sm:$0x1] }
 0x542   : > { %10777 = vst [vmem:[#allocation48_spill] sm:$0xff] %v10051_v35  ;;  %5537 = vmatmul.bf16.gmra.mxu0 %v10778_v20  ;;  %v10070_v35 = vpop.f32.mrf.mxu3  ;;  %5828 = vmatpush.bf16.msra.mxu2 %v7353_v16  ;;  %v7377_v20 = vld [vmem:[#allocation12] sm:$0xff] }
 0x543   : > { %10783 = vst [vmem:[#allocation52_spill] sm:$0xff] %v10070_v35  ;;  %6145 = vmatpush.bf16.msra.mxu3 %v7377_v20  ;;  %v7361_v35 = vld [vmem:[%s8210_s25] sm:$0xff] }
 0x547   : > { %v10060_v47 = vpop.f32.mrf.mxu2 }
 0x548   : > { %10780 = vst [vmem:[#allocation50_spill] sm:$0xff] %v10060_v47  ;;  %v5070_v45 = vpop.f32.mrf.mxu1 }
 0x549   : > { %v10065_v19 = vadd.f32 %v5070_v45, %v9894_v9  ;;  %v3143_v9 = vsel %vm8226_vm3, 0, %v3142_v23 }
 0x54a   : > { %3144 = vst [vmem:[#allocation3 + $0xcc] sm:$0x1] %v3143_v9  ;;  %v10089_v9 = vpop.f32.mrf.mxu0 }
 0x54b   : > { %10781 = vst [vmem:[#allocation51_spill] sm:$0xff] %v10065_v19 }
 0x54f   : > { %v5157_v0 = vpop.f32.mrf.mxu2 }
 0x550   : > { %v10067_v30 = vadd.f32 %v5157_v0, %v5069_v56  ;;  %v5073_v53 = vpop.f32.mrf.mxu1  ;;  %v3196_v56 = vld [vmem:[#allocation3 + $0xd4] sm:$0x1] }
 0x551   : > { %v5074_v59 = vadd.f32 %v5073_v53, %v9901_v37  ;;  %5581 = vmatmul.bf16.gmra.mxu1 %v10748_v34  ;;  %v3197_v53 = vsel %vm8232_vm4, 0, %v3196_v56  ;;  %v10082_v34 = vpop.f32.mrf.mxu3  ;;  %v3698_v19 = vld [vmem:[#allocation3 + $0xcc] sm:$0xff]  }
 0x552   : > { %10782 = vst [vmem:[#allocation49_spill] sm:$0xff] %v10067_v30  ;;  %v10086_v30 = vld [vmem:[#allocation3 + $0xcc] sm:$0xf0]  ;;  %5453 = vmatmul.bf16.gmra.mxu3 %v3698_v19 }
 0x553   : > { %3198 = vst [vmem:[#allocation3 + $0xd4] sm:$0x1] %v3197_v53 }
 0x554   : > { %10788 = vst [vmem:[#allocation56_spill] sm:$0xff] %v10082_v34  ;;  %v10103_v34 = vpop.f32.mrf.mxu0 }
 0x557   : > { %v10073_v61 = vpop.f32.mrf.mxu2 }
 0x558   : > { %10784 = vst [vmem:[#allocation54_spill] sm:$0xff] %v10073_v61  ;;  %v5075_v45 = vpop.f32.mrf.mxu1 }
 0x559   : > { %v10078_v0 = vadd.f32 %v5075_v45, %v9911_v11  ;;  %v4105_v45 = vshll.u32 %v3698_v19, 16  ;;  %v10096_v53 = vpop.f32.mrf.mxu3 }
 0x55a   : > { %v3717_v23 = vld [vmem:[#allocation3 + $0xd4] sm:$0x1]  ;;  %10791 = vst [vmem:[#allocation21_spill] sm:$0xff] %v10096_v53 }
 0x55b   : > { %10786 = vst [vmem:[#allocation53_spill] sm:$0xff] %v10078_v0  ;;  %v3879_v11 = vunpack.c.l.b16 %v3717_v23 }
 0x55d   : > { %v10092_v56 = vpack.c.b16 %v3879_v11, %v3879_v11 }
 0x55f   : > { %v5162_v61 = vpop.f32.mrf.mxu2  ;;  %v4110_v0 = vshll.u32 %v10092_v56, 16 }
 0x560   : > { %v10084_v16 = vadd.f32 %v5162_v61, %v5074_v59  ;;  %v5078_v47 = vpop.f32.mrf.mxu1  ;;  %v4103_v59 = vshrl.u32 %v3698_v19, 16  ;;  %v4107_v61 = vrot.slane %v4105_v45, 1 }
 0x561   : > { %v5079_v20 = vadd.f32 %v5078_v47, %v9919_v25  ;;  %5586 = vmatmul.bf16.gmra.mxu1 %v10750_v48  ;;  %v4112_v23 = vrot.slane %v4110_v0, 1 }
 0x562   : > { %10789 = vst [vmem:[#allocation30_spill] sm:$0xff] %v10084_v16  ;;  %v4108_v47 = vor.u32 %v4107_v61, %v4103_v59  ;;  %6146 = vmatmul.bf16.vlgmr.msra.gmra.mxu3 %v7361_v35 }
 0x564   : > { %v4113_v48 = vsel %vm1243_vm10, %v4108_v47, %v4112_v23  ;;  %v5469_v47 = vadd.f32 %v10003_v33, %v9908_v17 }
 0x565   : > { %5542 = vmatmul.bf16.gmra.mxu0 %v4113_v48 }
 0x567   : > { %v10094_v37 = vpop.f32.mrf.mxu2 }
 0x568   : > { %10790 = vst [vmem:[#allocation40_spill] sm:$0xff] %v10094_v37  ;;  %v5080_v25 = vpop.f32.mrf.mxu1  ;;  %v10107_v37 = vpop.f32.mrf.mxu3 }
 0x569   : > { %v10100_v16 = vadd.f32 %v5080_v25, %v9929_v27 }
 0x56f   : > { %v5167_v11 = vpop.f32.mrf.mxu2 }
 0x570   : > { %v10105_v19 = vadd.f32 %v5167_v11, %v5079_v20  ;;  %v5083_v45 = vpop.f32.mrf.mxu1  ;;  %v10117_v61 = vpop.f32.mrf.mxu3 }
 0x571   : > { %v5084_v53 = vadd.f32 %v5083_v45, %v9941_v43  ;;  %5591 = vmatmul.bf16.gmra.mxu1 %v10752_v55  ;;  %v7362_v43 = vld [vmem:[%s8210_s25 + $0x8] sm:$0xff]  ;;  %v5474_v45 = vadd.f32 %v10025_v62, %v9937_v54 }
 0x572   : > { %6151 = vmatmul.bf16.gmra.mxu3 %v7362_v43 }
 0x577   : > { %v10112_v27 = vpop.f32.mrf.mxu2 }
 0x578   : > { %v5085_v0 = vpop.f32.mrf.mxu1  ;;  %v10126_v35 = vpop.f32.mrf.mxu3 }
 0x579   : > { %v10115_v59 = vadd.f32 %v5085_v0, %v9953_v3  ;;  %v5471_v3 = vadd.f32 %v10014_v21, %v9923_v40  ;;  %v10140_v0 = vpop.f32.mrf.mxu0 }
 0x57f   : > { %v5172_v25 = vpop.f32.mrf.mxu2 }
 0x580   : > { %v10119_v20 = vadd.f32 %v5172_v25, %v5084_v53  ;;  %v5557_v23 = vpop.f32.mrf.mxu1  ;;  %v10133_v53 = vld [vmem:[%s10464_s4] ss:$0 sm:$0xff]  ;;  %v10142_v25 = vpop.f32.mrf.mxu3 }
 0x581   : > { %v5558_v48 = vadd.f32 %v5557_v23, %v5469_v47  ;;  %5596 = vmatmul.bf16.gmra.mxu1 %v9499_v7  ;;  %v7363_v23 = vld [vmem:[%s8210_s25 + $0x10] sm:$0xff]  ;;  %v5490_v62 = vpop.f32.mrf.mxu0 }
 0x582   : > { %6156 = vmatmul.bf16.gmra.mxu3 %v7363_v23 }
 0x583   : > { %v5637_v55 = vadd.f32 %v5558_v48, %v9872_v22 }
 0x585   : > { %v5673_v11 = vadd.f32 %v10133_v53, %v5637_v55 }
 0x587   : > { %v5705_v40 = vmax.f32 %v5673_v11, 0.0 }
 0x588   : > { %v5559_v17 = vpop.f32.mrf.mxu1  ;;  %v10149_v55 = vpop.f32.mrf.mxu3 }
 0x589   : > { %v5560_v33 = vadd.f32 %v5559_v17, %v5471_v3 }
 0x58b   : > { %v5638_v22 = vadd.f32 %v5560_v33, %v9880_v10  ;;  %v5476_v10 = vadd.f32 %v10035_v26, %v9948_v1  ;;  %v5493_v26 = vpop.f32.mrf.mxu0 }
 0x58d   : > { %v5674_v7 = vadd.f32 %v10133_v53, %v5638_v22 }
 0x58f   : > { %v5706_v21 = vmax.f32 %v5674_v7, 0.0 }
 0x590   : > { %v5562_v47 = vpop.f32.mrf.mxu1 }
 0x591   : > { %v5737_v43 = vpack.c.bf16 %v5706_v21, %v5705_v40  ;;  %v5563_v48 = vadd.f32 %v5562_v47, %v5474_v45  ;;  %5601 = vmatmul.bf16.gmra.mxu1 %v10753_v28  ;;  %v7364_v40 = vld [vmem:[%s8210_s25 + $0x18] sm:$0xff]  ;;  %v10157_v47 = vpop.f32.mrf.mxu3 }
 0x592   : > { %6161 = vmatmul.bf16.gmra.mxu3 %v7364_v40 }
 0x593   : > { %v5639_v3 = vadd.f32 %v5563_v48, %v9888_v42  ;;  %5829 = vmatmul.bf16.vlgmr.msra.gmra.mxu2 %v5737_v43  ;;  %v5479_v42 = vadd.f32 %v10046_v14, %v9960_v60 }
 0x595   : > { %v5675_v33 = vadd.f32 %v10133_v53, %v5639_v3  ;;  %v5495_v3 = vpop.f32.mrf.mxu0 }
 0x597   : > { %v5707_v28 = vmax.f32 %v5675_v33, 0.0 }
 0x598   : > { %v5564_v54 = vpop.f32.mrf.mxu1 }
 0x599   : > { %v5565_v17 = vadd.f32 %v5564_v54, %v5476_v10  ;;  %v10165_v10 = vpop.f32.mrf.mxu3 }
 0x59b   : > { %v5640_v11 = vadd.f32 %v5565_v17, %v9896_v38  ;;  %v5481_v38 = vadd.f32 %v10055_v24, %v9969_v50 }
 0x59d   : > { %v5676_v22 = vadd.f32 %v10133_v53, %v5640_v11  ;;  %v7365_v11 = vld [vmem:[%s8210_s25 + $0x20] sm:$0xff] }
 0x59f   : > { %v5708_v7 = vmax.f32 %v5676_v22, 0.0 }
 0x5a0   : > { %v5567_v45 = vpop.f32.mrf.mxu1 }
 0x5a1   : > { %v5568_v21 = vadd.f32 %v5567_v45, %v5479_v42  ;;  %v5738_v1 = vpack.c.bf16 %v5708_v7, %v5707_v28  ;;  %5606 = vmatmul.bf16.gmra.mxu1 %v9585_v18  ;;  %v5498_v42 = vpop.f32.mrf.mxu0  ;;  %v10175_v28 = vpop.f32.mrf.mxu3 }
 0x5a2   : > { %6166 = vmatmul.bf16.gmra.mxu3 %v7365_v11 }
 0x5a3   : > { %v5641_v23 = vadd.f32 %v5568_v21, %v9903_v52  ;;  %5834 = vmatmul.bf16.gmra.mxu2 %v5738_v1  ;;  %v5484_v52 = vadd.f32 %v10089_v9, %v9983_v39 }
 0x5a5   : > { %v5677_v43 = vadd.f32 %v10133_v53, %v5641_v23  ;;  %v5489_v23 = vadd.f32 %v10140_v0, %v10001_v4 }
 0x5a7   : > { %v5709_v18 = vmax.f32 %v5677_v43, 0.0 }
 0x5a8   : > { %v5569_v60 = vpop.f32.mrf.mxu1 }
 0x5a9   : > { %v5570_v14 = vadd.f32 %v5569_v60, %v5481_v38  ;;  %v5500_v38 = vpop.f32.mrf.mxu0 }
 0x5ab   : > { %v5642_v48 = vadd.f32 %v5570_v14, %v9913_v2  ;;  %v5486_v2 = vadd.f32 %v10103_v34, %v9993_v57  ;;  %v10183_v57 = vpop.f32.mrf.mxu3 }
 0x5ad   : > { %v5678_v54 = vadd.f32 %v10133_v53, %v5642_v48  ;;  %v5120_v48 = vadd.f32 %v9950_v13, %v9935_v58 }
 0x5af   : > { %v5710_v17 = vmax.f32 %v5678_v54, 0.0 }
 0x5b0   : > { %v5572_v33 = vpop.f32.mrf.mxu1 }
 0x5b1   : > { %v5573_v22 = vadd.f32 %v5572_v33, %v5484_v52  ;;  %v5739_v50 = vpack.c.bf16 %v5710_v17, %v5709_v18  ;;  %5611 = vmatmul.bf16.gmra.mxu1 %v9628_v8  ;;  %v7366_v8 = vld [vmem:[%s8210_s25 + $0x28] sm:$0xff]  ;;  %v5503_v4 = vpop.f32.mrf.mxu0 }
 0x5b2   : > { %6171 = vmatmul.bf16.gmra.mxu3 %v7366_v8 }
 0x5b3   : > { %v5643_v24 = vadd.f32 %v5573_v22, %v9921_v44  ;;  %5839 = vmatmul.bf16.gmra.mxu2 %v5739_v50  ;;  %v10190_v0 = vpop.f32.mrf.mxu3  ;;  %v7367_v22 = vld [vmem:[%s8210_s25 + $0x30] sm:$0xff]  ;;  %v5496_v50 = vadd.f32 %v5495_v3, %v10033_v6  ;;  %v5499_v6 = vadd.f32 %v5498_v42, %v10042_v51 }
 0x5b4   : > { %v7788_v3 = vld [vmem:[#allocation3 + $0xcc] sm:$0xe] }
 0x5b5   : > { %v5679_v7 = vadd.f32 %v10133_v53, %v5643_v24 }
 0x5b7   : > { %v5711_v21 = vmax.f32 %v5679_v7, 0.0 }
 0x5b8   : > { %v5574_v39 = vpop.f32.mrf.mxu1 }
 0x5b9   : > { %v5575_v9 = vadd.f32 %v5574_v39, %v5486_v2  ;;  %v5505_v58 = vpop.f32.mrf.mxu0  ;;  %v5125_v39 = vadd.f32 %v9967_v5, %v9957_v32  ;;  %v5501_v32 = vadd.f32 %v5500_v38, %v10053_v31  ;;  %v10793_v5 = vld [vmem:[#allocation32_spill] sm:$0xff] }
 0x5bb   : > { %v5644_v45 = vadd.f32 %v5575_v9, %v9931_v41  ;;  %v5491_v41 = vadd.f32 %v5490_v62, %v10012_v29  ;;  %v5494_v29 = vadd.f32 %v5493_v26, %v10022_v46  ;;  %v10197_v13 = vpop.f32.mrf.mxu3 }
 0x5bd   : > { %v5680_v40 = vadd.f32 %v10133_v53, %v5644_v45 }
 0x5bf   : > { %v5712_v44 = vmax.f32 %v5680_v40, 0.0 }
 0x5c0   : > { %v5577_v1 = vpop.f32.mrf.mxu1 }
 0x5c1   : > { %v5740_v34 = vpack.c.bf16 %v5712_v44, %v5711_v21  ;;  %v5578_v60 = vadd.f32 %v5577_v1, %v5489_v23  ;;  %5616 = vmatmul.bf16.gmra.mxu1 %v9667_v15  ;;  %v5508_v7 = vpop.f32.mrf.mxu0  ;;  %v7368_v1 = vld [vmem:[%s8210_s25 + $0x38] sm:$0xff] }
 0x5c2   : > { %6176 = vmatmul.bf16.gmra.mxu3 %v7367_v22  ;;  %v10792_v23 = vld [vmem:[#allocation33_spill] sm:$0xff] }
 0x5c3   : > { %5844 = vmatmul.bf16.gmra.mxu2 %v5740_v34  ;;  %v5645_v14 = vadd.f32 %v5578_v60, %v9943_v36  ;;  %v10205_v45 = vpop.f32.mrf.mxu3 }
 0x5c5   : > { %v5681_v52 = vadd.f32 %v10133_v53, %v5645_v14  ;;  %v7789_v14 = vor.u32 %v7788_v3, %v10086_v30 }
 0x5c7   : > { %v5713_v17 = vmax.f32 %v5681_v52, 0.0 }
 0x5c8   : > { %v5579_v43 = vpop.f32.mrf.mxu1 }
 0x5c9   : > { %v5580_v54 = vadd.f32 %v5579_v43, %v5491_v41  ;;  %v10794_v43 = vld [vmem:[#allocation38_spill] sm:$0xff]  ;;  %v5510_v42 = vpop.f32.mrf.mxu0 }
 0x5cb   : > { %v5646_v18 = vadd.f32 %v5580_v54, %v5120_v48  ;;  %v10795_v48 = vld [vmem:[#allocation23_spill] sm:$0xff] }
 0x5cc   : > { %v5130_v51 = vadd.f32 %v10795_v48, %v10794_v43 }
 0x5cd   : > { %v5682_v15 = vadd.f32 %v10133_v53, %v5646_v18 }
 0x5cf   : > { %v5714_v33 = vmax.f32 %v5682_v15, 0.0  ;;  %v4237_v15 = vrot.slane %v7789_v14, 1  ;;  %v10801_v14 = vld [vmem:[#allocation21_spill] sm:$0xff] }
 0x5d0   : > { %v5582_v11 = vpop.f32.mrf.mxu1  ;;  %v5511_v43 = vadd.f32 %v5510_v42, %v10801_v14 }
 0x5d1   : > { %v5741_v36 = vpack.c.bf16 %v5714_v33, %v5713_v17  ;;  %v5583_v62 = vadd.f32 %v5582_v11, %v5494_v29  ;;  %5621 = vmatmul.bf16.gmra.mxu1 %v10759_v49  ;;  %v4238_v17 = vrot.slane %v10092_v56, 1  ;;  %v7369_v29 = vld [vmem:[%s8210_s25 + $0x40] sm:$0xff]  ;;  %v10796_v56 = vld [vmem:[#allocation52_spill] sm:$0xff] }
 0x5d2   : > { %6181 = vmatmul.bf16.gmra.mxu3 %v7368_v1 }
 0x5d3   : > { %5849 = vmatmul.bf16.gmra.mxu2 %v5741_v36  ;;  %v5647_v24 = vadd.f32 %v5583_v62, %v9962_v12  ;;  %v4239_v30 = vsel %vm1532_vm9, %v4237_v15, %v4238_v17  ;;  %v5504_v36 = vadd.f32 %v5503_v4, %v10062_v63  ;;  %v10803_v15 = vld [vmem:[#allocation41_spill] sm:$0xff]  ;;  %v10804_v17 = vld [vmem:[#allocation24_spill] sm:$0xff] }
 0x5d5   : > { %v5683_v46 = vadd.f32 %v10133_v53, %v5647_v24  ;;  %v10212_v60 = vpop.f32.mrf.mxu3 }
 0x5d7   : > { %v5715_v40 = vmax.f32 %v5683_v46, 0.0 }
 0x5d8   : > { %v5584_v2 = vpop.f32.mrf.mxu1 }
 0x5d9   : > { %v5585_v9 = vadd.f32 %v5584_v2, %v5496_v50  ;;  %v5513_v50 = vpop.f32.mrf.mxu0  ;;  %v5506_v2 = vadd.f32 %v5505_v58, %v10796_v56  ;;  %v10800_v58 = vld [vmem:[#allocation56_spill] sm:$0xff] }
 0x5da   : > { %v5514_v56 = vadd.f32 %v5513_v50, %v10107_v37  ;;  %v10807_v37 = vld [vmem:[#allocation44_spill] sm:$0xff] }
 0x5db   : > { %v5648_v26 = vadd.f32 %v5585_v9, %v5125_v39  ;;  %v10797_v39 = vld [vmem:[#allocation31_spill] sm:$0xff] }
 0x5dd   : > { %v5684_v49 = vadd.f32 %v10133_v53, %v5648_v26  ;;  %v10220_v11 = vpop.f32.mrf.mxu3 }
 0x5df   : > { %v5716_v21 = vmax.f32 %v5684_v49, 0.0  ;;  %v10798_v49 = vld [vmem:[#allocation37_spill] sm:$0xff] }
 0x5e0   : > { %v5587_v44 = vpop.f32.mrf.mxu1 }
 0x5e1   : > { %v5742_v12 = vpack.c.bf16 %v5716_v21, %v5715_v40  ;;  %v5588_v8 = vadd.f32 %v5587_v44, %v5499_v6  ;;  %5626 = vmatmul.bf16.gmra.mxu1 %v10792_v23  ;;  %v10799_v40 = vld [vmem:[#allocation35_spill] sm:$0xff]  ;;  %v5515_v4 = vpop.f32.mrf.mxu0 }
 0x5e2   : > { %6186 = vmatmul.bf16.gmra.mxu3 %v7369_v29  ;;  %v5135_v21 = vadd.f32 %v10799_v40, %v10798_v49  ;;  %v5516_v40 = vadd.f32 %v5515_v4, %v10117_v61 }
 0x5e3   : > { %5854 = vmatmul.bf16.gmra.mxu2 %v5742_v12  ;;  %v5649_v34 = vadd.f32 %v5588_v8, %v10793_v5  ;;  %v5509_v5 = vadd.f32 %v5508_v7, %v10800_v58 }
 0x5e5   : > { %v5685_v52 = vadd.f32 %v10133_v53, %v5649_v34  ;;  %v6147_v46 = vpop.f32.mrf.mxu3 }
 0x5e7   : > { %v5717_v38 = vmax.f32 %v5685_v52, 0.0 }
 0x5e8   : > { %v5589_v41 = vpop.f32.mrf.mxu1 }
 0x5e9   : > { %v5590_v54 = vadd.f32 %v5589_v41, %v5501_v32  ;;  %v7370_v32 = vld [vmem:[%s8210_s25 + $0x48] sm:$0xff]  ;;  %v5518_v48 = vpop.f32.mrf.mxu0 }
 0x5eb   : > { %v5650_v18 = vadd.f32 %v5590_v54, %v5130_v51  ;;  %v10802_v51 = vld [vmem:[#allocation34_spill] sm:$0xff] }
 0x5ed   : > { %v5686_v31 = vadd.f32 %v10133_v53, %v5650_v18  ;;  %v6149_v8 = vpop.f32.mrf.mxu3 }
 0x5ef   : > { %v5718_v33 = vmax.f32 %v5686_v31, 0.0  ;;  %v5140_v31 = vadd.f32 %v10804_v17, %v10803_v15  ;;  %v7372_v17 = vld [vmem:[%s8210_s25 + $0x58] sm:$0xff] }
 0x5f0   : > { %v5592_v22 = vpop.f32.mrf.mxu1 }
 0x5f1   : > { %v5743_v62 = vpack.c.bf16 %v5718_v33, %v5717_v38  ;;  %v5593_v24 = vadd.f32 %v5592_v22, %v5504_v36  ;;  %5631 = vmatmul.bf16.gmra.mxu1 %v4239_v30  ;;  %v10241_v30 = vpop.f32.mrf.mxu2 }
 0x5f2   : > { %6191 = vmatmul.bf16.gmra.mxu3 %v7370_v32 }
 0x5f3   : > { %5859 = vmatmul.bf16.gmra.mxu2 %v5743_v62  ;;  %v5651_v9 = vadd.f32 %v5593_v24, %v10797_v39  ;;  %v7371_v24 = vld [vmem:[%s8210_s25 + $0x50] sm:$0xff] }
 0x5f5   : > { %v5687_v1 = vadd.f32 %v10133_v53, %v5651_v9  ;;  %v10235_v18 = vpop.f32.mrf.mxu3 }
 0x5f7   : > { %v5719_v12 = vmax.f32 %v5687_v1, 0.0 }
 0x5f8   : > { %v5594_v26 = vpop.f32.mrf.mxu1 }
 0x5f9   : > { %v5595_v44 = vadd.f32 %v5594_v26, %v5506_v2  ;;  %v5520_v2 = vpop.f32.mrf.mxu0  ;;  %v10250_v26 = vld [vmem:[%s10466_s6] ss:$0 sm:$0xff] }
 0x5fb   : > { %v5652_v63 = vadd.f32 %v5595_v44, %v5135_v21  ;;  %v10805_v21 = vld [vmem:[#allocation42_spill] sm:$0xff] }
 0x5fd   : > { %v5688_v6 = vadd.f32 %v10133_v53, %v5652_v63  ;;  %v10243_v62 = vpop.f32.mrf.mxu3 }
 0x5ff   : > { %v5720_v3 = vmax.f32 %v5688_v6, 0.0  ;;  %v10806_v6 = vld [vmem:[#allocation43_spill] sm:$0xff] }
 0x600   : > { %v5597_v23 = vpop.f32.mrf.mxu1  ;;  %v5145_v50 = vadd.f32 %v10807_v37, %v10806_v6 }
 0x601   : > { %v5744_v34 = vpack.c.bf16 %v5720_v3, %v5719_v12  ;;  %v5598_v41 = vadd.f32 %v5597_v23, %v5509_v5  ;;  %v10261_v12 = vld [vmem:[%s10468_s8] ss:$0 sm:$0xff]  ;;  %v5523_v32 = vpop.f32.mrf.mxu0 }
 0x602   : > { %6196 = vmatmul.bf16.gmra.mxu3 %v7371_v24  ;;  %v6148_v58 = vadd.f32 %v10261_v12, %v6147_v46  ;;  %v6153_v6 = vadd.f32 %v10261_v12, %v10235_v18 }
 0x603   : > { %5864 = vmatmul.bf16.gmra.mxu2 %v5744_v34  ;;  %v5653_v54 = vadd.f32 %v5598_v41, %v10802_v51 }
 0x605   : > { %v5689_v33 = vadd.f32 %v10133_v53, %v5653_v54  ;;  %v10254_v63 = vpop.f32.mrf.mxu3  ;;  %v5519_v54 = vadd.f32 %v5518_v48, %v10126_v35  ;;  %v5521_v35 = vadd.f32 %v5520_v2, %v10142_v25 }
 0x607   : > { %v5721_v29 = vmax.f32 %v5689_v33, 0.0 }
 0x608   : > { %v5599_v52 = vpop.f32.mrf.mxu1 }
 0x609   : > { %v5600_v38 = vadd.f32 %v5599_v52, %v5511_v43 }
 0x60b   : > { %v5654_v7 = vadd.f32 %v5600_v38, %v5140_v31  ;;  %v6150_v38 = vadd.f32 %v10261_v12, %v6149_v8  ;;  %v10809_v8 = vld [vmem:[#allocation46_spill] sm:$0xff] }
 0x60d   : > { %v5690_v22 = vadd.f32 %v10133_v53, %v5654_v7  ;;  %v10269_v15 = vpop.f32.mrf.mxu3 }
 0x60f   : > { %v5722_v36 = vmax.f32 %v5690_v22, 0.0 }
 0x610   : > { %v5602_v42 = vpop.f32.mrf.mxu1 }
 0x611   : > { %v5745_v39 = vpack.c.bf16 %v5722_v36, %v5721_v29  ;;  %v5603_v9 = vadd.f32 %v5602_v42, %v5514_v56  ;;  %v5525_v29 = vpop.f32.mrf.mxu0  ;;  %v10808_v56 = vld [vmem:[#allocation47_spill] sm:$0xff] }
 0x612   : > { %6201 = vmatmul.bf16.gmra.mxu3 %v7372_v17 }
 0x613   : > { %5869 = vmatmul.bf16.gmra.mxu2 %v5745_v39  ;;  %v5655_v44 = vadd.f32 %v5603_v9, %v10805_v21 }
 0x615   : > { %v5691_v61 = vadd.f32 %v10133_v53, %v5655_v44 }
 0x616   : > { %v5830_v49 = vpop.f32.mrf.mxu2 }
 0x617   : > { %v5831_v3 = vadd.f32 %v10250_v26, %v5830_v49  ;;  %v5723_v14 = vmax.f32 %v5691_v61, 0.0  ;;  %v10275_v49 = vpop.f32.mrf.mxu3 }
 0x618   : > { %v5604_v1 = vpop.f32.mrf.mxu1 }
 0x619   : > { %v5605_v23 = vadd.f32 %v5604_v1, %v5516_v40  ;;  %v5910_v5 = vmax.f32 %v5831_v3, 0.0  ;;  %v10810_v40 = vld [vmem:[#allocation25_spill] sm:$0xff] }
 0x61a   : > { %v5150_v21 = vadd.f32 %v10810_v40, %v10809_v8 }
 0x61b   : > { %v5656_v4 = vadd.f32 %v5605_v23, %v5145_v50  ;;  %v6227_v31 = vadd.f32 %v6148_v58, %v5910_v5  ;;  %v5528_v23 = vpop.f32.mrf.mxu0  ;;  %v5524_v5 = vadd.f32 %v5523_v32, %v10149_v55  ;;  %v5526_v55 = vadd.f32 %v5525_v29, %v10157_v47 }
 0x61c   : > { %v6158_v47 = vadd.f32 %v10261_v12, %v10254_v63 }
 0x61d   : > { %v5692_v34 = vadd.f32 %v10133_v53, %v5656_v4  ;;  %v6259_v36 = vmax.f32 %v6227_v31, 0.0 }
 0x61e   : > { %v5832_v41 = vpop.f32.mrf.mxu2 }
 0x61f   : > { %v5724_v43 = vmax.f32 %v5692_v34, 0.0  ;;  %v5833_v51 = vadd.f32 %v10250_v26, %v5832_v41  ;;  %v10291_v41 = vpop.f32.mrf.mxu3 }
 0x620   : > { %v5607_v52 = vpop.f32.mrf.mxu1 }
 0x621   : > { %v5911_v33 = vmax.f32 %v5833_v51, 0.0  ;;  %v5746_v46 = vpack.c.bf16 %v5724_v43, %v5723_v14  ;;  %v5608_v22 = vadd.f32 %v5607_v52, %v5519_v54  ;;  %v7373_v14 = vld [vmem:[%s8210_s25 + $0x60] sm:$0xff]  ;;  %v6155_v51 = vadd.f32 %v10261_v12, %v10243_v62 }
 0x622   : > { %6206 = vmatmul.bf16.gmra.mxu3 %v7373_v14  ;;  %v10813_v62 = vld [vmem:[#allocation50_spill] sm:$0xff] }
 0x623   : > { %v6228_v7 = vadd.f32 %v6150_v38, %v5911_v33  ;;  %5874 = vmatmul.bf16.gmra.mxu2 %v5746_v46  ;;  %v5657_v39 = vadd.f32 %v5608_v22, %v10808_v56  ;;  %v10811_v46 = vld [vmem:[#allocation48_spill] sm:$0xff] }
 0x625   : > { %v6260_v42 = vmax.f32 %v6228_v7, 0.0  ;;  %v5693_v25 = vadd.f32 %v10133_v53, %v5657_v39 }
 0x626   : > { %v5835_v24 = vpop.f32.mrf.mxu2 }
 0x627   : > { %v7461_v48 = vpack.c.bf16 %v6260_v42, %v6259_v36  ;;  %v5836_v44 = vadd.f32 %v10250_v26, %v5835_v24  ;;  %v5725_v61 = vmax.f32 %v5693_v25, 0.0  ;;  %v10298_v36 = vpop.f32.mrf.mxu3  ;;  %v10812_v42 = vld [vmem:[#allocation45_spill] sm:$0xff]  ;;  %v5529_v25 = vadd.f32 %v5528_v23, %v10165_v10 }
 0x628   : > { %v5609_v9 = vpop.f32.mrf.mxu1  ;;  %v5155_v24 = vadd.f32 %v10813_v62, %v10812_v42 }
 0x629   : > { %7462 = vst [vmem:[%s10281_s1] sm:$0xff] %v7461_v48   ;;  %v5610_v1 = vadd.f32 %v5609_v9, %v5521_v35  ;;  %v5912_v37 = vmax.f32 %v5836_v44, 0.0  ;;  %v5530_v35 = vpop.f32.mrf.mxu0 }
 0x62a   : > { %v5531_v10 = vadd.f32 %v5530_v35, %v10175_v28  ;;  %v6163_v28 = vadd.f32 %v10261_v12, %v10275_v49 }
 0x62b   : > { %v5658_v2 = vadd.f32 %v5610_v1, %v5150_v21  ;;  %v6229_v43 = vadd.f32 %v6153_v6, %v5912_v37  ;;  %v7374_v37 = vld [vmem:[%s8210_s25 + $0x68] sm:$0xff] }
 0x62d   : > { %v5694_v50 = vadd.f32 %v10133_v53, %v5658_v2  ;;  %v6261_v31 = vmax.f32 %v6229_v43, 0.0 }
 0x62e   : > { %v5837_v3 = vpop.f32.mrf.mxu2 }
 0x62f   : > { %v5726_v4 = vmax.f32 %v5694_v50, 0.0  ;;  %v5838_v58 = vadd.f32 %v10250_v26, %v5837_v3  ;;  %v10310_v6 = vpop.f32.mrf.mxu3  ;;  %v6160_v3 = vadd.f32 %v10261_v12, %v10269_v15  ;;  %v10815_v15 = vld [vmem:[#allocation51_spill] sm:$0xff] }
 0x630   : > { %v5612_v34 = vpop.f32.mrf.mxu1 }
 0x631   : > { %v5913_v18 = vmax.f32 %v5838_v58, 0.0  ;;  %v5747_v54 = vpack.c.bf16 %v5726_v4, %v5725_v61  ;;  %v5613_v17 = vadd.f32 %v5612_v34, %v5524_v5  ;;  %v5533_v4 = vpop.f32.mrf.mxu0 }
 0x632   : > { %6211 = vmatmul.bf16.gmra.mxu3 %v7374_v37 }
 0x633   : > { %v6230_v52 = vadd.f32 %v6155_v51, %v5913_v18  ;;  %5879 = vmatmul.bf16.gmra.mxu2 %v5747_v54  ;;  %v5659_v7 = vadd.f32 %v5613_v17, %v10811_v46  ;;  %v10814_v51 = vld [vmem:[#allocation49_spill] sm:$0xff]  ;;  %v10816_v17 = vld [vmem:[#allocation54_spill] sm:$0xff] }
 0x635   : > { %v6262_v38 = vmax.f32 %v6230_v52, 0.0  ;;  %v5695_v39 = vadd.f32 %v10133_v53, %v5659_v7 }
 0x636   : > { %v5840_v33 = vpop.f32.mrf.mxu2 }
 0x637   : > { %v7466_v32 = vpack.c.bf16 %v6262_v38, %v6261_v31  ;;  %v5841_v48 = vadd.f32 %v10250_v26, %v5840_v33  ;;  %v5727_v21 = vmax.f32 %v5695_v39, 0.0  ;;  %v10317_v52 = vpop.f32.mrf.mxu3  ;;  %v5160_v31 = vadd.f32 %v10816_v17, %v10815_v15 }
 0x638   : > { %v5614_v22 = vpop.f32.mrf.mxu1 }
 0x639   : > { %7608 = vst [vmem:[%s10281_s1 + $0x8] sm:$0xff] %v7466_v32   ;;  %v5615_v56 = vadd.f32 %v5614_v22, %v5526_v55  ;;  %v5914_v29 = vmax.f32 %v5841_v48, 0.0  ;;  %v5535_v46 = vpop.f32.mrf.mxu0  ;;  %v5534_v48 = vadd.f32 %v5533_v4, %v10183_v57  ;;  %v10819_v4 = vld [vmem:[#allocation40_spill] sm:$0xff] }
 0x63a   : > { %v5536_v57 = vadd.f32 %v5535_v46, %v10190_v0  ;;  %v6168_v0 = vadd.f32 %v10261_v12, %v10298_v36 }
 0x63b   : > { %v5660_v9 = vadd.f32 %v5615_v56, %v5155_v24  ;;  %v6231_v50 = vadd.f32 %v6158_v47, %v5914_v29  ;;  %v6165_v29 = vadd.f32 %v10261_v12, %v10291_v41  ;;  %v10818_v41 = vld [vmem:[#allocation53_spill] sm:$0xff] }
 0x63d   : > { %v5696_v8 = vadd.f32 %v10133_v53, %v5660_v9  ;;  %v6263_v34 = vmax.f32 %v6231_v50, 0.0  ;;  %v7375_v9 = vld [vmem:[%s8210_s25 + $0x70] sm:$0xff]  ;;  %v10817_v50 = vld [vmem:[#allocation30_spill] sm:$0xff] }
 0x63e   : > { %v5842_v40 = vpop.f32.mrf.mxu2 }
 0x63f   : > { %v5728_v44 = vmax.f32 %v5696_v8, 0.0  ;;  %v5843_v1 = vadd.f32 %v10250_v26, %v5842_v40  ;;  %v10329_v39 = vpop.f32.mrf.mxu3 }
 0x640   : > { %v5617_v2 = vpop.f32.mrf.mxu1 }
 0x641   : > { %v5915_v61 = vmax.f32 %v5843_v1, 0.0  ;;  %v5748_v63 = vpack.c.bf16 %v5728_v44, %v5727_v21  ;;  %v5618_v5 = vadd.f32 %v5617_v2, %v5529_v25  ;;  %v5538_v2 = vpop.f32.mrf.mxu0 }
 0x642   : > { %6216 = vmatmul.bf16.gmra.mxu3 %v7375_v9  ;;  %v5539_v17 = vadd.f32 %v5538_v2, %v10197_v13 }
 0x643   : > { %v6232_v58 = vadd.f32 %v6160_v3, %v5915_v61  ;;  %5884 = vmatmul.bf16.gmra.mxu2 %v5748_v63  ;;  %v5661_v18 = vadd.f32 %v5618_v5, %v10814_v51 }
 0x645   : > { %v6264_v14 = vmax.f32 %v6232_v58, 0.0  ;;  %v5697_v55 = vadd.f32 %v10133_v53, %v5661_v18  ;;  %v5165_v58 = vadd.f32 %v10819_v4, %v10818_v41 }
 0x646   : > { %v5845_v43 = vpop.f32.mrf.mxu2 }
 0x647   : > { %v7471_v23 = vpack.c.bf16 %v6264_v14, %v6263_v34  ;;  %v5846_v38 = vadd.f32 %v10250_v26, %v5845_v43  ;;  %v5729_v62 = vmax.f32 %v5697_v55, 0.0  ;;  %v10336_v63 = vpop.f32.mrf.mxu3 }
 0x648   : > { %v5619_v54 = vpop.f32.mrf.mxu1 }
 0x649   : > { %7609 = vst [vmem:[%s10281_s1 + $0x10] sm:$0xff] %v7471_v23   ;;  %v5620_v33 = vadd.f32 %v5619_v54, %v5531_v10  ;;  %v5916_v7 = vmax.f32 %v5846_v38, 0.0 }
 0x64b   : > { %v5662_v32 = vadd.f32 %v5620_v33, %v5160_v31  ;;  %v6233_v47 = vadd.f32 %v6163_v28, %v5916_v7  ;;  %v7376_v33 = vld [vmem:[%s8210_s25 + $0x78] sm:$0xff]  ;;  %v5540_v28 = vpop.f32.mrf.mxu0 }
 0x64c   : > { %v5541_v13 = vadd.f32 %v5540_v28, %v10205_v45 }
 0x64d   : > { %v5698_v22 = vadd.f32 %v10133_v53, %v5662_v32  ;;  %v6265_v44 = vmax.f32 %v6233_v47, 0.0  ;;  %v6170_v32 = vadd.f32 %v10261_v12, %v10310_v6  ;;  %v5170_v6 = vadd.f32 %v10112_v27, %v10100_v16 }
 0x64e   : > { %v5847_v42 = vpop.f32.mrf.mxu2  ;;  %v6175_v27 = vadd.f32 %v10261_v12, %v10329_v39 }
 0x64f   : > { %v5730_v24 = vmax.f32 %v5698_v22, 0.0  ;;  %v5848_v35 = vadd.f32 %v10250_v26, %v5847_v42  ;;  %v10348_v38 = vpop.f32.mrf.mxu3 }
 0x650   : > { %v5622_v56 = vpop.f32.mrf.mxu1 }
 0x651   : > { %v5917_v8 = vmax.f32 %v5848_v35, 0.0  ;;  %v5749_v49 = vpack.c.bf16 %v5730_v24, %v5729_v62  ;;  %v5623_v21 = vadd.f32 %v5622_v56, %v5534_v48 }
 0x652   : > { %6221 = vmatmul.bf16.gmra.mxu3 %v7376_v33 }
 0x653   : > { %v6234_v40 = vadd.f32 %v6165_v29, %v5917_v8  ;;  %5889 = vmatmul.bf16.gmra.mxu2 %v5749_v49  ;;  %v5663_v3 = vadd.f32 %v5623_v21, %v10817_v50  ;;  %v5543_v8 = vpop.f32.mrf.mxu0  ;;  %v6173_v21 = vadd.f32 %v10261_v12, %v10317_v52 }
 0x655   : > { %v6266_v1 = vmax.f32 %v6234_v40, 0.0  ;;  %v5699_v14 = vadd.f32 %v10133_v53, %v5663_v3 }
 0x656   : > { %v5850_v25 = vpop.f32.mrf.mxu2 }
 0x657   : > { %v7476_v37 = vpack.c.bf16 %v6266_v1, %v6265_v44  ;;  %v5851_v5 = vadd.f32 %v10250_v26, %v5850_v25  ;;  %v5731_v18 = vmax.f32 %v5699_v14, 0.0  ;;  %v6182_v9 = vpop.f32.mrf.mxu3  ;;  %v5544_v1 = vadd.f32 %v5543_v8, %v10212_v60 }
 0x658   : > { %v5624_v61 = vpop.f32.mrf.mxu1 }
 0x659   : > { %7610 = vst [vmem:[%s10281_s1 + $0x18] sm:$0xff] %v7476_v37   ;;  %v5625_v34 = vadd.f32 %v5624_v61, %v5536_v57  ;;  %v5918_v10 = vmax.f32 %v5851_v5, 0.0 }
 0x65b   : > { %v5664_v43 = vadd.f32 %v5625_v34, %v5165_v58  ;;  %v6235_v55 = vadd.f32 %v6168_v0, %v5918_v10  ;;  %v5545_v58 = vpop.f32.mrf.mxu0  ;;  %v5175_v10 = vadd.f32 %v10241_v30, %v10115_v59  ;;  %v6180_v30 = vadd.f32 %v10261_v12, %v10348_v38 }
 0x65c   : > { %v5546_v14 = vadd.f32 %v5545_v58, %v10220_v11 }
 0x65d   : > { %v5700_v23 = vadd.f32 %v10133_v53, %v5664_v43  ;;  %v6267_v42 = vmax.f32 %v6235_v55, 0.0 }
 0x65e   : > { %v5852_v51 = vpop.f32.mrf.mxu2 }
 0x65f   : > { %v5732_v54 = vmax.f32 %v5700_v23, 0.0  ;;  %v5853_v15 = vadd.f32 %v10250_v26, %v5852_v51  ;;  %v6184_v37 = vpop.f32.mrf.mxu3 }
 0x660   : > { %v5627_v31 = vpop.f32.mrf.mxu1 }
 0x661   : > { %v5919_v46 = vmax.f32 %v5853_v15, 0.0  ;;  %v5750_v36 = vpack.c.bf16 %v5732_v54, %v5731_v18  ;;  %v5628_v22 = vadd.f32 %v5627_v31, %v5539_v17  ;;  %v6178_v54 = vadd.f32 %v10261_v12, %v10336_v63 }
 0x663   : > { %v6236_v7 = vadd.f32 %v6170_v32, %v5919_v46  ;;  %5894 = vmatmul.bf16.gmra.mxu2 %v5750_v36  ;;  %v5665_v48 = vadd.f32 %v5628_v22, %v10105_v19 }
 0x665   : > { %v6268_v62 = vmax.f32 %v6236_v7, 0.0  ;;  %v5701_v49 = vadd.f32 %v10133_v53, %v5665_v48 }
 0x666   : > { %v5855_v24 = vpop.f32.mrf.mxu2 }
 0x667   : > { %v7481_v35 = vpack.c.bf16 %v6268_v62, %v6267_v42  ;;  %v5856_v47 = vadd.f32 %v10250_v26, %v5855_v24  ;;  %v5733_v25 = vmax.f32 %v5701_v49, 0.0  ;;  %v6187_v39 = vpop.f32.mrf.mxu3  ;;  %v6183_v24 = vadd.f32 %v10261_v12, %v6182_v9 }
 0x668   : > { %v5629_v56 = vpop.f32.mrf.mxu1  ;;  %v6188_v9 = vadd.f32 %v10261_v12, %v6187_v39 }
 0x669   : > { %7611 = vst [vmem:[%s10281_s1 + $0x20] sm:$0xff] %v7481_v35   ;;  %v5630_v29 = vadd.f32 %v5629_v56, %v5541_v13  ;;  %v5920_v45 = vmax.f32 %v5856_v47, 0.0  ;;  %v6185_v56 = vadd.f32 %v10261_v12, %v6184_v37 }
 0x66b   : > { %v5666_v40 = vadd.f32 %v5630_v29, %v5170_v6  ;;  %v6237_v50 = vadd.f32 %v6173_v21, %v5920_v45 }
 0x66d   : > { %v5702_v44 = vadd.f32 %v10133_v53, %v5666_v40  ;;  %v6269_v60 = vmax.f32 %v6237_v50, 0.0 }
 0x66e   : > { %v5857_v19 = vpop.f32.mrf.mxu2 }
 0x66f   : > { %v5734_v57 = vmax.f32 %v5702_v44, 0.0  ;;  %v5858_v16 = vadd.f32 %v10250_v26, %v5857_v19  ;;  %v6189_v36 = vpop.f32.mrf.mxu3 }
 0x670   : > { %v5632_v2 = vpop.f32.mrf.mxu1 }
 0x671   : > { %v5921_v3 = vmax.f32 %v5858_v16, 0.0  ;;  %v5633_v61 = vadd.f32 %v5632_v2, %v5544_v1  ;;  %v5751_v52 = vpack.c.bf16 %v5734_v57, %v5733_v25  ;;  %v6190_v16 = vadd.f32 %v10261_v12, %v6189_v36 }
 0x673   : > { %v6238_v41 = vadd.f32 %v6175_v27, %v5921_v3  ;;  %v5667_v4 = vadd.f32 %v5633_v61, %v10119_v20  ;;  %5899 = vmatmul.bf16.gmra.mxu2 %v5751_v52 }
 0x675   : > { %v6270_v5 = vmax.f32 %v6238_v41, 0.0  ;;  %v5703_v18 = vadd.f32 %v10133_v53, %v5667_v4 }
 0x676   : > { %v5860_v34 = vpop.f32.mrf.mxu2 }
 0x677   : > { %v7486_v43 = vpack.c.bf16 %v6270_v5, %v6269_v60  ;;  %v5861_v23 = vadd.f32 %v10250_v26, %v5860_v34  ;;  %v5735_v31 = vmax.f32 %v5703_v18, 0.0  ;;  %v6192_v62 = vpop.f32.mrf.mxu3 }
 0x678   : > { %v5634_v0 = vpop.f32.mrf.mxu1  ;;  %v6193_v4 = vadd.f32 %v10261_v12, %v6192_v62 }
 0x679   : > { %7612 = vst [vmem:[%s10281_s1 + $0x28] sm:$0xff] %v7486_v43   ;;  %v5635_v51 = vadd.f32 %v5634_v0, %v5546_v14  ;;  %v5922_v15 = vmax.f32 %v5861_v23, 0.0 }
 0x67b   : > { %v5668_v20 = vadd.f32 %v5635_v51, %v5175_v10  ;;  %v6239_v59 = vadd.f32 %v6178_v54, %v5922_v15 }
 0x67d   : > { %v5704_v17 = vadd.f32 %v10133_v53, %v5668_v20  ;;  %v6271_v7 = vmax.f32 %v6239_v59, 0.0 }
 0x67e   : > { %v5862_v11 = vpop.f32.mrf.mxu2 }
 0x67f   : > { %v5736_v33 = vmax.f32 %v5704_v17, 0.0  ;;  %v5863_v55 = vadd.f32 %v10250_v26, %v5862_v11  ;;  %v6194_v40 = vpop.f32.mrf.mxu3 }
 0x680   : > { %v6195_v14 = vadd.f32 %v10261_v12, %v6194_v40 }
 0x681   : > { %v5923_v32 = vmax.f32 %v5863_v55, 0.0  ;;  %v5752_v46 = vpack.c.bf16 %v5736_v33, %v5735_v31 }
 0x683   : > { %v6240_v28 = vadd.f32 %v6180_v30, %v5923_v32  ;;  %5904 = vmatmul.bf16.gmra.mxu2 %v5752_v46 }
 0x685   : > { %v6272_v63 = vmax.f32 %v6240_v28, 0.0 }
 0x686   : > { %v5865_v22 = vpop.f32.mrf.mxu2 }
 0x687   : > { %v7491_v42 = vpack.c.bf16 %v6272_v63, %v6271_v7  ;;  %v5866_v53 = vadd.f32 %v10250_v26, %v5865_v22  ;;  %v6197_v25 = vpop.f32.mrf.mxu3 }
 0x688   : > { %v6198_v54 = vadd.f32 %v10261_v12, %v6197_v25 }
 0x689   : > { %7613 = vst [vmem:[%s10281_s1 + $0x30] sm:$0xff] %v7491_v42   ;;  %v5924_v13 = vmax.f32 %v5866_v53, 0.0 }
 0x68b   : > { %v6241_v48 = vadd.f32 %v6183_v24, %v5924_v13 }
 0x68d   : > { %v6273_v29 = vmax.f32 %v6241_v48, 0.0 }
 0x68e   : > { %v5867_v35 = vpop.f32.mrf.mxu2 }
 0x68f   : > { %v5868_v38 = vadd.f32 %v10250_v26, %v5867_v35  ;;  %v6199_v41 = vpop.f32.mrf.mxu3 }
 0x690   : > { %v6200_v55 = vadd.f32 %v10261_v12, %v6199_v41 }
 0x691   : > { %v5925_v6 = vmax.f32 %v5868_v38, 0.0 }
 0x693   : > { %v6242_v47 = vadd.f32 %v6185_v56, %v5925_v6 }
 0x695   : > { %v6274_v8 = vmax.f32 %v6242_v47, 0.0 }
 0x696   : > { %v5870_v49 = vpop.f32.mrf.mxu2 }
 0x697   : > { %v7496_v21 = vpack.c.bf16 %v6274_v8, %v6273_v29  ;;  %v5871_v45 = vadd.f32 %v10250_v26, %v5870_v49  ;;  %v6202_v39 = vpop.f32.mrf.mxu3 }
 0x698   : > { %v6203_v22 = vadd.f32 %v10261_v12, %v6202_v39 }
 0x699   : > { %7614 = vst [vmem:[%s10281_s1 + $0x38] sm:$0xff] %v7496_v21   ;;  %v5926_v44 = vmax.f32 %v5871_v45, 0.0 }
 0x69b   : > { %v6243_v57 = vadd.f32 %v6188_v9, %v5926_v44 }
 0x69d   : > { %v6275_v37 = vmax.f32 %v6243_v57, 0.0 }
 0x69e   : > { %v5872_v19 = vpop.f32.mrf.mxu2 }
 0x69f   : > { %v5873_v1 = vadd.f32 %v10250_v26, %v5872_v19  ;;  %v6204_v11 = vpop.f32.mrf.mxu3 }
 0x6a0   : > { %v6205_v13 = vadd.f32 %v10261_v12, %v6204_v11 }
 0x6a1   : > { %v5927_v27 = vmax.f32 %v5873_v1, 0.0 }
 0x6a3   : > { %v6244_v2 = vadd.f32 %v6190_v16, %v5927_v27 }
 0x6a5   : > { %v6276_v50 = vmax.f32 %v6244_v2, 0.0 }
 0x6a6   : > { %v5875_v3 = vpop.f32.mrf.mxu2 }
 0x6a7   : > { %v7501_v61 = vpack.c.bf16 %v6276_v50, %v6275_v37  ;;  %v5876_v52 = vadd.f32 %v10250_v26, %v5875_v3  ;;  %v6207_v7 = vpop.f32.mrf.mxu3 }
 0x6a8   : > { %v6208_v40 = vadd.f32 %v10261_v12, %v6207_v7 }
 0x6a9   : > { %7615 = vst [vmem:[%s10281_s1 + $0x40] sm:$0xff] %v7501_v61   ;;  %v5928_v58 = vmax.f32 %v5876_v52, 0.0 }
 0x6ab   : > { %v6245_v34 = vadd.f32 %v6193_v4, %v5928_v58 }
 0x6ad   : > { %v6277_v10 = vmax.f32 %v6245_v34, 0.0 }
 0x6ae   : > { %v5877_v60 = vpop.f32.mrf.mxu2 }
 0x6af   : > { %v5878_v5 = vadd.f32 %v10250_v26, %v5877_v60  ;;  %v6209_v38 = vpop.f32.mrf.mxu3 }
 0x6b0   : > { %v6210_v19 = vadd.f32 %v10261_v12, %v6209_v38 }
 0x6b1   : > { %v5929_v43 = vmax.f32 %v5878_v5, 0.0 }
 0x6b3   : > { %v6246_v0 = vadd.f32 %v6195_v14, %v5929_v43 }
 0x6b5   : > { %v6278_v23 = vmax.f32 %v6246_v0, 0.0 }
 0x6b6   : > { %v5880_v51 = vpop.f32.mrf.mxu2 }
 0x6b7   : > { %v7506_v18 = vpack.c.bf16 %v6278_v23, %v6277_v10  ;;  %v5881_v20 = vadd.f32 %v10250_v26, %v5880_v51  ;;  %v6212_v49 = vpop.f32.mrf.mxu3 }
 0x6b8   : > { %v6213_v3 = vadd.f32 %v10261_v12, %v6212_v49 }
 0x6b9   : > { %7616 = vst [vmem:[%s10281_s1 + $0x48] sm:$0xff] %v7506_v18   ;;  %v5930_v15 = vmax.f32 %v5881_v20, 0.0 }
 0x6bb   : > { %v6247_v33 = vadd.f32 %v6198_v54, %v5930_v15 }
 0x6bd   : > { %v6279_v32 = vmax.f32 %v6247_v33, 0.0 }
 0x6be   : > { %v5882_v17 = vpop.f32.mrf.mxu2 }
 0x6bf   : > { %v5883_v31 = vadd.f32 %v10250_v26, %v5882_v17  ;;  %v6214_v2 = vpop.f32.mrf.mxu3 }
 0x6c0   : > { %v6215_v60 = vadd.f32 %v10261_v12, %v6214_v2 }
 0x6c1   : > { %v5931_v59 = vmax.f32 %v5883_v31, 0.0 }
 0x6c3   : > { %v6248_v30 = vadd.f32 %v6200_v55, %v5931_v59 }
 0x6c5   : > { %v6280_v46 = vmax.f32 %v6248_v30, 0.0 }
 0x6c6   : > { %v5885_v36 = vpop.f32.mrf.mxu2 }
 0x6c7   : > { %v7511_v28 = vpack.c.bf16 %v6280_v46, %v6279_v32  ;;  %v5886_v63 = vadd.f32 %v10250_v26, %v5885_v36  ;;  %v6217_v4 = vpop.f32.mrf.mxu3 }
 0x6c8   : > { %v6218_v51 = vadd.f32 %v10261_v12, %v6217_v4 }
 0x6c9   : > { %7617 = vst [vmem:[%s10281_s1 + $0x50] sm:$0xff] %v7511_v28   ;;  %v5932_v42 = vmax.f32 %v5886_v63, 0.0 }
 0x6cb   : > { %v6249_v24 = vadd.f32 %v6203_v22, %v5932_v42 }
 0x6cd   : > { %v6281_v56 = vmax.f32 %v6249_v24, 0.0 }
 0x6ce   : > { %v5887_v53 = vpop.f32.mrf.mxu2 }
 0x6cf   : > { %v5888_v62 = vadd.f32 %v10250_v26, %v5887_v53  ;;  %v6219_v23 = vpop.f32.mrf.mxu3 }
 0x6d0   : > { %v6220_v17 = vadd.f32 %v10261_v12, %v6219_v23 }
 0x6d1   : > { %v5933_v35 = vmax.f32 %v5888_v62, 0.0 }
 0x6d3   : > { %v6250_v48 = vadd.f32 %v6205_v13, %v5933_v35 }
 0x6d5   : > { %v6282_v6 = vmax.f32 %v6250_v48, 0.0 }
 0x6d6   : > { %v5890_v47 = vpop.f32.mrf.mxu2 }
 0x6d7   : > { %v7516_v29 = vpack.c.bf16 %v6282_v6, %v6281_v56  ;;  %v5891_v8 = vadd.f32 %v10250_v26, %v5890_v47  ;;  %v6222_v33 = vpop.f32.mrf.mxu3 }
 0x6d8   : > { %v6223_v36 = vadd.f32 %v10261_v12, %v6222_v33 }
 0x6d9   : > { %7618 = vst [vmem:[%s10281_s1 + $0x58] sm:$0xff] %v7516_v29   ;;  %v5934_v21 = vmax.f32 %v5891_v8, 0.0 }
 0x6db   : > { %v6251_v44 = vadd.f32 %v6208_v40, %v5934_v21 }
 0x6dd   : > { %v6283_v57 = vmax.f32 %v6251_v44, 0.0 }
 0x6de   : > { %v5892_v45 = vpop.f32.mrf.mxu2 }
 0x6df   : > { %v5893_v9 = vadd.f32 %v10250_v26, %v5892_v45  ;;  %v6224_v7 = vpop.f32.mrf.mxu3 }
 0x6e0   : > { %v6225_v53 = vadd.f32 %v10261_v12, %v6224_v7 }
 0x6e1   : > { %v5935_v1 = vmax.f32 %v5893_v9, 0.0 }
 0x6e3   : > { %v6252_v25 = vadd.f32 %v6210_v19, %v5935_v1 }
 0x6e5   : > { %v6284_v16 = vmax.f32 %v6252_v25, 0.0 }
 0x6e6   : > { %v5895_v27 = vpop.f32.mrf.mxu2 }
 0x6e7   : > { %v7521_v37 = vpack.c.bf16 %v6284_v16, %v6283_v57  ;;  %v5896_v50 = vadd.f32 %v10250_v26, %v5895_v27 }
 0x6e9   : > { %7619 = vst [vmem:[%s10281_s1 + $0x60] sm:$0xff] %v7521_v37   ;;  %v5936_v61 = vmax.f32 %v5896_v50, 0.0 }
 0x6eb   : > { %v6253_v58 = vadd.f32 %v6213_v3, %v5936_v61 }
 0x6ed   : > { %v6285_v14 = vmax.f32 %v6253_v58, 0.0 }
 0x6ee   : > { %v5897_v52 = vpop.f32.mrf.mxu2 }
 0x6ef   : > { %v5898_v41 = vadd.f32 %v10250_v26, %v5897_v52 }
 0x6f1   : > { %v5937_v5 = vmax.f32 %v5898_v41, 0.0 }
 0x6f3   : > { %v6254_v34 = vadd.f32 %v6215_v60, %v5937_v5 }
 0x6f5   : > { %v6286_v43 = vmax.f32 %v6254_v34, 0.0 }
 0x6f6   : > { %v5900_v0 = vpop.f32.mrf.mxu2 }
 0x6f7   : > { %v7526_v39 = vpack.c.bf16 %v6286_v43, %v6285_v14  ;;  %v5901_v10 = vadd.f32 %v10250_v26, %v5900_v0 }
 0x6f9   : > { %7620 = vst [vmem:[%s10281_s1 + $0x68] sm:$0xff] %v7526_v39   ;;  %v5938_v18 = vmax.f32 %v5901_v10, 0.0 }
 0x6fb   : > { %v6255_v15 = vadd.f32 %v6218_v51, %v5938_v18 }
 0x6fd   : > { %v6287_v55 = vmax.f32 %v6255_v15, 0.0 }
 0x6fe   : > { %v5902_v20 = vpop.f32.mrf.mxu2 }
 0x6ff   : > { %v5903_v54 = vadd.f32 %v10250_v26, %v5902_v20 }
 0x701   : > { %v5939_v11 = vmax.f32 %v5903_v54, 0.0 }
 0x703   : > { %v6256_v31 = vadd.f32 %v6220_v17, %v5939_v11 }
 0x705   : > { %v6288_v59 = vmax.f32 %v6256_v31, 0.0 }
 0x706   : > { %v5905_v30 = vpop.f32.mrf.mxu2 }
 0x707   : > { %v7531_v32 = vpack.c.bf16 %v6288_v59, %v6287_v55  ;;  %v5906_v46 = vadd.f32 %v10250_v26, %v5905_v30 }
 0x709   : > { %7621 = vst [vmem:[%s10281_s1 + $0x70] sm:$0xff] %v7531_v32   ;;  %v5940_v28 = vmax.f32 %v5906_v46, 0.0 }
 0x70b   : > { %v6257_v42 = vadd.f32 %v6223_v36, %v5940_v28 }
 0x70d   : > { %v6289_v13 = vmax.f32 %v6257_v42, 0.0 }
 0x70e   : > { %v5907_v63 = vpop.f32.mrf.mxu2 }
 0x70f   : > { %v5908_v22 = vadd.f32 %v10250_v26, %v5907_v63 }
 0x711   : > { %v5941_v62 = vmax.f32 %v5908_v22, 0.0 }
 0x713   : > { %v6258_v24 = vadd.f32 %v6225_v53, %v5941_v62 }
 0x715   : > { %v6290_v35 = vmax.f32 %v6258_v24, 0.0 }
 0x717   : > { %v7536_v38 = vpack.c.bf16 %v6290_v35, %v6289_v13 }
 0x719   : > { %7622 = vst [vmem:[%s10281_s1 + $0x78] sm:$0xff] %v7536_v38  }
 0x71a   : > { %7967 = shalt.err (!%p7964_p10)
}
 0x71b   : > { %s8023_s24 = smov 64   ;;  %s8024_s1 = smov 4  }
 0x71c   : > { %7641 = dma.vmem_to_hbm [thread:$0]  (%p8171_p3), %s6369_s28, 2048, %s6371_s19, %s6356_s13, %s8023_s24, %s8023_s24, %s8024_s1  }
 0x71d PF: > { %s6385_s3 = sand.u32 1, %s8002_s30   ;;  %p10820_p12 = scmp.ge.s32.totalorder %s8014_s12, 2 }
 0x71e   : > { %s6386_s25 = scalar_lea.sflag [#allocation6], %s6385_s3 }
 0x71f   : > { %p7661_p13 = pnand %p10820_p12, %p8110_p6 }
 0x721   : > { %p7662_p0 = pneg %p7661_p13 }
 0x723   : > { %7997 = dma.done.wait (%p7662_p0), %s6386_s25, 2048  }
 0x724   : > { %7999 = vsyncadd (%p7662_p0), %s6386_s25, 4294965248  ;;  %p24_p5 = scmp.ge.s32.totalorder %s8161_s14, 4   ;;  %s10821_s30 = smov %s8006_s10 }
 0x725   : > { %s10822_s10 = smov %s8010_s11  ;;  %s10823_s11 = smov %s8177_s22 }
 0x726   : > { %s10824_s12 = smov %s8161_s14  ;;  %26 = sbr.rel (!%p24_p5) target bundleno = 11 (0xb), region = 125 }
 0x72b   :  { %6392 = vsyncpa [#allocation5], 1 }
 0x72c   :  { %6394 = vsyncpa [#allocation5 + $0x1], 1 }
 0x72d   :  { %6395 = vsyncpa [#allocation8], 1 }
 0x72e   :  { %6396 = vsyncpa [#allocation11], 1 }
 0x72f   :  { %6397 = vsyncpa [#allocation6], 1 }
 0x730   :  { %6399 = vsyncpa [#allocation6 + $0x1], 1 }

</bundles_post_ra>
